<compile_context>
chip_gen: v7x
topology: tpu7x:2x2x1
jax: 0.10.0
libtpu: 0.0.40
codegen_flags: <defaults>
</compile_context>

<pallas_src>
import functools

import jax
import jax.numpy as jnp
from jax.experimental import pallas as pl
from jax.experimental.pallas import tpu as pltpu

NEG_SLOPE = 0.01  # PyTorch LeakyReLU default


# ----------------------------------------------------------------------------
# In-kernel helpers (pure jnp, traced inside the Pallas kernel)
# ----------------------------------------------------------------------------
def _leaky(y):
    return jnp.where(y >= 0, y, NEG_SLOPE * y)


def _mm(a, w):
    """bf16 MXU matmul with f32 accumulation (weights are stored bf16)."""
    return jnp.dot(a.astype(w.dtype), w, preferred_element_type=jnp.float32)


def _pool_time(h, batch, t, n):
    """Kernel-2 / stride-2 / ceil-mode max pool over the time axis.

    h rows are ordered (batch, time, node); every slice below is a static,
    n(=8)-aligned row slice, so pooling is pure VPU work (no MXU selection
    matmuls, no f32 emulated dots).
    """
    t_out = (t + 1) // 2
    if t <= 1:
        return h, t
    outs = []
    for b in range(batch):
        for i in range(t_out):
            r0 = (b * t + 2 * i) * n
            r1 = (b * t + min(2 * i + 1, t - 1)) * n       # ceil mode clamp
            outs.append(jnp.maximum(h[r0:r0 + n], h[r1:r1 + n]))
    return jnp.concatenate(outs, axis=0), t_out


# ----------------------------------------------------------------------------
# The fused forward kernel (single invocation, whole batch resident in VMEM)
# ----------------------------------------------------------------------------
def _fused_forward_kernel(x_ref, last_ref, e1w, e1b, e2w, e2b,
                          gwh, gwz, gb, twh, twz, tb,
                          rw1, rb1, rw2, rb2, *rest,
                          batch, n_nodes, t0, levels, n_blocks, horizon):
    p_refs = rest[:levels]          # per-level block-diag propagation matrices
    o_ref = rest[levels]

    # ---- encoder: Linear -> LeakyReLU -> Linear -> LeakyReLU, + outer leaky ----
    x = x_ref[...]                                            # (B*T*N, F_in) f32
    h = _leaky(_mm(x, e1w[...]) + e1b[...])
    h = _leaky(_leaky(_mm(h, e2w[...]) + e2b[...]))           # (B*T*N, H) f32

    t = t0
    for lvl in range(levels):
        # TODO(synk): DenseBlock internals assumed (transform -> A_hat
        # propagate -> bias + LeakyReLU -> concat, final transition linear).
        p = p_refs[lvl][...]                                  # (B*t*N, B*t*N) bf16
        zs = []                                               # dense "concat" kept as pieces
        for j in range(n_blocks):
            # growth linear: sum of per-piece matmuls (no concat, no weight slicing)
            y = _mm(h, gwh[lvl * n_blocks + j])
            for k in range(j):
                y = y + _mm(zs[k], gwz[(lvl * n_blocks + j) * (n_blocks - 1) + k])
            # graph propagation: block-diag (I_{B*t} (x) A_hat) @ y, bf16 MXU
            z = jnp.dot(p, y.astype(p.dtype), preferred_element_type=jnp.float32)
            zs.append(_leaky(z + gb[lvl * n_blocks + j]))
        # transition linear over the (virtual) concatenation [h, z1, .., zNB]
        pre = _mm(h, twh[lvl])
        for k in range(n_blocks):
            pre = pre + _mm(zs[k], twz[lvl * n_blocks + k])
        h = _leaky(pre + tb[lvl])                             # (B*t*N, H) f32
        h, t = _pool_time(h, batch, t, n_nodes)               # temporal max pool

    # ---- readout heads (t == 1 -> rows = B*N), batched over the B*N rows ----
    last = last_ref[...]                                      # (B*N, F) f32 residual
    outs = []
    for r in range(horizon):
        y = _leaky(_mm(h, rw1[r]) + rb1[r])                   # (B*N, 2H)
        outs.append(_mm(y, rw2[r]) + rb2[r] + last)           # (B*N, F)
    o_ref[...] = jnp.concatenate(outs, axis=-1)               # single (B*N, hor*F) store


# ----------------------------------------------------------------------------
# Parameter packing (outside the kernel, not on the hot path):
#  * all per-channel linears stay un-kroned (native size), cast to bf16
#  * growth / transition weights pre-split into per-piece blocks
#  * per-level block-diagonal propagation matrices I_{B*t} (x) A_hat in bf16
# ----------------------------------------------------------------------------
def _pack_operands(params, a_hat, *, batch, time_lengths, w_dtype=jnp.bfloat16):
    levels = len(params["space"])
    n_blocks = len(params["space"][0]["growth"])
    H = params["enc2"][0].shape[1]
    G = params["space"][0]["growth"][0][0].shape[1]

    wd = lambda a: a.astype(w_dtype)
    brow = lambda v: v[None, :].astype(jnp.float32)

    ops = {}
    ops["e1w"], ops["e1b"] = wd(params["enc1"][0]), brow(params["enc1"][1])
    ops["e2w"], ops["e2b"] = wd(params["enc2"][0]), brow(params["enc2"][1])

    # growth weights: "from h" blocks and "from z_k" blocks (pre-split, padded)
    gwh, gwz, gbs = [], [], []
    for l in range(levels):
        for j in range(n_blocks):
            w, b_ = params["space"][l]["growth"][j]          # w: (H + j*G, G)
            gwh.append(w[:H])
            for k in range(max(n_blocks - 1, 1)):
                if k < j:
                    gwz.append(w[H + k * G:H + (k + 1) * G])
                else:
                    gwz.append(jnp.zeros((G, G), jnp.float32))   # never read
            gbs.append(brow(b_))
    ops["gwh"] = wd(jnp.stack(gwh))                           # (L*NB, H, G)
    ops["gwz"] = wd(jnp.stack(gwz))                           # (L*NB*(NB-1), G, G)
    ops["gb"] = jnp.stack(gbs)                                # (L*NB, 1, G) f32

    ops["twh"] = wd(jnp.stack(
        [params["space"][l]["trans"][0][:H] for l in range(levels)]))
    ops["twz"] = wd(jnp.stack(
        [params["space"][l]["trans"][0][H + k * G:H + (k + 1) * G]
         for l in range(levels) for k in range(n_blocks)]))
    ops["tb"] = jnp.stack(
        [brow(params["space"][l]["trans"][1]) for l in range(levels)])

    ops["rw1"] = wd(jnp.stack([r["l1"][0] for r in params["readout"]]))
    ops["rb1"] = jnp.stack([brow(r["l1"][1]) for r in params["readout"]])
    ops["rw2"] = wd(jnp.stack([r["l2"][0] for r in params["readout"]]))
    ops["rb2"] = jnp.stack([brow(r["l2"][1]) for r in params["readout"]])

    # per-level graph propagation: block-diagonal I_{B*t_l} (x) A_hat (bf16)
    ops["props"] = [wd(jnp.kron(jnp.eye(batch * t, dtype=jnp.float32), a_hat))
                    for t in time_lengths]
    return ops


# ----------------------------------------------------------------------------
# Forward pass wrapper (mirrors DenseGCNMaxPooled.forward)
# ----------------------------------------------------------------------------
def dense_gcn_max_pooled_forward(params, x, a_hat, *, levels=6, horizon=4):
    B, T, N, F_in = x.shape
    n_blocks = len(params["space"][0]["growth"])
    assert len(params["space"]) == levels and len(params["readout"]) == horizon

    # static temporal lengths per level (20 -> 10 -> 5 -> 3 -> 2 -> 1)
    time_lengths, t = [], T
    for _ in range(levels):
        time_lengths.append(t)
        t = (t + 1) // 2
    assert t == 1, "readout layout assumes the time axis pools down to 1"

    ops = _pack_operands(params, a_hat, batch=B, time_lengths=time_lengths)

    # row layout: one row per (batch, time, node); lanes = channels
    x_rows = x.reshape(B * T * N, F_in)
    last_rows = x[:, -1].reshape(B * N, F_in)        # residual last input timestep

    kernel = functools.partial(
        _fused_forward_kernel, batch=B, n_nodes=N, t0=T,
        levels=levels, n_blocks=n_blocks, horizon=horizon)

    vmem = pl.BlockSpec(memory_space=pltpu.MemorySpace.VMEM)  # whole array in VMEM
    inputs = (x_rows, last_rows,
              ops["e1w"], ops["e1b"], ops["e2w"], ops["e2b"],
              ops["gwh"], ops["gwz"], ops["gb"],
              ops["twh"], ops["twz"], ops["tb"],
              ops["rw1"], ops["rb1"], ops["rw2"], ops["rb2"],
              *ops["props"])

    out = pl.pallas_call(
        kernel,
        out_shape=jax.ShapeDtypeStruct((B * N, horizon * F_in), jnp.float32),
        in_specs=[vmem] * len(inputs),
        out_specs=vmem,
        # no grid: single invocation, whole (tiny) batch on one TensorCore --
        # avoids per-core duplication of the weight fetch on v7x.  For large B
        # one would reintroduce a batch-tile grid marked "parallel".
    )(*inputs)

    # rows=(b, n), lanes=(head, f)  ->  (B, horizon, N, F_in)
    return out.reshape(B, N, horizon, F_in).transpose(0, 2, 1, 3)


# ----------------------------------------------------------------------------
# Pure-JAX reference (natural layout, f32) -- used only for a sanity check
# ----------------------------------------------------------------------------
def _reference_forward(params, x, a_hat, *, levels=6, horizon=4):
    B, T, N, F_in = x.shape
    leaky = lambda v: jnp.where(v >= 0, v, NEG_SLOPE * v)
    h = leaky(x @ params["enc1"][0] + params["enc1"][1])
    h = leaky(leaky(h @ params["enc2"][0] + params["enc2"][1]))
    t = T
    for lvl in range(levels):
        cat = h
        for (w, b) in params["space"][lvl]["growth"]:
            z = jnp.einsum("mn,btnc->btmc", a_hat, cat @ w)
            cat = jnp.concatenate([cat, leaky(z + b)], axis=-1)
        wt, bt = params["space"][lvl]["trans"]
        h = leaky(cat @ wt + bt)
        t_out = (t + 1) // 2
        h = jnp.concatenate(
            [jnp.max(h[:, 2 * i:min(2 * i + 2, t)], axis=1, keepdims=True)
             for i in range(t_out)], axis=1)
        t = t_out
    last = x[:, -1:]
    outs = []
    for r in range(horizon):
        w1, b1 = params["readout"][r]["l1"]
        w2, b2 = params["readout"][r]["l2"]
        outs.append(leaky(h @ w1 + b1) @ w2 + b2 + last)
    return jnp.concatenate(outs, axis=1)


# ----------------------------------------------------------------------------
# Parameter init (deterministic, PyTorch Linear-style uniform) + graph glue
# ----------------------------------------------------------------------------
def init_linear(key, fan_in, fan_out):
    kw, kb = jax.random.split(key)
    bound = 1.0 / (fan_in ** 0.5)
    w = jax.random.uniform(kw, (fan_in, fan_out), jnp.float32, -bound, bound)
    b = jax.random.uniform(kb, (fan_out,), jnp.float32, -bound, bound)
    return w, b


def init_params(key, *, input_size, hidden, growth, n_blocks, levels, horizon,
                out_features):
    nkeys = 2 + levels * (n_blocks + 1) + horizon * 2
    k = iter(jax.random.split(key, nkeys))
    p = {}
    p["enc1"] = init_linear(next(k), input_size, hidden * 2)
    p["enc2"] = init_linear(next(k), hidden * 2, hidden)
    p["space"] = []
    for _ in range(levels):
        growth_layers = []
        c = hidden
        for _ in range(n_blocks):
            growth_layers.append(init_linear(next(k), c, growth))
            c += growth
        trans = init_linear(next(k), c, hidden)
        p["space"].append({"growth": growth_layers, "trans": trans})
    p["readout"] = []
    for _ in range(horizon):
        p["readout"].append({"l1": init_linear(next(k), hidden, hidden * 2),
                             "l2": init_linear(next(k), hidden * 2, out_features)})
    return p


def build_adjacency(n_nodes):
    """Symmetric ring graph -> GCN-normalized dense adjacency (glue, not hot path)."""
    src = jnp.arange(n_nodes)
    dst = (src + 1) % n_nodes
    edge_index = jnp.stack([jnp.concatenate([src, dst]),
                            jnp.concatenate([dst, src])])
    edge_weight = jnp.ones((edge_index.shape[1],), jnp.float32)
    A = jnp.zeros((n_nodes, n_nodes), jnp.float32)
    A = A.at[edge_index[0], edge_index[1]].add(edge_weight)
    A = A + jnp.eye(n_nodes, dtype=jnp.float32)
    d_inv_sqrt = 1.0 / jnp.sqrt(A.sum(axis=1))
    return A * d_inv_sqrt[:, None] * d_inv_sqrt[None, :]


# ----------------------------------------------------------------------------
if __name__ == "__main__":
    # Small synthetic configuration (consistent with the module's forward):
    B, T, N, F_in, H = 2, 20, 8, 8, 32
    GROWTH, N_BLOCKS, LEVELS, HORIZON = 16, 3, 6, 4

    key = jax.random.PRNGKey(0)
    kx, kp = jax.random.split(key)
    x = jax.random.normal(kx, (B, T, N, F_in), dtype=jnp.float32)
    params = init_params(kp, input_size=F_in, hidden=H, growth=GROWTH,
                         n_blocks=N_BLOCKS, levels=LEVELS, horizon=HORIZON,
                         out_features=F_in)
    a_hat = build_adjacency(N)

    fwd = jax.jit(functools.partial(dense_gcn_max_pooled_forward,
                                    levels=LEVELS, horizon=HORIZON))
    out = jax.block_until_ready(fwd(params, x, a_hat))
    assert out.shape == (B, HORIZON, N, F_in), out.shape
    assert bool(jnp.all(jnp.isfinite(out)))

    # sanity check against a pure-JAX f32 reference (loose tolerance: the
    # kernel intentionally uses bf16 matmul operands with f32 accumulation)
    ref = _reference_forward(params, x, a_hat, levels=LEVELS, horizon=HORIZON)
    err = float(jnp.max(jnp.abs(out - ref)))
    scale = float(jnp.max(jnp.abs(ref)))
    assert err <= 0.1 + 0.05 * scale, (err, scale)

    print("KERNEL_OK")
</pallas_src>

<mosaic_0001>
module attributes {stable_mosaic.version = 11 : i64} {
  func.func @_fused_forward_kernel(%arg0: memref<320x8xf32, #tpu.memory_space<vmem>>, %arg1: memref<16x8xf32, #tpu.memory_space<vmem>>, %arg2: memref<8x64xbf16, #tpu.memory_space<vmem>>, %arg3: memref<1x64xf32, #tpu.memory_space<vmem>>, %arg4: memref<64x32xbf16, #tpu.memory_space<vmem>>, %arg5: memref<1x32xf32, #tpu.memory_space<vmem>>, %arg6: memref<18x32x16xbf16, #tpu.memory_space<vmem>>, %arg7: memref<36x16x16xbf16, #tpu.memory_space<vmem>>, %arg8: memref<18x1x16xf32, #tpu.memory_space<vmem>>, %arg9: memref<6x32x32xbf16, #tpu.memory_space<vmem>>, %arg10: memref<18x16x32xbf16, #tpu.memory_space<vmem>>, %arg11: memref<6x1x32xf32, #tpu.memory_space<vmem>>, %arg12: memref<4x32x64xbf16, #tpu.memory_space<vmem>>, %arg13: memref<4x1x64xf32, #tpu.memory_space<vmem>>, %arg14: memref<4x64x8xbf16, #tpu.memory_space<vmem>>, %arg15: memref<4x1x8xf32, #tpu.memory_space<vmem>>, %arg16: memref<320x320xbf16, #tpu.memory_space<vmem>>, %arg17: memref<160x160xbf16, #tpu.memory_space<vmem>>, %arg18: memref<80x80xbf16, #tpu.memory_space<vmem>>, %arg19: memref<48x48xbf16, #tpu.memory_space<vmem>>, %arg20: memref<32x32xbf16, #tpu.memory_space<vmem>>, %arg21: memref<16x16xbf16, #tpu.memory_space<vmem>>, %arg22: memref<16x32xf32, #tpu.memory_space<vmem>>) attributes {dimension_semantics = [], scalar_prefetch = 0 : i64, scratch_operands = 0 : i64, tpu.core_type = #tpu.core_type<tc>} {
    %c0 = arith.constant 0 : index
    %c0_0 = arith.constant 0 : index
    %0 = vector.load %arg0[%c0, %c0_0] : memref<320x8xf32, #tpu.memory_space<vmem>>, vector<320x8xf32>
    %c0_1 = arith.constant 0 : index
    %c0_2 = arith.constant 0 : index
    %1 = vector.load %arg2[%c0_1, %c0_2] : memref<8x64xbf16, #tpu.memory_space<vmem>>, vector<8x64xbf16>
    %2 = arith.truncf %0 : vector<320x8xf32> to vector<320x8xbf16>
    %cst = arith.constant dense<0.000000e+00> : vector<320x64xf32>
    %3 = tpu.matmul %2, %1, %cst {dimension_numbers = #tpu.dot_dimension_numbers<[1], [0], [0], [1], [0, 0, 1, 1], [], []>} : vector<320x8xbf16>, vector<8x64xbf16>, vector<320x64xf32> -> vector<320x64xf32>
    %c0_3 = arith.constant 0 : index
    %c0_4 = arith.constant 0 : index
    %4 = vector.load %arg3[%c0_3, %c0_4] : memref<1x64xf32, #tpu.memory_space<vmem>>, vector<1x64xf32>
    %5 = vector.broadcast %4 : vector<1x64xf32> to vector<320x64xf32>
    %6 = arith.addf %3, %5 : vector<320x64xf32>
    %cst_5 = arith.constant 0.000000e+00 : f32
    %7 = vector.broadcast %cst_5 : f32 to vector<320x64xf32>
    %8 = arith.cmpf oge, %6, %7 : vector<320x64xf32>
    %cst_6 = arith.constant 0.00999999977 : f32
    %9 = vector.broadcast %cst_6 : f32 to vector<320x64xf32>
    %10 = arith.mulf %9, %6 : vector<320x64xf32>
    %11 = arith.select %8, %6, %10 : vector<320x64xi1>, vector<320x64xf32>
    %c0_7 = arith.constant 0 : index
    %c0_8 = arith.constant 0 : index
    %12 = vector.load %arg4[%c0_7, %c0_8] : memref<64x32xbf16, #tpu.memory_space<vmem>>, vector<64x32xbf16>
    %13 = arith.truncf %11 : vector<320x64xf32> to vector<320x64xbf16>
    %cst_9 = arith.constant dense<0.000000e+00> : vector<320x32xf32>
    %14 = tpu.matmul %13, %12, %cst_9 {dimension_numbers = #tpu.dot_dimension_numbers<[1], [0], [0], [1], [0, 0, 1, 1], [], []>} : vector<320x64xbf16>, vector<64x32xbf16>, vector<320x32xf32> -> vector<320x32xf32>
    %c0_10 = arith.constant 0 : index
    %c0_11 = arith.constant 0 : index
    %15 = vector.load %arg5[%c0_10, %c0_11] : memref<1x32xf32, #tpu.memory_space<vmem>>, vector<1x32xf32>
    %16 = vector.broadcast %15 : vector<1x32xf32> to vector<320x32xf32>
    %17 = arith.addf %14, %16 : vector<320x32xf32>
    %cst_12 = arith.constant 0.000000e+00 : f32
    %18 = vector.broadcast %cst_12 : f32 to vector<320x32xf32>
    %19 = arith.cmpf oge, %17, %18 : vector<320x32xf32>
    %cst_13 = arith.constant 0.00999999977 : f32
    %20 = vector.broadcast %cst_13 : f32 to vector<320x32xf32>
    %21 = arith.mulf %20, %17 : vector<320x32xf32>
    %22 = arith.select %19, %17, %21 : vector<320x32xi1>, vector<320x32xf32>
    %cst_14 = arith.constant 0.000000e+00 : f32
    %23 = vector.broadcast %cst_14 : f32 to vector<320x32xf32>
    %24 = arith.cmpf oge, %22, %23 : vector<320x32xf32>
    %cst_15 = arith.constant 0.00999999977 : f32
    %25 = vector.broadcast %cst_15 : f32 to vector<320x32xf32>
    %26 = arith.mulf %25, %22 : vector<320x32xf32>
    %27 = arith.select %24, %22, %26 : vector<320x32xi1>, vector<320x32xf32>
    %c0_16 = arith.constant 0 : index
    %c0_17 = arith.constant 0 : index
    %28 = vector.load %arg16[%c0_16, %c0_17] : memref<320x320xbf16, #tpu.memory_space<vmem>>, vector<320x320xbf16>
    %c0_18 = arith.constant 0 : index
    %c0_19 = arith.constant 0 : index
    %c0_20 = arith.constant 0 : index
    %29 = vector.load %arg6[%c0_18, %c0_19, %c0_20] : memref<18x32x16xbf16, #tpu.memory_space<vmem>>, vector<1x32x16xbf16>
    %30 = vector.shape_cast %29 : vector<1x32x16xbf16> to vector<32x16xbf16>
    %31 = arith.truncf %27 : vector<320x32xf32> to vector<320x32xbf16>
    %cst_21 = arith.constant dense<0.000000e+00> : vector<320x16xf32>
    %32 = tpu.matmul %31, %30, %cst_21 {dimension_numbers = #tpu.dot_dimension_numbers<[1], [0], [0], [1], [0, 0, 1, 1], [], []>} : vector<320x32xbf16>, vector<32x16xbf16>, vector<320x16xf32> -> vector<320x16xf32>
    %33 = arith.truncf %32 : vector<320x16xf32> to vector<320x16xbf16>
    %cst_22 = arith.constant dense<0.000000e+00> : vector<320x16xf32>
    %34 = tpu.matmul %28, %33, %cst_22 {dimension_numbers = #tpu.dot_dimension_numbers<[1], [0], [0], [1], [0, 0, 1, 1], [], []>} : vector<320x320xbf16>, vector<320x16xbf16>, vector<320x16xf32> -> vector<320x16xf32>
    %c0_23 = arith.constant 0 : index
    %c0_24 = arith.constant 0 : index
    %c0_25 = arith.constant 0 : index
    %35 = vector.load %arg8[%c0_23, %c0_24, %c0_25] : memref<18x1x16xf32, #tpu.memory_space<vmem>>, vector<1x1x16xf32>
    %36 = vector.shape_cast %35 : vector<1x1x16xf32> to vector<1x16xf32>
    %37 = vector.broadcast %36 : vector<1x16xf32> to vector<320x16xf32>
    %38 = arith.addf %34, %37 : vector<320x16xf32>
    %cst_26 = arith.constant 0.000000e+00 : f32
    %39 = vector.broadcast %cst_26 : f32 to vector<320x16xf32>
    %40 = arith.cmpf oge, %38, %39 : vector<320x16xf32>
    %cst_27 = arith.constant 0.00999999977 : f32
    %41 = vector.broadcast %cst_27 : f32 to vector<320x16xf32>
    %42 = arith.mulf %41, %38 : vector<320x16xf32>
    %43 = arith.select %40, %38, %42 : vector<320x16xi1>, vector<320x16xf32>
    %c1 = arith.constant 1 : index
    %c0_28 = arith.constant 0 : index
    %c0_29 = arith.constant 0 : index
    %44 = vector.load %arg6[%c1, %c0_28, %c0_29] : memref<18x32x16xbf16, #tpu.memory_space<vmem>>, vector<1x32x16xbf16>
    %45 = vector.shape_cast %44 : vector<1x32x16xbf16> to vector<32x16xbf16>
    %46 = arith.truncf %27 : vector<320x32xf32> to vector<320x32xbf16>
    %cst_30 = arith.constant dense<0.000000e+00> : vector<320x16xf32>
    %47 = tpu.matmul %46, %45, %cst_30 {dimension_numbers = #tpu.dot_dimension_numbers<[1], [0], [0], [1], [0, 0, 1, 1], [], []>} : vector<320x32xbf16>, vector<32x16xbf16>, vector<320x16xf32> -> vector<320x16xf32>
    %c2 = arith.constant 2 : index
    %c0_31 = arith.constant 0 : index
    %c0_32 = arith.constant 0 : index
    %48 = vector.load %arg7[%c2, %c0_31, %c0_32] : memref<36x16x16xbf16, #tpu.memory_space<vmem>>, vector<1x16x16xbf16>
    %49 = vector.shape_cast %48 : vector<1x16x16xbf16> to vector<16x16xbf16>
    %50 = arith.truncf %43 : vector<320x16xf32> to vector<320x16xbf16>
    %cst_33 = arith.constant dense<0.000000e+00> : vector<320x16xf32>
    %51 = tpu.matmul %50, %49, %cst_33 {dimension_numbers = #tpu.dot_dimension_numbers<[1], [0], [0], [1], [0, 0, 1, 1], [], []>} : vector<320x16xbf16>, vector<16x16xbf16>, vector<320x16xf32> -> vector<320x16xf32>
    %52 = arith.addf %47, %51 : vector<320x16xf32>
    %53 = arith.truncf %52 : vector<320x16xf32> to vector<320x16xbf16>
    %cst_34 = arith.constant dense<0.000000e+00> : vector<320x16xf32>
    %54 = tpu.matmul %28, %53, %cst_34 {dimension_numbers = #tpu.dot_dimension_numbers<[1], [0], [0], [1], [0, 0, 1, 1], [], []>} : vector<320x320xbf16>, vector<320x16xbf16>, vector<320x16xf32> -> vector<320x16xf32>
    %c1_35 = arith.constant 1 : index
    %c0_36 = arith.constant 0 : index
    %c0_37 = arith.constant 0 : index
    %55 = vector.load %arg8[%c1_35, %c0_36, %c0_37] : memref<18x1x16xf32, #tpu.memory_space<vmem>>, vector<1x1x16xf32>
    %56 = vector.shape_cast %55 : vector<1x1x16xf32> to vector<1x16xf32>
    %57 = vector.broadcast %56 : vector<1x16xf32> to vector<320x16xf32>
    %58 = arith.addf %54, %57 : vector<320x16xf32>
    %cst_38 = arith.constant 0.000000e+00 : f32
    %59 = vector.broadcast %cst_38 : f32 to vector<320x16xf32>
    %60 = arith.cmpf oge, %58, %59 : vector<320x16xf32>
    %cst_39 = arith.constant 0.00999999977 : f32
    %61 = vector.broadcast %cst_39 : f32 to vector<320x16xf32>
    %62 = arith.mulf %61, %58 : vector<320x16xf32>
    %63 = arith.select %60, %58, %62 : vector<320x16xi1>, vector<320x16xf32>
    %c2_40 = arith.constant 2 : index
    %c0_41 = arith.constant 0 : index
    %c0_42 = arith.constant 0 : index
    %64 = vector.load %arg6[%c2_40, %c0_41, %c0_42] : memref<18x32x16xbf16, #tpu.memory_space<vmem>>, vector<1x32x16xbf16>
    %65 = vector.shape_cast %64 : vector<1x32x16xbf16> to vector<32x16xbf16>
    %66 = arith.truncf %27 : vector<320x32xf32> to vector<320x32xbf16>
    %cst_43 = arith.constant dense<0.000000e+00> : vector<320x16xf32>
    %67 = tpu.matmul %66, %65, %cst_43 {dimension_numbers = #tpu.dot_dimension_numbers<[1], [0], [0], [1], [0, 0, 1, 1], [], []>} : vector<320x32xbf16>, vector<32x16xbf16>, vector<320x16xf32> -> vector<320x16xf32>
    %c4 = arith.constant 4 : index
    %c0_44 = arith.constant 0 : index
    %c0_45 = arith.constant 0 : index
    %68 = vector.load %arg7[%c4, %c0_44, %c0_45] : memref<36x16x16xbf16, #tpu.memory_space<vmem>>, vector<1x16x16xbf16>
    %69 = vector.shape_cast %68 : vector<1x16x16xbf16> to vector<16x16xbf16>
    %70 = arith.truncf %43 : vector<320x16xf32> to vector<320x16xbf16>
    %cst_46 = arith.constant dense<0.000000e+00> : vector<320x16xf32>
    %71 = tpu.matmul %70, %69, %cst_46 {dimension_numbers = #tpu.dot_dimension_numbers<[1], [0], [0], [1], [0, 0, 1, 1], [], []>} : vector<320x16xbf16>, vector<16x16xbf16>, vector<320x16xf32> -> vector<320x16xf32>
    %72 = arith.addf %67, %71 : vector<320x16xf32>
    %c5 = arith.constant 5 : index
    %c0_47 = arith.constant 0 : index
    %c0_48 = arith.constant 0 : index
    %73 = vector.load %arg7[%c5, %c0_47, %c0_48] : memref<36x16x16xbf16, #tpu.memory_space<vmem>>, vector<1x16x16xbf16>
    %74 = vector.shape_cast %73 : vector<1x16x16xbf16> to vector<16x16xbf16>
    %75 = arith.truncf %63 : vector<320x16xf32> to vector<320x16xbf16>
    %cst_49 = arith.constant dense<0.000000e+00> : vector<320x16xf32>
    %76 = tpu.matmul %75, %74, %cst_49 {dimension_numbers = #tpu.dot_dimension_numbers<[1], [0], [0], [1], [0, 0, 1, 1], [], []>} : vector<320x16xbf16>, vector<16x16xbf16>, vector<320x16xf32> -> vector<320x16xf32>
    %77 = arith.addf %72, %76 : vector<320x16xf32>
    %78 = arith.truncf %77 : vector<320x16xf32> to vector<320x16xbf16>
    %cst_50 = arith.constant dense<0.000000e+00> : vector<320x16xf32>
    %79 = tpu.matmul %28, %78, %cst_50 {dimension_numbers = #tpu.dot_dimension_numbers<[1], [0], [0], [1], [0, 0, 1, 1], [], []>} : vector<320x320xbf16>, vector<320x16xbf16>, vector<320x16xf32> -> vector<320x16xf32>
    %c2_51 = arith.constant 2 : index
    %c0_52 = arith.constant 0 : index
    %c0_53 = arith.constant 0 : index
    %80 = vector.load %arg8[%c2_51, %c0_52, %c0_53] : memref<18x1x16xf32, #tpu.memory_space<vmem>>, vector<1x1x16xf32>
    %81 = vector.shape_cast %80 : vector<1x1x16xf32> to vector<1x16xf32>
    %82 = vector.broadcast %81 : vector<1x16xf32> to vector<320x16xf32>
    %83 = arith.addf %79, %82 : vector<320x16xf32>
    %cst_54 = arith.constant 0.000000e+00 : f32
    %84 = vector.broadcast %cst_54 : f32 to vector<320x16xf32>
    %85 = arith.cmpf oge, %83, %84 : vector<320x16xf32>
    %cst_55 = arith.constant 0.00999999977 : f32
    %86 = vector.broadcast %cst_55 : f32 to vector<320x16xf32>
    %87 = arith.mulf %86, %83 : vector<320x16xf32>
    %88 = arith.select %85, %83, %87 : vector<320x16xi1>, vector<320x16xf32>
    %c0_56 = arith.constant 0 : index
    %c0_57 = arith.constant 0 : index
    %c0_58 = arith.constant 0 : index
    %89 = vector.load %arg9[%c0_56, %c0_57, %c0_58] : memref<6x32x32xbf16, #tpu.memory_space<vmem>>, vector<1x32x32xbf16>
    %90 = vector.shape_cast %89 : vector<1x32x32xbf16> to vector<32x32xbf16>
    %91 = arith.truncf %27 : vector<320x32xf32> to vector<320x32xbf16>
    %cst_59 = arith.constant dense<0.000000e+00> : vector<320x32xf32>
    %92 = tpu.matmul %91, %90, %cst_59 {dimension_numbers = #tpu.dot_dimension_numbers<[1], [0], [0], [1], [0, 0, 1, 1], [], []>} : vector<320x32xbf16>, vector<32x32xbf16>, vector<320x32xf32> -> vector<320x32xf32>
    %c0_60 = arith.constant 0 : index
    %c0_61 = arith.constant 0 : index
    %c0_62 = arith.constant 0 : index
    %93 = vector.load %arg10[%c0_60, %c0_61, %c0_62] : memref<18x16x32xbf16, #tpu.memory_space<vmem>>, vector<1x16x32xbf16>
    %94 = vector.shape_cast %93 : vector<1x16x32xbf16> to vector<16x32xbf16>
    %95 = arith.truncf %43 : vector<320x16xf32> to vector<320x16xbf16>
    %cst_63 = arith.constant dense<0.000000e+00> : vector<320x32xf32>
    %96 = tpu.matmul %95, %94, %cst_63 {dimension_numbers = #tpu.dot_dimension_numbers<[1], [0], [0], [1], [0, 0, 1, 1], [], []>} : vector<320x16xbf16>, vector<16x32xbf16>, vector<320x32xf32> -> vector<320x32xf32>
    %97 = arith.addf %92, %96 : vector<320x32xf32>
    %c1_64 = arith.constant 1 : index
    %c0_65 = arith.constant 0 : index
    %c0_66 = arith.constant 0 : index
    %98 = vector.load %arg10[%c1_64, %c0_65, %c0_66] : memref<18x16x32xbf16, #tpu.memory_space<vmem>>, vector<1x16x32xbf16>
    %99 = vector.shape_cast %98 : vector<1x16x32xbf16> to vector<16x32xbf16>
    %100 = arith.truncf %63 : vector<320x16xf32> to vector<320x16xbf16>
    %cst_67 = arith.constant dense<0.000000e+00> : vector<320x32xf32>
    %101 = tpu.matmul %100, %99, %cst_67 {dimension_numbers = #tpu.dot_dimension_numbers<[1], [0], [0], [1], [0, 0, 1, 1], [], []>} : vector<320x16xbf16>, vector<16x32xbf16>, vector<320x32xf32> -> vector<320x32xf32>
    %102 = arith.addf %97, %101 : vector<320x32xf32>
    %c2_68 = arith.constant 2 : index
    %c0_69 = arith.constant 0 : index
    %c0_70 = arith.constant 0 : index
    %103 = vector.load %arg10[%c2_68, %c0_69, %c0_70] : memref<18x16x32xbf16, #tpu.memory_space<vmem>>, vector<1x16x32xbf16>
    %104 = vector.shape_cast %103 : vector<1x16x32xbf16> to vector<16x32xbf16>
    %105 = arith.truncf %88 : vector<320x16xf32> to vector<320x16xbf16>
    %cst_71 = arith.constant dense<0.000000e+00> : vector<320x32xf32>
    %106 = tpu.matmul %105, %104, %cst_71 {dimension_numbers = #tpu.dot_dimension_numbers<[1], [0], [0], [1], [0, 0, 1, 1], [], []>} : vector<320x16xbf16>, vector<16x32xbf16>, vector<320x32xf32> -> vector<320x32xf32>
    %107 = arith.addf %102, %106 : vector<320x32xf32>
    %c0_72 = arith.constant 0 : index
    %c0_73 = arith.constant 0 : index
    %c0_74 = arith.constant 0 : index
    %108 = vector.load %arg11[%c0_72, %c0_73, %c0_74] : memref<6x1x32xf32, #tpu.memory_space<vmem>>, vector<1x1x32xf32>
    %109 = vector.shape_cast %108 : vector<1x1x32xf32> to vector<1x32xf32>
    %110 = vector.broadcast %109 : vector<1x32xf32> to vector<320x32xf32>
    %111 = arith.addf %107, %110 : vector<320x32xf32>
    %cst_75 = arith.constant 0.000000e+00 : f32
    %112 = vector.broadcast %cst_75 : f32 to vector<320x32xf32>
    %113 = arith.cmpf oge, %111, %112 : vector<320x32xf32>
    %cst_76 = arith.constant 0.00999999977 : f32
    %114 = vector.broadcast %cst_76 : f32 to vector<320x32xf32>
    %115 = arith.mulf %114, %111 : vector<320x32xf32>
    %116 = arith.select %113, %111, %115 : vector<320x32xi1>, vector<320x32xf32>
    %117 = vector.extract_strided_slice %116 {offsets = [0, 0], sizes = [8, 32], strides = [1, 1]} : vector<320x32xf32> to vector<8x32xf32>
    %118 = vector.extract_strided_slice %116 {offsets = [8, 0], sizes = [8, 32], strides = [1, 1]} : vector<320x32xf32> to vector<8x32xf32>
    %119 = arith.maximumf %117, %118 : vector<8x32xf32>
    %120 = vector.extract_strided_slice %116 {offsets = [16, 0], sizes = [8, 32], strides = [1, 1]} : vector<320x32xf32> to vector<8x32xf32>
    %121 = vector.extract_strided_slice %116 {offsets = [24, 0], sizes = [8, 32], strides = [1, 1]} : vector<320x32xf32> to vector<8x32xf32>
    %122 = arith.maximumf %120, %121 : vector<8x32xf32>
    %123 = vector.extract_strided_slice %116 {offsets = [32, 0], sizes = [8, 32], strides = [1, 1]} : vector<320x32xf32> to vector<8x32xf32>
    %124 = vector.extract_strided_slice %116 {offsets = [40, 0], sizes = [8, 32], strides = [1, 1]} : vector<320x32xf32> to vector<8x32xf32>
    %125 = arith.maximumf %123, %124 : vector<8x32xf32>
    %126 = vector.extract_strided_slice %116 {offsets = [48, 0], sizes = [8, 32], strides = [1, 1]} : vector<320x32xf32> to vector<8x32xf32>
    %127 = vector.extract_strided_slice %116 {offsets = [56, 0], sizes = [8, 32], strides = [1, 1]} : vector<320x32xf32> to vector<8x32xf32>
    %128 = arith.maximumf %126, %127 : vector<8x32xf32>
    %129 = vector.extract_strided_slice %116 {offsets = [64, 0], sizes = [8, 32], strides = [1, 1]} : vector<320x32xf32> to vector<8x32xf32>
    %130 = vector.extract_strided_slice %116 {offsets = [72, 0], sizes = [8, 32], strides = [1, 1]} : vector<320x32xf32> to vector<8x32xf32>
    %131 = arith.maximumf %129, %130 : vector<8x32xf32>
    %132 = vector.extract_strided_slice %116 {offsets = [80, 0], sizes = [8, 32], strides = [1, 1]} : vector<320x32xf32> to vector<8x32xf32>
    %133 = vector.extract_strided_slice %116 {offsets = [88, 0], sizes = [8, 32], strides = [1, 1]} : vector<320x32xf32> to vector<8x32xf32>
    %134 = arith.maximumf %132, %133 : vector<8x32xf32>
    %135 = vector.extract_strided_slice %116 {offsets = [96, 0], sizes = [8, 32], strides = [1, 1]} : vector<320x32xf32> to vector<8x32xf32>
    %136 = vector.extract_strided_slice %116 {offsets = [104, 0], sizes = [8, 32], strides = [1, 1]} : vector<320x32xf32> to vector<8x32xf32>
    %137 = arith.maximumf %135, %136 : vector<8x32xf32>
    %138 = vector.extract_strided_slice %116 {offsets = [112, 0], sizes = [8, 32], strides = [1, 1]} : vector<320x32xf32> to vector<8x32xf32>
    %139 = vector.extract_strided_slice %116 {offsets = [120, 0], sizes = [8, 32], strides = [1, 1]} : vector<320x32xf32> to vector<8x32xf32>
    %140 = arith.maximumf %138, %139 : vector<8x32xf32>
    %141 = vector.extract_strided_slice %116 {offsets = [128, 0], sizes = [8, 32], strides = [1, 1]} : vector<320x32xf32> to vector<8x32xf32>
    %142 = vector.extract_strided_slice %116 {offsets = [136, 0], sizes = [8, 32], strides = [1, 1]} : vector<320x32xf32> to vector<8x32xf32>
    %143 = arith.maximumf %141, %142 : vector<8x32xf32>
    %144 = vector.extract_strided_slice %116 {offsets = [144, 0], sizes = [8, 32], strides = [1, 1]} : vector<320x32xf32> to vector<8x32xf32>
    %145 = vector.extract_strided_slice %116 {offsets = [152, 0], sizes = [8, 32], strides = [1, 1]} : vector<320x32xf32> to vector<8x32xf32>
    %146 = arith.maximumf %144, %145 : vector<8x32xf32>
    %147 = vector.extract_strided_slice %116 {offsets = [160, 0], sizes = [8, 32], strides = [1, 1]} : vector<320x32xf32> to vector<8x32xf32>
    %148 = vector.extract_strided_slice %116 {offsets = [168, 0], sizes = [8, 32], strides = [1, 1]} : vector<320x32xf32> to vector<8x32xf32>
    %149 = arith.maximumf %147, %148 : vector<8x32xf32>
    %150 = vector.extract_strided_slice %116 {offsets = [176, 0], sizes = [8, 32], strides = [1, 1]} : vector<320x32xf32> to vector<8x32xf32>
    %151 = vector.extract_strided_slice %116 {offsets = [184, 0], sizes = [8, 32], strides = [1, 1]} : vector<320x32xf32> to vector<8x32xf32>
    %152 = arith.maximumf %150, %151 : vector<8x32xf32>
    %153 = vector.extract_strided_slice %116 {offsets = [192, 0], sizes = [8, 32], strides = [1, 1]} : vector<320x32xf32> to vector<8x32xf32>
    %154 = vector.extract_strided_slice %116 {offsets = [200, 0], sizes = [8, 32], strides = [1, 1]} : vector<320x32xf32> to vector<8x32xf32>
    %155 = arith.maximumf %153, %154 : vector<8x32xf32>
    %156 = vector.extract_strided_slice %116 {offsets = [208, 0], sizes = [8, 32], strides = [1, 1]} : vector<320x32xf32> to vector<8x32xf32>
    %157 = vector.extract_strided_slice %116 {offsets = [216, 0], sizes = [8, 32], strides = [1, 1]} : vector<320x32xf32> to vector<8x32xf32>
    %158 = arith.maximumf %156, %157 : vector<8x32xf32>
    %159 = vector.extract_strided_slice %116 {offsets = [224, 0], sizes = [8, 32], strides = [1, 1]} : vector<320x32xf32> to vector<8x32xf32>
    %160 = vector.extract_strided_slice %116 {offsets = [232, 0], sizes = [8, 32], strides = [1, 1]} : vector<320x32xf32> to vector<8x32xf32>
    %161 = arith.maximumf %159, %160 : vector<8x32xf32>
    %162 = vector.extract_strided_slice %116 {offsets = [240, 0], sizes = [8, 32], strides = [1, 1]} : vector<320x32xf32> to vector<8x32xf32>
    %163 = vector.extract_strided_slice %116 {offsets = [248, 0], sizes = [8, 32], strides = [1, 1]} : vector<320x32xf32> to vector<8x32xf32>
    %164 = arith.maximumf %162, %163 : vector<8x32xf32>
    %165 = vector.extract_strided_slice %116 {offsets = [256, 0], sizes = [8, 32], strides = [1, 1]} : vector<320x32xf32> to vector<8x32xf32>
    %166 = vector.extract_strided_slice %116 {offsets = [264, 0], sizes = [8, 32], strides = [1, 1]} : vector<320x32xf32> to vector<8x32xf32>
    %167 = arith.maximumf %165, %166 : vector<8x32xf32>
    %168 = vector.extract_strided_slice %116 {offsets = [272, 0], sizes = [8, 32], strides = [1, 1]} : vector<320x32xf32> to vector<8x32xf32>
    %169 = vector.extract_strided_slice %116 {offsets = [280, 0], sizes = [8, 32], strides = [1, 1]} : vector<320x32xf32> to vector<8x32xf32>
    %170 = arith.maximumf %168, %169 : vector<8x32xf32>
    %171 = vector.extract_strided_slice %116 {offsets = [288, 0], sizes = [8, 32], strides = [1, 1]} : vector<320x32xf32> to vector<8x32xf32>
    %172 = vector.extract_strided_slice %116 {offsets = [296, 0], sizes = [8, 32], strides = [1, 1]} : vector<320x32xf32> to vector<8x32xf32>
    %173 = arith.maximumf %171, %172 : vector<8x32xf32>
    %174 = vector.extract_strided_slice %116 {offsets = [304, 0], sizes = [8, 32], strides = [1, 1]} : vector<320x32xf32> to vector<8x32xf32>
    %175 = vector.extract_strided_slice %116 {offsets = [312, 0], sizes = [8, 32], strides = [1, 1]} : vector<320x32xf32> to vector<8x32xf32>
    %176 = arith.maximumf %174, %175 : vector<8x32xf32>
    %177 = tpu.concatenate %119, %122, %125, %128, %131, %134, %137, %140, %143, %146, %149, %152, %155, %158, %161, %164 in 0 : vector<8x32xf32>, vector<8x32xf32>, vector<8x32xf32>, vector<8x32xf32>, vector<8x32xf32>, vector<8x32xf32>, vector<8x32xf32>, vector<8x32xf32>, vector<8x32xf32>, vector<8x32xf32>, vector<8x32xf32>, vector<8x32xf32>, vector<8x32xf32>, vector<8x32xf32>, vector<8x32xf32>, vector<8x32xf32> -> vector<128x32xf32>
    %178 = tpu.concatenate %167, %170, %173, %176 in 0 : vector<8x32xf32>, vector<8x32xf32>, vector<8x32xf32>, vector<8x32xf32> -> vector<32x32xf32>
    %179 = tpu.concatenate %177, %178 in 0 : vector<128x32xf32>, vector<32x32xf32> -> vector<160x32xf32>
    %c0_77 = arith.constant 0 : index
    %c0_78 = arith.constant 0 : index
    %180 = vector.load %arg17[%c0_77, %c0_78] : memref<160x160xbf16, #tpu.memory_space<vmem>>, vector<160x160xbf16>
    %c3 = arith.constant 3 : index
    %c0_79 = arith.constant 0 : index
    %c0_80 = arith.constant 0 : index
    %181 = vector.load %arg6[%c3, %c0_79, %c0_80] : memref<18x32x16xbf16, #tpu.memory_space<vmem>>, vector<1x32x16xbf16>
    %182 = vector.shape_cast %181 : vector<1x32x16xbf16> to vector<32x16xbf16>
    %183 = arith.truncf %179 : vector<160x32xf32> to vector<160x32xbf16>
    %cst_81 = arith.constant dense<0.000000e+00> : vector<160x16xf32>
    %184 = tpu.matmul %183, %182, %cst_81 {dimension_numbers = #tpu.dot_dimension_numbers<[1], [0], [0], [1], [0, 0, 1, 1], [], []>} : vector<160x32xbf16>, vector<32x16xbf16>, vector<160x16xf32> -> vector<160x16xf32>
    %185 = arith.truncf %184 : vector<160x16xf32> to vector<160x16xbf16>
    %cst_82 = arith.constant dense<0.000000e+00> : vector<160x16xf32>
    %186 = tpu.matmul %180, %185, %cst_82 {dimension_numbers = #tpu.dot_dimension_numbers<[1], [0], [0], [1], [0, 0, 1, 1], [], []>} : vector<160x160xbf16>, vector<160x16xbf16>, vector<160x16xf32> -> vector<160x16xf32>
    %c3_83 = arith.constant 3 : index
    %c0_84 = arith.constant 0 : index
    %c0_85 = arith.constant 0 : index
    %187 = vector.load %arg8[%c3_83, %c0_84, %c0_85] : memref<18x1x16xf32, #tpu.memory_space<vmem>>, vector<1x1x16xf32>
    %188 = vector.shape_cast %187 : vector<1x1x16xf32> to vector<1x16xf32>
    %189 = vector.broadcast %188 : vector<1x16xf32> to vector<160x16xf32>
    %190 = arith.addf %186, %189 : vector<160x16xf32>
    %cst_86 = arith.constant 0.000000e+00 : f32
    %191 = vector.broadcast %cst_86 : f32 to vector<160x16xf32>
    %192 = arith.cmpf oge, %190, %191 : vector<160x16xf32>
    %cst_87 = arith.constant 0.00999999977 : f32
    %193 = vector.broadcast %cst_87 : f32 to vector<160x16xf32>
    %194 = arith.mulf %193, %190 : vector<160x16xf32>
    %195 = arith.select %192, %190, %194 : vector<160x16xi1>, vector<160x16xf32>
    %c4_88 = arith.constant 4 : index
    %c0_89 = arith.constant 0 : index
    %c0_90 = arith.constant 0 : index
    %196 = vector.load %arg6[%c4_88, %c0_89, %c0_90] : memref<18x32x16xbf16, #tpu.memory_space<vmem>>, vector<1x32x16xbf16>
    %197 = vector.shape_cast %196 : vector<1x32x16xbf16> to vector<32x16xbf16>
    %198 = arith.truncf %179 : vector<160x32xf32> to vector<160x32xbf16>
    %cst_91 = arith.constant dense<0.000000e+00> : vector<160x16xf32>
    %199 = tpu.matmul %198, %197, %cst_91 {dimension_numbers = #tpu.dot_dimension_numbers<[1], [0], [0], [1], [0, 0, 1, 1], [], []>} : vector<160x32xbf16>, vector<32x16xbf16>, vector<160x16xf32> -> vector<160x16xf32>
    %c8 = arith.constant 8 : index
    %c0_92 = arith.constant 0 : index
    %c0_93 = arith.constant 0 : index
    %200 = vector.load %arg7[%c8, %c0_92, %c0_93] : memref<36x16x16xbf16, #tpu.memory_space<vmem>>, vector<1x16x16xbf16>
    %201 = vector.shape_cast %200 : vector<1x16x16xbf16> to vector<16x16xbf16>
    %202 = arith.truncf %195 : vector<160x16xf32> to vector<160x16xbf16>
    %cst_94 = arith.constant dense<0.000000e+00> : vector<160x16xf32>
    %203 = tpu.matmul %202, %201, %cst_94 {dimension_numbers = #tpu.dot_dimension_numbers<[1], [0], [0], [1], [0, 0, 1, 1], [], []>} : vector<160x16xbf16>, vector<16x16xbf16>, vector<160x16xf32> -> vector<160x16xf32>
    %204 = arith.addf %199, %203 : vector<160x16xf32>
    %205 = arith.truncf %204 : vector<160x16xf32> to vector<160x16xbf16>
    %cst_95 = arith.constant dense<0.000000e+00> : vector<160x16xf32>
    %206 = tpu.matmul %180, %205, %cst_95 {dimension_numbers = #tpu.dot_dimension_numbers<[1], [0], [0], [1], [0, 0, 1, 1], [], []>} : vector<160x160xbf16>, vector<160x16xbf16>, vector<160x16xf32> -> vector<160x16xf32>
    %c4_96 = arith.constant 4 : index
    %c0_97 = arith.constant 0 : index
    %c0_98 = arith.constant 0 : index
    %207 = vector.load %arg8[%c4_96, %c0_97, %c0_98] : memref<18x1x16xf32, #tpu.memory_space<vmem>>, vector<1x1x16xf32>
    %208 = vector.shape_cast %207 : vector<1x1x16xf32> to vector<1x16xf32>
    %209 = vector.broadcast %208 : vector<1x16xf32> to vector<160x16xf32>
    %210 = arith.addf %206, %209 : vector<160x16xf32>
    %cst_99 = arith.constant 0.000000e+00 : f32
    %211 = vector.broadcast %cst_99 : f32 to vector<160x16xf32>
    %212 = arith.cmpf oge, %210, %211 : vector<160x16xf32>
    %cst_100 = arith.constant 0.00999999977 : f32
    %213 = vector.broadcast %cst_100 : f32 to vector<160x16xf32>
    %214 = arith.mulf %213, %210 : vector<160x16xf32>
    %215 = arith.select %212, %210, %214 : vector<160x16xi1>, vector<160x16xf32>
    %c5_101 = arith.constant 5 : index
    %c0_102 = arith.constant 0 : index
    %c0_103 = arith.constant 0 : index
    %216 = vector.load %arg6[%c5_101, %c0_102, %c0_103] : memref<18x32x16xbf16, #tpu.memory_space<vmem>>, vector<1x32x16xbf16>
    %217 = vector.shape_cast %216 : vector<1x32x16xbf16> to vector<32x16xbf16>
    %218 = arith.truncf %179 : vector<160x32xf32> to vector<160x32xbf16>
    %cst_104 = arith.constant dense<0.000000e+00> : vector<160x16xf32>
    %219 = tpu.matmul %218, %217, %cst_104 {dimension_numbers = #tpu.dot_dimension_numbers<[1], [0], [0], [1], [0, 0, 1, 1], [], []>} : vector<160x32xbf16>, vector<32x16xbf16>, vector<160x16xf32> -> vector<160x16xf32>
    %c10 = arith.constant 10 : index
    %c0_105 = arith.constant 0 : index
    %c0_106 = arith.constant 0 : index
    %220 = vector.load %arg7[%c10, %c0_105, %c0_106] : memref<36x16x16xbf16, #tpu.memory_space<vmem>>, vector<1x16x16xbf16>
    %221 = vector.shape_cast %220 : vector<1x16x16xbf16> to vector<16x16xbf16>
    %222 = arith.truncf %195 : vector<160x16xf32> to vector<160x16xbf16>
    %cst_107 = arith.constant dense<0.000000e+00> : vector<160x16xf32>
    %223 = tpu.matmul %222, %221, %cst_107 {dimension_numbers = #tpu.dot_dimension_numbers<[1], [0], [0], [1], [0, 0, 1, 1], [], []>} : vector<160x16xbf16>, vector<16x16xbf16>, vector<160x16xf32> -> vector<160x16xf32>
    %224 = arith.addf %219, %223 : vector<160x16xf32>
    %c11 = arith.constant 11 : index
    %c0_108 = arith.constant 0 : index
    %c0_109 = arith.constant 0 : index
    %225 = vector.load %arg7[%c11, %c0_108, %c0_109] : memref<36x16x16xbf16, #tpu.memory_space<vmem>>, vector<1x16x16xbf16>
    %226 = vector.shape_cast %225 : vector<1x16x16xbf16> to vector<16x16xbf16>
    %227 = arith.truncf %215 : vector<160x16xf32> to vector<160x16xbf16>
    %cst_110 = arith.constant dense<0.000000e+00> : vector<160x16xf32>
    %228 = tpu.matmul %227, %226, %cst_110 {dimension_numbers = #tpu.dot_dimension_numbers<[1], [0], [0], [1], [0, 0, 1, 1], [], []>} : vector<160x16xbf16>, vector<16x16xbf16>, vector<160x16xf32> -> vector<160x16xf32>
    %229 = arith.addf %224, %228 : vector<160x16xf32>
    %230 = arith.truncf %229 : vector<160x16xf32> to vector<160x16xbf16>
    %cst_111 = arith.constant dense<0.000000e+00> : vector<160x16xf32>
    %231 = tpu.matmul %180, %230, %cst_111 {dimension_numbers = #tpu.dot_dimension_numbers<[1], [0], [0], [1], [0, 0, 1, 1], [], []>} : vector<160x160xbf16>, vector<160x16xbf16>, vector<160x16xf32> -> vector<160x16xf32>
    %c5_112 = arith.constant 5 : index
    %c0_113 = arith.constant 0 : index
    %c0_114 = arith.constant 0 : index
    %232 = vector.load %arg8[%c5_112, %c0_113, %c0_114] : memref<18x1x16xf32, #tpu.memory_space<vmem>>, vector<1x1x16xf32>
    %233 = vector.shape_cast %232 : vector<1x1x16xf32> to vector<1x16xf32>
    %234 = vector.broadcast %233 : vector<1x16xf32> to vector<160x16xf32>
    %235 = arith.addf %231, %234 : vector<160x16xf32>
    %cst_115 = arith.constant 0.000000e+00 : f32
    %236 = vector.broadcast %cst_115 : f32 to vector<160x16xf32>
    %237 = arith.cmpf oge, %235, %236 : vector<160x16xf32>
    %cst_116 = arith.constant 0.00999999977 : f32
    %238 = vector.broadcast %cst_116 : f32 to vector<160x16xf32>
    %239 = arith.mulf %238, %235 : vector<160x16xf32>
    %240 = arith.select %237, %235, %239 : vector<160x16xi1>, vector<160x16xf32>
    %c1_117 = arith.constant 1 : index
    %c0_118 = arith.constant 0 : index
    %c0_119 = arith.constant 0 : index
    %241 = vector.load %arg9[%c1_117, %c0_118, %c0_119] : memref<6x32x32xbf16, #tpu.memory_space<vmem>>, vector<1x32x32xbf16>
    %242 = vector.shape_cast %241 : vector<1x32x32xbf16> to vector<32x32xbf16>
    %243 = arith.truncf %179 : vector<160x32xf32> to vector<160x32xbf16>
    %cst_120 = arith.constant dense<0.000000e+00> : vector<160x32xf32>
    %244 = tpu.matmul %243, %242, %cst_120 {dimension_numbers = #tpu.dot_dimension_numbers<[1], [0], [0], [1], [0, 0, 1, 1], [], []>} : vector<160x32xbf16>, vector<32x32xbf16>, vector<160x32xf32> -> vector<160x32xf32>
    %c3_121 = arith.constant 3 : index
    %c0_122 = arith.constant 0 : index
    %c0_123 = arith.constant 0 : index
    %245 = vector.load %arg10[%c3_121, %c0_122, %c0_123] : memref<18x16x32xbf16, #tpu.memory_space<vmem>>, vector<1x16x32xbf16>
    %246 = vector.shape_cast %245 : vector<1x16x32xbf16> to vector<16x32xbf16>
    %247 = arith.truncf %195 : vector<160x16xf32> to vector<160x16xbf16>
    %cst_124 = arith.constant dense<0.000000e+00> : vector<160x32xf32>
    %248 = tpu.matmul %247, %246, %cst_124 {dimension_numbers = #tpu.dot_dimension_numbers<[1], [0], [0], [1], [0, 0, 1, 1], [], []>} : vector<160x16xbf16>, vector<16x32xbf16>, vector<160x32xf32> -> vector<160x32xf32>
    %249 = arith.addf %244, %248 : vector<160x32xf32>
    %c4_125 = arith.constant 4 : index
    %c0_126 = arith.constant 0 : index
    %c0_127 = arith.constant 0 : index
    %250 = vector.load %arg10[%c4_125, %c0_126, %c0_127] : memref<18x16x32xbf16, #tpu.memory_space<vmem>>, vector<1x16x32xbf16>
    %251 = vector.shape_cast %250 : vector<1x16x32xbf16> to vector<16x32xbf16>
    %252 = arith.truncf %215 : vector<160x16xf32> to vector<160x16xbf16>
    %cst_128 = arith.constant dense<0.000000e+00> : vector<160x32xf32>
    %253 = tpu.matmul %252, %251, %cst_128 {dimension_numbers = #tpu.dot_dimension_numbers<[1], [0], [0], [1], [0, 0, 1, 1], [], []>} : vector<160x16xbf16>, vector<16x32xbf16>, vector<160x32xf32> -> vector<160x32xf32>
    %254 = arith.addf %249, %253 : vector<160x32xf32>
    %c5_129 = arith.constant 5 : index
    %c0_130 = arith.constant 0 : index
    %c0_131 = arith.constant 0 : index
    %255 = vector.load %arg10[%c5_129, %c0_130, %c0_131] : memref<18x16x32xbf16, #tpu.memory_space<vmem>>, vector<1x16x32xbf16>
    %256 = vector.shape_cast %255 : vector<1x16x32xbf16> to vector<16x32xbf16>
    %257 = arith.truncf %240 : vector<160x16xf32> to vector<160x16xbf16>
    %cst_132 = arith.constant dense<0.000000e+00> : vector<160x32xf32>
    %258 = tpu.matmul %257, %256, %cst_132 {dimension_numbers = #tpu.dot_dimension_numbers<[1], [0], [0], [1], [0, 0, 1, 1], [], []>} : vector<160x16xbf16>, vector<16x32xbf16>, vector<160x32xf32> -> vector<160x32xf32>
    %259 = arith.addf %254, %258 : vector<160x32xf32>
    %c1_133 = arith.constant 1 : index
    %c0_134 = arith.constant 0 : index
    %c0_135 = arith.constant 0 : index
    %260 = vector.load %arg11[%c1_133, %c0_134, %c0_135] : memref<6x1x32xf32, #tpu.memory_space<vmem>>, vector<1x1x32xf32>
    %261 = vector.shape_cast %260 : vector<1x1x32xf32> to vector<1x32xf32>
    %262 = vector.broadcast %261 : vector<1x32xf32> to vector<160x32xf32>
    %263 = arith.addf %259, %262 : vector<160x32xf32>
    %cst_136 = arith.constant 0.000000e+00 : f32
    %264 = vector.broadcast %cst_136 : f32 to vector<160x32xf32>
    %265 = arith.cmpf oge, %263, %264 : vector<160x32xf32>
    %cst_137 = arith.constant 0.00999999977 : f32
    %266 = vector.broadcast %cst_137 : f32 to vector<160x32xf32>
    %267 = arith.mulf %266, %263 : vector<160x32xf32>
    %268 = arith.select %265, %263, %267 : vector<160x32xi1>, vector<160x32xf32>
    %269 = vector.extract_strided_slice %268 {offsets = [0, 0], sizes = [8, 32], strides = [1, 1]} : vector<160x32xf32> to vector<8x32xf32>
    %270 = vector.extract_strided_slice %268 {offsets = [8, 0], sizes = [8, 32], strides = [1, 1]} : vector<160x32xf32> to vector<8x32xf32>
    %271 = arith.maximumf %269, %270 : vector<8x32xf32>
    %272 = vector.extract_strided_slice %268 {offsets = [16, 0], sizes = [8, 32], strides = [1, 1]} : vector<160x32xf32> to vector<8x32xf32>
    %273 = vector.extract_strided_slice %268 {offsets = [24, 0], sizes = [8, 32], strides = [1, 1]} : vector<160x32xf32> to vector<8x32xf32>
    %274 = arith.maximumf %272, %273 : vector<8x32xf32>
    %275 = vector.extract_strided_slice %268 {offsets = [32, 0], sizes = [8, 32], strides = [1, 1]} : vector<160x32xf32> to vector<8x32xf32>
    %276 = vector.extract_strided_slice %268 {offsets = [40, 0], sizes = [8, 32], strides = [1, 1]} : vector<160x32xf32> to vector<8x32xf32>
    %277 = arith.maximumf %275, %276 : vector<8x32xf32>
    %278 = vector.extract_strided_slice %268 {offsets = [48, 0], sizes = [8, 32], strides = [1, 1]} : vector<160x32xf32> to vector<8x32xf32>
    %279 = vector.extract_strided_slice %268 {offsets = [56, 0], sizes = [8, 32], strides = [1, 1]} : vector<160x32xf32> to vector<8x32xf32>
    %280 = arith.maximumf %278, %279 : vector<8x32xf32>
    %281 = vector.extract_strided_slice %268 {offsets = [64, 0], sizes = [8, 32], strides = [1, 1]} : vector<160x32xf32> to vector<8x32xf32>
    %282 = vector.extract_strided_slice %268 {offsets = [72, 0], sizes = [8, 32], strides = [1, 1]} : vector<160x32xf32> to vector<8x32xf32>
    %283 = arith.maximumf %281, %282 : vector<8x32xf32>
    %284 = vector.extract_strided_slice %268 {offsets = [80, 0], sizes = [8, 32], strides = [1, 1]} : vector<160x32xf32> to vector<8x32xf32>
    %285 = vector.extract_strided_slice %268 {offsets = [88, 0], sizes = [8, 32], strides = [1, 1]} : vector<160x32xf32> to vector<8x32xf32>
    %286 = arith.maximumf %284, %285 : vector<8x32xf32>
    %287 = vector.extract_strided_slice %268 {offsets = [96, 0], sizes = [8, 32], strides = [1, 1]} : vector<160x32xf32> to vector<8x32xf32>
    %288 = vector.extract_strided_slice %268 {offsets = [104, 0], sizes = [8, 32], strides = [1, 1]} : vector<160x32xf32> to vector<8x32xf32>
    %289 = arith.maximumf %287, %288 : vector<8x32xf32>
    %290 = vector.extract_strided_slice %268 {offsets = [112, 0], sizes = [8, 32], strides = [1, 1]} : vector<160x32xf32> to vector<8x32xf32>
    %291 = vector.extract_strided_slice %268 {offsets = [120, 0], sizes = [8, 32], strides = [1, 1]} : vector<160x32xf32> to vector<8x32xf32>
    %292 = arith.maximumf %290, %291 : vector<8x32xf32>
    %293 = vector.extract_strided_slice %268 {offsets = [128, 0], sizes = [8, 32], strides = [1, 1]} : vector<160x32xf32> to vector<8x32xf32>
    %294 = vector.extract_strided_slice %268 {offsets = [136, 0], sizes = [8, 32], strides = [1, 1]} : vector<160x32xf32> to vector<8x32xf32>
    %295 = arith.maximumf %293, %294 : vector<8x32xf32>
    %296 = vector.extract_strided_slice %268 {offsets = [144, 0], sizes = [8, 32], strides = [1, 1]} : vector<160x32xf32> to vector<8x32xf32>
    %297 = vector.extract_strided_slice %268 {offsets = [152, 0], sizes = [8, 32], strides = [1, 1]} : vector<160x32xf32> to vector<8x32xf32>
    %298 = arith.maximumf %296, %297 : vector<8x32xf32>
    %299 = tpu.concatenate %271, %274, %277, %280, %283, %286, %289, %292, %295, %298 in 0 : vector<8x32xf32>, vector<8x32xf32>, vector<8x32xf32>, vector<8x32xf32>, vector<8x32xf32>, vector<8x32xf32>, vector<8x32xf32>, vector<8x32xf32>, vector<8x32xf32>, vector<8x32xf32> -> vector<80x32xf32>
    %c0_138 = arith.constant 0 : index
    %c0_139 = arith.constant 0 : index
    %300 = vector.load %arg18[%c0_138, %c0_139] : memref<80x80xbf16, #tpu.memory_space<vmem>>, vector<80x80xbf16>
    %c6 = arith.constant 6 : index
    %c0_140 = arith.constant 0 : index
    %c0_141 = arith.constant 0 : index
    %301 = vector.load %arg6[%c6, %c0_140, %c0_141] : memref<18x32x16xbf16, #tpu.memory_space<vmem>>, vector<1x32x16xbf16>
    %302 = vector.shape_cast %301 : vector<1x32x16xbf16> to vector<32x16xbf16>
    %303 = arith.truncf %299 : vector<80x32xf32> to vector<80x32xbf16>
    %cst_142 = arith.constant dense<0.000000e+00> : vector<80x16xf32>
    %304 = tpu.matmul %303, %302, %cst_142 {dimension_numbers = #tpu.dot_dimension_numbers<[1], [0], [0], [1], [0, 0, 1, 1], [], []>} : vector<80x32xbf16>, vector<32x16xbf16>, vector<80x16xf32> -> vector<80x16xf32>
    %305 = arith.truncf %304 : vector<80x16xf32> to vector<80x16xbf16>
    %cst_143 = arith.constant dense<0.000000e+00> : vector<80x16xf32>
    %306 = tpu.matmul %300, %305, %cst_143 {dimension_numbers = #tpu.dot_dimension_numbers<[1], [0], [0], [1], [0, 0, 1, 1], [], []>} : vector<80x80xbf16>, vector<80x16xbf16>, vector<80x16xf32> -> vector<80x16xf32>
    %c6_144 = arith.constant 6 : index
    %c0_145 = arith.constant 0 : index
    %c0_146 = arith.constant 0 : index
    %307 = vector.load %arg8[%c6_144, %c0_145, %c0_146] : memref<18x1x16xf32, #tpu.memory_space<vmem>>, vector<1x1x16xf32>
    %308 = vector.shape_cast %307 : vector<1x1x16xf32> to vector<1x16xf32>
    %309 = vector.broadcast %308 : vector<1x16xf32> to vector<80x16xf32>
    %310 = arith.addf %306, %309 : vector<80x16xf32>
    %cst_147 = arith.constant 0.000000e+00 : f32
    %311 = vector.broadcast %cst_147 : f32 to vector<80x16xf32>
    %312 = arith.cmpf oge, %310, %311 : vector<80x16xf32>
    %cst_148 = arith.constant 0.00999999977 : f32
    %313 = vector.broadcast %cst_148 : f32 to vector<80x16xf32>
    %314 = arith.mulf %313, %310 : vector<80x16xf32>
    %315 = arith.select %312, %310, %314 : vector<80x16xi1>, vector<80x16xf32>
    %c7 = arith.constant 7 : index
    %c0_149 = arith.constant 0 : index
    %c0_150 = arith.constant 0 : index
    %316 = vector.load %arg6[%c7, %c0_149, %c0_150] : memref<18x32x16xbf16, #tpu.memory_space<vmem>>, vector<1x32x16xbf16>
    %317 = vector.shape_cast %316 : vector<1x32x16xbf16> to vector<32x16xbf16>
    %318 = arith.truncf %299 : vector<80x32xf32> to vector<80x32xbf16>
    %cst_151 = arith.constant dense<0.000000e+00> : vector<80x16xf32>
    %319 = tpu.matmul %318, %317, %cst_151 {dimension_numbers = #tpu.dot_dimension_numbers<[1], [0], [0], [1], [0, 0, 1, 1], [], []>} : vector<80x32xbf16>, vector<32x16xbf16>, vector<80x16xf32> -> vector<80x16xf32>
    %c14 = arith.constant 14 : index
    %c0_152 = arith.constant 0 : index
    %c0_153 = arith.constant 0 : index
    %320 = vector.load %arg7[%c14, %c0_152, %c0_153] : memref<36x16x16xbf16, #tpu.memory_space<vmem>>, vector<1x16x16xbf16>
    %321 = vector.shape_cast %320 : vector<1x16x16xbf16> to vector<16x16xbf16>
    %322 = arith.truncf %315 : vector<80x16xf32> to vector<80x16xbf16>
    %cst_154 = arith.constant dense<0.000000e+00> : vector<80x16xf32>
    %323 = tpu.matmul %322, %321, %cst_154 {dimension_numbers = #tpu.dot_dimension_numbers<[1], [0], [0], [1], [0, 0, 1, 1], [], []>} : vector<80x16xbf16>, vector<16x16xbf16>, vector<80x16xf32> -> vector<80x16xf32>
    %324 = arith.addf %319, %323 : vector<80x16xf32>
    %325 = arith.truncf %324 : vector<80x16xf32> to vector<80x16xbf16>
    %cst_155 = arith.constant dense<0.000000e+00> : vector<80x16xf32>
    %326 = tpu.matmul %300, %325, %cst_155 {dimension_numbers = #tpu.dot_dimension_numbers<[1], [0], [0], [1], [0, 0, 1, 1], [], []>} : vector<80x80xbf16>, vector<80x16xbf16>, vector<80x16xf32> -> vector<80x16xf32>
    %c7_156 = arith.constant 7 : index
    %c0_157 = arith.constant 0 : index
    %c0_158 = arith.constant 0 : index
    %327 = vector.load %arg8[%c7_156, %c0_157, %c0_158] : memref<18x1x16xf32, #tpu.memory_space<vmem>>, vector<1x1x16xf32>
    %328 = vector.shape_cast %327 : vector<1x1x16xf32> to vector<1x16xf32>
    %329 = vector.broadcast %328 : vector<1x16xf32> to vector<80x16xf32>
    %330 = arith.addf %326, %329 : vector<80x16xf32>
    %cst_159 = arith.constant 0.000000e+00 : f32
    %331 = vector.broadcast %cst_159 : f32 to vector<80x16xf32>
    %332 = arith.cmpf oge, %330, %331 : vector<80x16xf32>
    %cst_160 = arith.constant 0.00999999977 : f32
    %333 = vector.broadcast %cst_160 : f32 to vector<80x16xf32>
    %334 = arith.mulf %333, %330 : vector<80x16xf32>
    %335 = arith.select %332, %330, %334 : vector<80x16xi1>, vector<80x16xf32>
    %c8_161 = arith.constant 8 : index
    %c0_162 = arith.constant 0 : index
    %c0_163 = arith.constant 0 : index
    %336 = vector.load %arg6[%c8_161, %c0_162, %c0_163] : memref<18x32x16xbf16, #tpu.memory_space<vmem>>, vector<1x32x16xbf16>
    %337 = vector.shape_cast %336 : vector<1x32x16xbf16> to vector<32x16xbf16>
    %338 = arith.truncf %299 : vector<80x32xf32> to vector<80x32xbf16>
    %cst_164 = arith.constant dense<0.000000e+00> : vector<80x16xf32>
    %339 = tpu.matmul %338, %337, %cst_164 {dimension_numbers = #tpu.dot_dimension_numbers<[1], [0], [0], [1], [0, 0, 1, 1], [], []>} : vector<80x32xbf16>, vector<32x16xbf16>, vector<80x16xf32> -> vector<80x16xf32>
    %c16 = arith.constant 16 : index
    %c0_165 = arith.constant 0 : index
    %c0_166 = arith.constant 0 : index
    %340 = vector.load %arg7[%c16, %c0_165, %c0_166] : memref<36x16x16xbf16, #tpu.memory_space<vmem>>, vector<1x16x16xbf16>
    %341 = vector.shape_cast %340 : vector<1x16x16xbf16> to vector<16x16xbf16>
    %342 = arith.truncf %315 : vector<80x16xf32> to vector<80x16xbf16>
    %cst_167 = arith.constant dense<0.000000e+00> : vector<80x16xf32>
    %343 = tpu.matmul %342, %341, %cst_167 {dimension_numbers = #tpu.dot_dimension_numbers<[1], [0], [0], [1], [0, 0, 1, 1], [], []>} : vector<80x16xbf16>, vector<16x16xbf16>, vector<80x16xf32> -> vector<80x16xf32>
    %344 = arith.addf %339, %343 : vector<80x16xf32>
    %c17 = arith.constant 17 : index
    %c0_168 = arith.constant 0 : index
    %c0_169 = arith.constant 0 : index
    %345 = vector.load %arg7[%c17, %c0_168, %c0_169] : memref<36x16x16xbf16, #tpu.memory_space<vmem>>, vector<1x16x16xbf16>
    %346 = vector.shape_cast %345 : vector<1x16x16xbf16> to vector<16x16xbf16>
    %347 = arith.truncf %335 : vector<80x16xf32> to vector<80x16xbf16>
    %cst_170 = arith.constant dense<0.000000e+00> : vector<80x16xf32>
    %348 = tpu.matmul %347, %346, %cst_170 {dimension_numbers = #tpu.dot_dimension_numbers<[1], [0], [0], [1], [0, 0, 1, 1], [], []>} : vector<80x16xbf16>, vector<16x16xbf16>, vector<80x16xf32> -> vector<80x16xf32>
    %349 = arith.addf %344, %348 : vector<80x16xf32>
    %350 = arith.truncf %349 : vector<80x16xf32> to vector<80x16xbf16>
    %cst_171 = arith.constant dense<0.000000e+00> : vector<80x16xf32>
    %351 = tpu.matmul %300, %350, %cst_171 {dimension_numbers = #tpu.dot_dimension_numbers<[1], [0], [0], [1], [0, 0, 1, 1], [], []>} : vector<80x80xbf16>, vector<80x16xbf16>, vector<80x16xf32> -> vector<80x16xf32>
    %c8_172 = arith.constant 8 : index
    %c0_173 = arith.constant 0 : index
    %c0_174 = arith.constant 0 : index
    %352 = vector.load %arg8[%c8_172, %c0_173, %c0_174] : memref<18x1x16xf32, #tpu.memory_space<vmem>>, vector<1x1x16xf32>
    %353 = vector.shape_cast %352 : vector<1x1x16xf32> to vector<1x16xf32>
    %354 = vector.broadcast %353 : vector<1x16xf32> to vector<80x16xf32>
    %355 = arith.addf %351, %354 : vector<80x16xf32>
    %cst_175 = arith.constant 0.000000e+00 : f32
    %356 = vector.broadcast %cst_175 : f32 to vector<80x16xf32>
    %357 = arith.cmpf oge, %355, %356 : vector<80x16xf32>
    %cst_176 = arith.constant 0.00999999977 : f32
    %358 = vector.broadcast %cst_176 : f32 to vector<80x16xf32>
    %359 = arith.mulf %358, %355 : vector<80x16xf32>
    %360 = arith.select %357, %355, %359 : vector<80x16xi1>, vector<80x16xf32>
    %c2_177 = arith.constant 2 : index
    %c0_178 = arith.constant 0 : index
    %c0_179 = arith.constant 0 : index
    %361 = vector.load %arg9[%c2_177, %c0_178, %c0_179] : memref<6x32x32xbf16, #tpu.memory_space<vmem>>, vector<1x32x32xbf16>
    %362 = vector.shape_cast %361 : vector<1x32x32xbf16> to vector<32x32xbf16>
    %363 = arith.truncf %299 : vector<80x32xf32> to vector<80x32xbf16>
    %cst_180 = arith.constant dense<0.000000e+00> : vector<80x32xf32>
    %364 = tpu.matmul %363, %362, %cst_180 {dimension_numbers = #tpu.dot_dimension_numbers<[1], [0], [0], [1], [0, 0, 1, 1], [], []>} : vector<80x32xbf16>, vector<32x32xbf16>, vector<80x32xf32> -> vector<80x32xf32>
    %c6_181 = arith.constant 6 : index
    %c0_182 = arith.constant 0 : index
    %c0_183 = arith.constant 0 : index
    %365 = vector.load %arg10[%c6_181, %c0_182, %c0_183] : memref<18x16x32xbf16, #tpu.memory_space<vmem>>, vector<1x16x32xbf16>
    %366 = vector.shape_cast %365 : vector<1x16x32xbf16> to vector<16x32xbf16>
    %367 = arith.truncf %315 : vector<80x16xf32> to vector<80x16xbf16>
    %cst_184 = arith.constant dense<0.000000e+00> : vector<80x32xf32>
    %368 = tpu.matmul %367, %366, %cst_184 {dimension_numbers = #tpu.dot_dimension_numbers<[1], [0], [0], [1], [0, 0, 1, 1], [], []>} : vector<80x16xbf16>, vector<16x32xbf16>, vector<80x32xf32> -> vector<80x32xf32>
    %369 = arith.addf %364, %368 : vector<80x32xf32>
    %c7_185 = arith.constant 7 : index
    %c0_186 = arith.constant 0 : index
    %c0_187 = arith.constant 0 : index
    %370 = vector.load %arg10[%c7_185, %c0_186, %c0_187] : memref<18x16x32xbf16, #tpu.memory_space<vmem>>, vector<1x16x32xbf16>
    %371 = vector.shape_cast %370 : vector<1x16x32xbf16> to vector<16x32xbf16>
    %372 = arith.truncf %335 : vector<80x16xf32> to vector<80x16xbf16>
    %cst_188 = arith.constant dense<0.000000e+00> : vector<80x32xf32>
    %373 = tpu.matmul %372, %371, %cst_188 {dimension_numbers = #tpu.dot_dimension_numbers<[1], [0], [0], [1], [0, 0, 1, 1], [], []>} : vector<80x16xbf16>, vector<16x32xbf16>, vector<80x32xf32> -> vector<80x32xf32>
    %374 = arith.addf %369, %373 : vector<80x32xf32>
    %c8_189 = arith.constant 8 : index
    %c0_190 = arith.constant 0 : index
    %c0_191 = arith.constant 0 : index
    %375 = vector.load %arg10[%c8_189, %c0_190, %c0_191] : memref<18x16x32xbf16, #tpu.memory_space<vmem>>, vector<1x16x32xbf16>
    %376 = vector.shape_cast %375 : vector<1x16x32xbf16> to vector<16x32xbf16>
    %377 = arith.truncf %360 : vector<80x16xf32> to vector<80x16xbf16>
    %cst_192 = arith.constant dense<0.000000e+00> : vector<80x32xf32>
    %378 = tpu.matmul %377, %376, %cst_192 {dimension_numbers = #tpu.dot_dimension_numbers<[1], [0], [0], [1], [0, 0, 1, 1], [], []>} : vector<80x16xbf16>, vector<16x32xbf16>, vector<80x32xf32> -> vector<80x32xf32>
    %379 = arith.addf %374, %378 : vector<80x32xf32>
    %c2_193 = arith.constant 2 : index
    %c0_194 = arith.constant 0 : index
    %c0_195 = arith.constant 0 : index
    %380 = vector.load %arg11[%c2_193, %c0_194, %c0_195] : memref<6x1x32xf32, #tpu.memory_space<vmem>>, vector<1x1x32xf32>
    %381 = vector.shape_cast %380 : vector<1x1x32xf32> to vector<1x32xf32>
    %382 = vector.broadcast %381 : vector<1x32xf32> to vector<80x32xf32>
    %383 = arith.addf %379, %382 : vector<80x32xf32>
    %cst_196 = arith.constant 0.000000e+00 : f32
    %384 = vector.broadcast %cst_196 : f32 to vector<80x32xf32>
    %385 = arith.cmpf oge, %383, %384 : vector<80x32xf32>
    %cst_197 = arith.constant 0.00999999977 : f32
    %386 = vector.broadcast %cst_197 : f32 to vector<80x32xf32>
    %387 = arith.mulf %386, %383 : vector<80x32xf32>
    %388 = arith.select %385, %383, %387 : vector<80x32xi1>, vector<80x32xf32>
    %389 = vector.extract_strided_slice %388 {offsets = [0, 0], sizes = [8, 32], strides = [1, 1]} : vector<80x32xf32> to vector<8x32xf32>
    %390 = vector.extract_strided_slice %388 {offsets = [8, 0], sizes = [8, 32], strides = [1, 1]} : vector<80x32xf32> to vector<8x32xf32>
    %391 = arith.maximumf %389, %390 : vector<8x32xf32>
    %392 = vector.extract_strided_slice %388 {offsets = [16, 0], sizes = [8, 32], strides = [1, 1]} : vector<80x32xf32> to vector<8x32xf32>
    %393 = vector.extract_strided_slice %388 {offsets = [24, 0], sizes = [8, 32], strides = [1, 1]} : vector<80x32xf32> to vector<8x32xf32>
    %394 = arith.maximumf %392, %393 : vector<8x32xf32>
    %395 = vector.extract_strided_slice %388 {offsets = [32, 0], sizes = [8, 32], strides = [1, 1]} : vector<80x32xf32> to vector<8x32xf32>
    %396 = vector.extract_strided_slice %388 {offsets = [32, 0], sizes = [8, 32], strides = [1, 1]} : vector<80x32xf32> to vector<8x32xf32>
    %397 = arith.maximumf %395, %396 : vector<8x32xf32>
    %398 = vector.extract_strided_slice %388 {offsets = [40, 0], sizes = [8, 32], strides = [1, 1]} : vector<80x32xf32> to vector<8x32xf32>
    %399 = vector.extract_strided_slice %388 {offsets = [48, 0], sizes = [8, 32], strides = [1, 1]} : vector<80x32xf32> to vector<8x32xf32>
    %400 = arith.maximumf %398, %399 : vector<8x32xf32>
    %401 = vector.extract_strided_slice %388 {offsets = [56, 0], sizes = [8, 32], strides = [1, 1]} : vector<80x32xf32> to vector<8x32xf32>
    %402 = vector.extract_strided_slice %388 {offsets = [64, 0], sizes = [8, 32], strides = [1, 1]} : vector<80x32xf32> to vector<8x32xf32>
    %403 = arith.maximumf %401, %402 : vector<8x32xf32>
    %404 = vector.extract_strided_slice %388 {offsets = [72, 0], sizes = [8, 32], strides = [1, 1]} : vector<80x32xf32> to vector<8x32xf32>
    %405 = vector.extract_strided_slice %388 {offsets = [72, 0], sizes = [8, 32], strides = [1, 1]} : vector<80x32xf32> to vector<8x32xf32>
    %406 = arith.maximumf %404, %405 : vector<8x32xf32>
    %407 = tpu.concatenate %391, %394, %397, %400, %403, %406 in 0 : vector<8x32xf32>, vector<8x32xf32>, vector<8x32xf32>, vector<8x32xf32>, vector<8x32xf32>, vector<8x32xf32> -> vector<48x32xf32>
    %c0_198 = arith.constant 0 : index
    %c0_199 = arith.constant 0 : index
    %408 = vector.load %arg19[%c0_198, %c0_199] : memref<48x48xbf16, #tpu.memory_space<vmem>>, vector<48x48xbf16>
    %c9 = arith.constant 9 : index
    %c0_200 = arith.constant 0 : index
    %c0_201 = arith.constant 0 : index
    %409 = vector.load %arg6[%c9, %c0_200, %c0_201] : memref<18x32x16xbf16, #tpu.memory_space<vmem>>, vector<1x32x16xbf16>
    %410 = vector.shape_cast %409 : vector<1x32x16xbf16> to vector<32x16xbf16>
    %411 = arith.truncf %407 : vector<48x32xf32> to vector<48x32xbf16>
    %cst_202 = arith.constant dense<0.000000e+00> : vector<48x16xf32>
    %412 = tpu.matmul %411, %410, %cst_202 {dimension_numbers = #tpu.dot_dimension_numbers<[1], [0], [0], [1], [0, 0, 1, 1], [], []>} : vector<48x32xbf16>, vector<32x16xbf16>, vector<48x16xf32> -> vector<48x16xf32>
    %413 = arith.truncf %412 : vector<48x16xf32> to vector<48x16xbf16>
    %cst_203 = arith.constant dense<0.000000e+00> : vector<48x16xf32>
    %414 = tpu.matmul %408, %413, %cst_203 {dimension_numbers = #tpu.dot_dimension_numbers<[1], [0], [0], [1], [0, 0, 1, 1], [], []>} : vector<48x48xbf16>, vector<48x16xbf16>, vector<48x16xf32> -> vector<48x16xf32>
    %c9_204 = arith.constant 9 : index
    %c0_205 = arith.constant 0 : index
    %c0_206 = arith.constant 0 : index
    %415 = vector.load %arg8[%c9_204, %c0_205, %c0_206] : memref<18x1x16xf32, #tpu.memory_space<vmem>>, vector<1x1x16xf32>
    %416 = vector.shape_cast %415 : vector<1x1x16xf32> to vector<1x16xf32>
    %417 = vector.broadcast %416 : vector<1x16xf32> to vector<48x16xf32>
    %418 = arith.addf %414, %417 : vector<48x16xf32>
    %cst_207 = arith.constant 0.000000e+00 : f32
    %419 = vector.broadcast %cst_207 : f32 to vector<48x16xf32>
    %420 = arith.cmpf oge, %418, %419 : vector<48x16xf32>
    %cst_208 = arith.constant 0.00999999977 : f32
    %421 = vector.broadcast %cst_208 : f32 to vector<48x16xf32>
    %422 = arith.mulf %421, %418 : vector<48x16xf32>
    %423 = arith.select %420, %418, %422 : vector<48x16xi1>, vector<48x16xf32>
    %c10_209 = arith.constant 10 : index
    %c0_210 = arith.constant 0 : index
    %c0_211 = arith.constant 0 : index
    %424 = vector.load %arg6[%c10_209, %c0_210, %c0_211] : memref<18x32x16xbf16, #tpu.memory_space<vmem>>, vector<1x32x16xbf16>
    %425 = vector.shape_cast %424 : vector<1x32x16xbf16> to vector<32x16xbf16>
    %426 = arith.truncf %407 : vector<48x32xf32> to vector<48x32xbf16>
    %cst_212 = arith.constant dense<0.000000e+00> : vector<48x16xf32>
    %427 = tpu.matmul %426, %425, %cst_212 {dimension_numbers = #tpu.dot_dimension_numbers<[1], [0], [0], [1], [0, 0, 1, 1], [], []>} : vector<48x32xbf16>, vector<32x16xbf16>, vector<48x16xf32> -> vector<48x16xf32>
    %c20 = arith.constant 20 : index
    %c0_213 = arith.constant 0 : index
    %c0_214 = arith.constant 0 : index
    %428 = vector.load %arg7[%c20, %c0_213, %c0_214] : memref<36x16x16xbf16, #tpu.memory_space<vmem>>, vector<1x16x16xbf16>
    %429 = vector.shape_cast %428 : vector<1x16x16xbf16> to vector<16x16xbf16>
    %430 = arith.truncf %423 : vector<48x16xf32> to vector<48x16xbf16>
    %cst_215 = arith.constant dense<0.000000e+00> : vector<48x16xf32>
    %431 = tpu.matmul %430, %429, %cst_215 {dimension_numbers = #tpu.dot_dimension_numbers<[1], [0], [0], [1], [0, 0, 1, 1], [], []>} : vector<48x16xbf16>, vector<16x16xbf16>, vector<48x16xf32> -> vector<48x16xf32>
    %432 = arith.addf %427, %431 : vector<48x16xf32>
    %433 = arith.truncf %432 : vector<48x16xf32> to vector<48x16xbf16>
    %cst_216 = arith.constant dense<0.000000e+00> : vector<48x16xf32>
    %434 = tpu.matmul %408, %433, %cst_216 {dimension_numbers = #tpu.dot_dimension_numbers<[1], [0], [0], [1], [0, 0, 1, 1], [], []>} : vector<48x48xbf16>, vector<48x16xbf16>, vector<48x16xf32> -> vector<48x16xf32>
    %c10_217 = arith.constant 10 : index
    %c0_218 = arith.constant 0 : index
    %c0_219 = arith.constant 0 : index
    %435 = vector.load %arg8[%c10_217, %c0_218, %c0_219] : memref<18x1x16xf32, #tpu.memory_space<vmem>>, vector<1x1x16xf32>
    %436 = vector.shape_cast %435 : vector<1x1x16xf32> to vector<1x16xf32>
    %437 = vector.broadcast %436 : vector<1x16xf32> to vector<48x16xf32>
    %438 = arith.addf %434, %437 : vector<48x16xf32>
    %cst_220 = arith.constant 0.000000e+00 : f32
    %439 = vector.broadcast %cst_220 : f32 to vector<48x16xf32>
    %440 = arith.cmpf oge, %438, %439 : vector<48x16xf32>
    %cst_221 = arith.constant 0.00999999977 : f32
    %441 = vector.broadcast %cst_221 : f32 to vector<48x16xf32>
    %442 = arith.mulf %441, %438 : vector<48x16xf32>
    %443 = arith.select %440, %438, %442 : vector<48x16xi1>, vector<48x16xf32>
    %c11_222 = arith.constant 11 : index
    %c0_223 = arith.constant 0 : index
    %c0_224 = arith.constant 0 : index
    %444 = vector.load %arg6[%c11_222, %c0_223, %c0_224] : memref<18x32x16xbf16, #tpu.memory_space<vmem>>, vector<1x32x16xbf16>
    %445 = vector.shape_cast %444 : vector<1x32x16xbf16> to vector<32x16xbf16>
    %446 = arith.truncf %407 : vector<48x32xf32> to vector<48x32xbf16>
    %cst_225 = arith.constant dense<0.000000e+00> : vector<48x16xf32>
    %447 = tpu.matmul %446, %445, %cst_225 {dimension_numbers = #tpu.dot_dimension_numbers<[1], [0], [0], [1], [0, 0, 1, 1], [], []>} : vector<48x32xbf16>, vector<32x16xbf16>, vector<48x16xf32> -> vector<48x16xf32>
    %c22 = arith.constant 22 : index
    %c0_226 = arith.constant 0 : index
    %c0_227 = arith.constant 0 : index
    %448 = vector.load %arg7[%c22, %c0_226, %c0_227] : memref<36x16x16xbf16, #tpu.memory_space<vmem>>, vector<1x16x16xbf16>
    %449 = vector.shape_cast %448 : vector<1x16x16xbf16> to vector<16x16xbf16>
    %450 = arith.truncf %423 : vector<48x16xf32> to vector<48x16xbf16>
    %cst_228 = arith.constant dense<0.000000e+00> : vector<48x16xf32>
    %451 = tpu.matmul %450, %449, %cst_228 {dimension_numbers = #tpu.dot_dimension_numbers<[1], [0], [0], [1], [0, 0, 1, 1], [], []>} : vector<48x16xbf16>, vector<16x16xbf16>, vector<48x16xf32> -> vector<48x16xf32>
    %452 = arith.addf %447, %451 : vector<48x16xf32>
    %c23 = arith.constant 23 : index
    %c0_229 = arith.constant 0 : index
    %c0_230 = arith.constant 0 : index
    %453 = vector.load %arg7[%c23, %c0_229, %c0_230] : memref<36x16x16xbf16, #tpu.memory_space<vmem>>, vector<1x16x16xbf16>
    %454 = vector.shape_cast %453 : vector<1x16x16xbf16> to vector<16x16xbf16>
    %455 = arith.truncf %443 : vector<48x16xf32> to vector<48x16xbf16>
    %cst_231 = arith.constant dense<0.000000e+00> : vector<48x16xf32>
    %456 = tpu.matmul %455, %454, %cst_231 {dimension_numbers = #tpu.dot_dimension_numbers<[1], [0], [0], [1], [0, 0, 1, 1], [], []>} : vector<48x16xbf16>, vector<16x16xbf16>, vector<48x16xf32> -> vector<48x16xf32>
    %457 = arith.addf %452, %456 : vector<48x16xf32>
    %458 = arith.truncf %457 : vector<48x16xf32> to vector<48x16xbf16>
    %cst_232 = arith.constant dense<0.000000e+00> : vector<48x16xf32>
    %459 = tpu.matmul %408, %458, %cst_232 {dimension_numbers = #tpu.dot_dimension_numbers<[1], [0], [0], [1], [0, 0, 1, 1], [], []>} : vector<48x48xbf16>, vector<48x16xbf16>, vector<48x16xf32> -> vector<48x16xf32>
    %c11_233 = arith.constant 11 : index
    %c0_234 = arith.constant 0 : index
    %c0_235 = arith.constant 0 : index
    %460 = vector.load %arg8[%c11_233, %c0_234, %c0_235] : memref<18x1x16xf32, #tpu.memory_space<vmem>>, vector<1x1x16xf32>
    %461 = vector.shape_cast %460 : vector<1x1x16xf32> to vector<1x16xf32>
    %462 = vector.broadcast %461 : vector<1x16xf32> to vector<48x16xf32>
    %463 = arith.addf %459, %462 : vector<48x16xf32>
    %cst_236 = arith.constant 0.000000e+00 : f32
    %464 = vector.broadcast %cst_236 : f32 to vector<48x16xf32>
    %465 = arith.cmpf oge, %463, %464 : vector<48x16xf32>
    %cst_237 = arith.constant 0.00999999977 : f32
    %466 = vector.broadcast %cst_237 : f32 to vector<48x16xf32>
    %467 = arith.mulf %466, %463 : vector<48x16xf32>
    %468 = arith.select %465, %463, %467 : vector<48x16xi1>, vector<48x16xf32>
    %c3_238 = arith.constant 3 : index
    %c0_239 = arith.constant 0 : index
    %c0_240 = arith.constant 0 : index
    %469 = vector.load %arg9[%c3_238, %c0_239, %c0_240] : memref<6x32x32xbf16, #tpu.memory_space<vmem>>, vector<1x32x32xbf16>
    %470 = vector.shape_cast %469 : vector<1x32x32xbf16> to vector<32x32xbf16>
    %471 = arith.truncf %407 : vector<48x32xf32> to vector<48x32xbf16>
    %cst_241 = arith.constant dense<0.000000e+00> : vector<48x32xf32>
    %472 = tpu.matmul %471, %470, %cst_241 {dimension_numbers = #tpu.dot_dimension_numbers<[1], [0], [0], [1], [0, 0, 1, 1], [], []>} : vector<48x32xbf16>, vector<32x32xbf16>, vector<48x32xf32> -> vector<48x32xf32>
    %c9_242 = arith.constant 9 : index
    %c0_243 = arith.constant 0 : index
    %c0_244 = arith.constant 0 : index
    %473 = vector.load %arg10[%c9_242, %c0_243, %c0_244] : memref<18x16x32xbf16, #tpu.memory_space<vmem>>, vector<1x16x32xbf16>
    %474 = vector.shape_cast %473 : vector<1x16x32xbf16> to vector<16x32xbf16>
    %475 = arith.truncf %423 : vector<48x16xf32> to vector<48x16xbf16>
    %cst_245 = arith.constant dense<0.000000e+00> : vector<48x32xf32>
    %476 = tpu.matmul %475, %474, %cst_245 {dimension_numbers = #tpu.dot_dimension_numbers<[1], [0], [0], [1], [0, 0, 1, 1], [], []>} : vector<48x16xbf16>, vector<16x32xbf16>, vector<48x32xf32> -> vector<48x32xf32>
    %477 = arith.addf %472, %476 : vector<48x32xf32>
    %c10_246 = arith.constant 10 : index
    %c0_247 = arith.constant 0 : index
    %c0_248 = arith.constant 0 : index
    %478 = vector.load %arg10[%c10_246, %c0_247, %c0_248] : memref<18x16x32xbf16, #tpu.memory_space<vmem>>, vector<1x16x32xbf16>
    %479 = vector.shape_cast %478 : vector<1x16x32xbf16> to vector<16x32xbf16>
    %480 = arith.truncf %443 : vector<48x16xf32> to vector<48x16xbf16>
    %cst_249 = arith.constant dense<0.000000e+00> : vector<48x32xf32>
    %481 = tpu.matmul %480, %479, %cst_249 {dimension_numbers = #tpu.dot_dimension_numbers<[1], [0], [0], [1], [0, 0, 1, 1], [], []>} : vector<48x16xbf16>, vector<16x32xbf16>, vector<48x32xf32> -> vector<48x32xf32>
    %482 = arith.addf %477, %481 : vector<48x32xf32>
    %c11_250 = arith.constant 11 : index
    %c0_251 = arith.constant 0 : index
    %c0_252 = arith.constant 0 : index
    %483 = vector.load %arg10[%c11_250, %c0_251, %c0_252] : memref<18x16x32xbf16, #tpu.memory_space<vmem>>, vector<1x16x32xbf16>
    %484 = vector.shape_cast %483 : vector<1x16x32xbf16> to vector<16x32xbf16>
    %485 = arith.truncf %468 : vector<48x16xf32> to vector<48x16xbf16>
    %cst_253 = arith.constant dense<0.000000e+00> : vector<48x32xf32>
    %486 = tpu.matmul %485, %484, %cst_253 {dimension_numbers = #tpu.dot_dimension_numbers<[1], [0], [0], [1], [0, 0, 1, 1], [], []>} : vector<48x16xbf16>, vector<16x32xbf16>, vector<48x32xf32> -> vector<48x32xf32>
    %487 = arith.addf %482, %486 : vector<48x32xf32>
    %c3_254 = arith.constant 3 : index
    %c0_255 = arith.constant 0 : index
    %c0_256 = arith.constant 0 : index
    %488 = vector.load %arg11[%c3_254, %c0_255, %c0_256] : memref<6x1x32xf32, #tpu.memory_space<vmem>>, vector<1x1x32xf32>
    %489 = vector.shape_cast %488 : vector<1x1x32xf32> to vector<1x32xf32>
    %490 = vector.broadcast %489 : vector<1x32xf32> to vector<48x32xf32>
    %491 = arith.addf %487, %490 : vector<48x32xf32>
    %cst_257 = arith.constant 0.000000e+00 : f32
    %492 = vector.broadcast %cst_257 : f32 to vector<48x32xf32>
    %493 = arith.cmpf oge, %491, %492 : vector<48x32xf32>
    %cst_258 = arith.constant 0.00999999977 : f32
    %494 = vector.broadcast %cst_258 : f32 to vector<48x32xf32>
    %495 = arith.mulf %494, %491 : vector<48x32xf32>
    %496 = arith.select %493, %491, %495 : vector<48x32xi1>, vector<48x32xf32>
    %497 = vector.extract_strided_slice %496 {offsets = [0, 0], sizes = [8, 32], strides = [1, 1]} : vector<48x32xf32> to vector<8x32xf32>
    %498 = vector.extract_strided_slice %496 {offsets = [8, 0], sizes = [8, 32], strides = [1, 1]} : vector<48x32xf32> to vector<8x32xf32>
    %499 = arith.maximumf %497, %498 : vector<8x32xf32>
    %500 = vector.extract_strided_slice %496 {offsets = [16, 0], sizes = [8, 32], strides = [1, 1]} : vector<48x32xf32> to vector<8x32xf32>
    %501 = vector.extract_strided_slice %496 {offsets = [16, 0], sizes = [8, 32], strides = [1, 1]} : vector<48x32xf32> to vector<8x32xf32>
    %502 = arith.maximumf %500, %501 : vector<8x32xf32>
    %503 = vector.extract_strided_slice %496 {offsets = [24, 0], sizes = [8, 32], strides = [1, 1]} : vector<48x32xf32> to vector<8x32xf32>
    %504 = vector.extract_strided_slice %496 {offsets = [32, 0], sizes = [8, 32], strides = [1, 1]} : vector<48x32xf32> to vector<8x32xf32>
    %505 = arith.maximumf %503, %504 : vector<8x32xf32>
    %506 = vector.extract_strided_slice %496 {offsets = [40, 0], sizes = [8, 32], strides = [1, 1]} : vector<48x32xf32> to vector<8x32xf32>
    %507 = vector.extract_strided_slice %496 {offsets = [40, 0], sizes = [8, 32], strides = [1, 1]} : vector<48x32xf32> to vector<8x32xf32>
    %508 = arith.maximumf %506, %507 : vector<8x32xf32>
    %509 = tpu.concatenate %499, %502, %505, %508 in 0 : vector<8x32xf32>, vector<8x32xf32>, vector<8x32xf32>, vector<8x32xf32> -> vector<32x32xf32>
    %c0_259 = arith.constant 0 : index
    %c0_260 = arith.constant 0 : index
    %510 = vector.load %arg20[%c0_259, %c0_260] : memref<32x32xbf16, #tpu.memory_space<vmem>>, vector<32x32xbf16>
    %c12 = arith.constant 12 : index
    %c0_261 = arith.constant 0 : index
    %c0_262 = arith.constant 0 : index
    %511 = vector.load %arg6[%c12, %c0_261, %c0_262] : memref<18x32x16xbf16, #tpu.memory_space<vmem>>, vector<1x32x16xbf16>
    %512 = vector.shape_cast %511 : vector<1x32x16xbf16> to vector<32x16xbf16>
    %513 = arith.truncf %509 : vector<32x32xf32> to vector<32x32xbf16>
    %cst_263 = arith.constant dense<0.000000e+00> : vector<32x16xf32>
    %514 = tpu.matmul %513, %512, %cst_263 {dimension_numbers = #tpu.dot_dimension_numbers<[1], [0], [0], [1], [0, 0, 1, 1], [], []>} : vector<32x32xbf16>, vector<32x16xbf16>, vector<32x16xf32> -> vector<32x16xf32>
    %515 = arith.truncf %514 : vector<32x16xf32> to vector<32x16xbf16>
    %cst_264 = arith.constant dense<0.000000e+00> : vector<32x16xf32>
    %516 = tpu.matmul %510, %515, %cst_264 {dimension_numbers = #tpu.dot_dimension_numbers<[1], [0], [0], [1], [0, 0, 1, 1], [], []>} : vector<32x32xbf16>, vector<32x16xbf16>, vector<32x16xf32> -> vector<32x16xf32>
    %c12_265 = arith.constant 12 : index
    %c0_266 = arith.constant 0 : index
    %c0_267 = arith.constant 0 : index
    %517 = vector.load %arg8[%c12_265, %c0_266, %c0_267] : memref<18x1x16xf32, #tpu.memory_space<vmem>>, vector<1x1x16xf32>
    %518 = vector.shape_cast %517 : vector<1x1x16xf32> to vector<1x16xf32>
    %519 = vector.broadcast %518 : vector<1x16xf32> to vector<32x16xf32>
    %520 = arith.addf %516, %519 : vector<32x16xf32>
    %cst_268 = arith.constant 0.000000e+00 : f32
    %521 = vector.broadcast %cst_268 : f32 to vector<32x16xf32>
    %522 = arith.cmpf oge, %520, %521 : vector<32x16xf32>
    %cst_269 = arith.constant 0.00999999977 : f32
    %523 = vector.broadcast %cst_269 : f32 to vector<32x16xf32>
    %524 = arith.mulf %523, %520 : vector<32x16xf32>
    %525 = arith.select %522, %520, %524 : vector<32x16xi1>, vector<32x16xf32>
    %c13 = arith.constant 13 : index
    %c0_270 = arith.constant 0 : index
    %c0_271 = arith.constant 0 : index
    %526 = vector.load %arg6[%c13, %c0_270, %c0_271] : memref<18x32x16xbf16, #tpu.memory_space<vmem>>, vector<1x32x16xbf16>
    %527 = vector.shape_cast %526 : vector<1x32x16xbf16> to vector<32x16xbf16>
    %528 = arith.truncf %509 : vector<32x32xf32> to vector<32x32xbf16>
    %cst_272 = arith.constant dense<0.000000e+00> : vector<32x16xf32>
    %529 = tpu.matmul %528, %527, %cst_272 {dimension_numbers = #tpu.dot_dimension_numbers<[1], [0], [0], [1], [0, 0, 1, 1], [], []>} : vector<32x32xbf16>, vector<32x16xbf16>, vector<32x16xf32> -> vector<32x16xf32>
    %c26 = arith.constant 26 : index
    %c0_273 = arith.constant 0 : index
    %c0_274 = arith.constant 0 : index
    %530 = vector.load %arg7[%c26, %c0_273, %c0_274] : memref<36x16x16xbf16, #tpu.memory_space<vmem>>, vector<1x16x16xbf16>
    %531 = vector.shape_cast %530 : vector<1x16x16xbf16> to vector<16x16xbf16>
    %532 = arith.truncf %525 : vector<32x16xf32> to vector<32x16xbf16>
    %cst_275 = arith.constant dense<0.000000e+00> : vector<32x16xf32>
    %533 = tpu.matmul %532, %531, %cst_275 {dimension_numbers = #tpu.dot_dimension_numbers<[1], [0], [0], [1], [0, 0, 1, 1], [], []>} : vector<32x16xbf16>, vector<16x16xbf16>, vector<32x16xf32> -> vector<32x16xf32>
    %534 = arith.addf %529, %533 : vector<32x16xf32>
    %535 = arith.truncf %534 : vector<32x16xf32> to vector<32x16xbf16>
    %cst_276 = arith.constant dense<0.000000e+00> : vector<32x16xf32>
    %536 = tpu.matmul %510, %535, %cst_276 {dimension_numbers = #tpu.dot_dimension_numbers<[1], [0], [0], [1], [0, 0, 1, 1], [], []>} : vector<32x32xbf16>, vector<32x16xbf16>, vector<32x16xf32> -> vector<32x16xf32>
    %c13_277 = arith.constant 13 : index
    %c0_278 = arith.constant 0 : index
    %c0_279 = arith.constant 0 : index
    %537 = vector.load %arg8[%c13_277, %c0_278, %c0_279] : memref<18x1x16xf32, #tpu.memory_space<vmem>>, vector<1x1x16xf32>
    %538 = vector.shape_cast %537 : vector<1x1x16xf32> to vector<1x16xf32>
    %539 = vector.broadcast %538 : vector<1x16xf32> to vector<32x16xf32>
    %540 = arith.addf %536, %539 : vector<32x16xf32>
    %cst_280 = arith.constant 0.000000e+00 : f32
    %541 = vector.broadcast %cst_280 : f32 to vector<32x16xf32>
    %542 = arith.cmpf oge, %540, %541 : vector<32x16xf32>
    %cst_281 = arith.constant 0.00999999977 : f32
    %543 = vector.broadcast %cst_281 : f32 to vector<32x16xf32>
    %544 = arith.mulf %543, %540 : vector<32x16xf32>
    %545 = arith.select %542, %540, %544 : vector<32x16xi1>, vector<32x16xf32>
    %c14_282 = arith.constant 14 : index
    %c0_283 = arith.constant 0 : index
    %c0_284 = arith.constant 0 : index
    %546 = vector.load %arg6[%c14_282, %c0_283, %c0_284] : memref<18x32x16xbf16, #tpu.memory_space<vmem>>, vector<1x32x16xbf16>
    %547 = vector.shape_cast %546 : vector<1x32x16xbf16> to vector<32x16xbf16>
    %548 = arith.truncf %509 : vector<32x32xf32> to vector<32x32xbf16>
    %cst_285 = arith.constant dense<0.000000e+00> : vector<32x16xf32>
    %549 = tpu.matmul %548, %547, %cst_285 {dimension_numbers = #tpu.dot_dimension_numbers<[1], [0], [0], [1], [0, 0, 1, 1], [], []>} : vector<32x32xbf16>, vector<32x16xbf16>, vector<32x16xf32> -> vector<32x16xf32>
    %c28 = arith.constant 28 : index
    %c0_286 = arith.constant 0 : index
    %c0_287 = arith.constant 0 : index
    %550 = vector.load %arg7[%c28, %c0_286, %c0_287] : memref<36x16x16xbf16, #tpu.memory_space<vmem>>, vector<1x16x16xbf16>
    %551 = vector.shape_cast %550 : vector<1x16x16xbf16> to vector<16x16xbf16>
    %552 = arith.truncf %525 : vector<32x16xf32> to vector<32x16xbf16>
    %cst_288 = arith.constant dense<0.000000e+00> : vector<32x16xf32>
    %553 = tpu.matmul %552, %551, %cst_288 {dimension_numbers = #tpu.dot_dimension_numbers<[1], [0], [0], [1], [0, 0, 1, 1], [], []>} : vector<32x16xbf16>, vector<16x16xbf16>, vector<32x16xf32> -> vector<32x16xf32>
    %554 = arith.addf %549, %553 : vector<32x16xf32>
    %c29 = arith.constant 29 : index
    %c0_289 = arith.constant 0 : index
    %c0_290 = arith.constant 0 : index
    %555 = vector.load %arg7[%c29, %c0_289, %c0_290] : memref<36x16x16xbf16, #tpu.memory_space<vmem>>, vector<1x16x16xbf16>
    %556 = vector.shape_cast %555 : vector<1x16x16xbf16> to vector<16x16xbf16>
    %557 = arith.truncf %545 : vector<32x16xf32> to vector<32x16xbf16>
    %cst_291 = arith.constant dense<0.000000e+00> : vector<32x16xf32>
    %558 = tpu.matmul %557, %556, %cst_291 {dimension_numbers = #tpu.dot_dimension_numbers<[1], [0], [0], [1], [0, 0, 1, 1], [], []>} : vector<32x16xbf16>, vector<16x16xbf16>, vector<32x16xf32> -> vector<32x16xf32>
    %559 = arith.addf %554, %558 : vector<32x16xf32>
    %560 = arith.truncf %559 : vector<32x16xf32> to vector<32x16xbf16>
    %cst_292 = arith.constant dense<0.000000e+00> : vector<32x16xf32>
    %561 = tpu.matmul %510, %560, %cst_292 {dimension_numbers = #tpu.dot_dimension_numbers<[1], [0], [0], [1], [0, 0, 1, 1], [], []>} : vector<32x32xbf16>, vector<32x16xbf16>, vector<32x16xf32> -> vector<32x16xf32>
    %c14_293 = arith.constant 14 : index
    %c0_294 = arith.constant 0 : index
    %c0_295 = arith.constant 0 : index
    %562 = vector.load %arg8[%c14_293, %c0_294, %c0_295] : memref<18x1x16xf32, #tpu.memory_space<vmem>>, vector<1x1x16xf32>
    %563 = vector.shape_cast %562 : vector<1x1x16xf32> to vector<1x16xf32>
    %564 = vector.broadcast %563 : vector<1x16xf32> to vector<32x16xf32>
    %565 = arith.addf %561, %564 : vector<32x16xf32>
    %cst_296 = arith.constant 0.000000e+00 : f32
    %566 = vector.broadcast %cst_296 : f32 to vector<32x16xf32>
    %567 = arith.cmpf oge, %565, %566 : vector<32x16xf32>
    %cst_297 = arith.constant 0.00999999977 : f32
    %568 = vector.broadcast %cst_297 : f32 to vector<32x16xf32>
    %569 = arith.mulf %568, %565 : vector<32x16xf32>
    %570 = arith.select %567, %565, %569 : vector<32x16xi1>, vector<32x16xf32>
    %c4_298 = arith.constant 4 : index
    %c0_299 = arith.constant 0 : index
    %c0_300 = arith.constant 0 : index
    %571 = vector.load %arg9[%c4_298, %c0_299, %c0_300] : memref<6x32x32xbf16, #tpu.memory_space<vmem>>, vector<1x32x32xbf16>
    %572 = vector.shape_cast %571 : vector<1x32x32xbf16> to vector<32x32xbf16>
    %573 = arith.truncf %509 : vector<32x32xf32> to vector<32x32xbf16>
    %cst_301 = arith.constant dense<0.000000e+00> : vector<32x32xf32>
    %574 = tpu.matmul %573, %572, %cst_301 {dimension_numbers = #tpu.dot_dimension_numbers<[1], [0], [0], [1], [0, 0, 1, 1], [], []>} : vector<32x32xbf16>, vector<32x32xbf16>, vector<32x32xf32> -> vector<32x32xf32>
    %c12_302 = arith.constant 12 : index
    %c0_303 = arith.constant 0 : index
    %c0_304 = arith.constant 0 : index
    %575 = vector.load %arg10[%c12_302, %c0_303, %c0_304] : memref<18x16x32xbf16, #tpu.memory_space<vmem>>, vector<1x16x32xbf16>
    %576 = vector.shape_cast %575 : vector<1x16x32xbf16> to vector<16x32xbf16>
    %577 = arith.truncf %525 : vector<32x16xf32> to vector<32x16xbf16>
    %cst_305 = arith.constant dense<0.000000e+00> : vector<32x32xf32>
    %578 = tpu.matmul %577, %576, %cst_305 {dimension_numbers = #tpu.dot_dimension_numbers<[1], [0], [0], [1], [0, 0, 1, 1], [], []>} : vector<32x16xbf16>, vector<16x32xbf16>, vector<32x32xf32> -> vector<32x32xf32>
    %579 = arith.addf %574, %578 : vector<32x32xf32>
    %c13_306 = arith.constant 13 : index
    %c0_307 = arith.constant 0 : index
    %c0_308 = arith.constant 0 : index
    %580 = vector.load %arg10[%c13_306, %c0_307, %c0_308] : memref<18x16x32xbf16, #tpu.memory_space<vmem>>, vector<1x16x32xbf16>
    %581 = vector.shape_cast %580 : vector<1x16x32xbf16> to vector<16x32xbf16>
    %582 = arith.truncf %545 : vector<32x16xf32> to vector<32x16xbf16>
    %cst_309 = arith.constant dense<0.000000e+00> : vector<32x32xf32>
    %583 = tpu.matmul %582, %581, %cst_309 {dimension_numbers = #tpu.dot_dimension_numbers<[1], [0], [0], [1], [0, 0, 1, 1], [], []>} : vector<32x16xbf16>, vector<16x32xbf16>, vector<32x32xf32> -> vector<32x32xf32>
    %584 = arith.addf %579, %583 : vector<32x32xf32>
    %c14_310 = arith.constant 14 : index
    %c0_311 = arith.constant 0 : index
    %c0_312 = arith.constant 0 : index
    %585 = vector.load %arg10[%c14_310, %c0_311, %c0_312] : memref<18x16x32xbf16, #tpu.memory_space<vmem>>, vector<1x16x32xbf16>
    %586 = vector.shape_cast %585 : vector<1x16x32xbf16> to vector<16x32xbf16>
    %587 = arith.truncf %570 : vector<32x16xf32> to vector<32x16xbf16>
    %cst_313 = arith.constant dense<0.000000e+00> : vector<32x32xf32>
    %588 = tpu.matmul %587, %586, %cst_313 {dimension_numbers = #tpu.dot_dimension_numbers<[1], [0], [0], [1], [0, 0, 1, 1], [], []>} : vector<32x16xbf16>, vector<16x32xbf16>, vector<32x32xf32> -> vector<32x32xf32>
    %589 = arith.addf %584, %588 : vector<32x32xf32>
    %c4_314 = arith.constant 4 : index
    %c0_315 = arith.constant 0 : index
    %c0_316 = arith.constant 0 : index
    %590 = vector.load %arg11[%c4_314, %c0_315, %c0_316] : memref<6x1x32xf32, #tpu.memory_space<vmem>>, vector<1x1x32xf32>
    %591 = vector.shape_cast %590 : vector<1x1x32xf32> to vector<1x32xf32>
    %592 = vector.broadcast %591 : vector<1x32xf32> to vector<32x32xf32>
    %593 = arith.addf %589, %592 : vector<32x32xf32>
    %cst_317 = arith.constant 0.000000e+00 : f32
    %594 = vector.broadcast %cst_317 : f32 to vector<32x32xf32>
    %595 = arith.cmpf oge, %593, %594 : vector<32x32xf32>
    %cst_318 = arith.constant 0.00999999977 : f32
    %596 = vector.broadcast %cst_318 : f32 to vector<32x32xf32>
    %597 = arith.mulf %596, %593 : vector<32x32xf32>
    %598 = arith.select %595, %593, %597 : vector<32x32xi1>, vector<32x32xf32>
    %599 = vector.extract_strided_slice %598 {offsets = [0, 0], sizes = [8, 32], strides = [1, 1]} : vector<32x32xf32> to vector<8x32xf32>
    %600 = vector.extract_strided_slice %598 {offsets = [8, 0], sizes = [8, 32], strides = [1, 1]} : vector<32x32xf32> to vector<8x32xf32>
    %601 = arith.maximumf %599, %600 : vector<8x32xf32>
    %602 = vector.extract_strided_slice %598 {offsets = [16, 0], sizes = [8, 32], strides = [1, 1]} : vector<32x32xf32> to vector<8x32xf32>
    %603 = vector.extract_strided_slice %598 {offsets = [24, 0], sizes = [8, 32], strides = [1, 1]} : vector<32x32xf32> to vector<8x32xf32>
    %604 = arith.maximumf %602, %603 : vector<8x32xf32>
    %605 = tpu.concatenate %601, %604 in 0 : vector<8x32xf32>, vector<8x32xf32> -> vector<16x32xf32>
    %c0_319 = arith.constant 0 : index
    %c0_320 = arith.constant 0 : index
    %606 = vector.load %arg21[%c0_319, %c0_320] : memref<16x16xbf16, #tpu.memory_space<vmem>>, vector<16x16xbf16>
    %c15 = arith.constant 15 : index
    %c0_321 = arith.constant 0 : index
    %c0_322 = arith.constant 0 : index
    %607 = vector.load %arg6[%c15, %c0_321, %c0_322] : memref<18x32x16xbf16, #tpu.memory_space<vmem>>, vector<1x32x16xbf16>
    %608 = vector.shape_cast %607 : vector<1x32x16xbf16> to vector<32x16xbf16>
    %609 = arith.truncf %605 : vector<16x32xf32> to vector<16x32xbf16>
    %cst_323 = arith.constant dense<0.000000e+00> : vector<16x16xf32>
    %610 = tpu.matmul %609, %608, %cst_323 {dimension_numbers = #tpu.dot_dimension_numbers<[1], [0], [0], [1], [0, 0, 1, 1], [], []>} : vector<16x32xbf16>, vector<32x16xbf16>, vector<16x16xf32> -> vector<16x16xf32>
    %611 = arith.truncf %610 : vector<16x16xf32> to vector<16x16xbf16>
    %cst_324 = arith.constant dense<0.000000e+00> : vector<16x16xf32>
    %612 = tpu.matmul %606, %611, %cst_324 {dimension_numbers = #tpu.dot_dimension_numbers<[1], [0], [0], [1], [0, 0, 1, 1], [], []>} : vector<16x16xbf16>, vector<16x16xbf16>, vector<16x16xf32> -> vector<16x16xf32>
    %c15_325 = arith.constant 15 : index
    %c0_326 = arith.constant 0 : index
    %c0_327 = arith.constant 0 : index
    %613 = vector.load %arg8[%c15_325, %c0_326, %c0_327] : memref<18x1x16xf32, #tpu.memory_space<vmem>>, vector<1x1x16xf32>
    %614 = vector.shape_cast %613 : vector<1x1x16xf32> to vector<1x16xf32>
    %615 = vector.broadcast %614 : vector<1x16xf32> to vector<16x16xf32>
    %616 = arith.addf %612, %615 : vector<16x16xf32>
    %cst_328 = arith.constant 0.000000e+00 : f32
    %617 = vector.broadcast %cst_328 : f32 to vector<16x16xf32>
    %618 = arith.cmpf oge, %616, %617 : vector<16x16xf32>
    %cst_329 = arith.constant 0.00999999977 : f32
    %619 = vector.broadcast %cst_329 : f32 to vector<16x16xf32>
    %620 = arith.mulf %619, %616 : vector<16x16xf32>
    %621 = arith.select %618, %616, %620 : vector<16x16xi1>, vector<16x16xf32>
    %c16_330 = arith.constant 16 : index
    %c0_331 = arith.constant 0 : index
    %c0_332 = arith.constant 0 : index
    %622 = vector.load %arg6[%c16_330, %c0_331, %c0_332] : memref<18x32x16xbf16, #tpu.memory_space<vmem>>, vector<1x32x16xbf16>
    %623 = vector.shape_cast %622 : vector<1x32x16xbf16> to vector<32x16xbf16>
    %624 = arith.truncf %605 : vector<16x32xf32> to vector<16x32xbf16>
    %cst_333 = arith.constant dense<0.000000e+00> : vector<16x16xf32>
    %625 = tpu.matmul %624, %623, %cst_333 {dimension_numbers = #tpu.dot_dimension_numbers<[1], [0], [0], [1], [0, 0, 1, 1], [], []>} : vector<16x32xbf16>, vector<32x16xbf16>, vector<16x16xf32> -> vector<16x16xf32>
    %c32 = arith.constant 32 : index
    %c0_334 = arith.constant 0 : index
    %c0_335 = arith.constant 0 : index
    %626 = vector.load %arg7[%c32, %c0_334, %c0_335] : memref<36x16x16xbf16, #tpu.memory_space<vmem>>, vector<1x16x16xbf16>
    %627 = vector.shape_cast %626 : vector<1x16x16xbf16> to vector<16x16xbf16>
    %628 = arith.truncf %621 : vector<16x16xf32> to vector<16x16xbf16>
    %cst_336 = arith.constant dense<0.000000e+00> : vector<16x16xf32>
    %629 = tpu.matmul %628, %627, %cst_336 {dimension_numbers = #tpu.dot_dimension_numbers<[1], [0], [0], [1], [0, 0, 1, 1], [], []>} : vector<16x16xbf16>, vector<16x16xbf16>, vector<16x16xf32> -> vector<16x16xf32>
    %630 = arith.addf %625, %629 : vector<16x16xf32>
    %631 = arith.truncf %630 : vector<16x16xf32> to vector<16x16xbf16>
    %cst_337 = arith.constant dense<0.000000e+00> : vector<16x16xf32>
    %632 = tpu.matmul %606, %631, %cst_337 {dimension_numbers = #tpu.dot_dimension_numbers<[1], [0], [0], [1], [0, 0, 1, 1], [], []>} : vector<16x16xbf16>, vector<16x16xbf16>, vector<16x16xf32> -> vector<16x16xf32>
    %c16_338 = arith.constant 16 : index
    %c0_339 = arith.constant 0 : index
    %c0_340 = arith.constant 0 : index
    %633 = vector.load %arg8[%c16_338, %c0_339, %c0_340] : memref<18x1x16xf32, #tpu.memory_space<vmem>>, vector<1x1x16xf32>
    %634 = vector.shape_cast %633 : vector<1x1x16xf32> to vector<1x16xf32>
    %635 = vector.broadcast %634 : vector<1x16xf32> to vector<16x16xf32>
    %636 = arith.addf %632, %635 : vector<16x16xf32>
    %cst_341 = arith.constant 0.000000e+00 : f32
    %637 = vector.broadcast %cst_341 : f32 to vector<16x16xf32>
    %638 = arith.cmpf oge, %636, %637 : vector<16x16xf32>
    %cst_342 = arith.constant 0.00999999977 : f32
    %639 = vector.broadcast %cst_342 : f32 to vector<16x16xf32>
    %640 = arith.mulf %639, %636 : vector<16x16xf32>
    %641 = arith.select %638, %636, %640 : vector<16x16xi1>, vector<16x16xf32>
    %c17_343 = arith.constant 17 : index
    %c0_344 = arith.constant 0 : index
    %c0_345 = arith.constant 0 : index
    %642 = vector.load %arg6[%c17_343, %c0_344, %c0_345] : memref<18x32x16xbf16, #tpu.memory_space<vmem>>, vector<1x32x16xbf16>
    %643 = vector.shape_cast %642 : vector<1x32x16xbf16> to vector<32x16xbf16>
    %644 = arith.truncf %605 : vector<16x32xf32> to vector<16x32xbf16>
    %cst_346 = arith.constant dense<0.000000e+00> : vector<16x16xf32>
    %645 = tpu.matmul %644, %643, %cst_346 {dimension_numbers = #tpu.dot_dimension_numbers<[1], [0], [0], [1], [0, 0, 1, 1], [], []>} : vector<16x32xbf16>, vector<32x16xbf16>, vector<16x16xf32> -> vector<16x16xf32>
    %c34 = arith.constant 34 : index
    %c0_347 = arith.constant 0 : index
    %c0_348 = arith.constant 0 : index
    %646 = vector.load %arg7[%c34, %c0_347, %c0_348] : memref<36x16x16xbf16, #tpu.memory_space<vmem>>, vector<1x16x16xbf16>
    %647 = vector.shape_cast %646 : vector<1x16x16xbf16> to vector<16x16xbf16>
    %648 = arith.truncf %621 : vector<16x16xf32> to vector<16x16xbf16>
    %cst_349 = arith.constant dense<0.000000e+00> : vector<16x16xf32>
    %649 = tpu.matmul %648, %647, %cst_349 {dimension_numbers = #tpu.dot_dimension_numbers<[1], [0], [0], [1], [0, 0, 1, 1], [], []>} : vector<16x16xbf16>, vector<16x16xbf16>, vector<16x16xf32> -> vector<16x16xf32>
    %650 = arith.addf %645, %649 : vector<16x16xf32>
    %c35 = arith.constant 35 : index
    %c0_350 = arith.constant 0 : index
    %c0_351 = arith.constant 0 : index
    %651 = vector.load %arg7[%c35, %c0_350, %c0_351] : memref<36x16x16xbf16, #tpu.memory_space<vmem>>, vector<1x16x16xbf16>
    %652 = vector.shape_cast %651 : vector<1x16x16xbf16> to vector<16x16xbf16>
    %653 = arith.truncf %641 : vector<16x16xf32> to vector<16x16xbf16>
    %cst_352 = arith.constant dense<0.000000e+00> : vector<16x16xf32>
    %654 = tpu.matmul %653, %652, %cst_352 {dimension_numbers = #tpu.dot_dimension_numbers<[1], [0], [0], [1], [0, 0, 1, 1], [], []>} : vector<16x16xbf16>, vector<16x16xbf16>, vector<16x16xf32> -> vector<16x16xf32>
    %655 = arith.addf %650, %654 : vector<16x16xf32>
    %656 = arith.truncf %655 : vector<16x16xf32> to vector<16x16xbf16>
    %cst_353 = arith.constant dense<0.000000e+00> : vector<16x16xf32>
    %657 = tpu.matmul %606, %656, %cst_353 {dimension_numbers = #tpu.dot_dimension_numbers<[1], [0], [0], [1], [0, 0, 1, 1], [], []>} : vector<16x16xbf16>, vector<16x16xbf16>, vector<16x16xf32> -> vector<16x16xf32>
    %c17_354 = arith.constant 17 : index
    %c0_355 = arith.constant 0 : index
    %c0_356 = arith.constant 0 : index
    %658 = vector.load %arg8[%c17_354, %c0_355, %c0_356] : memref<18x1x16xf32, #tpu.memory_space<vmem>>, vector<1x1x16xf32>
    %659 = vector.shape_cast %658 : vector<1x1x16xf32> to vector<1x16xf32>
    %660 = vector.broadcast %659 : vector<1x16xf32> to vector<16x16xf32>
    %661 = arith.addf %657, %660 : vector<16x16xf32>
    %cst_357 = arith.constant 0.000000e+00 : f32
    %662 = vector.broadcast %cst_357 : f32 to vector<16x16xf32>
    %663 = arith.cmpf oge, %661, %662 : vector<16x16xf32>
    %cst_358 = arith.constant 0.00999999977 : f32
    %664 = vector.broadcast %cst_358 : f32 to vector<16x16xf32>
    %665 = arith.mulf %664, %661 : vector<16x16xf32>
    %666 = arith.select %663, %661, %665 : vector<16x16xi1>, vector<16x16xf32>
    %c5_359 = arith.constant 5 : index
    %c0_360 = arith.constant 0 : index
    %c0_361 = arith.constant 0 : index
    %667 = vector.load %arg9[%c5_359, %c0_360, %c0_361] : memref<6x32x32xbf16, #tpu.memory_space<vmem>>, vector<1x32x32xbf16>
    %668 = vector.shape_cast %667 : vector<1x32x32xbf16> to vector<32x32xbf16>
    %669 = arith.truncf %605 : vector<16x32xf32> to vector<16x32xbf16>
    %cst_362 = arith.constant dense<0.000000e+00> : vector<16x32xf32>
    %670 = tpu.matmul %669, %668, %cst_362 {dimension_numbers = #tpu.dot_dimension_numbers<[1], [0], [0], [1], [0, 0, 1, 1], [], []>} : vector<16x32xbf16>, vector<32x32xbf16>, vector<16x32xf32> -> vector<16x32xf32>
    %c15_363 = arith.constant 15 : index
    %c0_364 = arith.constant 0 : index
    %c0_365 = arith.constant 0 : index
    %671 = vector.load %arg10[%c15_363, %c0_364, %c0_365] : memref<18x16x32xbf16, #tpu.memory_space<vmem>>, vector<1x16x32xbf16>
    %672 = vector.shape_cast %671 : vector<1x16x32xbf16> to vector<16x32xbf16>
    %673 = arith.truncf %621 : vector<16x16xf32> to vector<16x16xbf16>
    %cst_366 = arith.constant dense<0.000000e+00> : vector<16x32xf32>
    %674 = tpu.matmul %673, %672, %cst_366 {dimension_numbers = #tpu.dot_dimension_numbers<[1], [0], [0], [1], [0, 0, 1, 1], [], []>} : vector<16x16xbf16>, vector<16x32xbf16>, vector<16x32xf32> -> vector<16x32xf32>
    %675 = arith.addf %670, %674 : vector<16x32xf32>
    %c16_367 = arith.constant 16 : index
    %c0_368 = arith.constant 0 : index
    %c0_369 = arith.constant 0 : index
    %676 = vector.load %arg10[%c16_367, %c0_368, %c0_369] : memref<18x16x32xbf16, #tpu.memory_space<vmem>>, vector<1x16x32xbf16>
    %677 = vector.shape_cast %676 : vector<1x16x32xbf16> to vector<16x32xbf16>
    %678 = arith.truncf %641 : vector<16x16xf32> to vector<16x16xbf16>
    %cst_370 = arith.constant dense<0.000000e+00> : vector<16x32xf32>
    %679 = tpu.matmul %678, %677, %cst_370 {dimension_numbers = #tpu.dot_dimension_numbers<[1], [0], [0], [1], [0, 0, 1, 1], [], []>} : vector<16x16xbf16>, vector<16x32xbf16>, vector<16x32xf32> -> vector<16x32xf32>
    %680 = arith.addf %675, %679 : vector<16x32xf32>
    %c17_371 = arith.constant 17 : index
    %c0_372 = arith.constant 0 : index
    %c0_373 = arith.constant 0 : index
    %681 = vector.load %arg10[%c17_371, %c0_372, %c0_373] : memref<18x16x32xbf16, #tpu.memory_space<vmem>>, vector<1x16x32xbf16>
    %682 = vector.shape_cast %681 : vector<1x16x32xbf16> to vector<16x32xbf16>
    %683 = arith.truncf %666 : vector<16x16xf32> to vector<16x16xbf16>
    %cst_374 = arith.constant dense<0.000000e+00> : vector<16x32xf32>
    %684 = tpu.matmul %683, %682, %cst_374 {dimension_numbers = #tpu.dot_dimension_numbers<[1], [0], [0], [1], [0, 0, 1, 1], [], []>} : vector<16x16xbf16>, vector<16x32xbf16>, vector<16x32xf32> -> vector<16x32xf32>
    %685 = arith.addf %680, %684 : vector<16x32xf32>
    %c5_375 = arith.constant 5 : index
    %c0_376 = arith.constant 0 : index
    %c0_377 = arith.constant 0 : index
    %686 = vector.load %arg11[%c5_375, %c0_376, %c0_377] : memref<6x1x32xf32, #tpu.memory_space<vmem>>, vector<1x1x32xf32>
    %687 = vector.shape_cast %686 : vector<1x1x32xf32> to vector<1x32xf32>
    %688 = vector.broadcast %687 : vector<1x32xf32> to vector<16x32xf32>
    %689 = arith.addf %685, %688 : vector<16x32xf32>
    %cst_378 = arith.constant 0.000000e+00 : f32
    %690 = vector.broadcast %cst_378 : f32 to vector<16x32xf32>
    %691 = arith.cmpf oge, %689, %690 : vector<16x32xf32>
    %cst_379 = arith.constant 0.00999999977 : f32
    %692 = vector.broadcast %cst_379 : f32 to vector<16x32xf32>
    %693 = arith.mulf %692, %689 : vector<16x32xf32>
    %694 = arith.select %691, %689, %693 : vector<16x32xi1>, vector<16x32xf32>
    %c0_380 = arith.constant 0 : index
    %c0_381 = arith.constant 0 : index
    %695 = vector.load %arg1[%c0_380, %c0_381] : memref<16x8xf32, #tpu.memory_space<vmem>>, vector<16x8xf32>
    %c0_382 = arith.constant 0 : index
    %c0_383 = arith.constant 0 : index
    %c0_384 = arith.constant 0 : index
    %696 = vector.load %arg12[%c0_382, %c0_383, %c0_384] : memref<4x32x64xbf16, #tpu.memory_space<vmem>>, vector<1x32x64xbf16>
    %697 = vector.shape_cast %696 : vector<1x32x64xbf16> to vector<32x64xbf16>
    %698 = arith.truncf %694 : vector<16x32xf32> to vector<16x32xbf16>
    %cst_385 = arith.constant dense<0.000000e+00> : vector<16x64xf32>
    %699 = tpu.matmul %698, %697, %cst_385 {dimension_numbers = #tpu.dot_dimension_numbers<[1], [0], [0], [1], [0, 0, 1, 1], [], []>} : vector<16x32xbf16>, vector<32x64xbf16>, vector<16x64xf32> -> vector<16x64xf32>
    %c0_386 = arith.constant 0 : index
    %c0_387 = arith.constant 0 : index
    %c0_388 = arith.constant 0 : index
    %700 = vector.load %arg13[%c0_386, %c0_387, %c0_388] : memref<4x1x64xf32, #tpu.memory_space<vmem>>, vector<1x1x64xf32>
    %701 = vector.shape_cast %700 : vector<1x1x64xf32> to vector<1x64xf32>
    %702 = vector.broadcast %701 : vector<1x64xf32> to vector<16x64xf32>
    %703 = arith.addf %699, %702 : vector<16x64xf32>
    %cst_389 = arith.constant 0.000000e+00 : f32
    %704 = vector.broadcast %cst_389 : f32 to vector<16x64xf32>
    %705 = arith.cmpf oge, %703, %704 : vector<16x64xf32>
    %cst_390 = arith.constant 0.00999999977 : f32
    %706 = vector.broadcast %cst_390 : f32 to vector<16x64xf32>
    %707 = arith.mulf %706, %703 : vector<16x64xf32>
    %708 = arith.select %705, %703, %707 : vector<16x64xi1>, vector<16x64xf32>
    %c0_391 = arith.constant 0 : index
    %c0_392 = arith.constant 0 : index
    %c0_393 = arith.constant 0 : index
    %709 = vector.load %arg14[%c0_391, %c0_392, %c0_393] : memref<4x64x8xbf16, #tpu.memory_space<vmem>>, vector<1x64x8xbf16>
    %710 = vector.shape_cast %709 : vector<1x64x8xbf16> to vector<64x8xbf16>
    %711 = arith.truncf %708 : vector<16x64xf32> to vector<16x64xbf16>
    %cst_394 = arith.constant dense<0.000000e+00> : vector<16x8xf32>
    %712 = tpu.matmul %711, %710, %cst_394 {dimension_numbers = #tpu.dot_dimension_numbers<[1], [0], [0], [1], [0, 0, 1, 1], [], []>} : vector<16x64xbf16>, vector<64x8xbf16>, vector<16x8xf32> -> vector<16x8xf32>
    %c0_395 = arith.constant 0 : index
    %c0_396 = arith.constant 0 : index
    %c0_397 = arith.constant 0 : index
    %713 = vector.load %arg15[%c0_395, %c0_396, %c0_397] : memref<4x1x8xf32, #tpu.memory_space<vmem>>, vector<1x1x8xf32>
    %714 = vector.shape_cast %713 : vector<1x1x8xf32> to vector<1x8xf32>
    %715 = vector.broadcast %714 : vector<1x8xf32> to vector<16x8xf32>
    %716 = arith.addf %712, %715 : vector<16x8xf32>
    %717 = arith.addf %716, %695 : vector<16x8xf32>
    %c1_398 = arith.constant 1 : index
    %c0_399 = arith.constant 0 : index
    %c0_400 = arith.constant 0 : index
    %718 = vector.load %arg12[%c1_398, %c0_399, %c0_400] : memref<4x32x64xbf16, #tpu.memory_space<vmem>>, vector<1x32x64xbf16>
    %719 = vector.shape_cast %718 : vector<1x32x64xbf16> to vector<32x64xbf16>
    %720 = arith.truncf %694 : vector<16x32xf32> to vector<16x32xbf16>
    %cst_401 = arith.constant dense<0.000000e+00> : vector<16x64xf32>
    %721 = tpu.matmul %720, %719, %cst_401 {dimension_numbers = #tpu.dot_dimension_numbers<[1], [0], [0], [1], [0, 0, 1, 1], [], []>} : vector<16x32xbf16>, vector<32x64xbf16>, vector<16x64xf32> -> vector<16x64xf32>
    %c1_402 = arith.constant 1 : index
    %c0_403 = arith.constant 0 : index
    %c0_404 = arith.constant 0 : index
    %722 = vector.load %arg13[%c1_402, %c0_403, %c0_404] : memref<4x1x64xf32, #tpu.memory_space<vmem>>, vector<1x1x64xf32>
    %723 = vector.shape_cast %722 : vector<1x1x64xf32> to vector<1x64xf32>
    %724 = vector.broadcast %723 : vector<1x64xf32> to vector<16x64xf32>
    %725 = arith.addf %721, %724 : vector<16x64xf32>
    %cst_405 = arith.constant 0.000000e+00 : f32
    %726 = vector.broadcast %cst_405 : f32 to vector<16x64xf32>
    %727 = arith.cmpf oge, %725, %726 : vector<16x64xf32>
    %cst_406 = arith.constant 0.00999999977 : f32
    %728 = vector.broadcast %cst_406 : f32 to vector<16x64xf32>
    %729 = arith.mulf %728, %725 : vector<16x64xf32>
    %730 = arith.select %727, %725, %729 : vector<16x64xi1>, vector<16x64xf32>
    %c1_407 = arith.constant 1 : index
    %c0_408 = arith.constant 0 : index
    %c0_409 = arith.constant 0 : index
    %731 = vector.load %arg14[%c1_407, %c0_408, %c0_409] : memref<4x64x8xbf16, #tpu.memory_space<vmem>>, vector<1x64x8xbf16>
    %732 = vector.shape_cast %731 : vector<1x64x8xbf16> to vector<64x8xbf16>
    %733 = arith.truncf %730 : vector<16x64xf32> to vector<16x64xbf16>
    %cst_410 = arith.constant dense<0.000000e+00> : vector<16x8xf32>
    %734 = tpu.matmul %733, %732, %cst_410 {dimension_numbers = #tpu.dot_dimension_numbers<[1], [0], [0], [1], [0, 0, 1, 1], [], []>} : vector<16x64xbf16>, vector<64x8xbf16>, vector<16x8xf32> -> vector<16x8xf32>
    %c1_411 = arith.constant 1 : index
    %c0_412 = arith.constant 0 : index
    %c0_413 = arith.constant 0 : index
    %735 = vector.load %arg15[%c1_411, %c0_412, %c0_413] : memref<4x1x8xf32, #tpu.memory_space<vmem>>, vector<1x1x8xf32>
    %736 = vector.shape_cast %735 : vector<1x1x8xf32> to vector<1x8xf32>
    %737 = vector.broadcast %736 : vector<1x8xf32> to vector<16x8xf32>
    %738 = arith.addf %734, %737 : vector<16x8xf32>
    %739 = arith.addf %738, %695 : vector<16x8xf32>
    %c2_414 = arith.constant 2 : index
    %c0_415 = arith.constant 0 : index
    %c0_416 = arith.constant 0 : index
    %740 = vector.load %arg12[%c2_414, %c0_415, %c0_416] : memref<4x32x64xbf16, #tpu.memory_space<vmem>>, vector<1x32x64xbf16>
    %741 = vector.shape_cast %740 : vector<1x32x64xbf16> to vector<32x64xbf16>
    %742 = arith.truncf %694 : vector<16x32xf32> to vector<16x32xbf16>
    %cst_417 = arith.constant dense<0.000000e+00> : vector<16x64xf32>
    %743 = tpu.matmul %742, %741, %cst_417 {dimension_numbers = #tpu.dot_dimension_numbers<[1], [0], [0], [1], [0, 0, 1, 1], [], []>} : vector<16x32xbf16>, vector<32x64xbf16>, vector<16x64xf32> -> vector<16x64xf32>
    %c2_418 = arith.constant 2 : index
    %c0_419 = arith.constant 0 : index
    %c0_420 = arith.constant 0 : index
    %744 = vector.load %arg13[%c2_418, %c0_419, %c0_420] : memref<4x1x64xf32, #tpu.memory_space<vmem>>, vector<1x1x64xf32>
    %745 = vector.shape_cast %744 : vector<1x1x64xf32> to vector<1x64xf32>
    %746 = vector.broadcast %745 : vector<1x64xf32> to vector<16x64xf32>
    %747 = arith.addf %743, %746 : vector<16x64xf32>
    %cst_421 = arith.constant 0.000000e+00 : f32
    %748 = vector.broadcast %cst_421 : f32 to vector<16x64xf32>
    %749 = arith.cmpf oge, %747, %748 : vector<16x64xf32>
    %cst_422 = arith.constant 0.00999999977 : f32
    %750 = vector.broadcast %cst_422 : f32 to vector<16x64xf32>
    %751 = arith.mulf %750, %747 : vector<16x64xf32>
    %752 = arith.select %749, %747, %751 : vector<16x64xi1>, vector<16x64xf32>
    %c2_423 = arith.constant 2 : index
    %c0_424 = arith.constant 0 : index
    %c0_425 = arith.constant 0 : index
    %753 = vector.load %arg14[%c2_423, %c0_424, %c0_425] : memref<4x64x8xbf16, #tpu.memory_space<vmem>>, vector<1x64x8xbf16>
    %754 = vector.shape_cast %753 : vector<1x64x8xbf16> to vector<64x8xbf16>
    %755 = arith.truncf %752 : vector<16x64xf32> to vector<16x64xbf16>
    %cst_426 = arith.constant dense<0.000000e+00> : vector<16x8xf32>
    %756 = tpu.matmul %755, %754, %cst_426 {dimension_numbers = #tpu.dot_dimension_numbers<[1], [0], [0], [1], [0, 0, 1, 1], [], []>} : vector<16x64xbf16>, vector<64x8xbf16>, vector<16x8xf32> -> vector<16x8xf32>
    %c2_427 = arith.constant 2 : index
    %c0_428 = arith.constant 0 : index
    %c0_429 = arith.constant 0 : index
    %757 = vector.load %arg15[%c2_427, %c0_428, %c0_429] : memref<4x1x8xf32, #tpu.memory_space<vmem>>, vector<1x1x8xf32>
    %758 = vector.shape_cast %757 : vector<1x1x8xf32> to vector<1x8xf32>
    %759 = vector.broadcast %758 : vector<1x8xf32> to vector<16x8xf32>
    %760 = arith.addf %756, %759 : vector<16x8xf32>
    %761 = arith.addf %760, %695 : vector<16x8xf32>
    %c3_430 = arith.constant 3 : index
    %c0_431 = arith.constant 0 : index
    %c0_432 = arith.constant 0 : index
    %762 = vector.load %arg12[%c3_430, %c0_431, %c0_432] : memref<4x32x64xbf16, #tpu.memory_space<vmem>>, vector<1x32x64xbf16>
    %763 = vector.shape_cast %762 : vector<1x32x64xbf16> to vector<32x64xbf16>
    %764 = arith.truncf %694 : vector<16x32xf32> to vector<16x32xbf16>
    %cst_433 = arith.constant dense<0.000000e+00> : vector<16x64xf32>
    %765 = tpu.matmul %764, %763, %cst_433 {dimension_numbers = #tpu.dot_dimension_numbers<[1], [0], [0], [1], [0, 0, 1, 1], [], []>} : vector<16x32xbf16>, vector<32x64xbf16>, vector<16x64xf32> -> vector<16x64xf32>
    %c3_434 = arith.constant 3 : index
    %c0_435 = arith.constant 0 : index
    %c0_436 = arith.constant 0 : index
    %766 = vector.load %arg13[%c3_434, %c0_435, %c0_436] : memref<4x1x64xf32, #tpu.memory_space<vmem>>, vector<1x1x64xf32>
    %767 = vector.shape_cast %766 : vector<1x1x64xf32> to vector<1x64xf32>
    %768 = vector.broadcast %767 : vector<1x64xf32> to vector<16x64xf32>
    %769 = arith.addf %765, %768 : vector<16x64xf32>
    %cst_437 = arith.constant 0.000000e+00 : f32
    %770 = vector.broadcast %cst_437 : f32 to vector<16x64xf32>
    %771 = arith.cmpf oge, %769, %770 : vector<16x64xf32>
    %cst_438 = arith.constant 0.00999999977 : f32
    %772 = vector.broadcast %cst_438 : f32 to vector<16x64xf32>
    %773 = arith.mulf %772, %769 : vector<16x64xf32>
    %774 = arith.select %771, %769, %773 : vector<16x64xi1>, vector<16x64xf32>
    %c3_439 = arith.constant 3 : index
    %c0_440 = arith.constant 0 : index
    %c0_441 = arith.constant 0 : index
    %775 = vector.load %arg14[%c3_439, %c0_440, %c0_441] : memref<4x64x8xbf16, #tpu.memory_space<vmem>>, vector<1x64x8xbf16>
    %776 = vector.shape_cast %775 : vector<1x64x8xbf16> to vector<64x8xbf16>
    %777 = arith.truncf %774 : vector<16x64xf32> to vector<16x64xbf16>
    %cst_442 = arith.constant dense<0.000000e+00> : vector<16x8xf32>
    %778 = tpu.matmul %777, %776, %cst_442 {dimension_numbers = #tpu.dot_dimension_numbers<[1], [0], [0], [1], [0, 0, 1, 1], [], []>} : vector<16x64xbf16>, vector<64x8xbf16>, vector<16x8xf32> -> vector<16x8xf32>
    %c3_443 = arith.constant 3 : index
    %c0_444 = arith.constant 0 : index
    %c0_445 = arith.constant 0 : index
    %779 = vector.load %arg15[%c3_443, %c0_444, %c0_445] : memref<4x1x8xf32, #tpu.memory_space<vmem>>, vector<1x1x8xf32>
    %780 = vector.shape_cast %779 : vector<1x1x8xf32> to vector<1x8xf32>
    %781 = vector.broadcast %780 : vector<1x8xf32> to vector<16x8xf32>
    %782 = arith.addf %778, %781 : vector<16x8xf32>
    %783 = arith.addf %782, %695 : vector<16x8xf32>
    %784 = tpu.concatenate %717, %739, %761, %783 in 1 : vector<16x8xf32>, vector<16x8xf32>, vector<16x8xf32>, vector<16x8xf32> -> vector<16x32xf32>
    %c0_446 = arith.constant 0 : index
    %c0_447 = arith.constant 0 : index
    %785 = vector.load %arg22[%c0_446, %c0_447] : memref<16x32xf32, #tpu.memory_space<vmem>>, vector<16x32xf32>
    tpu.vector_store %arg22[%c0_446, %c0_447], %784 {strides = array<i32>} : memref<16x32xf32, #tpu.memory_space<vmem>>, vector<16x32xf32>,
    return
  }
}

</mosaic_0001>

<bundles_post_ra>
// kernel: dense_gcn_max_pooled_forward.1
= control target key start
LH: loop header
LB: loop body
LE: loop exit
PB: predicated region body
PF: predicated region fallthrough
CT: control target
= control target key end

     0   :  { %vm201_vm0 = vcmask 1043456   ;;  %vm140_vm1 = vcmask 64512   ;;  %vm577_vm6 = vcmask 523264   ;;  %s17186_s26 = smov 24   ;;  %s20970_s2 = inlined_call_operand.vmem [shape: bf16[8,64], index: 2, kind: input, shape index: {}]   ;;  %s20971_s0 = inlined_call_operand.vmem [shape: f32[320,8], index: 0, kind: input, shape index: {}]   ;;  %s20972_s4 = inlined_call_operand.vmem [shape: bf16[64,32], index: 4, kind: input, shape index: {}]   ;;  %s20973_s3 = inlined_call_operand.vmem [shape: f32[1,64], index: 3, kind: input, shape index: {}]   ;;  %s20974_s6 = inlined_call_operand.vmem [shape: bf16[18,32,16], index: 6, kind: input, shape index: {}]   ;;  %s20975_s5 = inlined_call_operand.vmem [shape: f32[1,32], index: 5, kind: input, shape index: {}]   ;;  %s20976_s16 = inlined_call_operand.vmem [shape: bf16[320,320], index: 16, kind: input, shape index: {}]   ;;  %s20977_s7 = inlined_call_operand.vmem [shape: bf16[36,16,16], index: 7, kind: input, shape index: {}]   ;;  %s20978_s8 = inlined_call_operand.vmem [shape: f32[18,1,16], index: 8, kind: input, shape index: {}]   ;;  %s20979_s10 = inlined_call_operand.vmem [shape: bf16[18,16,32], index: 10, kind: input, shape index: {}]   ;;  %s20980_s9 = inlined_call_operand.vmem [shape: bf16[6,32,32], index: 9, kind: input, shape index: {}]   ;;  %s20981_s11 = inlined_call_operand.vmem [shape: f32[6,1,32], index: 11, kind: input, shape index: {}]   ;;  %s20982_s17 = inlined_call_operand.vmem [shape: bf16[160,160], index: 17, kind: input, shape index: {}]   ;;  %s20983_s18 = inlined_call_operand.vmem [shape: bf16[80,80], index: 18, kind: input, shape index: {}]   ;;  %s20984_s19 = inlined_call_operand.vmem [shape: bf16[48,48], index: 19, kind: input, shape index: {}]   ;;  %s20985_s20 = inlined_call_operand.vmem [shape: bf16[32,32], index: 20, kind: input, shape index: {}]   ;;  %s20986_s21 = inlined_call_operand.vmem [shape: bf16[16,16], index: 21, kind: input, shape index: {}]   ;;  %s20987_s12 = inlined_call_operand.vmem [shape: bf16[4,32,64], index: 12, kind: input, shape index: {}]   ;;  %s20988_s14 = inlined_call_operand.vmem [shape: bf16[4,64,8], index: 14, kind: input, shape index: {}]   ;;  %s20989_s13 = inlined_call_operand.vmem [shape: f32[4,1,64], index: 13, kind: input, shape index: {}]   ;;  %s20990_s15 = inlined_call_operand.vmem [shape: f32[4,1,8], index: 15, kind: input, shape index: {}]   ;;  %s20991_s1 = inlined_call_operand.vmem [shape: f32[16,8], index: 1, kind: input, shape index: {}]   ;;  %s20992_s22 = inlined_call_operand.vmem [shape: f32[16,32], index: 22, kind: output, shape index: {}]  }
   0x1   :  { %21022 = sst [smem:[#allocation23_spill]] %s20970_s2 }
   0x2   :  { %21023 = sst [smem:[#allocation24_spill]] %s20971_s0  ;;  %s21029_s29 = sld [smem:[#allocation23_spill]] }
   0x3   :  { %21024 = sst [smem:[#allocation25_spill]] %s20972_s4  ;;  %s21030_s2 = sld [smem:[#allocation24_spill]] }
   0x4   :  { %21025 = sst [smem:[#allocation26_spill]] %s20973_s3  ;;  %s21031_s23 = sld [smem:[#allocation25_spill]] }
   0x5   :  { %21026 = sst [smem:[#allocation27_spill]] %s20974_s6  ;;  %s21032_s27 = sld [smem:[#allocation26_spill]] }
   0x6   :  { %21027 = sst [smem:[#allocation28_spill]] %s20975_s5  ;;  %s21033_s28 = sld [smem:[#allocation27_spill]] }
   0x7   :  { %21028 = sst [smem:[#allocation29_spill]] %s20976_s16  ;;  %s21034_s5 = sld [smem:[#allocation28_spill]] }
   0x8   :  { %v112_v0 = vld [vmem:[%s21029_s29] sm:$0xf]  ;;  %s21053_s25 = sld [smem:[#allocation29_spill]] }
   0x9   :  { %v72_v1 = vld [vmem:[%s21030_s2] sm:$0xff]  ;;  %v73_v2 = vld [vmem:[%s21030_s2 + $0x8] sm:$0xff]  ;;  %16822 = vmatprep.subr.msk.bf16.mxu0 %vm201_vm0, %v112_v0  ;;  %v203_v3 = vsel %vm201_vm0, %v112_v0, 0  ;;  %v74_v5 = vld [vmem:[%s21030_s2 + $0x10] sm:$0xff] }
   0xa   :  { %v113_v4 = vpack.c.bf16 %v73_v2, %v72_v1  ;;  %v75_v6 = vld [vmem:[%s21030_s2 + $0x18] sm:$0xff]  ;;  %v76_v7 = vld [vmem:[%s21030_s2 + $0x20] sm:$0xff]  ;;  %14659 = vmatpush3.bf16.msra.mxu0 %v203_v3  ;;  %v77_v9 = vld [vmem:[%s21030_s2 + $0x28] sm:$0xff] }
   0xb   :  { %v114_v8 = vpack.c.bf16 %v75_v6, %v74_v5  ;;  %v115_v10 = vpack.c.bf16 %v77_v9, %v76_v7  ;;  %v78_v11 = vld [vmem:[%s21030_s2 + $0x30] sm:$0xff]  ;;  %v79_v12 = vld [vmem:[%s21030_s2 + $0x38] sm:$0xff]  ;;  %v80_v13 = vld [vmem:[%s21030_s2 + $0x40] sm:$0xff] }
   0xc   :  { %14660 = vmatprep.mubr.msk.bf16.mxu0 %vm140_vm1, %v113_v4  ;;  %v81_v14 = vld [vmem:[%s21030_s2 + $0x48] sm:$0xff]  ;;  %v116_v15 = vpack.c.bf16 %v79_v12, %v78_v11  ;;  %v82_v17 = vld [vmem:[%s21030_s2 + $0x50] sm:$0xff]  ;;  %v83_v18 = vld [vmem:[%s21030_s2 + $0x58] sm:$0xff] }
   0xd   :  { %14661 = vmatmul.mubr.msk.bf16.vlgmr.msra.gmra.mrb[0].mxu0 %vm140_vm1, %v114_v8  ;;  %v117_v16 = vpack.c.bf16 %v81_v14, %v80_v13  ;;  %v84_v19 = vld [vmem:[%s21030_s2 + $0x60] sm:$0xff]  ;;  %v85_v20 = vld [vmem:[%s21030_s2 + $0x68] sm:$0xff]  ;;  %v118_v22 = vpack.c.bf16 %v83_v18, %v82_v17  ;;  %v86_v24 = vld [vmem:[%s21030_s2 + $0x70] sm:$0xff] }
   0xe   :  { %14664 = vmatprep.mubr.msk.bf16.mxu0 %vm140_vm1, %v115_v10  ;;  %v16829_v21 = vld [vmem:[%s21031_s23] sm:$0xff]   ;;  %v119_v23 = vpack.c.bf16 %v85_v20, %v84_v19  ;;  %v87_v25 = vld [vmem:[%s21030_s2 + $0x78] sm:$0xff]  ;;  %v89_v27 = vld [vmem:[%s21030_s2 + $0x88] sm:$0xff] }
   0xf   :  { %14700 = vmatprep.subr.bf16.mxu1 %v16829_v21  ;;  %v88_v26 = vld [vmem:[%s21030_s2 + $0x80] sm:$0xff]  ;;  %v120_v28 = vpack.c.bf16 %v87_v25, %v86_v24  ;;  %v90_v30 = vld [vmem:[%s21030_s2 + $0x90] sm:$0xff]  ;;  %v91_v31 = vld [vmem:[%s21030_s2 + $0x98] sm:$0xff] }
  0x10   :  { %14701 = vmatpush3.bf16.msra.mxu1 %v16829_v21  ;;  %v121_v29 = vpack.c.bf16 %v89_v27, %v88_v26  ;;  %v92_v32 = vld [vmem:[%s21030_s2 + $0xa0] sm:$0xff]  ;;  %v93_v33 = vld [vmem:[%s21030_s2 + $0xa8] sm:$0xff]  ;;  %v122_v34 = vpack.c.bf16 %v91_v31, %v90_v30  ;;  %v94_v36 = vld [vmem:[%s21030_s2 + $0xb0] sm:$0xff] }
  0x11   :  { %v123_v35 = vpack.c.bf16 %v93_v33, %v92_v32  ;;  %v95_v37 = vld [vmem:[%s21030_s2 + $0xb8] sm:$0xff]  ;;  %v96_v38 = vld [vmem:[%s21030_s2 + $0xc0] sm:$0xff]  ;;  %v97_v39 = vld [vmem:[%s21030_s2 + $0xc8] sm:$0xff] }
  0x12   :  { %v124_v40 = vpack.c.bf16 %v95_v37, %v94_v36  ;;  %v125_v41 = vpack.c.bf16 %v97_v39, %v96_v38  ;;  %v98_v42 = vld [vmem:[%s21030_s2 + $0xd0] sm:$0xff]  ;;  %v99_v43 = vld [vmem:[%s21030_s2 + $0xd8] sm:$0xff]  ;;  %v100_v44 = vld [vmem:[%s21030_s2 + $0xe0] sm:$0xff] }
  0x13   :  { %v101_v45 = vld [vmem:[%s21030_s2 + $0xe8] sm:$0xff]  ;;  %v126_v46 = vpack.c.bf16 %v99_v43, %v98_v42  ;;  %v102_v48 = vld [vmem:[%s21030_s2 + $0xf0] sm:$0xff]  ;;  %v103_v49 = vld [vmem:[%s21030_s2 + $0xf8] sm:$0xff] }
  0x14   :  { %v127_v47 = vpack.c.bf16 %v101_v45, %v100_v44  ;;  %v104_v50 = vld [vmem:[%s21030_s2 + $0x100] sm:$0xff]  ;;  %v105_v51 = vld [vmem:[%s21030_s2 + $0x108] sm:$0xff]  ;;  %v128_v52 = vpack.c.bf16 %v103_v49, %v102_v48  ;;  %v106_v54 = vld [vmem:[%s21030_s2 + $0x110] sm:$0xff] }
  0x15   :  { %14665 = vmatmul.mubr.msk.bf16.gmra.mrb[4].mxu0 %vm140_vm1, %v116_v15  ;;  %v129_v53 = vpack.c.bf16 %v105_v51, %v104_v50  ;;  %v107_v55 = vld [vmem:[%s21030_s2 + $0x118] sm:$0xff]  ;;  %v108_v56 = vld [vmem:[%s21030_s2 + $0x120] sm:$0xff]  ;;  %v109_v57 = vld [vmem:[%s21030_s2 + $0x128] sm:$0xff] }
  0x16   :  { %14668 = vmatprep.mubr.msk.bf16.mxu0 %vm140_vm1, %v117_v16  ;;  %v130_v58 = vpack.c.bf16 %v107_v55, %v106_v54  ;;  %v131_v59 = vpack.c.bf16 %v109_v57, %v108_v56  ;;  %v110_v60 = vld [vmem:[%s21030_s2 + $0x130] sm:$0xff]  ;;  %v111_v61 = vld [vmem:[%s21030_s2 + $0x138] sm:$0xff]  ;;  %v16830_v63 = vld [vmem:[%s21031_s23 + $0x8] sm:$0xff]  }
  0x17   :  { %v132_v62 = vpack.c.bf16 %v111_v61, %v110_v60  ;;  %14702 = vmatprep.subr.bf16.mxu1 %v16830_v63  ;;  %v16831_v0 = vld [vmem:[%s21031_s23 + $0x10] sm:$0xff]   ;;  %v16832_v1 = vld [vmem:[%s21031_s23 + $0x18] sm:$0xff]   ;;  %v17460_v2 = vld [vmem:[%s21032_s27] ss:$0 sm:$0xff] }
  0x18   :  { %14703 = vmatpush3.bf16.msra.mxu1 %v16830_v63 }
  0x19   :  { %14704 = vmatprep.subr.bf16.mxu1 %v16831_v0 }
  0x1c   :  { %14705 = vmatpush3.bf16.msra.mxu1 %v16831_v0 }
  0x1d   :  { %14669 = vmatmul.mubr.msk.bf16.gmra.mrb[8].mxu0 %vm140_vm1, %v118_v22  ;;  %14706 = vmatprep.subr.bf16.mxu1 %v16832_v1 }
  0x1e   :  { %14672 = vmatprep.mubr.msk.bf16.mxu0 %vm140_vm1, %v119_v23 }
  0x20   :  { %14707 = vmatpush3.bf16.msra.mxu1 %v16832_v1 }
  0x25   :  { %14673 = vmatmul.mubr.msk.bf16.gmra.mrb[12].mxu0 %vm140_vm1, %v120_v28 }
  0x26   :  { %14676 = vmatprep.mubr.msk.bf16.mxu0 %vm140_vm1, %v121_v29 }
  0x2d   :  { %14677 = vmatmul.mubr.msk.bf16.gmra.mrb[16].mxu0 %vm140_vm1, %v122_v34 }
  0x2e   :  { %14680 = vmatprep.mubr.msk.bf16.mxu0 %vm140_vm1, %v123_v35 }
  0x35   :  { %14681 = vmatmul.mubr.msk.bf16.gmra.mrb[20].mxu0 %vm140_vm1, %v124_v40 }
  0x36   :  { %14684 = vmatprep.mubr.msk.bf16.mxu0 %vm140_vm1, %v125_v41 }
  0x3d   :  { %14685 = vmatmul.mubr.msk.bf16.gmra.mrb[24].mxu0 %vm140_vm1, %v126_v46 }
  0x3e   :  { %14688 = vmatprep.mubr.msk.bf16.mxu0 %vm140_vm1, %v127_v47 }
  0x45   :  { %14689 = vmatmul.mubr.msk.bf16.gmra.mrb[28].mxu0 %vm140_vm1, %v128_v52 }
  0x46   :  { %14692 = vmatprep.mubr.msk.bf16.mxu0 %vm140_vm1, %v129_v53 }
  0x4d   :  { %14693 = vmatmul.mubr.msk.bf16.gmra.mrb[32].mxu0 %vm140_vm1, %v130_v58 }
  0x4e   :  { %14696 = vmatprep.mubr.msk.bf16.mxu0 %vm140_vm1, %v131_v59 }
  0x55   :  { %14697 = vmatmul.mubr.msk.bf16.gmra.mrb[36].mxu0 %vm140_vm1, %v132_v62 }
  0xe0   :  { %v14662_v3 = vpop.f32.mrb[0].mxu0 }
  0xe1   :  { %v248_v4 = vadd.f32 %v14662_v3, %v17460_v2  ;;  %v239_v5 = vpop.f32.mrb[1].mxu0 }
  0xe2   :  { %v240_v6 = vadd.f32 %v17460_v2, %v239_v5  ;;  %v14663_v7 = vpop.f32.mrb[2].mxu0 }
  0xe3   :  { %v440_v8 = vmul.f32 0.01, %v248_v4  ;;  %v251_v9 = vadd.f32 %v14663_v7, %v17460_v2  ;;  %v242_v10 = vpop.f32.mrb[3].mxu0  ;;  %vm400_vm2 = vcmp.ge.f32.partialorder %v248_v4, 0.0 }
  0xe4   :  { %v243_v11 = vadd.f32 %v17460_v2, %v242_v10  ;;  %v438_v12 = vmul.f32 0.01, %v240_v6  ;;  %vm398_vm4 = vcmp.ge.f32.partialorder %v240_v6, 0.0 }
  0xe5   :  { %vm401_vm3 = vcmp.ge.f32.partialorder %v251_v9, 0.0  ;;  %v441_v13 = vmul.f32 0.01, %v251_v9  ;;  %v480_v15 = vsel %vm400_vm2, %v248_v4, %v440_v8 }
  0xe6   :  { %vm399_vm5 = vcmp.ge.f32.partialorder %v243_v11, 0.0  ;;  %v439_v14 = vmul.f32 0.01, %v243_v11  ;;  %v478_v18 = vsel %vm398_vm4, %v240_v6, %v438_v12 }
  0xe7   :  { %v481_v16 = vsel %vm401_vm3, %v251_v9, %v441_v13 }
  0xe8   :  { %v14666_v17 = vpop.f32.mrb[4].mxu0  ;;  %v479_v19 = vsel %vm399_vm5, %v243_v11, %v439_v14  ;;  %v527_v20 = vpack.c.bf16 %v481_v16, %v480_v15 }
  0xe9   :  { %v264_v21 = vadd.f32 %v14666_v17, %v17460_v2  ;;  %v255_v22 = vpop.f32.mrb[5].mxu0  ;;  %v526_v23 = vpack.c.bf16 %v479_v19, %v478_v18 }
  0xea   :  { %v256_v24 = vadd.f32 %v17460_v2, %v255_v22  ;;  %v14667_v25 = vpop.f32.mrb[6].mxu0 }
  0xeb   :  { %v444_v26 = vmul.f32 0.01, %v264_v21  ;;  %v267_v27 = vadd.f32 %v14667_v25, %v17460_v2  ;;  %v258_v28 = vpop.f32.mrb[7].mxu0  ;;  %14708 = vmatprep.mubr.msk.bf16.mxu1 %vm577_vm6, %v526_v23  ;;  %vm404_vm7 = vcmp.ge.f32.partialorder %v264_v21, 0.0 }
  0xec   :  { %v442_v29 = vmul.f32 0.01, %v256_v24  ;;  %v259_v30 = vadd.f32 %v17460_v2, %v258_v28  ;;  %14709 = vmatmul.mubr.msk.bf16.vlgmr.msra.gmra.mrb[0].mxu1 %vm577_vm6, %v527_v20  ;;  %vm402_vm8 = vcmp.ge.f32.partialorder %v256_v24, 0.0 }
  0xed   :  { %vm405_vm9 = vcmp.ge.f32.partialorder %v267_v27, 0.0  ;;  %v445_v31 = vmul.f32 0.01, %v267_v27  ;;  %v484_v33 = vsel %vm404_vm7, %v264_v21, %v444_v26 }
  0xee   :  { %vm403_vm10 = vcmp.ge.f32.partialorder %v259_v30, 0.0  ;;  %v443_v32 = vmul.f32 0.01, %v259_v30  ;;  %v482_v35 = vsel %vm402_vm8, %v256_v24, %v442_v29 }
  0xef   :  { %v485_v34 = vsel %vm405_vm9, %v267_v27, %v445_v31 }
  0xf0   :  { %v483_v36 = vsel %vm403_vm10, %v259_v30, %v443_v32  ;;  %v14670_v37 = vpop.f32.mrb[8].mxu0  ;;  %v529_v38 = vpack.c.bf16 %v485_v34, %v484_v33 }
  0xf1   :  { %v280_v39 = vadd.f32 %v14670_v37, %v17460_v2  ;;  %v271_v40 = vpop.f32.mrb[9].mxu0  ;;  %v528_v41 = vpack.c.bf16 %v483_v36, %v482_v35 }
  0xf2   :  { %v272_v42 = vadd.f32 %v17460_v2, %v271_v40  ;;  %v14671_v43 = vpop.f32.mrb[10].mxu0 }
  0xf3   :  { %v448_v44 = vmul.f32 0.01, %v280_v39  ;;  %v283_v45 = vadd.f32 %v14671_v43, %v17460_v2  ;;  %v274_v46 = vpop.f32.mrb[11].mxu0  ;;  %14712 = vmatprep.mubr.msk.bf16.mxu1 %vm577_vm6, %v528_v41  ;;  %vm408_vm11 = vcmp.ge.f32.partialorder %v280_v39, 0.0 }
  0xf4   :  { %v446_v47 = vmul.f32 0.01, %v272_v42  ;;  %v275_v48 = vadd.f32 %v17460_v2, %v274_v46  ;;  %14713 = vmatmul.mubr.msk.bf16.gmra.mrb[4].mxu1 %vm577_vm6, %v529_v38  ;;  %vm406_vm12 = vcmp.ge.f32.partialorder %v272_v42, 0.0 }
  0xf5   :  { %vm409_vm13 = vcmp.ge.f32.partialorder %v283_v45, 0.0  ;;  %v449_v49 = vmul.f32 0.01, %v283_v45  ;;  %v488_v51 = vsel %vm408_vm11, %v280_v39, %v448_v44 }
  0xf6   :  { %vm407_vm14 = vcmp.ge.f32.partialorder %v275_v48, 0.0  ;;  %v447_v50 = vmul.f32 0.01, %v275_v48  ;;  %v486_v53 = vsel %vm406_vm12, %v272_v42, %v446_v47 }
  0xf7   :  { %v489_v52 = vsel %vm409_vm13, %v283_v45, %v449_v49 }
  0xf8   :  { %v487_v54 = vsel %vm407_vm14, %v275_v48, %v447_v50  ;;  %v14674_v55 = vpop.f32.mrb[12].mxu0  ;;  %v531_v56 = vpack.c.bf16 %v489_v52, %v488_v51 }
  0xf9   :  { %v296_v57 = vadd.f32 %v14674_v55, %v17460_v2  ;;  %v287_v58 = vpop.f32.mrb[13].mxu0  ;;  %v530_v59 = vpack.c.bf16 %v487_v54, %v486_v53 }
  0xfa   :  { %v288_v60 = vadd.f32 %v17460_v2, %v287_v58  ;;  %v14675_v61 = vpop.f32.mrb[14].mxu0 }
  0xfb   :  { %v452_v62 = vmul.f32 0.01, %v296_v57  ;;  %v299_v63 = vadd.f32 %v14675_v61, %v17460_v2  ;;  %v290_v0 = vpop.f32.mrb[15].mxu0  ;;  %14716 = vmatprep.mubr.msk.bf16.mxu1 %vm577_vm6, %v530_v59  ;;  %vm412_vm15 = vcmp.ge.f32.partialorder %v296_v57, 0.0 }
  0xfc   :  { %v450_v1 = vmul.f32 0.01, %v288_v60  ;;  %v291_v3 = vadd.f32 %v17460_v2, %v290_v0  ;;  %14717 = vmatmul.mubr.msk.bf16.gmra.mrb[8].mxu1 %vm577_vm6, %v531_v56  ;;  %vm410_vm0 = vcmp.ge.f32.partialorder %v288_v60, 0.0 }
  0xfd   :  { %vm413_vm2 = vcmp.ge.f32.partialorder %v299_v63, 0.0  ;;  %v453_v4 = vmul.f32 0.01, %v299_v63  ;;  %v492_v6 = vsel %vm412_vm15, %v296_v57, %v452_v62 }
  0xfe   :  { %vm411_vm3 = vcmp.ge.f32.partialorder %v291_v3, 0.0  ;;  %v451_v5 = vmul.f32 0.01, %v291_v3  ;;  %v490_v8 = vsel %vm410_vm0, %v288_v60, %v450_v1 }
  0xff   :  { %v493_v7 = vsel %vm413_vm2, %v299_v63, %v453_v4 }
 0x100   :  { %v491_v9 = vsel %vm411_vm3, %v291_v3, %v451_v5  ;;  %v14678_v10 = vpop.f32.mrb[16].mxu0  ;;  %v533_v11 = vpack.c.bf16 %v493_v7, %v492_v6 }
 0x101   :  { %v312_v12 = vadd.f32 %v14678_v10, %v17460_v2  ;;  %v303_v13 = vpop.f32.mrb[17].mxu0  ;;  %v532_v14 = vpack.c.bf16 %v491_v9, %v490_v8 }
 0x102   :  { %v304_v15 = vadd.f32 %v17460_v2, %v303_v13  ;;  %v14679_v16 = vpop.f32.mrb[18].mxu0 }
 0x103   :  { %v456_v17 = vmul.f32 0.01, %v312_v12  ;;  %v315_v18 = vadd.f32 %v14679_v16, %v17460_v2  ;;  %v306_v19 = vpop.f32.mrb[19].mxu0  ;;  %14720 = vmatprep.mubr.msk.bf16.mxu1 %vm577_vm6, %v532_v14  ;;  %vm416_vm4 = vcmp.ge.f32.partialorder %v312_v12, 0.0 }
 0x104   :  { %v454_v20 = vmul.f32 0.01, %v304_v15  ;;  %v307_v21 = vadd.f32 %v17460_v2, %v306_v19  ;;  %14721 = vmatmul.mubr.msk.bf16.gmra.mrb[12].mxu1 %vm577_vm6, %v533_v11  ;;  %vm414_vm5 = vcmp.ge.f32.partialorder %v304_v15, 0.0 }
 0x105   :  { %vm417_vm7 = vcmp.ge.f32.partialorder %v315_v18, 0.0  ;;  %v457_v22 = vmul.f32 0.01, %v315_v18  ;;  %v496_v24 = vsel %vm416_vm4, %v312_v12, %v456_v17 }
 0x106   :  { %vm415_vm8 = vcmp.ge.f32.partialorder %v307_v21, 0.0  ;;  %v455_v23 = vmul.f32 0.01, %v307_v21  ;;  %v494_v26 = vsel %vm414_vm5, %v304_v15, %v454_v20 }
 0x107   :  { %v497_v25 = vsel %vm417_vm7, %v315_v18, %v457_v22 }
 0x108   :  { %v495_v27 = vsel %vm415_vm8, %v307_v21, %v455_v23  ;;  %v14682_v28 = vpop.f32.mrb[20].mxu0  ;;  %v535_v29 = vpack.c.bf16 %v497_v25, %v496_v24 }
 0x109   :  { %v328_v30 = vadd.f32 %v14682_v28, %v17460_v2  ;;  %v319_v31 = vpop.f32.mrb[21].mxu0  ;;  %v534_v32 = vpack.c.bf16 %v495_v27, %v494_v26 }
 0x10a   :  { %v320_v33 = vadd.f32 %v17460_v2, %v319_v31  ;;  %v14683_v34 = vpop.f32.mrb[22].mxu0 }
 0x10b   :  { %v460_v35 = vmul.f32 0.01, %v328_v30  ;;  %v331_v36 = vadd.f32 %v14683_v34, %v17460_v2  ;;  %v322_v37 = vpop.f32.mrb[23].mxu0  ;;  %14724 = vmatprep.mubr.msk.bf16.mxu1 %vm577_vm6, %v534_v32  ;;  %vm420_vm9 = vcmp.ge.f32.partialorder %v328_v30, 0.0 }
 0x10c   :  { %v458_v38 = vmul.f32 0.01, %v320_v33  ;;  %v323_v39 = vadd.f32 %v17460_v2, %v322_v37  ;;  %14725 = vmatmul.mubr.msk.bf16.gmra.mrb[16].mxu1 %vm577_vm6, %v535_v29  ;;  %vm418_vm10 = vcmp.ge.f32.partialorder %v320_v33, 0.0 }
 0x10d   :  { %vm421_vm11 = vcmp.ge.f32.partialorder %v331_v36, 0.0  ;;  %v461_v40 = vmul.f32 0.01, %v331_v36  ;;  %v500_v42 = vsel %vm420_vm9, %v328_v30, %v460_v35 }
 0x10e   :  { %vm419_vm12 = vcmp.ge.f32.partialorder %v323_v39, 0.0  ;;  %v459_v41 = vmul.f32 0.01, %v323_v39  ;;  %v498_v44 = vsel %vm418_vm10, %v320_v33, %v458_v38 }
 0x10f   :  { %v501_v43 = vsel %vm421_vm11, %v331_v36, %v461_v40 }
 0x110   :  { %v499_v45 = vsel %vm419_vm12, %v323_v39, %v459_v41  ;;  %v14686_v46 = vpop.f32.mrb[24].mxu0  ;;  %v537_v47 = vpack.c.bf16 %v501_v43, %v500_v42 }
 0x111   :  { %v344_v48 = vadd.f32 %v14686_v46, %v17460_v2  ;;  %v335_v49 = vpop.f32.mrb[25].mxu0  ;;  %v536_v50 = vpack.c.bf16 %v499_v45, %v498_v44 }
 0x112   :  { %v336_v51 = vadd.f32 %v17460_v2, %v335_v49  ;;  %v14687_v52 = vpop.f32.mrb[26].mxu0 }
 0x113   :  { %v464_v53 = vmul.f32 0.01, %v344_v48  ;;  %v347_v54 = vadd.f32 %v14687_v52, %v17460_v2  ;;  %v338_v55 = vpop.f32.mrb[27].mxu0  ;;  %14728 = vmatprep.mubr.msk.bf16.mxu1 %vm577_vm6, %v536_v50  ;;  %vm424_vm13 = vcmp.ge.f32.partialorder %v344_v48, 0.0 }
 0x114   :  { %v462_v56 = vmul.f32 0.01, %v336_v51  ;;  %v339_v57 = vadd.f32 %v17460_v2, %v338_v55  ;;  %14729 = vmatmul.mubr.msk.bf16.gmra.mrb[20].mxu1 %vm577_vm6, %v537_v47  ;;  %vm422_vm14 = vcmp.ge.f32.partialorder %v336_v51, 0.0 }
 0x115   :  { %vm425_vm15 = vcmp.ge.f32.partialorder %v347_v54, 0.0  ;;  %v465_v58 = vmul.f32 0.01, %v347_v54  ;;  %v504_v60 = vsel %vm424_vm13, %v344_v48, %v464_v53 }
 0x116   :  { %vm423_vm0 = vcmp.ge.f32.partialorder %v339_v57, 0.0  ;;  %v463_v59 = vmul.f32 0.01, %v339_v57  ;;  %v502_v62 = vsel %vm422_vm14, %v336_v51, %v462_v56 }
 0x117   :  { %v505_v61 = vsel %vm425_vm15, %v347_v54, %v465_v58  ;;  %v17531_v58 = vld [vmem:[%s21034_s5] ss:$0 sm:$0xff]  ;;  %s17184_s5 = smov 8  }
 0x118   :  { %v503_v63 = vsel %vm423_vm0, %v339_v57, %v463_v59  ;;  %v14690_v0 = vpop.f32.mrb[28].mxu0  ;;  %v539_v1 = vpack.c.bf16 %v505_v61, %v504_v60  ;;  %v16834_v57 = vld [vmem:[%s21033_s28 + $0x8] sm:$0xff]  }
 0x119   :  { %v360_v3 = vadd.f32 %v14690_v0, %v17460_v2  ;;  %v351_v4 = vpop.f32.mrb[29].mxu0  ;;  %v538_v5 = vpack.c.bf16 %v503_v63, %v502_v62 }
 0x11a   :  { %v352_v6 = vadd.f32 %v17460_v2, %v351_v4  ;;  %v14691_v7 = vpop.f32.mrb[30].mxu0 }
 0x11b   :  { %v468_v8 = vmul.f32 0.01, %v360_v3  ;;  %v363_v9 = vadd.f32 %v14691_v7, %v17460_v2  ;;  %v354_v10 = vpop.f32.mrb[31].mxu0  ;;  %14732 = vmatprep.mubr.msk.bf16.mxu1 %vm577_vm6, %v538_v5  ;;  %vm428_vm2 = vcmp.ge.f32.partialorder %v360_v3, 0.0 }
 0x11c   :  { %v466_v11 = vmul.f32 0.01, %v352_v6  ;;  %v355_v12 = vadd.f32 %v17460_v2, %v354_v10  ;;  %14733 = vmatmul.mubr.msk.bf16.gmra.mrb[24].mxu1 %vm577_vm6, %v539_v1  ;;  %vm426_vm3 = vcmp.ge.f32.partialorder %v352_v6, 0.0 }
 0x11d   :  { %vm429_vm4 = vcmp.ge.f32.partialorder %v363_v9, 0.0  ;;  %v469_v13 = vmul.f32 0.01, %v363_v9  ;;  %v508_v15 = vsel %vm428_vm2, %v360_v3, %v468_v8 }
 0x11e   :  { %vm427_vm5 = vcmp.ge.f32.partialorder %v355_v12, 0.0  ;;  %v467_v14 = vmul.f32 0.01, %v355_v12  ;;  %v506_v17 = vsel %vm426_vm3, %v352_v6, %v466_v11 }
 0x11f   :  { %v509_v16 = vsel %vm429_vm4, %v363_v9, %v469_v13 }
 0x120   :  { %v507_v18 = vsel %vm427_vm5, %v355_v12, %v467_v14  ;;  %v14694_v19 = vpop.f32.mrb[32].mxu0  ;;  %v541_v20 = vpack.c.bf16 %v509_v16, %v508_v15 }
 0x121   :  { %v376_v21 = vadd.f32 %v14694_v19, %v17460_v2  ;;  %v367_v22 = vpop.f32.mrb[33].mxu0  ;;  %v540_v23 = vpack.c.bf16 %v507_v18, %v506_v17 }
 0x122   :  { %v368_v24 = vadd.f32 %v17460_v2, %v367_v22  ;;  %v14695_v25 = vpop.f32.mrb[34].mxu0 }
 0x123   :  { %vm432_vm7 = vcmp.ge.f32.partialorder %v376_v21, 0.0  ;;  %v472_v26 = vmul.f32 0.01, %v376_v21  ;;  %v379_v27 = vadd.f32 %v14695_v25, %v17460_v2  ;;  %v370_v28 = vpop.f32.mrb[35].mxu0  ;;  %14736 = vmatprep.mubr.msk.bf16.mxu1 %vm577_vm6, %v540_v23 }
 0x124   :  { %vm430_vm8 = vcmp.ge.f32.partialorder %v368_v24, 0.0  ;;  %v470_v29 = vmul.f32 0.01, %v368_v24  ;;  %v371_v30 = vadd.f32 %v17460_v2, %v370_v28  ;;  %14737 = vmatmul.mubr.msk.bf16.gmra.mrb[28].mxu1 %vm577_vm6, %v541_v20 }
 0x125   :  { %v512_v31 = vsel %vm432_vm7, %v376_v21, %v472_v26  ;;  %vm433_vm9 = vcmp.ge.f32.partialorder %v379_v27, 0.0  ;;  %v473_v32 = vmul.f32 0.01, %v379_v27 }
 0x126   :  { %v510_v33 = vsel %vm430_vm8, %v368_v24, %v470_v29  ;;  %vm431_vm10 = vcmp.ge.f32.partialorder %v371_v30, 0.0  ;;  %v471_v34 = vmul.f32 0.01, %v371_v30 }
 0x127   :  { %v513_v35 = vsel %vm433_vm9, %v379_v27, %v473_v32  ;;  %vm1187_vm9 = vcmask 261120  }
 0x128   :  { %v511_v36 = vsel %vm431_vm10, %v371_v30, %v471_v34  ;;  %v14698_v37 = vpop.f32.mrb[36].mxu0  ;;  %v543_v38 = vpack.c.bf16 %v513_v35, %v512_v31 }
 0x129   :  { %v392_v39 = vadd.f32 %v14698_v37, %v17460_v2  ;;  %v383_v40 = vpop.f32.mrb[37].mxu0  ;;  %v542_v41 = vpack.c.bf16 %v511_v36, %v510_v33 }
 0x12a   :  { %v384_v42 = vadd.f32 %v17460_v2, %v383_v40  ;;  %v14699_v43 = vpop.f32.mrb[38].mxu0 }
 0x12b   :  { %vm436_vm11 = vcmp.ge.f32.partialorder %v392_v39, 0.0  ;;  %v476_v44 = vmul.f32 0.01, %v392_v39  ;;  %v395_v45 = vadd.f32 %v14699_v43, %v17460_v2  ;;  %v386_v46 = vpop.f32.mrb[39].mxu0  ;;  %14740 = vmatprep.mubr.msk.bf16.mxu1 %vm577_vm6, %v542_v41 }
 0x12c   :  { %vm434_vm12 = vcmp.ge.f32.partialorder %v384_v42, 0.0  ;;  %v474_v47 = vmul.f32 0.01, %v384_v42  ;;  %v387_v48 = vadd.f32 %v17460_v2, %v386_v46  ;;  %14741 = vmatmul.mubr.msk.bf16.gmra.mrb[32].mxu1 %vm577_vm6, %v543_v38  ;;  %v16833_v2 = vld [vmem:[%s21033_s28] sm:$0xff]  }
 0x12d   :  { %v516_v49 = vsel %vm436_vm11, %v392_v39, %v476_v44  ;;  %vm437_vm13 = vcmp.ge.f32.partialorder %v395_v45, 0.0  ;;  %v477_v50 = vmul.f32 0.01, %v395_v45  ;;  %14748 = vmatprep.subr.bf16.mxu0 %v16833_v2 }
 0x12e   :  { %v514_v51 = vsel %vm434_vm12, %v384_v42, %v474_v47  ;;  %vm435_vm14 = vcmp.ge.f32.partialorder %v387_v48, 0.0  ;;  %v475_v52 = vmul.f32 0.01, %v387_v48  ;;  %14749 = vmatpush3.bf16.msra.mxu0 %v16833_v2 }
 0x12f   :  { %v517_v53 = vsel %vm437_vm13, %v395_v45, %v477_v50  ;;  %14750 = vmatprep.subr.bf16.mxu0 %v16834_v57 }
 0x130   :  { %v515_v54 = vsel %vm435_vm14, %v387_v48, %v475_v52  ;;  %v545_v55 = vpack.c.bf16 %v517_v53, %v516_v49 }
 0x131   :  { %v544_v56 = vpack.c.bf16 %v515_v54, %v514_v51 }
 0x132   :  { %14751 = vmatpush3.bf16.msra.mxu0 %v16834_v57 }
 0x133   :  { %14744 = vmatprep.mubr.msk.bf16.mxu1 %vm577_vm6, %v544_v56 }
 0x134   :  { %14745 = vmatmul.mubr.msk.bf16.gmra.mrb[36].mxu1 %vm577_vm6, %v545_v55 }
 0x1bf   :  { %v14710_v59 = vpop.f32.mrb[0].mxu1 }
 0x1c0   :  { %v681_v60 = vadd.f32 %v14710_v59, %v17531_v58  ;;  %v672_v61 = vpop.f32.mrb[1].mxu1 }
 0x1c1   :  { %v673_v62 = vadd.f32 %v17531_v58, %v672_v61  ;;  %v14711_v63 = vpop.f32.mrb[2].mxu1 }
 0x1c2   :  { %vm833_vm15 = vcmp.ge.f32.partialorder %v681_v60, 0.0  ;;  %v873_v0 = vmul.f32 0.01, %v681_v60  ;;  %v684_v1 = vadd.f32 %v14711_v63, %v17531_v58  ;;  %v675_v3 = vpop.f32.mrb[3].mxu1 }
 0x1c3   :  { %v676_v4 = vadd.f32 %v17531_v58, %v675_v3  ;;  %vm831_vm0 = vcmp.ge.f32.partialorder %v673_v62, 0.0  ;;  %v871_v5 = vmul.f32 0.01, %v673_v62 }
 0x1c4   :  { %v913_v6 = vsel %vm833_vm15, %v681_v60, %v873_v0  ;;  %vm834_vm2 = vcmp.ge.f32.partialorder %v684_v1, 0.0  ;;  %v874_v7 = vmul.f32 0.01, %v684_v1 }
 0x1c5   :  { %v993_v8 = vmul.f32 0.01, %v913_v6  ;;  %vm832_vm3 = vcmp.ge.f32.partialorder %v676_v4, 0.0  ;;  %v872_v9 = vmul.f32 0.01, %v676_v4  ;;  %vm953_vm4 = vcmp.ge.f32.partialorder %v913_v6, 0.0 }
 0x1c6   :  { %v914_v10 = vsel %vm834_vm2, %v684_v1, %v874_v7  ;;  %v911_v11 = vsel %vm831_vm0, %v673_v62, %v871_v5 }
 0x1c7   :  { %vm954_vm5 = vcmp.ge.f32.partialorder %v914_v10, 0.0  ;;  %v994_v12 = vmul.f32 0.01, %v914_v10  ;;  %v14714_v13 = vpop.f32.mrb[4].mxu1  ;;  %v912_v14 = vsel %vm832_vm3, %v676_v4, %v872_v9  ;;  %vm951_vm7 = vcmp.ge.f32.partialorder %v911_v11, 0.0 }
 0x1c8   :  { %v697_v15 = vadd.f32 %v14714_v13, %v17531_v58  ;;  %v688_v16 = vpop.f32.mrb[5].mxu1  ;;  %vm952_vm8 = vcmp.ge.f32.partialorder %v912_v14, 0.0  ;;  %v991_v17 = vmul.f32 0.01, %v911_v11  ;;  %v992_v18 = vmul.f32 0.01, %v912_v14 }
 0x1c9   :  { %v689_v19 = vadd.f32 %v17531_v58, %v688_v16  ;;  %v14715_v20 = vpop.f32.mrb[6].mxu1  ;;  %v1033_v21 = vsel %vm953_vm4, %v913_v6, %v993_v8  ;;  %v1034_v22 = vsel %vm954_vm5, %v914_v10, %v994_v12 }
 0x1ca   :  { %v700_v23 = vadd.f32 %v14715_v20, %v17531_v58  ;;  %v691_v24 = vpop.f32.mrb[7].mxu1  ;;  %v1031_v25 = vsel %vm951_vm7, %v911_v11, %v991_v17  ;;  %v1032_v26 = vsel %vm952_vm8, %v912_v14, %v992_v18  ;;  %v17541_v27 = vpack.c.bf16 %v1034_v22, %v1033_v21 }
 0x1cb   :  { %v692_v28 = vadd.f32 %v17531_v58, %v691_v24  ;;  %v17544_v29 = vpack.c.bf16 %v1032_v26, %v1031_v25  ;;  %vm835_vm10 = vcmp.ge.f32.partialorder %v689_v19, 0.0  ;;  %v875_v30 = vmul.f32 0.01, %v689_v19 }
 0x1cc   :  { %21035 = vst [vmem:[#allocation2_spill] sm:$0xff] %v17541_v27  ;;  %vm837_vm11 = vcmp.ge.f32.partialorder %v697_v15, 0.0  ;;  %vm838_vm12 = vcmp.ge.f32.partialorder %v700_v23, 0.0  ;;  %v877_v31 = vmul.f32 0.01, %v697_v15 }
 0x1cd   :  { %21036 = vst [vmem:[#allocation3_spill] sm:$0xff] %v17544_v29  ;;  %v878_v32 = vmul.f32 0.01, %v700_v23  ;;  %14752 = vmatprep.mubr.msk.bf16.mxu0 %vm1187_vm9, %v17544_v29  ;;  %vm836_vm13 = vcmp.ge.f32.partialorder %v692_v28, 0.0  ;;  %v876_v33 = vmul.f32 0.01, %v692_v28  ;;  %v915_v34 = vsel %vm835_vm10, %v689_v19, %v875_v30 }
 0x1ce   :  { %14753 = vmatmul.mubr.msk.bf16.vlgmr.msra.gmra.mrb[40].mxu0 %vm1187_vm9, %v17541_v27  ;;  %vm955_vm14 = vcmp.ge.f32.partialorder %v915_v34, 0.0  ;;  %v995_v35 = vmul.f32 0.01, %v915_v34  ;;  %v917_v36 = vsel %vm837_vm11, %v697_v15, %v877_v31 }
 0x1cf   :  { %v918_v37 = vsel %vm838_vm12, %v700_v23, %v878_v32  ;;  %v14718_v38 = vpop.f32.mrb[8].mxu1  ;;  %v916_v39 = vsel %vm836_vm13, %v692_v28, %v876_v33  ;;  %vm957_vm15 = vcmp.ge.f32.partialorder %v917_v36, 0.0  ;;  %v997_v40 = vmul.f32 0.01, %v917_v36 }
 0x1d0   :  { %v713_v41 = vadd.f32 %v14718_v38, %v17531_v58  ;;  %v704_v42 = vpop.f32.mrb[9].mxu1  ;;  %vm956_vm0 = vcmp.ge.f32.partialorder %v916_v39, 0.0  ;;  %v996_v43 = vmul.f32 0.01, %v916_v39  ;;  %vm958_vm2 = vcmp.ge.f32.partialorder %v918_v37, 0.0 }
 0x1d1   :  { %v705_v44 = vadd.f32 %v17531_v58, %v704_v42  ;;  %v14719_v45 = vpop.f32.mrb[10].mxu1  ;;  %v1035_v46 = vsel %vm955_vm14, %v915_v34, %v995_v35  ;;  %v998_v47 = vmul.f32 0.01, %v918_v37  ;;  %v1037_v48 = vsel %vm957_vm15, %v917_v36, %v997_v40 }
 0x1d2   :  { %v716_v49 = vadd.f32 %v14719_v45, %v17531_v58  ;;  %v707_v50 = vpop.f32.mrb[11].mxu1  ;;  %v1036_v51 = vsel %vm956_vm0, %v916_v39, %v996_v43  ;;  %vm841_vm3 = vcmp.ge.f32.partialorder %v713_v41, 0.0  ;;  %v881_v52 = vmul.f32 0.01, %v713_v41 }
 0x1d3   :  { %v708_v53 = vadd.f32 %v17531_v58, %v707_v50  ;;  %v17554_v54 = vpack.c.bf16 %v1036_v51, %v1035_v46  ;;  %v1038_v55 = vsel %vm958_vm2, %v918_v37, %v998_v47  ;;  %vm839_vm4 = vcmp.ge.f32.partialorder %v705_v44, 0.0 }
 0x1d4   :  { %v17556_v56 = vpack.c.bf16 %v1038_v55, %v1037_v48  ;;  %v879_v2 = vmul.f32 0.01, %v705_v44  ;;  %vm842_vm5 = vcmp.ge.f32.partialorder %v716_v49, 0.0  ;;  %v882_v57 = vmul.f32 0.01, %v716_v49 }
 0x1d5   :  { %21037 = vst [vmem:[#allocation4_spill] sm:$0xff] %v17554_v54  ;;  %14756 = vmatprep.mubr.msk.bf16.mxu0 %vm1187_vm9, %v17554_v54  ;;  %vm840_vm7 = vcmp.ge.f32.partialorder %v708_v53, 0.0  ;;  %v880_v59 = vmul.f32 0.01, %v708_v53  ;;  %v921_v60 = vsel %vm841_vm3, %v713_v41, %v881_v52 }
 0x1d6   :  { %21038 = vst [vmem:[#allocation5_spill] sm:$0xff] %v17556_v56  ;;  %14757 = vmatmul.mubr.msk.bf16.gmra.mrb[44].mxu0 %vm1187_vm9, %v17556_v56  ;;  %v919_v61 = vsel %vm839_vm4, %v705_v44, %v879_v2  ;;  %v922_v62 = vsel %vm842_vm5, %v716_v49, %v882_v57  ;;  %vm961_vm8 = vcmp.ge.f32.partialorder %v921_v60, 0.0  ;;  %v1001_v63 = vmul.f32 0.01, %v921_v60 }
 0x1d7   :  { %v14722_v0 = vpop.f32.mrb[12].mxu1  ;;  %v920_v1 = vsel %vm840_vm7, %v708_v53, %v880_v59  ;;  %vm959_vm10 = vcmp.ge.f32.partialorder %v919_v61, 0.0  ;;  %v999_v3 = vmul.f32 0.01, %v919_v61  ;;  %vm962_vm11 = vcmp.ge.f32.partialorder %v922_v62, 0.0 }
 0x1d8   :  { %v729_v4 = vadd.f32 %v14722_v0, %v17531_v58  ;;  %v720_v5 = vpop.f32.mrb[13].mxu1  ;;  %vm960_vm12 = vcmp.ge.f32.partialorder %v920_v1, 0.0  ;;  %v1000_v6 = vmul.f32 0.01, %v920_v1  ;;  %v1002_v7 = vmul.f32 0.01, %v922_v62 }
 0x1d9   :  { %v721_v8 = vadd.f32 %v17531_v58, %v720_v5  ;;  %v14723_v9 = vpop.f32.mrb[14].mxu1  ;;  %v1039_v10 = vsel %vm959_vm10, %v919_v61, %v999_v3  ;;  %v1041_v11 = vsel %vm961_vm8, %v921_v60, %v1001_v63 }
 0x1da   :  { %v732_v12 = vadd.f32 %v14723_v9, %v17531_v58  ;;  %v723_v13 = vpop.f32.mrb[15].mxu1  ;;  %v1040_v14 = vsel %vm960_vm12, %v920_v1, %v1000_v6  ;;  %v1042_v15 = vsel %vm962_vm11, %v922_v62, %v1002_v7  ;;  %vm845_vm13 = vcmp.ge.f32.partialorder %v729_v4, 0.0 }
 0x1db   :  { %v724_v16 = vadd.f32 %v17531_v58, %v723_v13  ;;  %v17566_v17 = vpack.c.bf16 %v1040_v14, %v1039_v10  ;;  %v17568_v18 = vpack.c.bf16 %v1042_v15, %v1041_v11  ;;  %vm843_vm14 = vcmp.ge.f32.partialorder %v721_v8, 0.0 }
 0x1dc   :  { %v883_v19 = vmul.f32 0.01, %v721_v8  ;;  %vm846_vm15 = vcmp.ge.f32.partialorder %v732_v12, 0.0  ;;  %v885_v20 = vmul.f32 0.01, %v729_v4 }
 0x1dd   :  { %21039 = vst [vmem:[#allocation6_spill] sm:$0xff] %v17566_v17  ;;  %21040 = vst [vmem:[#allocation7_spill] sm:$0xff] %v17568_v18  ;;  %14760 = vmatprep.mubr.msk.bf16.mxu0 %vm1187_vm9, %v17566_v17  ;;  %vm844_vm0 = vcmp.ge.f32.partialorder %v724_v16, 0.0  ;;  %v884_v21 = vmul.f32 0.01, %v724_v16 }
 0x1de   :  { %v886_v22 = vmul.f32 0.01, %v732_v12  ;;  %14761 = vmatmul.mubr.msk.bf16.gmra.mrb[48].mxu0 %vm1187_vm9, %v17568_v18  ;;  %v923_v23 = vsel %vm843_vm14, %v721_v8, %v883_v19  ;;  %v925_v24 = vsel %vm845_vm13, %v729_v4, %v885_v20 }
 0x1df   :  { %v14726_v25 = vpop.f32.mrb[16].mxu1  ;;  %v924_v26 = vsel %vm844_vm0, %v724_v16, %v884_v21  ;;  %vm963_vm2 = vcmp.ge.f32.partialorder %v923_v23, 0.0  ;;  %v1003_v28 = vmul.f32 0.01, %v923_v23  ;;  %vm965_vm4 = vcmp.ge.f32.partialorder %v925_v24, 0.0 }
 0x1e0   :  { %v926_v30 = vsel %vm846_vm15, %v732_v12, %v886_v22  ;;  %v745_v31 = vadd.f32 %v14726_v25, %v17531_v58  ;;  %v736_v32 = vpop.f32.mrb[17].mxu1  ;;  %vm964_vm3 = vcmp.ge.f32.partialorder %v924_v26, 0.0  ;;  %v1004_v33 = vmul.f32 0.01, %v924_v26 }
 0x1e1   :  { %v737_v34 = vadd.f32 %v17531_v58, %v736_v32  ;;  %v14727_v35 = vpop.f32.mrb[18].mxu1  ;;  %v1043_v36 = vsel %vm963_vm2, %v923_v23, %v1003_v28  ;;  %vm966_vm5 = vcmp.ge.f32.partialorder %v926_v30, 0.0  ;;  %v1005_v37 = vmul.f32 0.01, %v925_v24 }
 0x1e2   :  { %v748_v38 = vadd.f32 %v14727_v35, %v17531_v58  ;;  %v739_v39 = vpop.f32.mrb[19].mxu1  ;;  %v1044_v40 = vsel %vm964_vm3, %v924_v26, %v1004_v33  ;;  %v1006_v41 = vmul.f32 0.01, %v926_v30  ;;  %vm849_vm7 = vcmp.ge.f32.partialorder %v745_v31, 0.0 }
 0x1e3   :  { %v740_v42 = vadd.f32 %v17531_v58, %v739_v39  ;;  %v17578_v43 = vpack.c.bf16 %v1044_v40, %v1043_v36  ;;  %v1045_v44 = vsel %vm965_vm4, %v925_v24, %v1005_v37  ;;  %vm847_vm8 = vcmp.ge.f32.partialorder %v737_v34, 0.0 }
 0x1e4   :  { %v1046_v45 = vsel %vm966_vm5, %v926_v30, %v1006_v41  ;;  %v887_v46 = vmul.f32 0.01, %v737_v34  ;;  %vm850_vm10 = vcmp.ge.f32.partialorder %v748_v38, 0.0  ;;  %v889_v47 = vmul.f32 0.01, %v745_v31 }
 0x1e5   :  { %21041 = vst [vmem:[#allocation8_spill] sm:$0xff] %v17578_v43  ;;  %14764 = vmatprep.mubr.msk.bf16.mxu0 %vm1187_vm9, %v17578_v43  ;;  %v17582_v48 = vpack.c.bf16 %v1046_v45, %v1045_v44  ;;  %vm848_vm11 = vcmp.ge.f32.partialorder %v740_v42, 0.0  ;;  %v888_v49 = vmul.f32 0.01, %v740_v42  ;;  %v890_v50 = vmul.f32 0.01, %v748_v38 }
 0x1e6   :  { %v927_v51 = vsel %vm847_vm8, %v737_v34, %v887_v46  ;;  %v929_v52 = vsel %vm849_vm7, %v745_v31, %v889_v47 }
 0x1e7   :  { %21042 = vst [vmem:[#allocation9_spill] sm:$0xff] %v17582_v48  ;;  %14765 = vmatmul.mubr.msk.bf16.gmra.mrb[52].mxu0 %vm1187_vm9, %v17582_v48  ;;  %v14730_v53 = vpop.f32.mrb[20].mxu1  ;;  %v928_v55 = vsel %vm848_vm11, %v740_v42, %v888_v49  ;;  %vm967_vm12 = vcmp.ge.f32.partialorder %v927_v51, 0.0  ;;  %v1007_v2 = vmul.f32 0.01, %v927_v51  ;;  %v930_v57 = vsel %vm850_vm10, %v748_v38, %v890_v50 }
 0x1e8   :  { %v761_v59 = vadd.f32 %v14730_v53, %v17531_v58  ;;  %v752_v60 = vpop.f32.mrb[21].mxu1  ;;  %vm968_vm13 = vcmp.ge.f32.partialorder %v928_v55, 0.0  ;;  %v1008_v61 = vmul.f32 0.01, %v928_v55  ;;  %vm969_vm14 = vcmp.ge.f32.partialorder %v929_v52, 0.0 }
 0x1e9   :  { %v753_v62 = vadd.f32 %v17531_v58, %v752_v60  ;;  %v14731_v63 = vpop.f32.mrb[22].mxu1  ;;  %v1047_v0 = vsel %vm967_vm12, %v927_v51, %v1007_v2  ;;  %vm970_vm15 = vcmp.ge.f32.partialorder %v930_v57, 0.0  ;;  %v1009_v1 = vmul.f32 0.01, %v929_v52 }
 0x1ea   :  { %v764_v3 = vadd.f32 %v14731_v63, %v17531_v58  ;;  %v755_v4 = vpop.f32.mrb[23].mxu1  ;;  %v1048_v5 = vsel %vm968_vm13, %v928_v55, %v1008_v61  ;;  %v1010_v6 = vmul.f32 0.01, %v930_v57  ;;  %vm853_vm0 = vcmp.ge.f32.partialorder %v761_v59, 0.0 }
 0x1eb   :  { %v756_v7 = vadd.f32 %v17531_v58, %v755_v4  ;;  %v17590_v8 = vpack.c.bf16 %v1048_v5, %v1047_v0  ;;  %v1049_v9 = vsel %vm969_vm14, %v929_v52, %v1009_v1  ;;  %vm851_vm2 = vcmp.ge.f32.partialorder %v753_v62, 0.0 }
 0x1ec   :  { %v1050_v10 = vsel %vm970_vm15, %v930_v57, %v1010_v6  ;;  %v891_v11 = vmul.f32 0.01, %v753_v62  ;;  %vm854_vm3 = vcmp.ge.f32.partialorder %v764_v3, 0.0  ;;  %v893_v12 = vmul.f32 0.01, %v761_v59 }
 0x1ed   :  { %21043 = vst [vmem:[#allocation10_spill] sm:$0xff] %v17590_v8  ;;  %14768 = vmatprep.mubr.msk.bf16.mxu0 %vm1187_vm9, %v17590_v8  ;;  %v17594_v13 = vpack.c.bf16 %v1050_v10, %v1049_v9  ;;  %vm852_vm4 = vcmp.ge.f32.partialorder %v756_v7, 0.0  ;;  %v892_v14 = vmul.f32 0.01, %v756_v7  ;;  %v894_v15 = vmul.f32 0.01, %v764_v3 }
 0x1ee   :  { %v931_v16 = vsel %vm851_vm2, %v753_v62, %v891_v11  ;;  %v933_v19 = vsel %vm853_vm0, %v761_v59, %v893_v12 }
 0x1ef   :  { %21044 = vst [vmem:[#allocation11_spill] sm:$0xff] %v17594_v13  ;;  %14769 = vmatmul.mubr.msk.bf16.gmra.mrb[56].mxu0 %vm1187_vm9, %v17594_v13  ;;  %v14734_v20 = vpop.f32.mrb[24].mxu1  ;;  %v932_v21 = vsel %vm852_vm4, %v756_v7, %v892_v14  ;;  %vm971_vm5 = vcmp.ge.f32.partialorder %v931_v16, 0.0  ;;  %v1011_v22 = vmul.f32 0.01, %v931_v16  ;;  %v934_v23 = vsel %vm854_vm3, %v764_v3, %v894_v15 }
 0x1f0   :  { %v777_v24 = vadd.f32 %v14734_v20, %v17531_v58  ;;  %v768_v25 = vpop.f32.mrb[25].mxu1  ;;  %vm972_vm7 = vcmp.ge.f32.partialorder %v932_v21, 0.0  ;;  %v1012_v26 = vmul.f32 0.01, %v932_v21  ;;  %vm973_vm8 = vcmp.ge.f32.partialorder %v933_v19, 0.0 }
 0x1f1   :  { %v769_v28 = vadd.f32 %v17531_v58, %v768_v25  ;;  %v14735_v30 = vpop.f32.mrb[26].mxu1  ;;  %v1051_v31 = vsel %vm971_vm5, %v931_v16, %v1011_v22  ;;  %vm974_vm10 = vcmp.ge.f32.partialorder %v934_v23, 0.0  ;;  %v1013_v32 = vmul.f32 0.01, %v933_v19 }
 0x1f2   :  { %v897_v33 = vmul.f32 0.01, %v777_v24  ;;  %v780_v34 = vadd.f32 %v14735_v30, %v17531_v58  ;;  %v771_v35 = vpop.f32.mrb[27].mxu1  ;;  %v1052_v36 = vsel %vm972_vm7, %v932_v21, %v1012_v26  ;;  %v1014_v37 = vmul.f32 0.01, %v934_v23 }
 0x1f3   :  { %v895_v38 = vmul.f32 0.01, %v769_v28  ;;  %v772_v39 = vadd.f32 %v17531_v58, %v771_v35  ;;  %v17602_v40 = vpack.c.bf16 %v1052_v36, %v1051_v31  ;;  %v1053_v41 = vsel %vm973_vm8, %v933_v19, %v1013_v32 }
 0x1f4   :  { %v898_v42 = vmul.f32 0.01, %v780_v34  ;;  %v1054_v44 = vsel %vm974_vm10, %v934_v23, %v1014_v37  ;;  %vm855_vm11 = vcmp.ge.f32.partialorder %v769_v28, 0.0  ;;  %vm857_vm12 = vcmp.ge.f32.partialorder %v777_v24, 0.0 }
 0x1f5   :  { %21045 = vst [vmem:[#allocation12_spill] sm:$0xff] %v17602_v40  ;;  %v896_v45 = vmul.f32 0.01, %v772_v39  ;;  %14772 = vmatprep.mubr.msk.bf16.mxu0 %vm1187_vm9, %v17602_v40  ;;  %v17606_v46 = vpack.c.bf16 %v1054_v44, %v1053_v41  ;;  %vm856_vm13 = vcmp.ge.f32.partialorder %v772_v39, 0.0  ;;  %v935_v47 = vsel %vm855_vm11, %v769_v28, %v895_v38 }
 0x1f6   :  { %vm975_vm14 = vcmp.ge.f32.partialorder %v935_v47, 0.0  ;;  %v1015_v49 = vmul.f32 0.01, %v935_v47  ;;  %vm858_vm15 = vcmp.ge.f32.partialorder %v780_v34, 0.0  ;;  %v937_v50 = vsel %vm857_vm12, %v777_v24, %v897_v33 }
 0x1f7   :  { %21046 = vst [vmem:[#allocation13_spill] sm:$0xff] %v17606_v46  ;;  %14773 = vmatmul.mubr.msk.bf16.gmra.mrb[60].mxu0 %vm1187_vm9, %v17606_v46  ;;  %v14738_v51 = vpop.f32.mrb[28].mxu1  ;;  %v936_v52 = vsel %vm856_vm13, %v772_v39, %v896_v45  ;;  %v938_v53 = vsel %vm858_vm15, %v780_v34, %v898_v42  ;;  %vm977_vm0 = vcmp.ge.f32.partialorder %v937_v50, 0.0  ;;  %v1017_v55 = vmul.f32 0.01, %v937_v50 }
 0x1f8   :  { %v793_v2 = vadd.f32 %v14738_v51, %v17531_v58  ;;  %v784_v57 = vpop.f32.mrb[29].mxu1  ;;  %vm976_vm2 = vcmp.ge.f32.partialorder %v936_v52, 0.0  ;;  %v1016_v59 = vmul.f32 0.01, %v936_v52  ;;  %v1055_v60 = vsel %vm975_vm14, %v935_v47, %v1015_v49 }
 0x1f9   :  { %v785_v61 = vadd.f32 %v17531_v58, %v784_v57  ;;  %v14739_v62 = vpop.f32.mrb[30].mxu1  ;;  %vm978_vm3 = vcmp.ge.f32.partialorder %v938_v53, 0.0  ;;  %v1018_v63 = vmul.f32 0.01, %v938_v53  ;;  %v1057_v0 = vsel %vm977_vm0, %v937_v50, %v1017_v55 }
 0x1fa   :  { %v901_v1 = vmul.f32 0.01, %v793_v2  ;;  %v796_v3 = vadd.f32 %v14739_v62, %v17531_v58  ;;  %v787_v4 = vpop.f32.mrb[31].mxu1  ;;  %v1056_v5 = vsel %vm976_vm2, %v936_v52, %v1016_v59  ;;  %vm861_vm4 = vcmp.ge.f32.partialorder %v793_v2, 0.0 }
 0x1fb   :  { %v899_v6 = vmul.f32 0.01, %v785_v61  ;;  %v788_v7 = vadd.f32 %v17531_v58, %v787_v4  ;;  %v17614_v9 = vpack.c.bf16 %v1056_v5, %v1055_v60  ;;  %v1058_v10 = vsel %vm978_vm3, %v938_v53, %v1018_v63 }
 0x1fc   :  { %v902_v11 = vmul.f32 0.01, %v796_v3  ;;  %v17616_v12 = vpack.c.bf16 %v1058_v10, %v1057_v0  ;;  %vm859_vm5 = vcmp.ge.f32.partialorder %v785_v61, 0.0  ;;  %vm862_vm7 = vcmp.ge.f32.partialorder %v796_v3, 0.0 }
 0x1fd   :  { %21047 = vst [vmem:[#allocation14_spill] sm:$0xff] %v17614_v9  ;;  %v900_v14 = vmul.f32 0.01, %v788_v7  ;;  %14776 = vmatprep.mubr.msk.bf16.mxu0 %vm1187_vm9, %v17614_v9  ;;  %vm860_vm8 = vcmp.ge.f32.partialorder %v788_v7, 0.0  ;;  %v939_v15 = vsel %vm859_vm5, %v785_v61, %v899_v6  ;;  %v941_v16 = vsel %vm861_vm4, %v793_v2, %v901_v1 }
 0x1fe   :  { %21048 = vst [vmem:[#allocation15_spill] sm:$0xff] %v17616_v12  ;;  %vm979_vm10 = vcmp.ge.f32.partialorder %v939_v15, 0.0  ;;  %v1019_v19 = vmul.f32 0.01, %v939_v15  ;;  %v942_v20 = vsel %vm862_vm7, %v796_v3, %v902_v11  ;;  %vm981_vm11 = vcmp.ge.f32.partialorder %v941_v16, 0.0 }
 0x1ff   :  { %14777 = vmatmul.mubr.msk.bf16.gmra.mrb[64].mxu0 %vm1187_vm9, %v17616_v12  ;;  %v14742_v21 = vpop.f32.mrb[32].mxu1  ;;  %v940_v22 = vsel %vm860_vm8, %v788_v7, %v900_v14  ;;  %vm982_vm12 = vcmp.ge.f32.partialorder %v942_v20, 0.0  ;;  %v1021_v23 = vmul.f32 0.01, %v941_v16  ;;  %v1022_v24 = vmul.f32 0.01, %v942_v20 }
 0x200   :  { %v809_v25 = vadd.f32 %v14742_v21, %v17531_v58  ;;  %v800_v26 = vpop.f32.mrb[33].mxu1  ;;  %vm980_vm13 = vcmp.ge.f32.partialorder %v940_v22, 0.0  ;;  %v1020_v28 = vmul.f32 0.01, %v940_v22  ;;  %v1059_v32 = vsel %vm979_vm10, %v939_v15, %v1019_v19 }
 0x201   :  { %v801_v30 = vadd.f32 %v17531_v58, %v800_v26  ;;  %v14743_v31 = vpop.f32.mrb[34].mxu1  ;;  %v1061_v33 = vsel %vm981_vm11, %v941_v16, %v1021_v23  ;;  %v1062_v34 = vsel %vm982_vm12, %v942_v20, %v1022_v24 }
 0x202   :  { %v905_v35 = vmul.f32 0.01, %v809_v25  ;;  %v812_v36 = vadd.f32 %v14743_v31, %v17531_v58  ;;  %v803_v37 = vpop.f32.mrb[35].mxu1  ;;  %v1060_v38 = vsel %vm980_vm13, %v940_v22, %v1020_v28  ;;  %v17626_v39 = vpack.c.bf16 %v1062_v34, %v1061_v33 }
 0x203   :  { %v903_v41 = vmul.f32 0.01, %v801_v30  ;;  %v804_v42 = vadd.f32 %v17531_v58, %v803_v37  ;;  %v17629_v44 = vpack.c.bf16 %v1060_v38, %v1059_v32  ;;  %vm863_vm14 = vcmp.ge.f32.partialorder %v801_v30, 0.0  ;;  %v16844_v37 = vld [vmem:[%s21053_s25 + $0x8] ss:$12 sps:$4 sm:$0xff]  }
 0x204   :  { %21049 = vst [vmem:[#allocation16_spill] sm:$0xff] %v17626_v39  ;;  %v906_v45 = vmul.f32 0.01, %v812_v36  ;;  %vm865_vm15 = vcmp.ge.f32.partialorder %v809_v25, 0.0  ;;  %vm866_vm0 = vcmp.ge.f32.partialorder %v812_v36, 0.0 }
 0x205   :  { %21050 = vst [vmem:[#allocation17_spill] sm:$0xff] %v17629_v44  ;;  %v904_v47 = vmul.f32 0.01, %v804_v42  ;;  %14780 = vmatprep.mubr.msk.bf16.mxu0 %vm1187_vm9, %v17629_v44  ;;  %vm864_vm2 = vcmp.ge.f32.partialorder %v804_v42, 0.0  ;;  %v943_v49 = vsel %vm863_vm14, %v801_v30, %v903_v41  ;;  %v945_v50 = vsel %vm865_vm15, %v809_v25, %v905_v35 }
 0x206   :  { %vm983_vm3 = vcmp.ge.f32.partialorder %v943_v49, 0.0  ;;  %v1023_v51 = vmul.f32 0.01, %v943_v49  ;;  %v946_v52 = vsel %vm866_vm0, %v812_v36, %v906_v45  ;;  %vm985_vm4 = vcmp.ge.f32.partialorder %v945_v50, 0.0  ;;  %v17659_v36 = vld [vmem:[%s21053_s25 + $0x4] ss:$12 sps:$4 sm:$0xff]  }
 0x207   :  { %14781 = vmatmul.mubr.msk.bf16.gmra.mrb[68].mxu0 %vm1187_vm9, %v17626_v39  ;;  %v14746_v53 = vpop.f32.mrb[36].mxu1  ;;  %v944_v55 = vsel %vm864_vm2, %v804_v42, %v904_v47  ;;  %vm986_vm5 = vcmp.ge.f32.partialorder %v946_v52, 0.0  ;;  %v1025_v2 = vmul.f32 0.01, %v945_v50  ;;  %v1026_v57 = vmul.f32 0.01, %v946_v52  ;;  %1860 = vmatprep.mubr.bf16.mxu1 %v17659_v36 }
 0x208   :  { %v825_v59 = vadd.f32 %v14746_v53, %v17531_v58  ;;  %v816_v60 = vpop.f32.mrb[37].mxu1  ;;  %vm984_vm7 = vcmp.ge.f32.partialorder %v944_v55, 0.0  ;;  %v1024_v61 = vmul.f32 0.01, %v944_v55  ;;  %v1063_v62 = vsel %vm983_vm3, %v943_v49, %v1023_v51 }
 0x209   :  { %v817_v63 = vadd.f32 %v17531_v58, %v816_v60  ;;  %v14747_v0 = vpop.f32.mrb[38].mxu1  ;;  %v1065_v1 = vsel %vm985_vm4, %v945_v50, %v1025_v2  ;;  %v1066_v3 = vsel %vm986_vm5, %v946_v52, %v1026_v57  ;;  %v20997_v35 = vmov 0  }
 0x20a   :  { %v909_v4 = vmul.f32 0.01, %v825_v59  ;;  %v828_v5 = vadd.f32 %v14747_v0, %v17531_v58  ;;  %v819_v6 = vpop.f32.mrb[39].mxu1  ;;  %v1064_v7 = vsel %vm984_vm7, %v944_v55, %v1024_v61  ;;  %v17638_v10 = vpack.c.bf16 %v1066_v3, %v1065_v1  ;;  %1828 = vmatprep.subr.bf16.mxu1 %v20997_v35 }
 0x20b   :  { %v907_v11 = vmul.f32 0.01, %v817_v63  ;;  %v820_v14 = vadd.f32 %v17531_v58, %v819_v6  ;;  %v17641_v15 = vpack.c.bf16 %v1064_v7, %v1063_v62  ;;  %vm867_vm8 = vcmp.ge.f32.partialorder %v817_v63, 0.0 }
 0x20c   :  { %v910_v16 = vmul.f32 0.01, %v828_v5  ;;  %vm869_vm10 = vcmp.ge.f32.partialorder %v825_v59, 0.0  ;;  %vm870_vm11 = vcmp.ge.f32.partialorder %v828_v5, 0.0  ;;  %vm2368_vm7 = vcmask 130048  }
 0x20d   :  { %21051 = vst [vmem:[#allocation18_spill] sm:$0xff] %v17641_v15  ;;  %v908_v19 = vmul.f32 0.01, %v820_v14  ;;  %14784 = vmatprep.mubr.msk.bf16.mxu0 %vm1187_vm9, %v17641_v15  ;;  %vm868_vm12 = vcmp.ge.f32.partialorder %v820_v14, 0.0  ;;  %v947_v20 = vsel %vm867_vm8, %v817_v63, %v907_v11  ;;  %v949_v21 = vsel %vm869_vm10, %v825_v59, %v909_v4 }
 0x20e   :  { %vm987_vm13 = vcmp.ge.f32.partialorder %v947_v20, 0.0  ;;  %v1027_v22 = vmul.f32 0.01, %v947_v20  ;;  %v950_v23 = vsel %vm870_vm11, %v828_v5, %v910_v16  ;;  %vm989_vm14 = vcmp.ge.f32.partialorder %v949_v21, 0.0 }
 0x20f   :  { %14785 = vmatmul.mubr.msk.bf16.gmra.mrb[72].mxu0 %vm1187_vm9, %v17638_v10  ;;  %v948_v58 = vsel %vm868_vm12, %v820_v14, %v908_v19  ;;  %vm990_vm15 = vcmp.ge.f32.partialorder %v950_v23, 0.0  ;;  %v1029_v24 = vmul.f32 0.01, %v949_v21  ;;  %v1030_v25 = vmul.f32 0.01, %v950_v23 }
 0x210   :  { %vm988_vm0 = vcmp.ge.f32.partialorder %v948_v58, 0.0  ;;  %v1028_v26 = vmul.f32 0.01, %v948_v58  ;;  %v1067_v28 = vsel %vm987_vm13, %v947_v20, %v1027_v22 }
 0x211   :  { %v1069_v30 = vsel %vm989_vm14, %v949_v21, %v1029_v24  ;;  %v1070_v31 = vsel %vm990_vm15, %v950_v23, %v1030_v25 }
 0x212   :  { %v1068_v32 = vsel %vm988_vm0, %v948_v58, %v1028_v26  ;;  %v17647_v33 = vpack.c.bf16 %v1070_v31, %v1069_v30 }
 0x213   :  { %v17649_v34 = vpack.c.bf16 %v1068_v32, %v1067_v28 }
 0x215   :  { %21052 = vst [vmem:[#allocation19_spill] sm:$0xff] %v17649_v34  ;;  %14788 = vmatprep.mubr.msk.bf16.mxu0 %vm1187_vm9, %v17649_v34 }
 0x217   :  { %14789 = vmatmul.mubr.msk.bf16.gmra.mrb[76].mxu0 %vm1187_vm9, %v17647_v33 }
 0x218   :  { %14800 = vmatprep.mubr.msk.bf16.mxu0 %vm577_vm6, %v16844_v37 }
 0x2a1   :  { %v14754_v38 = vpop.f32.mrb[40].mxu0 }
 0x2a2   :  { %v1282_v41 = vpop.f32.mrb[41].mxu0 }
 0x2a3   :  { %v14755_v42 = vpop.f32.mrb[42].mxu0 }
 0x2a4   :  { %v1442_v45 = vpack.c.bf16 %v14755_v42, %v14754_v38  ;;  %v1285_v47 = vpop.f32.mrb[43].mxu0 }
 0x2a5   :  { %v1441_v49 = vpack.c.bf16 %v1285_v47, %v1282_v41 }
 0x2a7   :  { %1829 = vmatpush1.bf16.msra.mxu1 %v1441_v49 }
 0x2a8   :  { %1830 = vmatprep.subr.bf16.mxu1 %v20997_v35 }
 0x2a9   :  { %v14758_v50 = vpop.f32.mrb[44].mxu0 }
 0x2aa   :  { %v1298_v51 = vpop.f32.mrb[45].mxu0 }
 0x2ab   :  { %v14759_v52 = vpop.f32.mrb[46].mxu0  ;;  %1831 = vmatpush1.bf16.msra.mxu1 %v1442_v45 }
 0x2ac   :  { %v1444_v53 = vpack.c.bf16 %v14759_v52, %v14758_v50  ;;  %v1301_v55 = vpop.f32.mrb[47].mxu0  ;;  %1832 = vmatprep.subr.bf16.mxu1 %v20997_v35  ;;  %v16835_v52 = vld [vmem:[%s21053_s25] ss:$12 sps:$4 sm:$0xff]  }
 0x2ad   :  { %v1443_v2 = vpack.c.bf16 %v1301_v55, %v1298_v51  ;;  %v16838_v55 = vld [vmem:[%s21053_s25 + $0x1c] ss:$12 sps:$4 sm:$0xff]  }
 0x2af   :  { %1833 = vmatpush1.bf16.msra.mxu1 %v1443_v2 }
 0x2b0   :  { %1834 = vmatprep.subr.bf16.mxu1 %v20997_v35 }
 0x2b1   :  { %v14762_v57 = vpop.f32.mrb[48].mxu0 }
 0x2b2   :  { %v1314_v59 = vpop.f32.mrb[49].mxu0 }
 0x2b3   :  { %v14763_v60 = vpop.f32.mrb[50].mxu0  ;;  %1835 = vmatpush1.bf16.msra.mxu1 %v1444_v53 }
 0x2b4   :  { %v1446_v61 = vpack.c.bf16 %v14763_v60, %v14762_v57  ;;  %v1317_v62 = vpop.f32.mrb[51].mxu0  ;;  %1836 = vmatprep.subr.bf16.mxu1 %v20997_v35 }
 0x2b5   :  { %v1445_v63 = vpack.c.bf16 %v1317_v62, %v1314_v59  ;;  %v16840_v62 = vld [vmem:[%s21053_s25 + $0x18] ss:$12 sps:$4 sm:$0xff]  }
 0x2b7   :  { %1837 = vmatpush1.bf16.msra.mxu1 %v1445_v63 }
 0x2b8   :  { %1838 = vmatprep.subr.bf16.mxu1 %v20997_v35 }
 0x2ba   :  { %v14766_v0 = vpop.f32.mrb[52].mxu0 }
 0x2bb   :  { %v1330_v1 = vpop.f32.mrb[53].mxu0  ;;  %1839 = vmatpush1.bf16.msra.mxu1 %v1446_v61 }
 0x2bc   :  { %v14767_v3 = vpop.f32.mrb[54].mxu0  ;;  %1840 = vmatprep.subr.bf16.mxu1 %v20997_v35 }
 0x2bd   :  { %v1448_v4 = vpack.c.bf16 %v14767_v3, %v14766_v0  ;;  %v1333_v5 = vpop.f32.mrb[55].mxu0  ;;  %v16841_v0 = vld [vmem:[%s21053_s25 + $0x34] ss:$12 sps:$4 sm:$0xff]  }
 0x2be   :  { %v1447_v6 = vpack.c.bf16 %v1333_v5, %v1330_v1  ;;  %v16843_v5 = vld [vmem:[%s21053_s25 + $0x30] ss:$12 sps:$4 sm:$0xff]  }
 0x2c0   :  { %1841 = vmatpush1.bf16.msra.mxu1 %v1447_v6  ;;  %v16845_v6 = vld [vmem:[%s21053_s25 + $0x20] ss:$12 sps:$4 sm:$0xff]  }
 0x2c1   :  { %1842 = vmatprep.subr.bf16.mxu1 %v20997_v35 }
 0x2c2   :  { %v14770_v7 = vpop.f32.mrb[56].mxu0 }
 0x2c3   :  { %v1346_v11 = vpop.f32.mrb[57].mxu0 }
 0x2c4   :  { %v14771_v14 = vpop.f32.mrb[58].mxu0  ;;  %1843 = vmatpush1.bf16.msra.mxu1 %v1448_v4 }
 0x2c5   :  { %v1450_v16 = vpack.c.bf16 %v14771_v14, %v14770_v7  ;;  %v1349_v19 = vpop.f32.mrb[59].mxu0  ;;  %1844 = vmatprep.subr.bf16.mxu1 %v20997_v35  ;;  %v16846_v7 = vld [vmem:[%s21053_s25 + $0x4c] ss:$12 sps:$4 sm:$0xff]   ;;  %v16848_v14 = vld [vmem:[%s21053_s25 + $0x48] ss:$12 sps:$4 sm:$0xff]  }
 0x2c6   :  { %v1449_v20 = vpack.c.bf16 %v1349_v19, %v1346_v11  ;;  %v16849_v11 = vld [vmem:[%s21053_s25 + $0x38] ss:$12 sps:$4 sm:$0xff]  }
 0x2c7   :  { %v16851_v19 = vld [vmem:[%s21053_s25 + $0x64] ss:$12 sps:$4 sm:$0xff]  }
 0x2c8   :  { %1845 = vmatpush1.bf16.msra.mxu1 %v1449_v20  ;;  %v16854_v20 = vld [vmem:[%s21053_s25 + $0x68] ss:$12 sps:$4 sm:$0xff]  }
 0x2c9   :  { %1846 = vmatprep.subr.bf16.mxu1 %v20997_v35 }
 0x2ca   :  { %v14774_v21 = vpop.f32.mrb[60].mxu0 }
 0x2cb   :  { %v1362_v22 = vpop.f32.mrb[61].mxu0 }
 0x2cc   :  { %v14775_v23 = vpop.f32.mrb[62].mxu0  ;;  %1847 = vmatpush1.bf16.msra.mxu1 %v1450_v16  ;;  %v16850_v16 = vld [vmem:[%s21053_s25 + $0x50] ss:$12 sps:$4 sm:$0xff]  }
 0x2cd   :  { %v1452_v58 = vpack.c.bf16 %v14775_v23, %v14774_v21  ;;  %v1365_v24 = vpop.f32.mrb[63].mxu0  ;;  %1848 = vmatprep.subr.bf16.mxu1 %v20997_v35  ;;  %v16853_v21 = vld [vmem:[%s21053_s25 + $0x60] ss:$12 sps:$4 sm:$0xff]   ;;  %v16856_v23 = vld [vmem:[%s21053_s25 + $0x7c] ss:$12 sps:$4 sm:$0xff]  }
 0x2ce   :  { %v1451_v25 = vpack.c.bf16 %v1365_v24, %v1362_v22  ;;  %v16855_v22 = vld [vmem:[%s21053_s25 + $0x80] ss:$12 sps:$4 sm:$0xff]   ;;  %v16858_v24 = vld [vmem:[%s21053_s25 + $0x78] ss:$12 sps:$4 sm:$0xff]  }
 0x2d0   :  { %1849 = vmatpush1.bf16.msra.mxu1 %v1451_v25  ;;  %v16859_v25 = vld [vmem:[%s21053_s25 + $0x94] ss:$12 sps:$4 sm:$0xff]  }
 0x2d1   :  { %1850 = vmatprep.subr.bf16.mxu1 %v20997_v35 }
 0x2d2   :  { %v14778_v26 = vpop.f32.mrb[64].mxu0 }
 0x2d3   :  { %v1378_v28 = vpop.f32.mrb[65].mxu0 }
 0x2d4   :  { %v14779_v30 = vpop.f32.mrb[66].mxu0  ;;  %1851 = vmatpush1.bf16.msra.mxu1 %v1452_v58  ;;  %v16862_v58 = vld [vmem:[%s21053_s25 + $0x98] ss:$12 sps:$4 sm:$0xff]  }
 0x2d5   :  { %v1454_v31 = vpack.c.bf16 %v14779_v30, %v14778_v26  ;;  %v1381_v32 = vpop.f32.mrb[67].mxu0  ;;  %1852 = vmatprep.subr.bf16.mxu1 %v20997_v35  ;;  %v16863_v26 = vld [vmem:[%s21053_s25 + $0xb0] ss:$12 sps:$4 sm:$0xff]  }
 0x2d6   :  { %v1453_v37 = vpack.c.bf16 %v1381_v32, %v1378_v28  ;;  %v16870_v28 = vld [vmem:[%s21053_s25 + $0xc8] ss:$12 sps:$4 sm:$0xff]   ;;  %v16861_v30 = vld [vmem:[%s21053_s25 + $0x90] ss:$12 sps:$4 sm:$0xff]   ;;  %v16871_v32 = vld [vmem:[%s21053_s25 + $0xe0] ss:$12 sps:$4 sm:$0xff]  }
 0x2d8   :  { %1853 = vmatpush1.bf16.msra.mxu1 %v1453_v37  ;;  %v16878_v37 = vld [vmem:[%s21053_s25 + $0xf8] ss:$12 sps:$4 sm:$0xff]  }
 0x2d9   :  { %1854 = vmatprep.subr.bf16.mxu1 %v20997_v35 }
 0x2da   :  { %v14782_v38 = vpop.f32.mrb[68].mxu0 }
 0x2db   :  { %v1394_v41 = vpop.f32.mrb[69].mxu0 }
 0x2dc   :  { %v14783_v42 = vpop.f32.mrb[70].mxu0  ;;  %1855 = vmatpush1.bf16.msra.mxu1 %v1454_v31  ;;  %v16864_v31 = vld [vmem:[%s21053_s25 + $0xac] ss:$12 sps:$4 sm:$0xff]  }
 0x2dd   :  { %v1456_v45 = vpack.c.bf16 %v14783_v42, %v14782_v38  ;;  %v1397_v47 = vpop.f32.mrb[71].mxu0  ;;  %1856 = vmatprep.subr.bf16.mxu1 %v20997_v35  ;;  %v16866_v38 = vld [vmem:[%s21053_s25 + $0xa8] ss:$12 sps:$4 sm:$0xff]   ;;  %v16879_v42 = vld [vmem:[%s21053_s25 + $0x110] ss:$12 sps:$4 sm:$0xff]  }
 0x2de   :  { %v1455_v49 = vpack.c.bf16 %v1397_v47, %v1394_v41  ;;  %v16867_v41 = vld [vmem:[%s21053_s25 + $0xc4] ss:$12 sps:$4 sm:$0xff]   ;;  %v16869_v47 = vld [vmem:[%s21053_s25 + $0xc0] ss:$12 sps:$4 sm:$0xff]  }
 0x2e0   :  { %1857 = vmatpush1.bf16.msra.mxu1 %v1455_v49  ;;  %v16872_v49 = vld [vmem:[%s21053_s25 + $0xdc] ss:$12 sps:$4 sm:$0xff]  }
 0x2e1   :  { %1858 = vmatprep.subr.bf16.mxu1 %v20997_v35 }
 0x2e2   :  { %v14786_v50 = vpop.f32.mrb[72].mxu0 }
 0x2e3   :  { %v1410_v51 = vpop.f32.mrb[73].mxu0 }
 0x2e4   :  { %v14787_v53 = vpop.f32.mrb[74].mxu0  ;;  %1859 = vmatpush1.bf16.msra.mxu1 %v1456_v45  ;;  %v16886_v45 = vld [vmem:[%s21053_s25 + $0x128] ss:$12 sps:$4 sm:$0xff]  }
 0x2e5   :  { %v1458_v2 = vpack.c.bf16 %v14787_v53, %v14786_v50  ;;  %v1413_v57 = vpop.f32.mrb[75].mxu0  ;;  %2855 = vmatprep.subr.bf16.mxu1 %v20997_v35  ;;  %v16887_v50 = vld [vmem:[%s21053_s25 + $0x140] ss:$12 sps:$4 sm:$0xff]  }
 0x2e6   :  { %v1457_v59 = vpack.c.bf16 %v1413_v57, %v1410_v51  ;;  %v16894_v51 = vld [vmem:[%s21053_s25 + $0x158] ss:$12 sps:$4 sm:$0xff]   ;;  %v16875_v53 = vld [vmem:[%s21053_s25 + $0xf4] ss:$12 sps:$4 sm:$0xff]   ;;  %v16877_v57 = vld [vmem:[%s21053_s25 + $0xf0] ss:$12 sps:$4 sm:$0xff]  }
 0x2e7   :  { %1861 = vmatmul.mubr.bf16.vlgmr.msra.gmra.mrb[40].mxu1 %v16835_v52  ;;  %v16874_v52 = vld [vmem:[%s21053_s25 + $0xd8] ss:$12 sps:$4 sm:$0xff]  }
 0x2e8   :  { %14792 = vmatprep.subr.bf16.mxu0 %v1457_v59  ;;  %1868 = vmatprep.mubr.bf16.mxu1 %v16838_v55  ;;  %v16895_v55 = vld [vmem:[%s21053_s25 + $0x170] ss:$12 sps:$4 sm:$0xff]  }
 0x2e9   :  { %14793 = vmatpush3.bf16.msra.mxu0 %v1457_v59  ;;  %v16880_v59 = vld [vmem:[%s21053_s25 + $0x10c] ss:$12 sps:$4 sm:$0xff]  }
 0x2ea   :  { %v14790_v60 = vpop.f32.mrb[76].mxu0  ;;  %14794 = vmatprep.subr.bf16.mxu0 %v1458_v2 }
 0x2eb   :  { %v1426_v61 = vpop.f32.mrb[77].mxu0 }
 0x2ec   :  { %v14791_v63 = vpop.f32.mrb[78].mxu0 }
 0x2ed   :  { %v1460_v1 = vpack.c.bf16 %v14791_v63, %v14790_v60  ;;  %v1429_v3 = vpop.f32.mrb[79].mxu0  ;;  %14795 = vmatpush3.bf16.msra.mxu0 %v1458_v2  ;;  %v16902_v2 = vld [vmem:[%s21053_s25 + $0x188] ss:$12 sps:$4 sm:$0xff]   ;;  %v16903_v60 = vld [vmem:[%s21053_s25 + $0x1a0] ss:$12 sps:$4 sm:$0xff]  }
 0x2ee   :  { %v1459_v4 = vpack.c.bf16 %v1429_v3, %v1426_v61  ;;  %v16910_v61 = vld [vmem:[%s21053_s25 + $0x1b8] ss:$12 sps:$4 sm:$0xff]   ;;  %v16888_v3 = vld [vmem:[%s21053_s25 + $0x13c] ss:$12 sps:$4 sm:$0xff]  }
 0x2ef   :  { %1869 = vmatmul.mubr.bf16.gmra.mrb[44].mxu1 %v16840_v62  ;;  %v16882_v62 = vld [vmem:[%s21053_s25 + $0x108] ss:$12 sps:$4 sm:$0xff]   ;;  %v16883_v63 = vld [vmem:[%s21053_s25 + $0x124] ss:$12 sps:$4 sm:$0xff]  }
 0x2f0   :  { %14796 = vmatprep.subr.bf16.mxu0 %v1459_v4  ;;  %1876 = vmatprep.mubr.bf16.mxu1 %v16841_v0  ;;  %v16911_v0 = vld [vmem:[%s21053_s25 + $0x1d0] ss:$12 sps:$4 sm:$0xff]  }
 0x2f1   :  { %14797 = vmatpush3.bf16.msra.mxu0 %v1459_v4  ;;  %v16890_v4 = vld [vmem:[%s21053_s25 + $0x138] ss:$12 sps:$4 sm:$0xff]  }
 0x2f2   :  { %14798 = vmatprep.subr.bf16.mxu0 %v1460_v1 }
 0x2f5   :  { %14799 = vmatpush3.bf16.msra.mxu0 %v1460_v1  ;;  %v16885_v1 = vld [vmem:[%s21053_s25 + $0x120] ss:$12 sps:$4 sm:$0xff]  }
 0x2f7   :  { %1877 = vmatmul.mubr.bf16.gmra.mrb[48].mxu1 %v16843_v5  ;;  %v16891_v5 = vld [vmem:[%s21053_s25 + $0x154] ss:$12 sps:$4 sm:$0xff]  }
 0x2f8   :  { %14801 = vmatmul.mubr.msk.bf16.vlgmr.msra.gmra.mrb[80].mxu0 %vm577_vm6, %v16845_v6  ;;  %1884 = vmatprep.mubr.bf16.mxu1 %v16846_v7  ;;  %v16893_v6 = vld [vmem:[%s21053_s25 + $0x150] ss:$12 sps:$4 sm:$0xff]   ;;  %v16896_v7 = vld [vmem:[%s21053_s25 + $0x16c] ss:$12 sps:$4 sm:$0xff]  }
 0x2f9   :  { %14804 = vmatprep.mubr.msk.bf16.mxu0 %vm577_vm6, %v16849_v11  ;;  %v16915_v11 = vld [vmem:[%s20977_s7 + $0x10] sm:$0xff]  }
 0x2fa   :  { %14840 = vmatprep.subr.bf16.mxu0 %v16915_v11 }
 0x2fb   :  { %14841 = vmatpush3.bf16.msra.mxu0 %v16915_v11 }
 0x2ff   :  { %1885 = vmatmul.mubr.bf16.gmra.mrb[52].mxu1 %v16848_v14  ;;  %v16898_v14 = vld [vmem:[%s21053_s25 + $0x168] ss:$12 sps:$4 sm:$0xff]  }
 0x300   :  { %14805 = vmatmul.mubr.msk.bf16.gmra.mrb[84].mxu0 %vm577_vm6, %v16850_v16  ;;  %1892 = vmatprep.mubr.bf16.mxu1 %v16851_v19  ;;  %v16899_v16 = vld [vmem:[%s21053_s25 + $0x184] ss:$12 sps:$4 sm:$0xff]   ;;  %v16901_v19 = vld [vmem:[%s21053_s25 + $0x180] ss:$12 sps:$4 sm:$0xff]  }
 0x301   :  { %14808 = vmatprep.mubr.msk.bf16.mxu0 %vm577_vm6, %v16854_v20  ;;  %v16904_v20 = vld [vmem:[%s21053_s25 + $0x19c] ss:$12 sps:$4 sm:$0xff]  }
 0x307   :  { %1893 = vmatmul.mubr.bf16.gmra.mrb[56].mxu1 %v16853_v21  ;;  %v16906_v21 = vld [vmem:[%s21053_s25 + $0x198] ss:$12 sps:$4 sm:$0xff]  }
 0x308   :  { %14809 = vmatmul.mubr.msk.bf16.gmra.mrb[88].mxu0 %vm577_vm6, %v16855_v22  ;;  %1900 = vmatprep.mubr.bf16.mxu1 %v16856_v23  ;;  %v16907_v22 = vld [vmem:[%s21053_s25 + $0x1b4] ss:$12 sps:$4 sm:$0xff]   ;;  %v16909_v23 = vld [vmem:[%s21053_s25 + $0x1b0] ss:$12 sps:$4 sm:$0xff]  }
 0x309   :  { %14812 = vmatprep.mubr.msk.bf16.mxu0 %vm577_vm6, %v16862_v58  ;;  %v16912_v58 = vld [vmem:[%s21053_s25 + $0x1cc] ss:$12 sps:$4 sm:$0xff]  }
 0x30f   :  { %1901 = vmatmul.mubr.bf16.gmra.mrb[60].mxu1 %v16858_v24  ;;  %v16914_v24 = vld [vmem:[%s21053_s25 + $0x1c8] ss:$12 sps:$4 sm:$0xff]  }
 0x310   :  { %1908 = vmatprep.mubr.bf16.mxu1 %v16859_v25  ;;  %14813 = vmatmul.mubr.msk.bf16.gmra.mrb[92].mxu0 %vm577_vm6, %v16863_v26 }
 0x311   :  { %14816 = vmatprep.mubr.msk.bf16.mxu0 %vm577_vm6, %v16870_v28 }
 0x317   :  { %1909 = vmatmul.mubr.bf16.gmra.mrb[64].mxu1 %v16861_v30 }
 0x318   :  { %1916 = vmatprep.mubr.bf16.mxu1 %v16864_v31  ;;  %14817 = vmatmul.mubr.msk.bf16.gmra.mrb[96].mxu0 %vm577_vm6, %v16871_v32 }
 0x319   :  { %14820 = vmatprep.mubr.msk.bf16.mxu0 %vm577_vm6, %v16878_v37 }
 0x31f   :  { %1917 = vmatmul.mubr.bf16.gmra.mrb[68].mxu1 %v16866_v38 }
 0x320   :  { %1924 = vmatprep.mubr.bf16.mxu1 %v16867_v41  ;;  %14821 = vmatmul.mubr.msk.bf16.gmra.mrb[100].mxu0 %vm577_vm6, %v16879_v42  ;;  %v17882_v41 = vld [vmem:[%s20978_s8] ss:$0 sm:$0xff] }
 0x321   :  { %14824 = vmatprep.mubr.msk.bf16.mxu0 %vm577_vm6, %v16886_v45 }
 0x327   :  { %1925 = vmatmul.mubr.bf16.gmra.mrb[72].mxu1 %v16869_v47 }
 0x328   :  { %1932 = vmatprep.mubr.bf16.mxu1 %v16872_v49  ;;  %14825 = vmatmul.mubr.msk.bf16.gmra.mrb[104].mxu0 %vm577_vm6, %v16887_v50 }
 0x329   :  { %14828 = vmatprep.mubr.msk.bf16.mxu0 %vm577_vm6, %v16894_v51 }
 0x32f   :  { %1933 = vmatmul.mubr.bf16.gmra.mrb[76].mxu1 %v16874_v52 }
 0x330   :  { %1940 = vmatprep.mubr.bf16.mxu1 %v16875_v53  ;;  %14829 = vmatmul.mubr.msk.bf16.gmra.mrb[108].mxu0 %vm577_vm6, %v16895_v55 }
 0x331   :  { %14832 = vmatprep.mubr.msk.bf16.mxu0 %vm577_vm6, %v16902_v2 }
 0x337   :  { %1941 = vmatmul.mubr.bf16.gmra.mrb[80].mxu1 %v16877_v57 }
 0x338   :  { %1948 = vmatprep.mubr.bf16.mxu1 %v16880_v59  ;;  %14833 = vmatmul.mubr.msk.bf16.gmra.mrb[112].mxu0 %vm577_vm6, %v16903_v60 }
 0x339   :  { %14836 = vmatprep.mubr.msk.bf16.mxu0 %vm577_vm6, %v16910_v61 }
 0x33f   :  { %1949 = vmatmul.mubr.bf16.gmra.mrb[84].mxu1 %v16882_v62 }
 0x340   :  { %1956 = vmatprep.mubr.bf16.mxu1 %v16883_v63  ;;  %14837 = vmatmul.mubr.msk.bf16.gmra.mrb[116].mxu0 %vm577_vm6, %v16911_v0 }
 0x347   :  { %1957 = vmatmul.mubr.bf16.gmra.mrb[88].mxu1 %v16885_v1 }
 0x348   :  { %1964 = vmatprep.mubr.bf16.mxu1 %v16888_v3 }
 0x34f   :  { %1965 = vmatmul.mubr.bf16.gmra.mrb[92].mxu1 %v16890_v4 }
 0x350   :  { %1972 = vmatprep.mubr.bf16.mxu1 %v16891_v5 }
 0x357   :  { %1973 = vmatmul.mubr.bf16.gmra.mrb[96].mxu1 %v16893_v6 }
 0x358   :  { %1980 = vmatprep.mubr.bf16.mxu1 %v16896_v7 }
 0x35f   :  { %1981 = vmatmul.mubr.bf16.gmra.mrb[100].mxu1 %v16898_v14 }
 0x360   :  { %1988 = vmatprep.mubr.bf16.mxu1 %v16899_v16 }
 0x367   :  { %1989 = vmatmul.mubr.bf16.gmra.mrb[104].mxu1 %v16901_v19 }
 0x368   :  { %1996 = vmatprep.mubr.bf16.mxu1 %v16904_v20 }
 0x36f   :  { %1997 = vmatmul.mubr.bf16.gmra.mrb[108].mxu1 %v16906_v21 }
 0x370   :  { %2004 = vmatprep.mubr.bf16.mxu1 %v16907_v22 }
 0x377   :  { %2005 = vmatmul.mubr.bf16.gmra.mrb[112].mxu1 %v16909_v23 }
 0x378   :  { %2012 = vmatprep.mubr.bf16.mxu1 %v16912_v58 }
 0x37f   :  { %2013 = vmatmul.mubr.bf16.gmra.mrb[116].mxu1 %v16914_v24 }
 0x380   :  { %2887 = vmatprep.mubr.bf16.mxu1 %v17659_v36 }
 0x3ba   :  { %v1862_v25 = vpop.f32.mrb[40].mxu1 }
 0x3bb   :  { %v1864_v26 = vpop.f32.mrb[41].mxu1  ;;  %v1863_v36 = vadd.f32 %v17882_v41, %v1862_v25 }
 0x3bc   :  { %v1865_v28 = vpop.f32.mrb[42].mxu1 }
 0x3bd   :  { %v1867_v30 = vpop.f32.mrb[43].mxu1  ;;  %v1866_v59 = vadd.f32 %v17882_v41, %v1865_v28 }
 0x3c2   :  { %v1870_v31 = vpop.f32.mrb[44].mxu1 }
 0x3c3   :  { %v1872_v32 = vpop.f32.mrb[45].mxu1  ;;  %v1871_v42 = vadd.f32 %v17882_v41, %v1870_v31 }
 0x3c4   :  { %v1873_v37 = vpop.f32.mrb[46].mxu1 }
 0x3c5   :  { %v1875_v38 = vpop.f32.mrb[47].mxu1  ;;  %v1874_v50 = vadd.f32 %v17882_v41, %v1873_v37 }
 0x3ca   :  { %v1878_v45 = vpop.f32.mrb[48].mxu1 }
 0x3cb   :  { %v1880_v47 = vpop.f32.mrb[49].mxu1  ;;  %v14802_v49 = vpop.f32.mrb[80].mxu0  ;;  %v1879_v4 = vadd.f32 %v17882_v41, %v1878_v45 }
 0x3cc   :  { %v2064_v51 = vadd.f32 %v14802_v49, %v1871_v42  ;;  %v1881_v52 = vpop.f32.mrb[50].mxu1  ;;  %v2055_v53 = vpop.f32.mrb[81].mxu0 }
 0x3cd   :  { %v2056_v55 = vadd.f32 %v2055_v53, %v1863_v36  ;;  %v1883_v2 = vpop.f32.mrb[51].mxu1  ;;  %v14803_v57 = vpop.f32.mrb[82].mxu0  ;;  %v1882_v31 = vadd.f32 %v17882_v41, %v1881_v52 }
 0x3ce   :  { %v2256_v60 = vmul.f32 0.01, %v2064_v51  ;;  %v2067_v61 = vadd.f32 %v14803_v57, %v1874_v50  ;;  %v2058_v62 = vpop.f32.mrb[83].mxu0  ;;  %vm2216_vm2 = vcmp.ge.f32.partialorder %v2064_v51, 0.0 }
 0x3cf   :  { %v2254_v63 = vmul.f32 0.01, %v2056_v55  ;;  %v2059_v0 = vadd.f32 %v2058_v62, %v1866_v59  ;;  %vm2214_vm3 = vcmp.ge.f32.partialorder %v2056_v55, 0.0 }
 0x3d0   :  { %vm2217_vm4 = vcmp.ge.f32.partialorder %v2067_v61, 0.0  ;;  %v2257_v1 = vmul.f32 0.01, %v2067_v61  ;;  %v2296_v5 = vsel %vm2216_vm2, %v2064_v51, %v2256_v60 }
 0x3d1   :  { %vm2215_vm5 = vcmp.ge.f32.partialorder %v2059_v0, 0.0  ;;  %v2255_v3 = vmul.f32 0.01, %v2059_v0  ;;  %v2294_v11 = vsel %vm2214_vm3, %v2056_v55, %v2254_v63 }
 0x3d2   :  { %v2297_v6 = vsel %vm2217_vm4, %v2067_v61, %v2257_v1  ;;  %v1886_v7 = vpop.f32.mrb[52].mxu1 }
 0x3d3   :  { %v17889_v14 = vpack.c.bf16 %v2297_v6, %v2296_v5  ;;  %v2295_v16 = vsel %vm2215_vm5, %v2059_v0, %v2255_v3  ;;  %v1887_v19 = vadd.f32 %v17882_v41, %v1886_v7  ;;  %v1888_v20 = vpop.f32.mrb[53].mxu1  ;;  %v14806_v21 = vpop.f32.mrb[84].mxu0  ;;  %v16916_v5 = vld [vmem:[%s21033_s28 + $0x10] sm:$0xff]   ;;  %v16917_v6 = vld [vmem:[%s21033_s28 + $0x18] sm:$0xff]  }
 0x3d4   :  { %v1889_v22 = vpop.f32.mrb[54].mxu1  ;;  %v2071_v23 = vpop.f32.mrb[85].mxu0  ;;  %v17892_v58 = vpack.c.bf16 %v2295_v16, %v2294_v11  ;;  %14882 = vmatprep.subr.bf16.mxu0 %v16916_v5 }
 0x3d5   :  { %v2080_v24 = vadd.f32 %v14806_v21, %v1887_v19  ;;  %v1890_v25 = vadd.f32 %v17882_v41, %v1889_v22  ;;  %v2072_v26 = vadd.f32 %v2071_v23, %v1879_v4  ;;  %v1891_v28 = vpop.f32.mrb[55].mxu1  ;;  %v14807_v30 = vpop.f32.mrb[86].mxu0 }
 0x3d6   :  { %v2074_v32 = vpop.f32.mrb[87].mxu0  ;;  %14842 = vmatprep.mubr.msk.bf16.mxu0 %vm2368_vm7, %v17892_v58 }
 0x3d7   :  { %v2260_v37 = vmul.f32 0.01, %v2080_v24  ;;  %14843 = vmatmul.mubr.msk.bf16.vlgmr.msra.gmra.mrb[120].mxu0 %vm2368_vm7, %v17889_v14  ;;  %vm2220_vm8 = vcmp.ge.f32.partialorder %v2080_v24, 0.0  ;;  %v2258_v38 = vmul.f32 0.01, %v2072_v26  ;;  %v2083_v42 = vadd.f32 %v14807_v30, %v1890_v25 }
 0x3d8   :  { %v2075_v45 = vadd.f32 %v2074_v32, %v1882_v31  ;;  %vm2218_vm10 = vcmp.ge.f32.partialorder %v2072_v26, 0.0  ;;  %14883 = vmatpush3.bf16.msra.mxu0 %v16916_v5 }
 0x3d9   :  { %vm2221_vm11 = vcmp.ge.f32.partialorder %v2083_v42, 0.0  ;;  %v2261_v47 = vmul.f32 0.01, %v2083_v42  ;;  %v2300_v36 = vsel %vm2220_vm8, %v2080_v24, %v2260_v37  ;;  %v2298_v52 = vsel %vm2218_vm10, %v2072_v26, %v2258_v38  ;;  %14884 = vmatprep.subr.bf16.mxu0 %v16917_v6 }
 0x3da   :  { %vm2219_vm12 = vcmp.ge.f32.partialorder %v2075_v45, 0.0  ;;  %v2259_v49 = vmul.f32 0.01, %v2075_v45  ;;  %v1894_v50 = vpop.f32.mrb[56].mxu1 }
 0x3db   :  { %v14810_v51 = vpop.f32.mrb[88].mxu0  ;;  %v2301_v53 = vsel %vm2221_vm11, %v2083_v42, %v2261_v47  ;;  %v1895_v2 = vadd.f32 %v17882_v41, %v1894_v50  ;;  %v1896_v57 = vpop.f32.mrb[57].mxu1 }
 0x3dc   :  { %v2299_v55 = vsel %vm2219_vm12, %v2075_v45, %v2259_v49  ;;  %v2087_v59 = vpop.f32.mrb[89].mxu0  ;;  %v1897_v60 = vpop.f32.mrb[58].mxu1  ;;  %v17903_v63 = vpack.c.bf16 %v2301_v53, %v2300_v36  ;;  %14885 = vmatpush3.bf16.msra.mxu0 %v16917_v6 }
 0x3dd   :  { %v14811_v61 = vpop.f32.mrb[90].mxu0  ;;  %v17901_v62 = vpack.c.bf16 %v2299_v55, %v2298_v52  ;;  %v1898_v0 = vadd.f32 %v17882_v41, %v1897_v60  ;;  %v2088_v1 = vadd.f32 %v2087_v59, %v1895_v2  ;;  %v1899_v3 = vpop.f32.mrb[59].mxu1 }
 0x3de   :  { %v2090_v4 = vpop.f32.mrb[91].mxu0 }
 0x3df   :  { %14846 = vmatprep.mubr.msk.bf16.mxu0 %vm2368_vm7, %v17901_v62  ;;  %v2262_v7 = vmul.f32 0.01, %v2088_v1  ;;  %v2091_v11 = vadd.f32 %v2090_v4, %v1898_v0  ;;  %vm2222_vm13 = vcmp.ge.f32.partialorder %v2088_v1, 0.0 }
 0x3e0   :  { %14847 = vmatmul.mubr.msk.bf16.gmra.mrb[124].mxu0 %vm2368_vm7, %v17903_v63 }
 0x3e1   :  { %vm2223_vm14 = vcmp.ge.f32.partialorder %v2091_v11, 0.0  ;;  %v2263_v16 = vmul.f32 0.01, %v2091_v11  ;;  %v2302_v23 = vsel %vm2222_vm13, %v2088_v1, %v2262_v7 }
 0x3e2   :  { %v1902_v19 = vpop.f32.mrb[60].mxu1 }
 0x3e3   :  { %v1903_v20 = vadd.f32 %v17882_v41, %v1902_v19  ;;  %v1904_v21 = vpop.f32.mrb[61].mxu1  ;;  %v14814_v22 = vpop.f32.mrb[92].mxu0  ;;  %v2303_v24 = vsel %vm2223_vm14, %v2091_v11, %v2263_v16 }
 0x3e4   :  { %v1905_v25 = vpop.f32.mrb[62].mxu1  ;;  %v2103_v26 = vpop.f32.mrb[93].mxu0  ;;  %v17918_v32 = vpack.c.bf16 %v2303_v24, %v2302_v23 }
 0x3e5   :  { %v2096_v28 = vadd.f32 %v14810_v51, %v1903_v20  ;;  %v1906_v30 = vadd.f32 %v17882_v41, %v1905_v25  ;;  %v1907_v31 = vpop.f32.mrb[63].mxu1  ;;  %v14815_v37 = vpop.f32.mrb[94].mxu0 }
 0x3e6   :  { %v2106_v38 = vpop.f32.mrb[95].mxu0  ;;  %14850 = vmatprep.mubr.msk.bf16.mxu0 %vm2368_vm7, %v17918_v32 }
 0x3e7   :  { %v2264_v42 = vmul.f32 0.01, %v2096_v28  ;;  %v2099_v45 = vadd.f32 %v14811_v61, %v1906_v30  ;;  %vm2224_vm15 = vcmp.ge.f32.partialorder %v2096_v28, 0.0 }
 0x3e9   :  { %vm2225_vm0 = vcmp.ge.f32.partialorder %v2099_v45, 0.0  ;;  %v2265_v47 = vmul.f32 0.01, %v2099_v45  ;;  %v2304_v51 = vsel %vm2224_vm15, %v2096_v28, %v2264_v42 }
 0x3ea   :  { %v1910_v49 = vpop.f32.mrb[64].mxu1 }
 0x3eb   :  { %v1911_v36 = vadd.f32 %v17882_v41, %v1910_v49  ;;  %v1912_v50 = vpop.f32.mrb[65].mxu1  ;;  %v2305_v52 = vsel %vm2225_vm0, %v2099_v45, %v2265_v47  ;;  %v17923_v53 = vpop.f32.mrb[96].mxu0 }
 0x3ec   :  { %v1913_v55 = vpop.f32.mrb[66].mxu1  ;;  %v17925_v2 = vpack.c.bf16 %v2305_v52, %v2304_v51  ;;  %v2119_v57 = vpop.f32.mrb[97].mxu0 }
 0x3ed   :  { %v1914_v59 = vadd.f32 %v17882_v41, %v1913_v55  ;;  %v2104_v60 = vadd.f32 %v2103_v26, %v1911_v36  ;;  %v1915_v61 = vpop.f32.mrb[67].mxu1  ;;  %v17928_v0 = vpop.f32.mrb[98].mxu0 }
 0x3ee   :  { %14851 = vmatmul.mubr.msk.bf16.gmra.mrb[128].mxu0 %vm2368_vm7, %v17925_v2  ;;  %v2122_v1 = vpop.f32.mrb[99].mxu0 }
 0x3ef   :  { %v2266_v3 = vmul.f32 0.01, %v2104_v60  ;;  %v2107_v4 = vadd.f32 %v2106_v38, %v1914_v59  ;;  %vm2226_vm2 = vcmp.ge.f32.partialorder %v2104_v60, 0.0 }
 0x3f1   :  { %vm2227_vm3 = vcmp.ge.f32.partialorder %v2107_v4, 0.0  ;;  %v2267_v5 = vmul.f32 0.01, %v2107_v4  ;;  %v2306_v7 = vsel %vm2226_vm2, %v2104_v60, %v2266_v3 }
 0x3f2   :  { %v1918_v6 = vpop.f32.mrb[68].mxu1 }
 0x3f3   :  { %v2307_v11 = vsel %vm2227_vm3, %v2107_v4, %v2267_v5  ;;  %v1919_v16 = vadd.f32 %v17882_v41, %v1918_v6  ;;  %v1920_v19 = vpop.f32.mrb[69].mxu1  ;;  %v17933_v20 = vpop.f32.mrb[100].mxu0 }
 0x3f4   :  { %v1921_v21 = vpop.f32.mrb[70].mxu1  ;;  %v17935_v23 = vpack.c.bf16 %v2307_v11, %v2306_v7  ;;  %v2135_v24 = vpop.f32.mrb[101].mxu0 }
 0x3f5   :  { %v2112_v25 = vadd.f32 %v14814_v22, %v1919_v16  ;;  %v1922_v26 = vadd.f32 %v17882_v41, %v1921_v21  ;;  %v1923_v28 = vpop.f32.mrb[71].mxu1  ;;  %v17938_v30 = vpop.f32.mrb[102].mxu0 }
 0x3f6   :  { %14854 = vmatprep.mubr.msk.bf16.mxu0 %vm2368_vm7, %v17935_v23  ;;  %v2138_v31 = vpop.f32.mrb[103].mxu0 }
 0x3f7   :  { %v2268_v38 = vmul.f32 0.01, %v2112_v25  ;;  %v2115_v42 = vadd.f32 %v14815_v37, %v1922_v26  ;;  %vm2228_vm4 = vcmp.ge.f32.partialorder %v2112_v25, 0.0 }
 0x3f9   :  { %vm2229_vm5 = vcmp.ge.f32.partialorder %v2115_v42, 0.0  ;;  %v2269_v45 = vmul.f32 0.01, %v2115_v42  ;;  %v2308_v50 = vsel %vm2228_vm4, %v2112_v25, %v2268_v38 }
 0x3fa   :  { %v1926_v47 = vpop.f32.mrb[72].mxu1 }
 0x3fb   :  { %v1927_v49 = vadd.f32 %v17882_v41, %v1926_v47  ;;  %v1928_v36 = vpop.f32.mrb[73].mxu1  ;;  %v2309_v22 = vsel %vm2229_vm5, %v2115_v42, %v2269_v45  ;;  %v17943_v51 = vpop.f32.mrb[104].mxu0 }
 0x3fc   :  { %v1929_v52 = vpop.f32.mrb[74].mxu1  ;;  %v17945_v55 = vpack.c.bf16 %v2309_v22, %v2308_v50  ;;  %v17947_v59 = vpop.f32.mrb[105].mxu0 }
 0x3fd   :  { %v1930_v60 = vadd.f32 %v17882_v41, %v1929_v52  ;;  %v2120_v61 = vadd.f32 %v2119_v57, %v1927_v49  ;;  %v1931_v37 = vpop.f32.mrb[75].mxu1  ;;  %v17950_v3 = vpop.f32.mrb[106].mxu0 }
 0x3fe   :  { %14855 = vmatmul.mubr.msk.bf16.gmra.mrb[132].mxu0 %vm2368_vm7, %v17945_v55  ;;  %v17954_v4 = vpop.f32.mrb[107].mxu0 }
 0x3ff   :  { %v2270_v5 = vmul.f32 0.01, %v2120_v61  ;;  %v2123_v6 = vadd.f32 %v2122_v1, %v1930_v60  ;;  %vm2230_vm8 = vcmp.ge.f32.partialorder %v2120_v61, 0.0 }
 0x401   :  { %vm2231_vm10 = vcmp.ge.f32.partialorder %v2123_v6, 0.0  ;;  %v2271_v7 = vmul.f32 0.01, %v2123_v6  ;;  %v2310_v16 = vsel %vm2230_vm8, %v2120_v61, %v2270_v5 }
 0x402   :  { %v1934_v11 = vpop.f32.mrb[76].mxu1 }
 0x403   :  { %v2311_v19 = vsel %vm2231_vm10, %v2123_v6, %v2271_v7  ;;  %v1935_v21 = vadd.f32 %v17882_v41, %v1934_v11  ;;  %v1936_v25 = vpop.f32.mrb[77].mxu1  ;;  %v17957_v57 = vpop.f32.mrb[108].mxu0 }
 0x404   :  { %v1937_v26 = vpop.f32.mrb[78].mxu1  ;;  %v17959_v28 = vpack.c.bf16 %v2311_v19, %v2310_v16  ;;  %v17961_v38 = vpop.f32.mrb[109].mxu0 }
 0x405   :  { %v2128_v42 = vadd.f32 %v17923_v53, %v1935_v21  ;;  %v1938_v1 = vadd.f32 %v17882_v41, %v1937_v26  ;;  %v1939_v45 = vpop.f32.mrb[79].mxu1  ;;  %v17965_v47 = vpop.f32.mrb[110].mxu0 }
 0x406   :  { %14858 = vmatprep.mubr.msk.bf16.mxu0 %vm2368_vm7, %v17959_v28  ;;  %v17969_v49 = vpop.f32.mrb[111].mxu0 }
 0x407   :  { %v2272_v36 = vmul.f32 0.01, %v2128_v42  ;;  %v2131_v50 = vadd.f32 %v17928_v0, %v1938_v1  ;;  %vm2232_vm11 = vcmp.ge.f32.partialorder %v2128_v42, 0.0 }
 0x409   :  { %vm2233_vm12 = vcmp.ge.f32.partialorder %v2131_v50, 0.0  ;;  %v2273_v22 = vmul.f32 0.01, %v2131_v50  ;;  %v2312_v61 = vsel %vm2232_vm11, %v2128_v42, %v2272_v36 }
 0x40a   :  { %v1942_v52 = vpop.f32.mrb[80].mxu1 }
 0x40b   :  { %v1943_v60 = vadd.f32 %v17882_v41, %v1942_v52  ;;  %v1944_v53 = vpop.f32.mrb[81].mxu1  ;;  %v2313_v37 = vsel %vm2233_vm12, %v2131_v50, %v2273_v22  ;;  %v17973_v5 = vpop.f32.mrb[112].mxu0 }
 0x40c   :  { %v1945_v6 = vpop.f32.mrb[82].mxu1  ;;  %v17975_v7 = vpack.c.bf16 %v2313_v37, %v2312_v61  ;;  %v17977_v11 = vpop.f32.mrb[113].mxu0 }
 0x40d   :  { %v1946_v16 = vadd.f32 %v17882_v41, %v1945_v6  ;;  %v2136_v19 = vadd.f32 %v2135_v24, %v1943_v60  ;;  %v1947_v0 = vpop.f32.mrb[83].mxu1  ;;  %v17980_v21 = vpop.f32.mrb[114].mxu0 }
 0x40e   :  { %14859 = vmatmul.mubr.msk.bf16.gmra.mrb[136].mxu0 %vm2368_vm7, %v17975_v7  ;;  %v17984_v25 = vpop.f32.mrb[115].mxu0 }
 0x40f   :  { %v2274_v26 = vmul.f32 0.01, %v2136_v19  ;;  %v2139_v42 = vadd.f32 %v2138_v31, %v1946_v16  ;;  %vm2234_vm13 = vcmp.ge.f32.partialorder %v2136_v19, 0.0 }
 0x411   :  { %vm2235_vm14 = vcmp.ge.f32.partialorder %v2139_v42, 0.0  ;;  %v2275_v1 = vmul.f32 0.01, %v2139_v42  ;;  %v2314_v36 = vsel %vm2234_vm13, %v2136_v19, %v2274_v26 }
 0x412   :  { %v1950_v45 = vpop.f32.mrb[84].mxu1 }
 0x413   :  { %v2315_v50 = vsel %vm2235_vm14, %v2139_v42, %v2275_v1  ;;  %v1951_v22 = vadd.f32 %v17882_v41, %v1950_v45  ;;  %v1952_v52 = vpop.f32.mrb[85].mxu1  ;;  %v17987_v24 = vpop.f32.mrb[116].mxu0 }
 0x414   :  { %v1953_v60 = vpop.f32.mrb[86].mxu1  ;;  %v17989_v53 = vpack.c.bf16 %v2315_v50, %v2314_v36  ;;  %v17991_v61 = vpop.f32.mrb[117].mxu0 }
 0x415   :  { %v2144_v37 = vadd.f32 %v17933_v20, %v1951_v22  ;;  %v1954_v31 = vadd.f32 %v17882_v41, %v1953_v60  ;;  %v1955_v6 = vpop.f32.mrb[87].mxu1  ;;  %v17995_v16 = vpop.f32.mrb[118].mxu0 }
 0x416   :  { %14862 = vmatprep.mubr.msk.bf16.mxu0 %vm2368_vm7, %v17989_v53  ;;  %v17999_v19 = vpop.f32.mrb[119].mxu0 }
 0x417   :  { %v2276_v0 = vmul.f32 0.01, %v2144_v37  ;;  %v2147_v26 = vadd.f32 %v17938_v30, %v1954_v31  ;;  %vm2236_vm15 = vcmp.ge.f32.partialorder %v2144_v37, 0.0 }
 0x419   :  { %v2277_v42 = vmul.f32 0.01, %v2147_v26  ;;  %vm2237_vm0 = vcmp.ge.f32.partialorder %v2147_v26, 0.0  ;;  %v2316_v36 = vsel %vm2236_vm15, %v2144_v37, %v2276_v0 }
 0x41a   :  { %v1958_v1 = vpop.f32.mrb[88].mxu1 }
 0x41b   :  { %v1960_v45 = vpop.f32.mrb[89].mxu1  ;;  %v1959_v20 = vadd.f32 %v17882_v41, %v1958_v1  ;;  %v2317_v50 = vsel %vm2237_vm0, %v2147_v26, %v2277_v42 }
 0x41c   :  { %v1961_v22 = vpop.f32.mrb[90].mxu1  ;;  %v18003_v52 = vpack.c.bf16 %v2317_v50, %v2316_v36 }
 0x41d   :  { %v2152_v60 = vadd.f32 %v17947_v59, %v1959_v20  ;;  %v1963_v6 = vpop.f32.mrb[91].mxu1  ;;  %v1962_v35 = vadd.f32 %v17882_v41, %v1961_v22 }
 0x41e   :  { %14863 = vmatmul.mubr.msk.bf16.gmra.mrb[140].mxu0 %vm2368_vm7, %v18003_v52 }
 0x41f   :  { %v2278_v30 = vmul.f32 0.01, %v2152_v60  ;;  %v2155_v31 = vadd.f32 %v17954_v4, %v1962_v35  ;;  %vm2238_vm2 = vcmp.ge.f32.partialorder %v2152_v60, 0.0 }
 0x421   :  { %vm2239_vm3 = vcmp.ge.f32.partialorder %v2155_v31, 0.0  ;;  %v2279_v45 = vmul.f32 0.01, %v2155_v31  ;;  %v2318_v37 = vsel %vm2238_vm2, %v2152_v60, %v2278_v30 }
 0x422   :  { %v1966_v1 = vpop.f32.mrb[92].mxu1 }
 0x423   :  { %v2319_v0 = vsel %vm2239_vm3, %v2155_v31, %v2279_v45  ;;  %v1967_v26 = vadd.f32 %v17882_v41, %v1966_v1  ;;  %v1968_v42 = vpop.f32.mrb[93].mxu1 }
 0x424   :  { %v1969_v36 = vpop.f32.mrb[94].mxu1  ;;  %v18011_v59 = vpack.c.bf16 %v2319_v0, %v2318_v37 }
 0x425   :  { %v2160_v20 = vadd.f32 %v17943_v51, %v1967_v26  ;;  %v1970_v50 = vadd.f32 %v17882_v41, %v1969_v36  ;;  %v1971_v22 = vpop.f32.mrb[95].mxu1 }
 0x426   :  { %14866 = vmatprep.mubr.msk.bf16.mxu0 %vm2368_vm7, %v18011_v59 }
 0x427   :  { %v2280_v35 = vmul.f32 0.01, %v2160_v20  ;;  %v2163_v4 = vadd.f32 %v17950_v3, %v1970_v50  ;;  %vm2240_vm4 = vcmp.ge.f32.partialorder %v2160_v20, 0.0 }
 0x429   :  { %v2281_v60 = vmul.f32 0.01, %v2163_v4  ;;  %vm2241_vm5 = vcmp.ge.f32.partialorder %v2163_v4, 0.0  ;;  %v2320_v45 = vsel %vm2240_vm4, %v2160_v20, %v2280_v35 }
 0x42a   :  { %v1974_v6 = vpop.f32.mrb[96].mxu1 }
 0x42b   :  { %v1976_v30 = vpop.f32.mrb[97].mxu1  ;;  %v1975_v31 = vadd.f32 %v17882_v41, %v1974_v6  ;;  %v2321_v1 = vsel %vm2241_vm5, %v2163_v4, %v2281_v60 }
 0x42c   :  { %v1977_v37 = vpop.f32.mrb[98].mxu1  ;;  %v18019_v51 = vpack.c.bf16 %v2321_v1, %v2320_v45 }
 0x42d   :  { %v2168_v0 = vadd.f32 %v17961_v38, %v1975_v31  ;;  %v1979_v26 = vpop.f32.mrb[99].mxu1  ;;  %v1978_v42 = vadd.f32 %v17882_v41, %v1977_v37 }
 0x42e   :  { %14867 = vmatmul.mubr.msk.bf16.gmra.mrb[144].mxu0 %vm2368_vm7, %v18019_v51 }
 0x42f   :  { %v2282_v3 = vmul.f32 0.01, %v2168_v0  ;;  %v2171_v36 = vadd.f32 %v17969_v49, %v1978_v42  ;;  %vm2242_vm8 = vcmp.ge.f32.partialorder %v2168_v0, 0.0 }
 0x431   :  { %vm2243_vm10 = vcmp.ge.f32.partialorder %v2171_v36, 0.0  ;;  %v2283_v50 = vmul.f32 0.01, %v2171_v36  ;;  %v2322_v20 = vsel %vm2242_vm8, %v2168_v0, %v2282_v3 }
 0x432   :  { %v1982_v22 = vpop.f32.mrb[100].mxu1 }
 0x433   :  { %v2323_v35 = vsel %vm2243_vm10, %v2171_v36, %v2283_v50  ;;  %v1983_v4 = vadd.f32 %v17882_v41, %v1982_v22  ;;  %v1984_v60 = vpop.f32.mrb[101].mxu1 }
 0x434   :  { %v1985_v6 = vpop.f32.mrb[102].mxu1  ;;  %v18027_v38 = vpack.c.bf16 %v2323_v35, %v2322_v20 }
 0x435   :  { %v2176_v30 = vadd.f32 %v17957_v57, %v1983_v4  ;;  %v1986_v31 = vadd.f32 %v17882_v41, %v1985_v6  ;;  %v1987_v45 = vpop.f32.mrb[103].mxu1 }
 0x436   :  { %14870 = vmatprep.mubr.msk.bf16.mxu0 %vm2368_vm7, %v18027_v38 }
 0x437   :  { %v2284_v49 = vmul.f32 0.01, %v2176_v30  ;;  %v2179_v1 = vadd.f32 %v17965_v47, %v1986_v31  ;;  %vm2244_vm11 = vcmp.ge.f32.partialorder %v2176_v30, 0.0 }
 0x439   :  { %v2285_v37 = vmul.f32 0.01, %v2179_v1  ;;  %vm2245_vm12 = vcmp.ge.f32.partialorder %v2179_v1, 0.0  ;;  %v2324_v3 = vsel %vm2244_vm11, %v2176_v30, %v2284_v49 }
 0x43a   :  { %v1990_v0 = vpop.f32.mrb[104].mxu1 }
 0x43b   :  { %v1992_v26 = vpop.f32.mrb[105].mxu1  ;;  %v1991_v42 = vadd.f32 %v17882_v41, %v1990_v0  ;;  %v2325_v36 = vsel %vm2245_vm12, %v2179_v1, %v2285_v37 }
 0x43c   :  { %v1993_v50 = vpop.f32.mrb[106].mxu1  ;;  %v18035_v57 = vpack.c.bf16 %v2325_v36, %v2324_v3 }
 0x43d   :  { %v2184_v22 = vadd.f32 %v17977_v11, %v1991_v42  ;;  %v1995_v20 = vpop.f32.mrb[107].mxu1  ;;  %v1994_v35 = vadd.f32 %v17882_v41, %v1993_v50 }
 0x43e   :  { %14871 = vmatmul.mubr.msk.bf16.gmra.mrb[148].mxu0 %vm2368_vm7, %v18035_v57 }
 0x43f   :  { %v2286_v47 = vmul.f32 0.01, %v2184_v22  ;;  %v2187_v4 = vadd.f32 %v17984_v25, %v1994_v35  ;;  %vm2246_vm13 = vcmp.ge.f32.partialorder %v2184_v22, 0.0 }
 0x441   :  { %vm2247_vm14 = vcmp.ge.f32.partialorder %v2187_v4, 0.0  ;;  %v2287_v60 = vmul.f32 0.01, %v2187_v4  ;;  %v2326_v30 = vsel %vm2246_vm13, %v2184_v22, %v2286_v47 }
 0x442   :  { %v1998_v6 = vpop.f32.mrb[108].mxu1 }
 0x443   :  { %v2327_v31 = vsel %vm2247_vm14, %v2187_v4, %v2287_v60  ;;  %v1999_v45 = vadd.f32 %v17882_v41, %v1998_v6  ;;  %v2000_v49 = vpop.f32.mrb[109].mxu1 }
 0x444   :  { %v2001_v1 = vpop.f32.mrb[110].mxu1  ;;  %v18043_v11 = vpack.c.bf16 %v2327_v31, %v2326_v30 }
 0x445   :  { %v2192_v37 = vadd.f32 %v17973_v5, %v1999_v45  ;;  %v2002_v0 = vadd.f32 %v17882_v41, %v2001_v1  ;;  %v2003_v26 = vpop.f32.mrb[111].mxu1 }
 0x446   :  { %14874 = vmatprep.mubr.msk.bf16.mxu0 %vm2368_vm7, %v18043_v11 }
 0x447   :  { %v2195_v25 = vadd.f32 %v17980_v21, %v2002_v0  ;;  %v2288_v42 = vmul.f32 0.01, %v2192_v37  ;;  %vm2248_vm15 = vcmp.ge.f32.partialorder %v2192_v37, 0.0 }
 0x449   :  { %vm2249_vm0 = vcmp.ge.f32.partialorder %v2195_v25, 0.0  ;;  %v2289_v3 = vmul.f32 0.01, %v2195_v25  ;;  %v2328_v20 = vsel %vm2248_vm15, %v2192_v37, %v2288_v42 }
 0x44a   :  { %v2006_v36 = vpop.f32.mrb[112].mxu1 }
 0x44b   :  { %v2008_v50 = vpop.f32.mrb[113].mxu1  ;;  %v2007_v22 = vadd.f32 %v17882_v41, %v2006_v36  ;;  %v2329_v35 = vsel %vm2249_vm0, %v2195_v25, %v2289_v3 }
 0x44c   :  { %v2009_v47 = vpop.f32.mrb[114].mxu1  ;;  %v18051_v5 = vpack.c.bf16 %v2329_v35, %v2328_v20 }
 0x44d   :  { %v2200_v4 = vadd.f32 %v17991_v61, %v2007_v22  ;;  %v2011_v60 = vpop.f32.mrb[115].mxu1  ;;  %v2010_v6 = vadd.f32 %v17882_v41, %v2009_v47 }
 0x44e   :  { %21054 = vst [vmem:[#allocation20_spill] sm:$0xff] %v18051_v5  ;;  %14875 = vmatmul.mubr.msk.bf16.gmra.mrb[152].mxu0 %vm2368_vm7, %v18051_v5 }
 0x44f   :  { %v2290_v21 = vmul.f32 0.01, %v2200_v4  ;;  %v2203_v30 = vadd.f32 %v17999_v19, %v2010_v6  ;;  %vm2250_vm2 = vcmp.ge.f32.partialorder %v2200_v4, 0.0 }
 0x451   :  { %vm2251_vm3 = vcmp.ge.f32.partialorder %v2203_v30, 0.0  ;;  %v2291_v31 = vmul.f32 0.01, %v2203_v30  ;;  %v2330_v49 = vsel %vm2250_vm2, %v2200_v4, %v2290_v21  ;;  %v21057_v21 = vmov 0  }
 0x452   :  { %v2014_v45 = vpop.f32.mrb[116].mxu1 }
 0x453   :  { %v2331_v1 = vsel %vm2251_vm3, %v2203_v30, %v2291_v31  ;;  %v2015_v37 = vadd.f32 %v17882_v41, %v2014_v45  ;;  %v2016_v0 = vpop.f32.mrb[117].mxu1 }
 0x454   :  { %v2017_v26 = vpop.f32.mrb[118].mxu1  ;;  %v18059_v61 = vpack.c.bf16 %v2331_v1, %v2330_v49 }
 0x455   :  { %v2208_v25 = vadd.f32 %v17987_v24, %v2015_v37  ;;  %v2018_v42 = vadd.f32 %v17882_v41, %v2017_v26  ;;  %v2019_v3 = vpop.f32.mrb[119].mxu1  ;;  %v17062_v41 = vld [vmem:[%s21053_s25 + $0x8] ss:$12 sps:$4 sm:$0xff]  }
 0x456   :  { %21055 = vst [vmem:[#allocation21_spill] sm:$0xff] %v18059_v61  ;;  %14878 = vmatprep.mubr.msk.bf16.mxu0 %vm2368_vm7, %v18059_v61 }
 0x457   :  { %v2211_v19 = vadd.f32 %v17995_v16, %v2018_v42  ;;  %v2292_v36 = vmul.f32 0.01, %v2208_v25  ;;  %vm2252_vm4 = vcmp.ge.f32.partialorder %v2208_v25, 0.0 }
 0x459   :  { %vm2253_vm5 = vcmp.ge.f32.partialorder %v2211_v19, 0.0  ;;  %v2293_v50 = vmul.f32 0.01, %v2211_v19  ;;  %v2332_v22 = vsel %vm2252_vm4, %v2208_v25, %v2292_v36 }
 0x45b   :  { %v2333_v20 = vsel %vm2253_vm5, %v2211_v19, %v2293_v50 }
 0x45c   :  { %v18066_v35 = vpack.c.bf16 %v2333_v20, %v2332_v22 }
 0x45e   :  { %21056 = vst [vmem:[#allocation22_spill] sm:$0xff] %v18066_v35  ;;  %14879 = vmatmul.mubr.msk.bf16.gmra.mrb[156].mxu0 %vm2368_vm7, %v18066_v35 }
 0x45f   :  { %14886 = vmatprep.mubr.msk.bf16.mxu0 %vm1187_vm9, %v17544_v29 }
 0x466   :  { %14887 = vmatmul.mubr.msk.bf16.vlgmr.msra.gmra.mrb[120].mxu0 %vm1187_vm9, %v17541_v27 }
 0x467   :  { %14890 = vmatprep.mubr.msk.bf16.mxu0 %vm1187_vm9, %v17554_v54 }
 0x46e   :  { %14891 = vmatmul.mubr.msk.bf16.gmra.mrb[124].mxu0 %vm1187_vm9, %v17556_v56 }
 0x46f   :  { %14894 = vmatprep.mubr.msk.bf16.mxu0 %vm1187_vm9, %v17566_v17 }
 0x476   :  { %14895 = vmatmul.mubr.msk.bf16.gmra.mrb[128].mxu0 %vm1187_vm9, %v17568_v18 }
 0x477   :  { %14898 = vmatprep.mubr.msk.bf16.mxu0 %vm1187_vm9, %v17578_v43 }
 0x47e   :  { %14899 = vmatmul.mubr.msk.bf16.gmra.mrb[132].mxu0 %vm1187_vm9, %v17582_v48 }
 0x47f   :  { %14902 = vmatprep.mubr.msk.bf16.mxu0 %vm1187_vm9, %v17590_v8 }
 0x486   :  { %14903 = vmatmul.mubr.msk.bf16.gmra.mrb[136].mxu0 %vm1187_vm9, %v17594_v13 }
 0x487   :  { %14906 = vmatprep.mubr.msk.bf16.mxu0 %vm1187_vm9, %v17602_v40 }
 0x48e   :  { %14907 = vmatmul.mubr.msk.bf16.gmra.mrb[140].mxu0 %vm1187_vm9, %v17606_v46 }
 0x48f   :  { %14910 = vmatprep.mubr.msk.bf16.mxu0 %vm1187_vm9, %v17614_v9 }
 0x496   :  { %14911 = vmatmul.mubr.msk.bf16.gmra.mrb[144].mxu0 %vm1187_vm9, %v17616_v12 }
 0x497   :  { %14914 = vmatprep.mubr.msk.bf16.mxu0 %vm1187_vm9, %v17629_v44 }
 0x49e   :  { %14915 = vmatmul.mubr.msk.bf16.gmra.mrb[148].mxu0 %vm1187_vm9, %v17626_v39 }
 0x49f   :  { %14918 = vmatprep.mubr.msk.bf16.mxu0 %vm1187_vm9, %v17641_v15 }
 0x4a6   :  { %14919 = vmatmul.mubr.msk.bf16.gmra.mrb[152].mxu0 %vm1187_vm9, %v17638_v10 }
 0x4a7   :  { %14922 = vmatprep.mubr.msk.bf16.mxu0 %vm1187_vm9, %v17649_v34 }
 0x4ae   :  { %14923 = vmatmul.mubr.msk.bf16.gmra.mrb[156].mxu0 %vm1187_vm9, %v17647_v33 }
 0x4af   :  { %14934 = vmatprep.mubr.msk.bf16.mxu0 %vm577_vm6, %v17062_v41 }
 0x539   :  { %v14888_v24 = vpop.f32.mrb[120].mxu0 }
 0x53a   :  { %v2668_v16 = vpop.f32.mrb[121].mxu0 }
 0x53b   :  { %v14889_v47 = vpop.f32.mrb[122].mxu0 }
 0x53c   :  { %v2828_v4 = vpack.c.bf16 %v14889_v47, %v14888_v24  ;;  %v2671_v60 = vpop.f32.mrb[123].mxu0 }
 0x53d   :  { %v2827_v6 = vpack.c.bf16 %v2671_v60, %v2668_v16 }
 0x53f   :  { %2856 = vmatpush1.bf16.msra.mxu1 %v2827_v6 }
 0x540   :  { %2857 = vmatprep.subr.bf16.mxu1 %v21057_v21 }
 0x541   :  { %v14892_v30 = vpop.f32.mrb[124].mxu0 }
 0x542   :  { %v2684_v31 = vpop.f32.mrb[125].mxu0 }
 0x543   :  { %v14893_v45 = vpop.f32.mrb[126].mxu0  ;;  %2858 = vmatpush1.bf16.msra.mxu1 %v2828_v4 }
 0x544   :  { %v2830_v49 = vpack.c.bf16 %v14893_v45, %v14892_v30  ;;  %v2687_v1 = vpop.f32.mrb[127].mxu0  ;;  %2859 = vmatprep.subr.bf16.mxu1 %v21057_v21 }
 0x545   :  { %v2829_v37 = vpack.c.bf16 %v2687_v1, %v2684_v31 }
 0x547   :  { %2860 = vmatpush1.bf16.msra.mxu1 %v2829_v37 }
 0x548   :  { %2861 = vmatprep.subr.bf16.mxu1 %v21057_v21 }
 0x549   :  { %v14896_v0 = vpop.f32.mrb[128].mxu0 }
 0x54a   :  { %v2700_v26 = vpop.f32.mrb[129].mxu0 }
 0x54b   :  { %v14897_v25 = vpop.f32.mrb[130].mxu0  ;;  %2862 = vmatpush1.bf16.msra.mxu1 %v2830_v49 }
 0x54c   :  { %v2832_v42 = vpack.c.bf16 %v14897_v25, %v14896_v0  ;;  %v2703_v3 = vpop.f32.mrb[131].mxu0  ;;  %2863 = vmatprep.subr.bf16.mxu1 %v21057_v21 }
 0x54d   :  { %v2831_v19 = vpack.c.bf16 %v2703_v3, %v2700_v26 }
 0x54f   :  { %2864 = vmatpush1.bf16.msra.mxu1 %v2831_v19 }
 0x550   :  { %2865 = vmatprep.subr.bf16.mxu1 %v21057_v21 }
 0x551   :  { %v14900_v36 = vpop.f32.mrb[132].mxu0 }
 0x552   :  { %v2716_v50 = vpop.f32.mrb[133].mxu0 }
 0x553   :  { %v14901_v22 = vpop.f32.mrb[134].mxu0  ;;  %2866 = vmatpush1.bf16.msra.mxu1 %v2832_v42 }
 0x554   :  { %v2834_v20 = vpack.c.bf16 %v14901_v22, %v14900_v36  ;;  %v2719_v41 = vpop.f32.mrb[135].mxu0  ;;  %2867 = vmatprep.subr.bf16.mxu1 %v21057_v21 }
 0x555   :  { %v2833_v24 = vpack.c.bf16 %v2719_v41, %v2716_v50 }
 0x557   :  { %2868 = vmatpush1.bf16.msra.mxu1 %v2833_v24 }
 0x558   :  { %2869 = vmatprep.subr.bf16.mxu1 %v21057_v21 }
 0x559   :  { %v14904_v16 = vpop.f32.mrb[136].mxu0 }
 0x55a   :  { %v2732_v47 = vpop.f32.mrb[137].mxu0 }
 0x55b   :  { %v14905_v4 = vpop.f32.mrb[138].mxu0  ;;  %2870 = vmatpush1.bf16.msra.mxu1 %v2834_v20 }
 0x55c   :  { %v2836_v60 = vpack.c.bf16 %v14905_v4, %v14904_v16  ;;  %v2735_v6 = vpop.f32.mrb[139].mxu0  ;;  %2871 = vmatprep.subr.bf16.mxu1 %v21057_v21 }
 0x55d   :  { %v2835_v30 = vpack.c.bf16 %v2735_v6, %v2732_v47  ;;  %v16918_v47 = vld [vmem:[%s20977_s7 + $0x20] sm:$0xff]  }
 0x55f   :  { %2872 = vmatpush1.bf16.msra.mxu1 %v2835_v30 }
 0x560   :  { %2873 = vmatprep.subr.bf16.mxu1 %v21057_v21 }
 0x561   :  { %v14908_v31 = vpop.f32.mrb[140].mxu0 }
 0x562   :  { %v2748_v45 = vpop.f32.mrb[141].mxu0 }
 0x563   :  { %v14909_v49 = vpop.f32.mrb[142].mxu0  ;;  %2874 = vmatpush1.bf16.msra.mxu1 %v2836_v60 }
 0x564   :  { %v2838_v1 = vpack.c.bf16 %v14909_v49, %v14908_v31  ;;  %v2751_v37 = vpop.f32.mrb[143].mxu0  ;;  %2875 = vmatprep.subr.bf16.mxu1 %v21057_v21  ;;  %v17063_v49 = vld [vmem:[%s21053_s25] ss:$12 sps:$4 sm:$0xff]  }
 0x565   :  { %v2837_v0 = vpack.c.bf16 %v2751_v37, %v2748_v45 }
 0x567   :  { %2876 = vmatpush1.bf16.msra.mxu1 %v2837_v0 }
 0x568   :  { %2877 = vmatprep.subr.bf16.mxu1 %v21057_v21 }
 0x569   :  { %v14912_v26 = vpop.f32.mrb[144].mxu0 }
 0x56a   :  { %v2764_v25 = vpop.f32.mrb[145].mxu0 }
 0x56b   :  { %v14913_v42 = vpop.f32.mrb[146].mxu0  ;;  %2878 = vmatpush1.bf16.msra.mxu1 %v2838_v1  ;;  %v17064_v1 = vld [vmem:[%s21053_s25 + $0x1c] ss:$12 sps:$4 sm:$0xff]  }
 0x56c   :  { %v2840_v3 = vpack.c.bf16 %v14913_v42, %v14912_v26  ;;  %v2767_v19 = vpop.f32.mrb[147].mxu0  ;;  %2879 = vmatprep.subr.bf16.mxu1 %v21057_v21 }
 0x56d   :  { %v2839_v36 = vpack.c.bf16 %v2767_v19, %v2764_v25  ;;  %v17065_v19 = vld [vmem:[%s21053_s25 + $0x18] ss:$12 sps:$4 sm:$0xff]  }
 0x56f   :  { %2880 = vmatpush1.bf16.msra.mxu1 %v2839_v36  ;;  %v17066_v36 = vld [vmem:[%s21053_s25 + $0x34] ss:$12 sps:$4 sm:$0xff]  }
 0x570   :  { %2881 = vmatprep.subr.bf16.mxu1 %v21057_v21 }
 0x571   :  { %v14916_v50 = vpop.f32.mrb[148].mxu0 }
 0x572   :  { %v2780_v22 = vpop.f32.mrb[149].mxu0 }
 0x573   :  { %v14917_v20 = vpop.f32.mrb[150].mxu0  ;;  %2882 = vmatpush1.bf16.msra.mxu1 %v2840_v3 }
 0x574   :  { %v2842_v41 = vpack.c.bf16 %v14917_v20, %v14916_v50  ;;  %v2783_v24 = vpop.f32.mrb[151].mxu0  ;;  %2883 = vmatprep.subr.bf16.mxu1 %v21057_v21  ;;  %v17067_v50 = vld [vmem:[%s21053_s25 + $0x30] ss:$12 sps:$4 sm:$0xff]   ;;  %v17069_v20 = vld [vmem:[%s21053_s25 + $0x20] ss:$12 sps:$4 sm:$0xff]  }
 0x575   :  { %v2841_v16 = vpack.c.bf16 %v2783_v24, %v2780_v22  ;;  %v17068_v22 = vld [vmem:[%s21053_s25 + $0x4c] ss:$12 sps:$4 sm:$0xff]   ;;  %v17071_v24 = vld [vmem:[%s21053_s25 + $0x48] ss:$12 sps:$4 sm:$0xff]  }
 0x577   :  { %2884 = vmatpush1.bf16.msra.mxu1 %v2841_v16  ;;  %v17072_v16 = vld [vmem:[%s21053_s25 + $0x64] ss:$12 sps:$4 sm:$0xff]  }
 0x578   :  { %2885 = vmatprep.subr.bf16.mxu1 %v21057_v21 }
 0x579   :  { %v14920_v4 = vpop.f32.mrb[152].mxu0 }
 0x57a   :  { %v2796_v60 = vpop.f32.mrb[153].mxu0 }
 0x57b   :  { %v14921_v6 = vpop.f32.mrb[154].mxu0  ;;  %2886 = vmatpush1.bf16.msra.mxu1 %v2842_v41  ;;  %v17070_v41 = vld [vmem:[%s21053_s25 + $0x38] ss:$12 sps:$4 sm:$0xff]  }
 0x57c   :  { %v2844_v30 = vpack.c.bf16 %v14921_v6, %v14920_v4  ;;  %v2799_v31 = vpop.f32.mrb[155].mxu0  ;;  %14974 = vmatprep.subr.bf16.mxu1 %v16918_v47  ;;  %v17074_v4 = vld [vmem:[%s21053_s25 + $0x68] ss:$12 sps:$4 sm:$0xff]  }
 0x57d   :  { %v2843_v45 = vpack.c.bf16 %v2799_v31, %v2796_v60  ;;  %v17075_v60 = vld [vmem:[%s21053_s25 + $0x60] ss:$12 sps:$4 sm:$0xff]   ;;  %v17076_v6 = vld [vmem:[%s21053_s25 + $0x7c] ss:$12 sps:$4 sm:$0xff]   ;;  %v17078_v31 = vld [vmem:[%s21053_s25 + $0x98] ss:$12 sps:$4 sm:$0xff]  }
 0x57e   :  { %2888 = vmatmul.mubr.bf16.vlgmr.msra.gmra.mrb[120].mxu1 %v17063_v49  ;;  %v17080_v49 = vld [vmem:[%s21053_s25 + $0x94] ss:$12 sps:$4 sm:$0xff]  }
 0x57f   :  { %14926 = vmatprep.subr.bf16.mxu0 %v2843_v45  ;;  %2895 = vmatprep.mubr.bf16.mxu1 %v17064_v1  ;;  %v17081_v1 = vld [vmem:[%s21053_s25 + $0xb0] ss:$12 sps:$4 sm:$0xff]  }
 0x580   :  { %14927 = vmatpush3.bf16.msra.mxu0 %v2843_v45  ;;  %14975 = vmatpush3.bf16.msra.mxu1 %v16918_v47  ;;  %v17073_v47 = vld [vmem:[%s21053_s25 + $0x50] ss:$12 sps:$4 sm:$0xff]   ;;  %v17079_v45 = vld [vmem:[%s21053_s25 + $0x78] ss:$12 sps:$4 sm:$0xff]  }
 0x581   :  { %v14924_v37 = vpop.f32.mrb[156].mxu0  ;;  %14928 = vmatprep.subr.bf16.mxu0 %v2844_v30 }
 0x582   :  { %v2812_v0 = vpop.f32.mrb[157].mxu0 }
 0x583   :  { %v14925_v26 = vpop.f32.mrb[158].mxu0 }
 0x584   :  { %v2846_v25 = vpack.c.bf16 %v14925_v26, %v14924_v37  ;;  %v2815_v42 = vpop.f32.mrb[159].mxu0  ;;  %14929 = vmatpush3.bf16.msra.mxu0 %v2844_v30  ;;  %v17077_v30 = vld [vmem:[%s21053_s25 + $0x80] ss:$12 sps:$4 sm:$0xff]   ;;  %v17082_v37 = vld [vmem:[%s21053_s25 + $0xc8] ss:$12 sps:$4 sm:$0xff]  }
 0x585   :  { %v2845_v3 = vpack.c.bf16 %v2815_v42, %v2812_v0  ;;  %v17083_v0 = vld [vmem:[%s21053_s25 + $0x90] ss:$12 sps:$4 sm:$0xff]   ;;  %v17084_v26 = vld [vmem:[%s21053_s25 + $0xac] ss:$12 sps:$4 sm:$0xff]  }
 0x586   :  { %2896 = vmatmul.mubr.bf16.gmra.mrb[124].mxu1 %v17065_v19  ;;  %v17086_v42 = vld [vmem:[%s21053_s25 + $0xf8] ss:$12 sps:$4 sm:$0xff]  }
 0x587   :  { %14930 = vmatprep.subr.bf16.mxu0 %v2845_v3  ;;  %2903 = vmatprep.mubr.bf16.mxu1 %v17066_v36  ;;  %v17088_v19 = vld [vmem:[%s21053_s25 + $0xc4] ss:$12 sps:$4 sm:$0xff]  }
 0x588   :  { %14931 = vmatpush3.bf16.msra.mxu0 %v2845_v3  ;;  %v17087_v3 = vld [vmem:[%s21053_s25 + $0xa8] ss:$12 sps:$4 sm:$0xff]   ;;  %v17089_v36 = vld [vmem:[%s21053_s25 + $0x110] ss:$12 sps:$4 sm:$0xff]  }
 0x589   :  { %14932 = vmatprep.subr.bf16.mxu0 %v2846_v25 }
 0x58c   :  { %14933 = vmatpush3.bf16.msra.mxu0 %v2846_v25  ;;  %v17085_v25 = vld [vmem:[%s21053_s25 + $0xe0] ss:$12 sps:$4 sm:$0xff]  }
 0x58d   :  { %4123 = vmatprep.subr.bf16.mxu0 %v21057_v21 }
 0x58e   :  { %2904 = vmatmul.mubr.bf16.gmra.mrb[128].mxu1 %v17067_v50  ;;  %v17090_v50 = vld [vmem:[%s21053_s25 + $0x128] ss:$12 sps:$4 sm:$0xff]  }
 0x58f   :  { %2911 = vmatprep.mubr.bf16.mxu1 %v17068_v22  ;;  %14935 = vmatmul.mubr.msk.bf16.vlgmr.msra.gmra.mrb[160].mxu0 %vm577_vm6, %v17069_v20  ;;  %v17091_v22 = vld [vmem:[%s21053_s25 + $0xc0] ss:$12 sps:$4 sm:$0xff]   ;;  %v17092_v20 = vld [vmem:[%s21053_s25 + $0xdc] ss:$12 sps:$4 sm:$0xff]  }
 0x590   :  { %14938 = vmatprep.mubr.msk.bf16.mxu0 %vm577_vm6, %v17070_v41  ;;  %v17093_v41 = vld [vmem:[%s21053_s25 + $0x140] ss:$12 sps:$4 sm:$0xff]  }
 0x596   :  { %2912 = vmatmul.mubr.bf16.gmra.mrb[132].mxu1 %v17071_v24  ;;  %v17094_v24 = vld [vmem:[%s21053_s25 + $0x158] ss:$12 sps:$4 sm:$0xff]  }
 0x597   :  { %2919 = vmatprep.mubr.bf16.mxu1 %v17072_v16  ;;  %14939 = vmatmul.mubr.msk.bf16.gmra.mrb[164].mxu0 %vm577_vm6, %v17073_v47  ;;  %v17095_v16 = vld [vmem:[%s21053_s25 + $0xd8] ss:$12 sps:$4 sm:$0xff]   ;;  %v17096_v47 = vld [vmem:[%s21053_s25 + $0xf4] ss:$12 sps:$4 sm:$0xff]  }
 0x598   :  { %14942 = vmatprep.mubr.msk.bf16.mxu0 %vm577_vm6, %v17074_v4  ;;  %v17097_v4 = vld [vmem:[%s21053_s25 + $0x170] ss:$12 sps:$4 sm:$0xff]  }
 0x59e   :  { %2920 = vmatmul.mubr.bf16.gmra.mrb[136].mxu1 %v17075_v60  ;;  %v17098_v60 = vld [vmem:[%s21053_s25 + $0x188] ss:$12 sps:$4 sm:$0xff]  }
 0x59f   :  { %2927 = vmatprep.mubr.bf16.mxu1 %v17076_v6  ;;  %14943 = vmatmul.mubr.msk.bf16.gmra.mrb[168].mxu0 %vm577_vm6, %v17077_v30  ;;  %v17099_v6 = vld [vmem:[%s21053_s25 + $0xf0] ss:$12 sps:$4 sm:$0xff]   ;;  %v17100_v30 = vld [vmem:[%s21053_s25 + $0x10c] ss:$12 sps:$4 sm:$0xff]  }
 0x5a0   :  { %14946 = vmatprep.mubr.msk.bf16.mxu0 %vm577_vm6, %v17078_v31  ;;  %v17101_v31 = vld [vmem:[%s21053_s25 + $0x1a0] ss:$12 sps:$4 sm:$0xff]  }
 0x5a6   :  { %2928 = vmatmul.mubr.bf16.gmra.mrb[140].mxu1 %v17079_v45  ;;  %v17102_v45 = vld [vmem:[%s21053_s25 + $0x1b8] ss:$12 sps:$4 sm:$0xff]  }
 0x5a7   :  { %2935 = vmatprep.mubr.bf16.mxu1 %v17080_v49  ;;  %14947 = vmatmul.mubr.msk.bf16.gmra.mrb[172].mxu0 %vm577_vm6, %v17081_v1  ;;  %v17103_v49 = vld [vmem:[%s21053_s25 + $0x108] ss:$12 sps:$4 sm:$0xff]   ;;  %v17104_v1 = vld [vmem:[%s21053_s25 + $0x124] ss:$12 sps:$4 sm:$0xff]  }
 0x5a8   :  { %14950 = vmatprep.mubr.msk.bf16.mxu0 %vm577_vm6, %v17082_v37  ;;  %v17105_v37 = vld [vmem:[%s21053_s25 + $0x1d0] ss:$12 sps:$4 sm:$0xff]  }
 0x5ae   :  { %2936 = vmatmul.mubr.bf16.gmra.mrb[144].mxu1 %v17083_v0  ;;  %v17106_v0 = vld [vmem:[%s21053_s25 + $0x4] ss:$12 sps:$4 sm:$0xff]  }
 0x5af   :  { %2943 = vmatprep.mubr.bf16.mxu1 %v17084_v26  ;;  %14951 = vmatmul.mubr.msk.bf16.gmra.mrb[176].mxu0 %vm577_vm6, %v17085_v25  ;;  %v17107_v26 = vld [vmem:[%s21053_s25 + $0x120] ss:$12 sps:$4 sm:$0xff]   ;;  %v17108_v25 = vld [vmem:[%s21053_s25 + $0x13c] ss:$12 sps:$4 sm:$0xff]  }
 0x5b0   :  { %14954 = vmatprep.mubr.msk.bf16.mxu0 %vm577_vm6, %v17086_v42  ;;  %v17109_v42 = vld [vmem:[%s21053_s25 + $0x138] ss:$12 sps:$4 sm:$0xff]  }
 0x5b6   :  { %2944 = vmatmul.mubr.bf16.gmra.mrb[148].mxu1 %v17087_v3  ;;  %v16919_v3 = vld [vmem:[%s21033_s28 + $0x20] sm:$0xff]  }
 0x5b7   :  { %2951 = vmatprep.mubr.bf16.mxu1 %v17088_v19  ;;  %14955 = vmatmul.mubr.msk.bf16.gmra.mrb[180].mxu0 %vm577_vm6, %v17089_v36  ;;  %v17110_v19 = vld [vmem:[%s21053_s25 + $0x154] ss:$12 sps:$4 sm:$0xff]   ;;  %v17111_v36 = vld [vmem:[%s21053_s25 + $0x150] ss:$12 sps:$4 sm:$0xff]  }
 0x5b8   :  { %14958 = vmatprep.mubr.msk.bf16.mxu0 %vm577_vm6, %v17090_v50  ;;  %15016 = vmatprep.subr.bf16.mxu1 %v16919_v3  ;;  %v17112_v50 = vld [vmem:[%s21053_s25 + $0x16c] ss:$12 sps:$4 sm:$0xff]  }
 0x5be   :  { %2952 = vmatmul.mubr.bf16.gmra.mrb[152].mxu1 %v17091_v22  ;;  %v17113_v22 = vld [vmem:[%s21053_s25 + $0x168] ss:$12 sps:$4 sm:$0xff]  }
 0x5bf   :  { %2959 = vmatprep.mubr.bf16.mxu1 %v17092_v20  ;;  %14959 = vmatmul.mubr.msk.bf16.gmra.mrb[184].mxu0 %vm577_vm6, %v17093_v41  ;;  %v17114_v20 = vld [vmem:[%s21053_s25 + $0x184] ss:$12 sps:$4 sm:$0xff]   ;;  %v17115_v41 = vld [vmem:[%s21053_s25 + $0x180] ss:$12 sps:$4 sm:$0xff]  }
 0x5c0   :  { %14962 = vmatprep.mubr.msk.bf16.mxu0 %vm577_vm6, %v17094_v24  ;;  %v17116_v24 = vld [vmem:[%s21053_s25 + $0x19c] ss:$12 sps:$4 sm:$0xff]  }
 0x5c6   :  { %2960 = vmatmul.mubr.bf16.gmra.mrb[156].mxu1 %v17095_v16  ;;  %v17117_v16 = vld [vmem:[%s21053_s25 + $0x198] ss:$12 sps:$4 sm:$0xff]  }
 0x5c7   :  { %2967 = vmatprep.mubr.bf16.mxu1 %v17096_v47  ;;  %14963 = vmatmul.mubr.msk.bf16.gmra.mrb[188].mxu0 %vm577_vm6, %v17097_v4  ;;  %v17118_v47 = vld [vmem:[%s21053_s25 + $0x1b4] ss:$12 sps:$4 sm:$0xff]   ;;  %v17119_v4 = vld [vmem:[%s21053_s25 + $0x1b0] ss:$12 sps:$4 sm:$0xff]  }
 0x5c8   :  { %14966 = vmatprep.mubr.msk.bf16.mxu0 %vm577_vm6, %v17098_v60  ;;  %v17120_v60 = vld [vmem:[%s21053_s25 + $0x1cc] ss:$12 sps:$4 sm:$0xff]  }
 0x5ce   :  { %2968 = vmatmul.mubr.bf16.gmra.mrb[160].mxu1 %v17099_v6  ;;  %v17121_v6 = vld [vmem:[%s21053_s25 + $0x1c8] ss:$12 sps:$4 sm:$0xff]  }
 0x5cf   :  { %2975 = vmatprep.mubr.bf16.mxu1 %v17100_v30  ;;  %14967 = vmatmul.mubr.msk.bf16.gmra.mrb[192].mxu0 %vm577_vm6, %v17101_v31  ;;  %v16920_v30 = vld [vmem:[%s21033_s28 + $0x28] sm:$0xff]  }
 0x5d0   :  { %14970 = vmatprep.mubr.msk.bf16.mxu0 %vm577_vm6, %v17102_v45  ;;  %v18356_v31 = vld [vmem:[%s20977_s7 + $0x28] sm:$0xff]  }
 0x5d6   :  { %2976 = vmatmul.mubr.bf16.gmra.mrb[164].mxu1 %v17103_v49 }
 0x5d7   :  { %2983 = vmatprep.mubr.bf16.mxu1 %v17104_v1  ;;  %14971 = vmatmul.mubr.msk.bf16.gmra.mrb[196].mxu0 %vm577_vm6, %v17105_v37 }
 0x5d8   :  { %4155 = vmatprep.mubr.bf16.mxu0 %v17106_v0 }
 0x5de   :  { %2984 = vmatmul.mubr.bf16.gmra.mrb[168].mxu1 %v17107_v26 }
 0x5df   :  { %2991 = vmatprep.mubr.bf16.mxu1 %v17108_v25 }
 0x5e6   :  { %2992 = vmatmul.mubr.bf16.gmra.mrb[172].mxu1 %v17109_v42 }
 0x5e7   :  { %2999 = vmatprep.mubr.bf16.mxu1 %v17110_v19 }
 0x5ee   :  { %3000 = vmatmul.mubr.bf16.gmra.mrb[176].mxu1 %v17111_v36 }
 0x5ef   :  { %3007 = vmatprep.mubr.bf16.mxu1 %v17112_v50 }
 0x5f6   :  { %3008 = vmatmul.mubr.bf16.gmra.mrb[180].mxu1 %v17113_v22 }
 0x5f7   :  { %3015 = vmatprep.mubr.bf16.mxu1 %v17114_v20 }
 0x5fe   :  { %3016 = vmatmul.mubr.bf16.gmra.mrb[184].mxu1 %v17115_v41 }
 0x5ff   :  { %3023 = vmatprep.mubr.bf16.mxu1 %v17116_v24 }
 0x606   :  { %3024 = vmatmul.mubr.bf16.gmra.mrb[188].mxu1 %v17117_v16 }
 0x607   :  { %3031 = vmatprep.mubr.bf16.mxu1 %v17118_v47 }
 0x60e   :  { %3032 = vmatmul.mubr.bf16.gmra.mrb[192].mxu1 %v17119_v4 }
 0x60f   :  { %3039 = vmatprep.mubr.bf16.mxu1 %v17120_v60 }
 0x616   :  { %3040 = vmatmul.mubr.bf16.gmra.mrb[196].mxu1 %v17121_v6 }
 0x617   :  { %14976 = vmatprep.mubr.msk.bf16.mxu1 %vm2368_vm7, %v17892_v58 }
 0x61e   :  { %14977 = vmatmul.mubr.msk.bf16.vlgmr.msra.gmra.mrb[200].mxu1 %vm2368_vm7, %v17889_v14 }
 0x61f   :  { %14980 = vmatprep.mubr.msk.bf16.mxu1 %vm2368_vm7, %v17901_v62  ;;  %15017 = vmatpush3.bf16.msra.mxu1 %v16919_v3  ;;  %v18382_v3 = vld [vmem:[%s20978_s8 + $0x1] ss:$0 sm:$0xff] }
 0x620   :  { %15018 = vmatprep.subr.bf16.mxu1 %v16920_v30 }
 0x623   :  { %15019 = vmatpush3.bf16.msra.mxu1 %v16920_v30 }
 0x624   :  { %15060 = vmatprep.subr.bf16.mxu1 %v18356_v31 }
 0x626   :  { %14981 = vmatmul.mubr.msk.bf16.gmra.mrb[204].mxu1 %vm2368_vm7, %v17903_v63 }
 0x627   :  { %14984 = vmatprep.mubr.msk.bf16.mxu1 %vm2368_vm7, %v17918_v32 }
 0x62e   :  { %14985 = vmatmul.mubr.msk.bf16.gmra.mrb[208].mxu1 %vm2368_vm7, %v17925_v2 }
 0x62f   :  { %14988 = vmatprep.mubr.msk.bf16.mxu1 %vm2368_vm7, %v17935_v23 }
 0x636   :  { %14989 = vmatmul.mubr.msk.bf16.gmra.mrb[212].mxu1 %vm2368_vm7, %v17945_v55 }
 0x637   :  { %14992 = vmatprep.mubr.msk.bf16.mxu1 %vm2368_vm7, %v17959_v28 }
 0x63e   :  { %14993 = vmatmul.mubr.msk.bf16.gmra.mrb[216].mxu1 %vm2368_vm7, %v17975_v7 }
 0x63f   :  { %14996 = vmatprep.mubr.msk.bf16.mxu1 %vm2368_vm7, %v17989_v53 }
 0x646   :  { %14997 = vmatmul.mubr.msk.bf16.gmra.mrb[220].mxu1 %vm2368_vm7, %v18003_v52 }
 0x647   :  { %15000 = vmatprep.mubr.msk.bf16.mxu1 %vm2368_vm7, %v18011_v59 }
 0x64e   :  { %15001 = vmatmul.mubr.msk.bf16.gmra.mrb[224].mxu1 %vm2368_vm7, %v18019_v51 }
 0x64f   :  { %15004 = vmatprep.mubr.msk.bf16.mxu1 %vm2368_vm7, %v18027_v38 }
 0x651   :  { %v2889_v45 = vpop.f32.mrb[120].mxu1 }
 0x652   :  { %v2891_v49 = vpop.f32.mrb[121].mxu1  ;;  %v2890_v22 = vadd.f32 %v18382_v3, %v2889_v45 }
 0x653   :  { %v2892_v1 = vpop.f32.mrb[122].mxu1 }
 0x654   :  { %v2894_v37 = vpop.f32.mrb[123].mxu1  ;;  %v2893_v6 = vadd.f32 %v18382_v3, %v2892_v1 }
 0x656   :  { %15005 = vmatmul.mubr.msk.bf16.gmra.mrb[228].mxu1 %vm2368_vm7, %v18035_v57 }
 0x657   :  { %15008 = vmatprep.mubr.msk.bf16.mxu1 %vm2368_vm7, %v18043_v11 }
 0x659   :  { %v2897_v0 = vpop.f32.mrb[124].mxu1 }
 0x65a   :  { %v2899_v26 = vpop.f32.mrb[125].mxu1  ;;  %v2898_v19 = vadd.f32 %v18382_v3, %v2897_v0 }
 0x65b   :  { %v2900_v25 = vpop.f32.mrb[126].mxu1 }
 0x65c   :  { %v2902_v42 = vpop.f32.mrb[127].mxu1  ;;  %v2901_v16 = vadd.f32 %v18382_v3, %v2900_v25 }
 0x65e   :  { %15009 = vmatmul.mubr.msk.bf16.gmra.mrb[232].mxu1 %vm2368_vm7, %v18051_v5 }
 0x65f   :  { %15012 = vmatprep.mubr.msk.bf16.mxu1 %vm2368_vm7, %v18059_v61 }
 0x661   :  { %v2905_v36 = vpop.f32.mrb[128].mxu1 }
 0x662   :  { %v14936_v50 = vpop.f32.mrb[160].mxu0  ;;  %v2907_v20 = vpop.f32.mrb[129].mxu1 }
 0x663   :  { %v3082_v41 = vpop.f32.mrb[161].mxu0  ;;  %v3091_v24 = vadd.f32 %v14936_v50, %v2898_v19  ;;  %v2908_v47 = vpop.f32.mrb[130].mxu1  ;;  %v2906_v50 = vadd.f32 %v18382_v3, %v2905_v36 }
 0x664   :  { %v3083_v4 = vadd.f32 %v3082_v41, %v2890_v22  ;;  %v14937_v60 = vpop.f32.mrb[162].mxu0  ;;  %v2910_v30 = vpop.f32.mrb[131].mxu1 }
 0x665   :  { %v3085_v49 = vpop.f32.mrb[163].mxu0  ;;  %v3283_v37 = vmul.f32 0.01, %v3091_v24  ;;  %v3094_v26 = vadd.f32 %v14937_v60, %v2901_v16  ;;  %vm3243_vm8 = vcmp.ge.f32.partialorder %v3091_v24, 0.0 }
 0x666   :  { %15013 = vmatmul.mubr.msk.bf16.gmra.mrb[236].mxu1 %vm2368_vm7, %v18066_v35  ;;  %v3281_v0 = vmul.f32 0.01, %v3083_v4  ;;  %v3086_v42 = vadd.f32 %v3085_v49, %v2893_v6  ;;  %vm3241_vm10 = vcmp.ge.f32.partialorder %v3083_v4, 0.0  ;;  %v2909_v35 = vadd.f32 %v18382_v3, %v2908_v47 }
 0x667   :  { %15020 = vmatprep.mubr.msk.bf16.mxu1 %vm1187_vm9, %v17544_v29  ;;  %vm3244_vm11 = vcmp.ge.f32.partialorder %v3094_v26, 0.0  ;;  %v3284_v45 = vmul.f32 0.01, %v3094_v26  ;;  %v3323_v19 = vsel %vm3243_vm8, %v3091_v24, %v3283_v37 }
 0x668   :  { %vm3242_vm12 = vcmp.ge.f32.partialorder %v3086_v42, 0.0  ;;  %v3282_v25 = vmul.f32 0.01, %v3086_v42  ;;  %v3321_v20 = vsel %vm3241_vm10, %v3083_v4, %v3281_v0 }
 0x669   :  { %v3324_v1 = vsel %vm3244_vm11, %v3094_v26, %v3284_v45  ;;  %v2913_v22 = vpop.f32.mrb[132].mxu1 }
 0x66a   :  { %v3322_v41 = vsel %vm3242_vm12, %v3086_v42, %v3282_v25  ;;  %v18393_v16 = vpack.c.bf16 %v3324_v1, %v3323_v19  ;;  %v14940_v60 = vpop.f32.mrb[164].mxu0  ;;  %v2914_v6 = vadd.f32 %v18382_v3, %v2913_v22  ;;  %v2915_v30 = vpop.f32.mrb[133].mxu1 }
 0x66b   :  { %v3098_v49 = vpop.f32.mrb[165].mxu0  ;;  %v2916_v21 = vpop.f32.mrb[134].mxu1  ;;  %v18396_v29 = vpack.c.bf16 %v3322_v41, %v3321_v20 }
 0x66c   :  { %v3099_v61 = vadd.f32 %v3098_v49, %v2906_v50  ;;  %v14941_v24 = vpop.f32.mrb[166].mxu0  ;;  %v3107_v37 = vadd.f32 %v14940_v60, %v2914_v6  ;;  %v2917_v36 = vadd.f32 %v18382_v3, %v2916_v21  ;;  %v2918_v26 = vpop.f32.mrb[135].mxu1 }
 0x66d   :  { %v3101_v4 = vpop.f32.mrb[167].mxu0 }
 0x66e   :  { %15021 = vmatmul.mubr.msk.bf16.vlgmr.msra.gmra.mrb[200].mxu1 %vm1187_vm9, %v17541_v27  ;;  %v3285_v0 = vmul.f32 0.01, %v3099_v61  ;;  %v3102_v42 = vadd.f32 %v3101_v4, %v2909_v35  ;;  %vm3245_vm13 = vcmp.ge.f32.partialorder %v3099_v61, 0.0  ;;  %v3287_v45 = vmul.f32 0.01, %v3107_v37 }
 0x66f   :  { %15024 = vmatprep.mubr.msk.bf16.mxu1 %vm1187_vm9, %v17554_v54  ;;  %v3110_v25 = vadd.f32 %v14941_v24, %v2917_v36  ;;  %15061 = vmatpush3.bf16.msra.mxu1 %v18356_v31  ;;  %vm3247_vm15 = vcmp.ge.f32.partialorder %v3107_v37, 0.0 }
 0x670   :  { %vm3246_vm14 = vcmp.ge.f32.partialorder %v3102_v42, 0.0  ;;  %v3286_v47 = vmul.f32 0.01, %v3102_v42  ;;  %v3325_v1 = vsel %vm3245_vm13, %v3099_v61, %v3285_v0  ;;  %v3327_v30 = vsel %vm3247_vm15, %v3107_v37, %v3287_v45 }
 0x671   :  { %vm3248_vm0 = vcmp.ge.f32.partialorder %v3110_v25, 0.0  ;;  %v3288_v21 = vmul.f32 0.01, %v3110_v25  ;;  %v2921_v19 = vpop.f32.mrb[136].mxu1 }
 0x672   :  { %v3326_v50 = vsel %vm3246_vm14, %v3102_v42, %v3286_v47  ;;  %v2922_v22 = vadd.f32 %v18382_v3, %v2921_v19  ;;  %v2923_v20 = vpop.f32.mrb[137].mxu1  ;;  %v14944_v35 = vpop.f32.mrb[168].mxu0 }
 0x673   :  { %v2924_v41 = vpop.f32.mrb[138].mxu1  ;;  %v3114_v60 = vpop.f32.mrb[169].mxu0  ;;  %v18406_v6 = vpack.c.bf16 %v3326_v50, %v3325_v1  ;;  %v3328_v49 = vsel %vm3248_vm0, %v3110_v25, %v3288_v21 }
 0x674   :  { %v2925_v31 = vadd.f32 %v18382_v3, %v2924_v41  ;;  %v3115_v24 = vadd.f32 %v3114_v60, %v2922_v22  ;;  %v14945_v36 = vpop.f32.mrb[170].mxu0  ;;  %v2926_v26 = vpop.f32.mrb[139].mxu1  ;;  %v18409_v4 = vpack.c.bf16 %v3328_v49, %v3327_v30 }
 0x675   :  { %v3117_v54 = vpop.f32.mrb[171].mxu0 }
 0x676   :  { %15025 = vmatmul.mubr.msk.bf16.gmra.mrb[204].mxu1 %vm1187_vm9, %v17556_v56  ;;  %v3289_v61 = vmul.f32 0.01, %v3115_v24  ;;  %v3118_v0 = vadd.f32 %v3117_v54, %v2925_v31  ;;  %vm3249_vm2 = vcmp.ge.f32.partialorder %v3115_v24, 0.0 }
 0x677   :  { %15028 = vmatprep.mubr.msk.bf16.mxu1 %vm1187_vm9, %v17566_v17 }
 0x678   :  { %vm3250_vm3 = vcmp.ge.f32.partialorder %v3118_v0, 0.0  ;;  %v3290_v37 = vmul.f32 0.01, %v3118_v0  ;;  %v3329_v45 = vsel %vm3249_vm2, %v3115_v24, %v3289_v61 }
 0x679   :  { %v2929_v42 = vpop.f32.mrb[140].mxu1 }
 0x67a   :  { %v3330_v25 = vsel %vm3250_vm3, %v3118_v0, %v3290_v37  ;;  %v2930_v47 = vadd.f32 %v18382_v3, %v2929_v42  ;;  %v2931_v21 = vpop.f32.mrb[141].mxu1  ;;  %v14948_v19 = vpop.f32.mrb[172].mxu0 }
 0x67b   :  { %v2932_v1 = vpop.f32.mrb[142].mxu1  ;;  %v18416_v50 = vpack.c.bf16 %v3330_v25, %v3329_v45  ;;  %v3130_v22 = vpop.f32.mrb[173].mxu0 }
 0x67c   :  { %v3123_v20 = vadd.f32 %v14944_v35, %v2930_v47  ;;  %v2933_v54 = vadd.f32 %v18382_v3, %v2932_v1  ;;  %v2934_v41 = vpop.f32.mrb[143].mxu1  ;;  %v14949_v60 = vpop.f32.mrb[174].mxu0 }
 0x67d   :  { %v3133_v30 = vpop.f32.mrb[175].mxu0 }
 0x67e   :  { %15029 = vmatmul.mubr.msk.bf16.gmra.mrb[208].mxu1 %vm1187_vm9, %v17568_v18  ;;  %v3291_v49 = vmul.f32 0.01, %v3123_v20  ;;  %v3126_v31 = vadd.f32 %v14945_v36, %v2933_v54  ;;  %vm3251_vm4 = vcmp.ge.f32.partialorder %v3123_v20, 0.0 }
 0x67f   :  { %15032 = vmatprep.mubr.msk.bf16.mxu1 %vm1187_vm9, %v17578_v43 }
 0x680   :  { %vm3252_vm5 = vcmp.ge.f32.partialorder %v3126_v31, 0.0  ;;  %v3292_v24 = vmul.f32 0.01, %v3126_v31  ;;  %v3331_v0 = vsel %vm3251_vm4, %v3123_v20, %v3291_v49  ;;  %v18438_v49 = vld [vmem:[%s20979_s10] sm:$0xff]  }
 0x681   :  { %v2937_v26 = vpop.f32.mrb[144].mxu1  ;;  %15150 = vmatprep.subr.bf16.mxu1 %v18438_v49 }
 0x682   :  { %v2938_v61 = vadd.f32 %v18382_v3, %v2937_v26  ;;  %v2939_v35 = vpop.f32.mrb[145].mxu1  ;;  %v3332_v37 = vsel %vm3252_vm5, %v3126_v31, %v3292_v24  ;;  %v18424_v42 = vpop.f32.mrb[176].mxu0 }
 0x683   :  { %v2940_v45 = vpop.f32.mrb[146].mxu1  ;;  %v18426_v25 = vpack.c.bf16 %v3332_v37, %v3331_v0  ;;  %v3146_v47 = vpop.f32.mrb[177].mxu0 }
 0x684   :  { %v2941_v36 = vadd.f32 %v18382_v3, %v2940_v45  ;;  %v2942_v21 = vpop.f32.mrb[147].mxu1  ;;  %v3131_v1 = vadd.f32 %v3130_v22, %v2938_v61  ;;  %v18429_v54 = vpop.f32.mrb[178].mxu0 }
 0x685   :  { %v3149_v41 = vpop.f32.mrb[179].mxu0 }
 0x686   :  { %15033 = vmatmul.mubr.msk.bf16.gmra.mrb[212].mxu1 %vm1187_vm9, %v17582_v48  ;;  %v3293_v26 = vmul.f32 0.01, %v3131_v1  ;;  %v3134_v35 = vadd.f32 %v3133_v30, %v2941_v36  ;;  %vm3253_vm8 = vcmp.ge.f32.partialorder %v3131_v1, 0.0 }
 0x687   :  { %15036 = vmatprep.mubr.msk.bf16.mxu1 %vm1187_vm9, %v17590_v8 }
 0x688   :  { %vm3254_vm10 = vcmp.ge.f32.partialorder %v3134_v35, 0.0  ;;  %v3294_v20 = vmul.f32 0.01, %v3134_v35  ;;  %v3333_v61 = vsel %vm3253_vm8, %v3131_v1, %v3293_v26 }
 0x689   :  { %v2945_v22 = vpop.f32.mrb[148].mxu1 }
 0x68a   :  { %v2946_v31 = vadd.f32 %v18382_v3, %v2945_v22  ;;  %v2947_v24 = vpop.f32.mrb[149].mxu1  ;;  %v3334_v0 = vsel %vm3254_vm10, %v3134_v35, %v3294_v20  ;;  %v18441_v37 = vpop.f32.mrb[180].mxu0 }
 0x68b   :  { %v2948_v30 = vpop.f32.mrb[150].mxu1  ;;  %v18444_v45 = vpack.c.bf16 %v3334_v0, %v3333_v61  ;;  %v18446_v36 = vpop.f32.mrb[181].mxu0 }
 0x68c   :  { %v3139_v21 = vadd.f32 %v14948_v19, %v2946_v31  ;;  %v2949_v8 = vadd.f32 %v18382_v3, %v2948_v30  ;;  %v2950_v48 = vpop.f32.mrb[151].mxu1  ;;  %v18449_v43 = vpop.f32.mrb[182].mxu0 }
 0x68d   :  { %v18451_v18 = vpop.f32.mrb[183].mxu0 }
 0x68e   :  { %15037 = vmatmul.mubr.msk.bf16.gmra.mrb[216].mxu1 %vm1187_vm9, %v17594_v13  ;;  %vm3255_vm11 = vcmp.ge.f32.partialorder %v3139_v21, 0.0  ;;  %v3295_v1 = vmul.f32 0.01, %v3139_v21  ;;  %v3142_v26 = vadd.f32 %v14949_v60, %v2949_v8 }
 0x68f   :  { %15040 = vmatprep.mubr.msk.bf16.mxu1 %vm1187_vm9, %v17602_v40 }
 0x690   :  { %vm3256_vm12 = vcmp.ge.f32.partialorder %v3142_v26, 0.0  ;;  %v3296_v35 = vmul.f32 0.01, %v3142_v26  ;;  %v3335_v19 = vsel %vm3255_vm11, %v3139_v21, %v3295_v1 }
 0x691   :  { %v2953_v20 = vpop.f32.mrb[152].mxu1 }
 0x692   :  { %v3336_v22 = vsel %vm3256_vm12, %v3142_v26, %v3296_v35  ;;  %v2954_v48 = vadd.f32 %v18382_v3, %v2953_v20  ;;  %v2955_v31 = vpop.f32.mrb[153].mxu1  ;;  %v18458_v24 = vpop.f32.mrb[184].mxu0 }
 0x693   :  { %v2956_v61 = vpop.f32.mrb[154].mxu1  ;;  %v18460_v0 = vpack.c.bf16 %v3336_v22, %v3335_v19  ;;  %v18462_v30 = vpop.f32.mrb[185].mxu0 }
 0x694   :  { %v2957_v8 = vadd.f32 %v18382_v3, %v2956_v61  ;;  %v2958_v60 = vpop.f32.mrb[155].mxu1  ;;  %v3147_v13 = vadd.f32 %v3146_v47, %v2954_v48  ;;  %v18465_v40 = vpop.f32.mrb[186].mxu0 }
 0x695   :  { %v18467_v17 = vpop.f32.mrb[187].mxu0 }
 0x696   :  { %15041 = vmatmul.mubr.msk.bf16.gmra.mrb[220].mxu1 %vm1187_vm9, %v17606_v46  ;;  %vm3257_vm13 = vcmp.ge.f32.partialorder %v3147_v13, 0.0  ;;  %v3297_v21 = vmul.f32 0.01, %v3147_v13  ;;  %v3150_v1 = vadd.f32 %v3149_v41, %v2957_v8 }
 0x697   :  { %15044 = vmatprep.mubr.msk.bf16.mxu1 %vm1187_vm9, %v17614_v9 }
 0x698   :  { %vm3258_vm14 = vcmp.ge.f32.partialorder %v3150_v1, 0.0  ;;  %v3298_v26 = vmul.f32 0.01, %v3150_v1  ;;  %v3337_v47 = vsel %vm3257_vm13, %v3147_v13, %v3297_v21 }
 0x699   :  { %v2961_v35 = vpop.f32.mrb[156].mxu1 }
 0x69a   :  { %v2962_v20 = vadd.f32 %v18382_v3, %v2961_v35  ;;  %v2963_v19 = vpop.f32.mrb[157].mxu1  ;;  %v3338_v22 = vsel %vm3258_vm14, %v3150_v1, %v3298_v26  ;;  %v18474_v48 = vpop.f32.mrb[188].mxu0 }
 0x69b   :  { %v2964_v31 = vpop.f32.mrb[158].mxu1  ;;  %v18476_v61 = vpack.c.bf16 %v3338_v22, %v3337_v47  ;;  %v18478_v60 = vpop.f32.mrb[189].mxu0 }
 0x69c   :  { %v3155_v41 = vadd.f32 %v18424_v42, %v2962_v20  ;;  %v2965_v8 = vadd.f32 %v18382_v3, %v2964_v31  ;;  %v2966_v9 = vpop.f32.mrb[159].mxu1  ;;  %v18482_v46 = vpop.f32.mrb[190].mxu0 }
 0x69d   :  { %v18484_v56 = vpop.f32.mrb[191].mxu0 }
 0x69e   :  { %15045 = vmatmul.mubr.msk.bf16.gmra.mrb[224].mxu1 %vm1187_vm9, %v17616_v12  ;;  %v3299_v13 = vmul.f32 0.01, %v3155_v41  ;;  %v3158_v21 = vadd.f32 %v18429_v54, %v2965_v8  ;;  %vm3259_vm15 = vcmp.ge.f32.partialorder %v3155_v41, 0.0 }
 0x69f   :  { %15048 = vmatprep.mubr.msk.bf16.mxu1 %vm1187_vm9, %v17629_v44 }
 0x6a0   :  { %vm3260_vm0 = vcmp.ge.f32.partialorder %v3158_v21, 0.0  ;;  %v3300_v1 = vmul.f32 0.01, %v3158_v21  ;;  %v3339_v26 = vsel %vm3259_vm15, %v3155_v41, %v3299_v13 }
 0x6a1   :  { %v2969_v42 = vpop.f32.mrb[160].mxu1 }
 0x6a2   :  { %v3340_v35 = vsel %vm3260_vm0, %v3158_v21, %v3300_v1  ;;  %v2970_v9 = vadd.f32 %v18382_v3, %v2969_v42  ;;  %v2971_v20 = vpop.f32.mrb[161].mxu1  ;;  %v18492_v19 = vpop.f32.mrb[192].mxu0 }
 0x6a3   :  { %v2972_v47 = vpop.f32.mrb[162].mxu1  ;;  %v18494_v22 = vpack.c.bf16 %v3340_v35, %v3339_v26  ;;  %v18496_v31 = vpop.f32.mrb[193].mxu0 }
 0x6a4   :  { %v2973_v54 = vadd.f32 %v18382_v3, %v2972_v47  ;;  %v2974_v8 = vpop.f32.mrb[163].mxu1  ;;  %v3163_v44 = vadd.f32 %v18446_v36, %v2970_v9  ;;  %v18500_v12 = vpop.f32.mrb[194].mxu0 }
 0x6a5   :  { %v18502_v27 = vpop.f32.mrb[195].mxu0 }
 0x6a6   :  { %15049 = vmatmul.mubr.msk.bf16.gmra.mrb[228].mxu1 %vm1187_vm9, %v17626_v39  ;;  %v3301_v41 = vmul.f32 0.01, %v3163_v44  ;;  %v3166_v13 = vadd.f32 %v18451_v18, %v2973_v54  ;;  %vm3261_vm2 = vcmp.ge.f32.partialorder %v3163_v44, 0.0 }
 0x6a7   :  { %15052 = vmatprep.mubr.msk.bf16.mxu1 %vm1187_vm9, %v17641_v15 }
 0x6a8   :  { %vm3262_vm3 = vcmp.ge.f32.partialorder %v3166_v13, 0.0  ;;  %v3302_v21 = vmul.f32 0.01, %v3166_v13  ;;  %v3341_v26 = vsel %vm3261_vm2, %v3163_v44, %v3301_v41 }
 0x6a9   :  { %v2977_v1 = vpop.f32.mrb[164].mxu1 }
 0x6aa   :  { %v2978_v42 = vadd.f32 %v18382_v3, %v2977_v1  ;;  %v2979_v36 = vpop.f32.mrb[165].mxu1  ;;  %v3342_v35 = vsel %vm3262_vm3, %v3166_v13, %v3302_v21  ;;  %v18510_v9 = vpop.f32.mrb[196].mxu0 }
 0x6ab   :  { %v2980_v20 = vpop.f32.mrb[166].mxu1  ;;  %v18512_v47 = vpack.c.bf16 %v3342_v35, %v3341_v26  ;;  %v18514_v8 = vpop.f32.mrb[197].mxu0 }
 0x6ac   :  { %v3171_v18 = vadd.f32 %v18441_v37, %v2978_v42  ;;  %v2981_v54 = vadd.f32 %v18382_v3, %v2980_v20  ;;  %v2982_v15 = vpop.f32.mrb[167].mxu1  ;;  %v18518_v39 = vpop.f32.mrb[198].mxu0 }
 0x6ad   :  { %v18520_v5 = vpop.f32.mrb[199].mxu0 }
 0x6ae   :  { %15053 = vmatmul.mubr.msk.bf16.gmra.mrb[232].mxu1 %vm1187_vm9, %v17638_v10  ;;  %v3303_v44 = vmul.f32 0.01, %v3171_v18  ;;  %v3174_v41 = vadd.f32 %v18449_v43, %v2981_v54  ;;  %vm3263_vm4 = vcmp.ge.f32.partialorder %v3171_v18, 0.0 }
 0x6af   :  { %15056 = vmatprep.mubr.msk.bf16.mxu1 %vm1187_vm9, %v17649_v34 }
 0x6b0   :  { %vm3264_vm5 = vcmp.ge.f32.partialorder %v3174_v41, 0.0  ;;  %v3304_v13 = vmul.f32 0.01, %v3174_v41  ;;  %v3343_v21 = vsel %vm3263_vm4, %v3171_v18, %v3303_v44 }
 0x6b1   :  { %v2985_v37 = vpop.f32.mrb[168].mxu1 }
 0x6b2   :  { %v3344_v1 = vsel %vm3264_vm5, %v3174_v41, %v3304_v13  ;;  %v2986_v15 = vadd.f32 %v18382_v3, %v2985_v37  ;;  %v2987_v42 = vpop.f32.mrb[169].mxu1 }
 0x6b3   :  { %v2988_v36 = vpop.f32.mrb[170].mxu1  ;;  %v18528_v26 = vpack.c.bf16 %v3344_v1, %v3343_v21 }
 0x6b4   :  { %v2989_v35 = vadd.f32 %v18382_v3, %v2988_v36  ;;  %v2990_v20 = vpop.f32.mrb[171].mxu1  ;;  %v3179_v43 = vadd.f32 %v18462_v30, %v2986_v15 }
 0x6b6   :  { %15057 = vmatmul.mubr.msk.bf16.gmra.mrb[236].mxu1 %vm1187_vm9, %v17647_v33  ;;  %v3305_v54 = vmul.f32 0.01, %v3179_v43  ;;  %v3182_v34 = vadd.f32 %v18467_v17, %v2989_v35  ;;  %vm3265_vm8 = vcmp.ge.f32.partialorder %v3179_v43, 0.0 }
 0x6b7   :  { %15062 = vmatprep.mubr.msk.bf16.mxu1 %vm2368_vm7, %v18396_v29 }
 0x6b8   :  { %vm3266_vm10 = vcmp.ge.f32.partialorder %v3182_v34, 0.0  ;;  %v3306_v18 = vmul.f32 0.01, %v3182_v34  ;;  %v3345_v37 = vsel %vm3265_vm8, %v3179_v43, %v3305_v54 }
 0x6b9   :  { %v2993_v44 = vpop.f32.mrb[172].mxu1 }
 0x6ba   :  { %v2994_v41 = vadd.f32 %v18382_v3, %v2993_v44  ;;  %v2995_v13 = vpop.f32.mrb[173].mxu1  ;;  %v3346_v21 = vsel %vm3266_vm10, %v3182_v34, %v3306_v18 }
 0x6bb   :  { %v2996_v1 = vpop.f32.mrb[174].mxu1  ;;  %v18538_v30 = vpack.c.bf16 %v3346_v21, %v3345_v37 }
 0x6bc   :  { %v3187_v15 = vadd.f32 %v18458_v24, %v2994_v41  ;;  %v2997_v42 = vadd.f32 %v18382_v3, %v2996_v1  ;;  %v2998_v17 = vpop.f32.mrb[175].mxu1 }
 0x6be   :  { %15063 = vmatmul.mubr.msk.bf16.vlgmr.msra.gmra.mrb[200].mxu1 %vm2368_vm7, %v18393_v16  ;;  %v3307_v36 = vmul.f32 0.01, %v3187_v15  ;;  %v3190_v35 = vadd.f32 %v18465_v40, %v2997_v42  ;;  %vm3267_vm11 = vcmp.ge.f32.partialorder %v3187_v15, 0.0 }
 0x6bf   :  { %15066 = vmatprep.mubr.msk.bf16.mxu1 %vm2368_vm7, %v18406_v6  ;;  %15151 = vmatpush3.bf16.msra.mxu1 %v18438_v49 }
 0x6c0   :  { %vm3268_vm12 = vcmp.ge.f32.partialorder %v3190_v35, 0.0  ;;  %v3308_v34 = vmul.f32 0.01, %v3190_v35  ;;  %v3347_v43 = vsel %vm3267_vm11, %v3187_v15, %v3307_v36 }
 0x6c1   :  { %v3001_v20 = vpop.f32.mrb[176].mxu1 }
 0x6c2   :  { %v3348_v24 = vsel %vm3268_vm12, %v3190_v35, %v3308_v34  ;;  %v3003_v54 = vpop.f32.mrb[177].mxu1  ;;  %v3002_v18 = vadd.f32 %v18382_v3, %v3001_v20 }
 0x6c3   :  { %v3004_v44 = vpop.f32.mrb[178].mxu1  ;;  %v18549_v41 = vpack.c.bf16 %v3348_v24, %v3347_v43 }
 0x6c4   :  { %v3006_v13 = vpop.f32.mrb[179].mxu1  ;;  %v3195_v40 = vadd.f32 %v18478_v60, %v3002_v18  ;;  %v3005_v37 = vadd.f32 %v18382_v3, %v3004_v44 }
 0x6c6   :  { %15067 = vmatmul.mubr.msk.bf16.gmra.mrb[204].mxu1 %vm2368_vm7, %v18409_v4  ;;  %v3309_v49 = vmul.f32 0.01, %v3195_v40  ;;  %v3198_v21 = vadd.f32 %v18484_v56, %v3005_v37  ;;  %vm3269_vm13 = vcmp.ge.f32.partialorder %v3195_v40, 0.0 }
 0x6c7   :  { %15070 = vmatprep.mubr.msk.bf16.mxu1 %vm2368_vm7, %v18416_v50 }
 0x6c8   :  { %vm3270_vm14 = vcmp.ge.f32.partialorder %v3198_v21, 0.0  ;;  %v3310_v1 = vmul.f32 0.01, %v3198_v21  ;;  %v3349_v36 = vsel %vm3269_vm13, %v3195_v40, %v3309_v49 }
 0x6c9   :  { %v3009_v15 = vpop.f32.mrb[180].mxu1 }
 0x6ca   :  { %v3010_v42 = vadd.f32 %v18382_v3, %v3009_v15  ;;  %v3011_v17 = vpop.f32.mrb[181].mxu1  ;;  %v3350_v60 = vsel %vm3270_vm14, %v3198_v21, %v3310_v1 }
 0x6cb   :  { %v3012_v35 = vpop.f32.mrb[182].mxu1  ;;  %v18559_v34 = vpack.c.bf16 %v3350_v60, %v3349_v36  ;;  %v18581_v36 = vld [vmem:[%s20980_s9] sm:$0xff]  }
 0x6cc   :  { %v3203_v20 = vadd.f32 %v18474_v48, %v3010_v42  ;;  %v3013_v43 = vadd.f32 %v18382_v3, %v3012_v35  ;;  %v3014_v56 = vpop.f32.mrb[183].mxu1  ;;  %15192 = vmatprep.subr.bf16.mxu1 %v18581_v36 }
 0x6ce   :  { %15071 = vmatmul.mubr.msk.bf16.gmra.mrb[208].mxu1 %vm2368_vm7, %v18426_v25  ;;  %v3311_v24 = vmul.f32 0.01, %v3203_v20  ;;  %v3206_v54 = vadd.f32 %v18482_v46, %v3013_v43  ;;  %vm3271_vm15 = vcmp.ge.f32.partialorder %v3203_v20, 0.0 }
 0x6cf   :  { %15074 = vmatprep.mubr.msk.bf16.mxu1 %vm2368_vm7, %v18444_v45 }
 0x6d0   :  { %vm3272_vm0 = vcmp.ge.f32.partialorder %v3206_v54, 0.0  ;;  %v3312_v18 = vmul.f32 0.01, %v3206_v54  ;;  %v3351_v13 = vsel %vm3271_vm15, %v3203_v20, %v3311_v24 }
 0x6d1   :  { %v3017_v44 = vpop.f32.mrb[184].mxu1 }
 0x6d2   :  { %v3352_v40 = vsel %vm3272_vm0, %v3206_v54, %v3312_v18  ;;  %v3019_v37 = vpop.f32.mrb[185].mxu1  ;;  %v3018_v48 = vadd.f32 %v18382_v3, %v3017_v44 }
 0x6d3   :  { %v3020_v49 = vpop.f32.mrb[186].mxu1  ;;  %v18569_v21 = vpack.c.bf16 %v3352_v40, %v3351_v13 }
 0x6d4   :  { %v3022_v1 = vpop.f32.mrb[187].mxu1  ;;  %v3211_v15 = vadd.f32 %v18496_v31, %v3018_v48  ;;  %v3021_v46 = vadd.f32 %v18382_v3, %v3020_v49 }
 0x6d6   :  { %15075 = vmatmul.mubr.msk.bf16.gmra.mrb[212].mxu1 %vm2368_vm7, %v18460_v0  ;;  %v3313_v42 = vmul.f32 0.01, %v3211_v15  ;;  %v3214_v17 = vadd.f32 %v18502_v27, %v3021_v46  ;;  %vm3273_vm2 = vcmp.ge.f32.partialorder %v3211_v15, 0.0 }
 0x6d7   :  { %15078 = vmatprep.mubr.msk.bf16.mxu1 %vm2368_vm7, %v18476_v61 }
 0x6d8   :  { %vm3274_vm3 = vcmp.ge.f32.partialorder %v3214_v17, 0.0  ;;  %v3314_v60 = vmul.f32 0.01, %v3214_v17  ;;  %v3353_v43 = vsel %vm3273_vm2, %v3211_v15, %v3313_v42 }
 0x6d9   :  { %v3025_v31 = vpop.f32.mrb[188].mxu1 }
 0x6da   :  { %v3026_v35 = vadd.f32 %v18382_v3, %v3025_v31  ;;  %v3027_v20 = vpop.f32.mrb[189].mxu1  ;;  %v3354_v56 = vsel %vm3274_vm3, %v3214_v17, %v3314_v60 }
 0x6db   :  { %v3028_v27 = vpop.f32.mrb[190].mxu1  ;;  %v18585_v24 = vpack.c.bf16 %v3354_v56, %v3353_v43 }
 0x6dc   :  { %v3219_v54 = vadd.f32 %v18492_v19, %v3026_v35  ;;  %v3029_v18 = vadd.f32 %v18382_v3, %v3028_v27  ;;  %v3030_v44 = vpop.f32.mrb[191].mxu1 }
 0x6de   :  { %15079 = vmatmul.mubr.msk.bf16.gmra.mrb[216].mxu1 %vm2368_vm7, %v18494_v22  ;;  %vm3275_vm4 = vcmp.ge.f32.partialorder %v3219_v54, 0.0  ;;  %v3315_v13 = vmul.f32 0.01, %v3219_v54  ;;  %v3222_v40 = vadd.f32 %v18500_v12, %v3029_v18 }
 0x6df   :  { %15082 = vmatprep.mubr.msk.bf16.mxu1 %vm2368_vm7, %v18512_v47 }
 0x6e0   :  { %vm3276_vm5 = vcmp.ge.f32.partialorder %v3222_v40, 0.0  ;;  %v3316_v37 = vmul.f32 0.01, %v3222_v40  ;;  %v3355_v49 = vsel %vm3275_vm4, %v3219_v54, %v3315_v13 }
 0x6e1   :  { %v3033_v48 = vpop.f32.mrb[192].mxu1 }
 0x6e2   :  { %v3356_v1 = vsel %vm3276_vm5, %v3222_v40, %v3316_v37  ;;  %v3034_v19 = vadd.f32 %v18382_v3, %v3033_v48  ;;  %v3035_v15 = vpop.f32.mrb[193].mxu1 }
 0x6e3   :  { %v3036_v46 = vpop.f32.mrb[194].mxu1  ;;  %v18595_v42 = vpack.c.bf16 %v3356_v1, %v3355_v49 }
 0x6e4   :  { %v3037_v17 = vadd.f32 %v18382_v3, %v3036_v46  ;;  %v3038_v60 = vpop.f32.mrb[195].mxu1  ;;  %v3227_v31 = vadd.f32 %v18514_v8, %v3034_v19 }
 0x6e6   :  { %15083 = vmatmul.mubr.msk.bf16.gmra.mrb[220].mxu1 %vm2368_vm7, %v18528_v26  ;;  %v3317_v12 = vmul.f32 0.01, %v3227_v31  ;;  %v3230_v35 = vadd.f32 %v18520_v5, %v3037_v17  ;;  %vm3277_vm8 = vcmp.ge.f32.partialorder %v3227_v31, 0.0 }
 0x6e7   :  { %15086 = vmatprep.mubr.msk.bf16.mxu1 %vm2368_vm7, %v18538_v30 }
 0x6e8   :  { %vm3278_vm10 = vcmp.ge.f32.partialorder %v3230_v35, 0.0  ;;  %v3318_v20 = vmul.f32 0.01, %v3230_v35  ;;  %v3357_v54 = vsel %vm3277_vm8, %v3227_v31, %v3317_v12 }
 0x6e9   :  { %v3041_v43 = vpop.f32.mrb[196].mxu1 }
 0x6ea   :  { %v3042_v56 = vadd.f32 %v18382_v3, %v3041_v43  ;;  %v3043_v27 = vpop.f32.mrb[197].mxu1  ;;  %v3358_v18 = vsel %vm3278_vm10, %v3230_v35, %v3318_v20  ;;  %v21076_v35 = vld [vmem:[#allocation16_spill] sm:$0xff]  ;;  %v21077_v20 = vld [vmem:[#allocation18_spill] sm:$0xff]  ;;  %v21078_v43 = vmov 0  }
 0x6eb   :  { %v3044_v44 = vpop.f32.mrb[198].mxu1  ;;  %v18605_v8 = vpack.c.bf16 %v3358_v18, %v3357_v54 }
 0x6ec   :  { %v3235_v13 = vadd.f32 %v18510_v9, %v3042_v56  ;;  %v3045_v40 = vadd.f32 %v18382_v3, %v3044_v44  ;;  %v3046_v5 = vpop.f32.mrb[199].mxu1  ;;  %v21074_v3 = vld [vmem:[#allocation15_spill] sm:$0xff]  ;;  %v21075_v9 = vld [vmem:[#allocation17_spill] sm:$0xff] }
 0x6ee   :  { %15087 = vmatmul.mubr.msk.bf16.gmra.mrb[224].mxu1 %vm2368_vm7, %v18549_v41  ;;  %v3319_v37 = vmul.f32 0.01, %v3235_v13  ;;  %v3238_v48 = vadd.f32 %v18518_v39, %v3045_v40  ;;  %vm3279_vm11 = vcmp.ge.f32.partialorder %v3235_v13, 0.0  ;;  %v16924_v39 = vld [vmem:[%s20980_s9 + $0x8] sm:$0xff]  }
 0x6ef   :  { %15090 = vmatprep.mubr.msk.bf16.mxu1 %vm2368_vm7, %v18559_v34  ;;  %v21079_v40 = vld [vmem:[#allocation19_spill] sm:$0xff] }
 0x6f0   :  { %vm3280_vm12 = vcmp.ge.f32.partialorder %v3238_v48, 0.0  ;;  %v3320_v49 = vmul.f32 0.01, %v3238_v48  ;;  %v3359_v1 = vsel %vm3279_vm11, %v3235_v13, %v3319_v37 }
 0x6f2   :  { %v3360_v19 = vsel %vm3280_vm12, %v3238_v48, %v3320_v49 }
 0x6f3   :  { %v18614_v15 = vpack.c.bf16 %v3360_v19, %v3359_v1 }
 0x6f6   :  { %15091 = vmatmul.mubr.msk.bf16.gmra.mrb[228].mxu1 %vm2368_vm7, %v18569_v21 }
 0x6f7   :  { %15094 = vmatprep.mubr.msk.bf16.mxu1 %vm2368_vm7, %v18585_v24 }
 0x6fe   :  { %15095 = vmatmul.mubr.msk.bf16.gmra.mrb[232].mxu1 %vm2368_vm7, %v18595_v42 }
 0x6ff   :  { %15098 = vmatprep.mubr.msk.bf16.mxu1 %vm2368_vm7, %v18605_v8 }
 0x706   :  { %15099 = vmatmul.mubr.msk.bf16.gmra.mrb[236].mxu1 %vm2368_vm7, %v18614_v15 }
 0x707   :  { %15152 = vmatprep.mubr.msk.bf16.mxu1 %vm2368_vm7, %v17892_v58  ;;  %v21058_v58 = vld [vmem:[#allocation20_spill] sm:$0xff] }
 0x70e   :  { %15153 = vmatmul.mubr.msk.bf16.vlgmr.msra.gmra.mrb[240].mxu1 %vm2368_vm7, %v17889_v14  ;;  %v16925_v14 = vld [vmem:[%s20979_s10 + $0x8] sm:$0xff]  }
 0x70f   :  { %15156 = vmatprep.mubr.msk.bf16.mxu1 %vm2368_vm7, %v17901_v62  ;;  %15193 = vmatpush3.bf16.msra.mxu1 %v18581_v36  ;;  %v21059_v62 = vld [vmem:[#allocation21_spill] sm:$0xff] }
 0x710   :  { %15194 = vmatprep.subr.bf16.mxu1 %v16924_v39 }
 0x713   :  { %15195 = vmatpush3.bf16.msra.mxu1 %v16924_v39 }
 0x714   :  { %15236 = vmatprep.subr.bf16.mxu1 %v16925_v14 }
 0x716   :  { %15157 = vmatmul.mubr.msk.bf16.gmra.mrb[244].mxu1 %vm2368_vm7, %v17903_v63  ;;  %v21060_v63 = vld [vmem:[#allocation22_spill] sm:$0xff] }
 0x717   :  { %15160 = vmatprep.mubr.msk.bf16.mxu1 %vm2368_vm7, %v17918_v32  ;;  %v21061_v32 = vld [vmem:[#allocation3_spill] sm:$0xff] }
 0x71e   :  { %15161 = vmatmul.mubr.msk.bf16.gmra.mrb[248].mxu1 %vm2368_vm7, %v17925_v2  ;;  %v21062_v2 = vld [vmem:[#allocation2_spill] sm:$0xff] }
 0x71f   :  { %15164 = vmatprep.mubr.msk.bf16.mxu1 %vm2368_vm7, %v17935_v23  ;;  %v21063_v23 = vld [vmem:[#allocation4_spill] sm:$0xff] }
 0x726   :  { %15165 = vmatmul.mubr.msk.bf16.gmra.mrb[252].mxu1 %vm2368_vm7, %v17945_v55  ;;  %v21064_v55 = vld [vmem:[#allocation5_spill] sm:$0xff] }
 0x727   :  { %15168 = vmatprep.mubr.msk.bf16.mxu1 %vm2368_vm7, %v17959_v28  ;;  %v21065_v28 = vld [vmem:[#allocation6_spill] sm:$0xff] }
 0x72e   :  { %15169 = vmatmul.mubr.msk.bf16.gmra.mrb[0].mxu1 %vm2368_vm7, %v17975_v7  ;;  %v21066_v7 = vld [vmem:[#allocation7_spill] sm:$0xff] }
 0x72f   :  { %15172 = vmatprep.mubr.msk.bf16.mxu1 %vm2368_vm7, %v17989_v53  ;;  %v21067_v53 = vld [vmem:[#allocation8_spill] sm:$0xff] }
 0x736   :  { %15173 = vmatmul.mubr.msk.bf16.gmra.mrb[4].mxu1 %vm2368_vm7, %v18003_v52  ;;  %v21068_v52 = vld [vmem:[#allocation9_spill] sm:$0xff] }
 0x737   :  { %15176 = vmatprep.mubr.msk.bf16.mxu1 %vm2368_vm7, %v18011_v59  ;;  %v21069_v59 = vld [vmem:[#allocation10_spill] sm:$0xff] }
 0x73e   :  { %15177 = vmatmul.mubr.msk.bf16.gmra.mrb[8].mxu1 %vm2368_vm7, %v18019_v51  ;;  %v21070_v51 = vld [vmem:[#allocation11_spill] sm:$0xff] }
 0x73f   :  { %15180 = vmatprep.mubr.msk.bf16.mxu1 %vm2368_vm7, %v18027_v38  ;;  %v21071_v38 = vld [vmem:[#allocation12_spill] sm:$0xff] }
 0x746   :  { %15181 = vmatmul.mubr.msk.bf16.gmra.mrb[12].mxu1 %vm2368_vm7, %v18035_v57  ;;  %v21072_v57 = vld [vmem:[#allocation13_spill] sm:$0xff] }
 0x747   :  { %15184 = vmatprep.mubr.msk.bf16.mxu1 %vm2368_vm7, %v18043_v11  ;;  %v21073_v11 = vld [vmem:[#allocation14_spill] sm:$0xff] }
 0x74e   :  { %15185 = vmatmul.mubr.msk.bf16.gmra.mrb[16].mxu1 %vm2368_vm7, %v21058_v58 }
 0x74f   :  { %15188 = vmatprep.mubr.msk.bf16.mxu1 %vm2368_vm7, %v21059_v62 }
 0x756   :  { %15189 = vmatmul.mubr.msk.bf16.gmra.mrb[20].mxu1 %vm2368_vm7, %v21060_v63 }
 0x757   :  { %15196 = vmatprep.mubr.msk.bf16.mxu1 %vm1187_vm9, %v21061_v32 }
 0x75e   :  { %15197 = vmatmul.mubr.msk.bf16.vlgmr.msra.gmra.mrb[240].mxu1 %vm1187_vm9, %v21062_v2 }
 0x75f   :  { %15200 = vmatprep.mubr.msk.bf16.mxu1 %vm1187_vm9, %v21063_v23  ;;  %15237 = vmatpush3.bf16.msra.mxu1 %v16925_v14 }
 0x766   :  { %15201 = vmatmul.mubr.msk.bf16.gmra.mrb[244].mxu1 %vm1187_vm9, %v21064_v55 }
 0x767   :  { %15204 = vmatprep.mubr.msk.bf16.mxu1 %vm1187_vm9, %v21065_v28 }
 0x76e   :  { %15205 = vmatmul.mubr.msk.bf16.gmra.mrb[248].mxu1 %vm1187_vm9, %v21066_v7 }
 0x76f   :  { %15208 = vmatprep.mubr.msk.bf16.mxu1 %vm1187_vm9, %v21067_v53 }
 0x776   :  { %15209 = vmatmul.mubr.msk.bf16.gmra.mrb[252].mxu1 %vm1187_vm9, %v21068_v52 }
 0x777   :  { %15212 = vmatprep.mubr.msk.bf16.mxu1 %vm1187_vm9, %v21069_v59 }
 0x77e   :  { %15213 = vmatmul.mubr.msk.bf16.gmra.mrb[0].mxu1 %vm1187_vm9, %v21070_v51 }
 0x77f   :  { %15216 = vmatprep.mubr.msk.bf16.mxu1 %vm1187_vm9, %v21071_v38 }
 0x786   :  { %15217 = vmatmul.mubr.msk.bf16.gmra.mrb[4].mxu1 %vm1187_vm9, %v21072_v57 }
 0x787   :  { %15220 = vmatprep.mubr.msk.bf16.mxu1 %vm1187_vm9, %v21073_v11 }
 0x78e   :  { %15221 = vmatmul.mubr.msk.bf16.gmra.mrb[8].mxu1 %vm1187_vm9, %v21074_v3 }
 0x78f   :  { %15224 = vmatprep.mubr.msk.bf16.mxu1 %vm1187_vm9, %v21075_v9 }
 0x791   :  { %v15064_v36 = vpop.f32.mrb[200].mxu1 }
 0x792   :  { %v3896_v46 = vpop.f32.mrb[201].mxu1 }
 0x793   :  { %v15065_v17 = vpop.f32.mrb[202].mxu1 }
 0x794   :  { %v4096_v60 = vpack.c.bf16 %v15065_v17, %v15064_v36  ;;  %v3899_v31 = vpop.f32.mrb[203].mxu1 }
 0x795   :  { %v4095_v12 = vpack.c.bf16 %v3899_v31, %v3896_v46 }
 0x796   :  { %15225 = vmatmul.mubr.msk.bf16.gmra.mrb[12].mxu1 %vm1187_vm9, %v21076_v35 }
 0x797   :  { %4124 = vmatpush1.bf16.msra.mxu0 %v4095_v12  ;;  %15228 = vmatprep.mubr.msk.bf16.mxu1 %vm1187_vm9, %v21077_v20  ;;  %v17122_v12 = vld [vmem:[%s21053_s25] ss:$12 sps:$4 sm:$0xff]  }
 0x798   :  { %4125 = vmatprep.subr.bf16.mxu0 %v21078_v43 }
 0x799   :  { %v15068_v56 = vpop.f32.mrb[204].mxu1 }
 0x79a   :  { %v3912_v27 = vpop.f32.mrb[205].mxu1 }
 0x79b   :  { %v15069_v54 = vpop.f32.mrb[206].mxu1  ;;  %4126 = vmatpush1.bf16.msra.mxu0 %v4096_v60 }
 0x79c   :  { %v4098_v18 = vpack.c.bf16 %v15069_v54, %v15068_v56  ;;  %v3915_v44 = vpop.f32.mrb[207].mxu1  ;;  %4127 = vmatprep.subr.bf16.mxu0 %v21078_v43 }
 0x79d   :  { %v4097_v13 = vpack.c.bf16 %v3915_v44, %v3912_v27  ;;  %v17133_v44 = vld [vmem:[%s21053_s25 + $0x94] ss:$12 sps:$4 sm:$0xff]  }
 0x79e   :  { %15229 = vmatmul.mubr.msk.bf16.gmra.mrb[16].mxu1 %vm1187_vm9, %v17638_v10 }
 0x79f   :  { %4128 = vmatpush1.bf16.msra.mxu0 %v4097_v13  ;;  %15232 = vmatprep.mubr.msk.bf16.mxu1 %vm1187_vm9, %v21079_v40  ;;  %v17134_v13 = vld [vmem:[%s21053_s25 + $0x90] ss:$12 sps:$4 sm:$0xff]   ;;  %v17136_v40 = vld [vmem:[%s21053_s25 + $0xa8] ss:$12 sps:$4 sm:$0xff]  }
 0x7a0   :  { %4129 = vmatprep.subr.bf16.mxu0 %v21078_v43 }
 0x7a1   :  { %v15072_v5 = vpop.f32.mrb[208].mxu1 }
 0x7a2   :  { %v3928_v37 = vpop.f32.mrb[209].mxu1 }
 0x7a3   :  { %v15073_v48 = vpop.f32.mrb[210].mxu1  ;;  %4130 = vmatpush1.bf16.msra.mxu0 %v4098_v18  ;;  %v17126_v18 = vld [vmem:[%s21053_s25 + $0x30] ss:$12 sps:$4 sm:$0xff]  }
 0x7a4   :  { %v4100_v49 = vpack.c.bf16 %v15073_v48, %v15072_v5  ;;  %v3931_v1 = vpop.f32.mrb[211].mxu1  ;;  %4131 = vmatprep.subr.bf16.mxu0 %v21078_v43  ;;  %v17137_v5 = vld [vmem:[%s21053_s25 + $0xc4] ss:$12 sps:$4 sm:$0xff]   ;;  %v17139_v48 = vld [vmem:[%s21053_s25 + $0xdc] ss:$12 sps:$4 sm:$0xff]  }
 0x7a5   :  { %v4099_v19 = vpack.c.bf16 %v3931_v1, %v3928_v37  ;;  %v17138_v37 = vld [vmem:[%s21053_s25 + $0xc0] ss:$12 sps:$4 sm:$0xff]  }
 0x7a6   :  { %15233 = vmatmul.mubr.msk.bf16.gmra.mrb[20].mxu1 %vm1187_vm9, %v17647_v33  ;;  %v17141_v1 = vld [vmem:[%s21053_s25 + $0xf4] ss:$12 sps:$4 sm:$0xff]  }
 0x7a7   :  { %4132 = vmatpush1.bf16.msra.mxu0 %v4099_v19  ;;  %15238 = vmatprep.mubr.msk.bf16.mxu1 %vm2368_vm7, %v18396_v29  ;;  %v17142_v19 = vld [vmem:[%s21053_s25 + $0xf0] ss:$12 sps:$4 sm:$0xff]  }
 0x7a8   :  { %4133 = vmatprep.subr.bf16.mxu0 %v21078_v43 }
 0x7a9   :  { %v15076_v10 = vpop.f32.mrb[212].mxu1 }
 0x7aa   :  { %v3944_v39 = vpop.f32.mrb[213].mxu1 }
 0x7ab   :  { %v15077_v14 = vpop.f32.mrb[214].mxu1  ;;  %4134 = vmatpush1.bf16.msra.mxu0 %v4100_v49  ;;  %v17140_v49 = vld [vmem:[%s21053_s25 + $0xd8] ss:$12 sps:$4 sm:$0xff]  }
 0x7ac   :  { %v3947_v58 = vpop.f32.mrb[215].mxu1  ;;  %4135 = vmatprep.subr.bf16.mxu0 %v21078_v43  ;;  %v4102_v62 = vpack.c.bf16 %v15077_v14, %v15076_v10  ;;  %v17143_v10 = vld [vmem:[%s21053_s25 + $0x10c] ss:$12 sps:$4 sm:$0xff]   ;;  %v17145_v14 = vld [vmem:[%s21053_s25 + $0x124] ss:$12 sps:$4 sm:$0xff]  }
 0x7ad   :  { %v4101_v63 = vpack.c.bf16 %v3947_v58, %v3944_v39  ;;  %v17144_v39 = vld [vmem:[%s21053_s25 + $0x108] ss:$12 sps:$4 sm:$0xff]   ;;  %v17146_v58 = vld [vmem:[%s21053_s25 + $0x120] ss:$12 sps:$4 sm:$0xff]  }
 0x7ae   :  { %15239 = vmatmul.mubr.msk.bf16.vlgmr.msra.gmra.mrb[240].mxu1 %vm2368_vm7, %v18393_v16 }
 0x7af   :  { %4136 = vmatpush1.bf16.msra.mxu0 %v4101_v63  ;;  %15242 = vmatprep.mubr.msk.bf16.mxu1 %vm2368_vm7, %v18406_v6  ;;  %v17148_v63 = vld [vmem:[%s21053_s25 + $0x138] ss:$12 sps:$4 sm:$0xff]  }
 0x7b0   :  { %4137 = vmatprep.subr.bf16.mxu0 %v21078_v43 }
 0x7b1   :  { %v15080_v29 = vpop.f32.mrb[216].mxu1 }
 0x7b2   :  { %v3960_v33 = vpop.f32.mrb[217].mxu1 }
 0x7b3   :  { %v15081_v32 = vpop.f32.mrb[218].mxu1  ;;  %4138 = vmatpush1.bf16.msra.mxu0 %v4102_v62  ;;  %v17147_v62 = vld [vmem:[%s21053_s25 + $0x13c] ss:$12 sps:$4 sm:$0xff]  }
 0x7b4   :  { %v4104_v2 = vpack.c.bf16 %v15081_v32, %v15080_v29  ;;  %v3963_v23 = vpop.f32.mrb[219].mxu1  ;;  %4139 = vmatprep.subr.bf16.mxu0 %v21078_v43  ;;  %v17149_v29 = vld [vmem:[%s21053_s25 + $0x154] ss:$12 sps:$4 sm:$0xff]   ;;  %v17151_v32 = vld [vmem:[%s21053_s25 + $0x16c] ss:$12 sps:$4 sm:$0xff]  }
 0x7b5   :  { %v4103_v55 = vpack.c.bf16 %v3963_v23, %v3960_v33  ;;  %v17150_v33 = vld [vmem:[%s21053_s25 + $0x150] ss:$12 sps:$4 sm:$0xff]  }
 0x7b6   :  { %15243 = vmatmul.mubr.msk.bf16.gmra.mrb[244].mxu1 %vm2368_vm7, %v18409_v4  ;;  %v17153_v23 = vld [vmem:[%s21053_s25 + $0x184] ss:$12 sps:$4 sm:$0xff]  }
 0x7b7   :  { %4140 = vmatpush1.bf16.msra.mxu0 %v4103_v55  ;;  %15246 = vmatprep.mubr.msk.bf16.mxu1 %vm2368_vm7, %v18416_v50  ;;  %v17154_v55 = vld [vmem:[%s21053_s25 + $0x180] ss:$12 sps:$4 sm:$0xff]  }
 0x7b8   :  { %4141 = vmatprep.subr.bf16.mxu0 %v21078_v43 }
 0x7b9   :  { %v15084_v16 = vpop.f32.mrb[220].mxu1 }
 0x7ba   :  { %v3976_v6 = vpop.f32.mrb[221].mxu1 }
 0x7bb   :  { %v15085_v28 = vpop.f32.mrb[222].mxu1  ;;  %4142 = vmatpush1.bf16.msra.mxu0 %v4104_v2  ;;  %v17152_v2 = vld [vmem:[%s21053_s25 + $0x168] ss:$12 sps:$4 sm:$0xff]  }
 0x7bc   :  { %v3979_v7 = vpop.f32.mrb[223].mxu1  ;;  %4143 = vmatprep.subr.bf16.mxu0 %v21078_v43  ;;  %v4106_v53 = vpack.c.bf16 %v15085_v28, %v15084_v16  ;;  %v17155_v16 = vld [vmem:[%s21053_s25 + $0x19c] ss:$12 sps:$4 sm:$0xff]   ;;  %v17157_v28 = vld [vmem:[%s21053_s25 + $0x1b4] ss:$12 sps:$4 sm:$0xff]  }
 0x7bd   :  { %v4105_v52 = vpack.c.bf16 %v3979_v7, %v3976_v6  ;;  %v17156_v6 = vld [vmem:[%s21053_s25 + $0x198] ss:$12 sps:$4 sm:$0xff]   ;;  %v17158_v7 = vld [vmem:[%s21053_s25 + $0x1b0] ss:$12 sps:$4 sm:$0xff]  }
 0x7be   :  { %15247 = vmatmul.mubr.msk.bf16.gmra.mrb[248].mxu1 %vm2368_vm7, %v18426_v25 }
 0x7bf   :  { %4144 = vmatpush1.bf16.msra.mxu0 %v4105_v52  ;;  %15250 = vmatprep.mubr.msk.bf16.mxu1 %vm2368_vm7, %v18444_v45  ;;  %v17160_v52 = vld [vmem:[%s21053_s25 + $0x1c8] ss:$12 sps:$4 sm:$0xff]  }
 0x7c0   :  { %4145 = vmatprep.subr.bf16.mxu0 %v21078_v43 }
 0x7c1   :  { %v15088_v4 = vpop.f32.mrb[224].mxu1 }
 0x7c2   :  { %v3992_v50 = vpop.f32.mrb[225].mxu1 }
 0x7c3   :  { %v15089_v59 = vpop.f32.mrb[226].mxu1  ;;  %4146 = vmatpush1.bf16.msra.mxu0 %v4106_v53  ;;  %v17159_v53 = vld [vmem:[%s21053_s25 + $0x1cc] ss:$12 sps:$4 sm:$0xff]  }
 0x7c4   :  { %v4108_v51 = vpack.c.bf16 %v15089_v59, %v15088_v4  ;;  %v3995_v38 = vpop.f32.mrb[227].mxu1  ;;  %4147 = vmatprep.subr.bf16.mxu0 %v21078_v43  ;;  %v17161_v4 = vld [vmem:[%s21053_s25 + $0x8] ss:$12 sps:$4 sm:$0xff]   ;;  %v17163_v59 = vld [vmem:[%s21053_s25 + $0x38] ss:$12 sps:$4 sm:$0xff]  }
 0x7c5   :  { %v4107_v57 = vpack.c.bf16 %v3995_v38, %v3992_v50  ;;  %v17162_v50 = vld [vmem:[%s21053_s25 + $0x20] ss:$12 sps:$4 sm:$0xff]   ;;  %v17165_v38 = vld [vmem:[%s21053_s25 + $0x68] ss:$12 sps:$4 sm:$0xff]  }
 0x7c6   :  { %15251 = vmatmul.mubr.msk.bf16.gmra.mrb[252].mxu1 %vm2368_vm7, %v18460_v0 }
 0x7c7   :  { %4148 = vmatpush1.bf16.msra.mxu0 %v4107_v57  ;;  %15254 = vmatprep.mubr.msk.bf16.mxu1 %vm2368_vm7, %v18476_v61  ;;  %v17166_v57 = vld [vmem:[%s21053_s25 + $0x80] ss:$12 sps:$4 sm:$0xff]  }
 0x7c8   :  { %4149 = vmatprep.subr.bf16.mxu0 %v21078_v43 }
 0x7c9   :  { %v15092_v25 = vpop.f32.mrb[228].mxu1 }
 0x7ca   :  { %v4008_v45 = vpop.f32.mrb[229].mxu1 }
 0x7cb   :  { %v15093_v11 = vpop.f32.mrb[230].mxu1  ;;  %4150 = vmatpush1.bf16.msra.mxu0 %v4108_v51  ;;  %v17164_v51 = vld [vmem:[%s21053_s25 + $0x50] ss:$12 sps:$4 sm:$0xff]  }
 0x7cc   :  { %v4110_v3 = vpack.c.bf16 %v15093_v11, %v15092_v25  ;;  %v4011_v9 = vpop.f32.mrb[231].mxu1  ;;  %4151 = vmatprep.subr.bf16.mxu0 %v21078_v43  ;;  %v17167_v25 = vld [vmem:[%s21053_s25 + $0x98] ss:$12 sps:$4 sm:$0xff]   ;;  %v17169_v11 = vld [vmem:[%s21053_s25 + $0xc8] ss:$12 sps:$4 sm:$0xff]  }
 0x7cd   :  { %v4109_v36 = vpack.c.bf16 %v4011_v9, %v4008_v45  ;;  %v17168_v45 = vld [vmem:[%s21053_s25 + $0xb0] ss:$12 sps:$4 sm:$0xff]   ;;  %v17171_v9 = vld [vmem:[%s21053_s25 + $0xf8] ss:$12 sps:$4 sm:$0xff]  }
 0x7ce   :  { %15255 = vmatmul.mubr.msk.bf16.gmra.mrb[0].mxu1 %vm2368_vm7, %v18494_v22  ;;  %v17123_v22 = vld [vmem:[%s21053_s25 + $0x1c] ss:$12 sps:$4 sm:$0xff]  }
 0x7cf   :  { %4152 = vmatpush1.bf16.msra.mxu0 %v4109_v36  ;;  %15258 = vmatprep.mubr.msk.bf16.mxu1 %vm2368_vm7, %v18512_v47  ;;  %v17172_v36 = vld [vmem:[%s21053_s25 + $0x110] ss:$12 sps:$4 sm:$0xff]  }
 0x7d0   :  { %4153 = vmatprep.subr.bf16.mxu0 %v21078_v43 }
 0x7d1   :  { %v15096_v0 = vpop.f32.mrb[232].mxu1 }
 0x7d2   :  { %v4024_v61 = vpop.f32.mrb[233].mxu1 }
 0x7d3   :  { %v15097_v46 = vpop.f32.mrb[234].mxu1  ;;  %4154 = vmatpush1.bf16.msra.mxu0 %v4110_v3  ;;  %v17170_v3 = vld [vmem:[%s21053_s25 + $0xe0] ss:$12 sps:$4 sm:$0xff]  }
 0x7d4   :  { %v4112_v17 = vpack.c.bf16 %v15097_v46, %v15096_v0  ;;  %v4027_v60 = vpop.f32.mrb[235].mxu1  ;;  %v17173_v0 = vld [vmem:[%s21053_s25 + $0x128] ss:$12 sps:$4 sm:$0xff]   ;;  %v17175_v46 = vld [vmem:[%s21053_s25 + $0x158] ss:$12 sps:$4 sm:$0xff]  }
 0x7d5   :  { %v4111_v31 = vpack.c.bf16 %v4027_v60, %v4024_v61  ;;  %v17174_v61 = vld [vmem:[%s21053_s25 + $0x140] ss:$12 sps:$4 sm:$0xff]  }
 0x7d6   :  { %4156 = vmatmul.mubr.bf16.vlgmr.msra.gmra.mrb[200].mxu0 %v17122_v12  ;;  %15259 = vmatmul.mubr.msk.bf16.gmra.mrb[4].mxu1 %vm2368_vm7, %v18528_v26  ;;  %v17124_v26 = vld [vmem:[%s21053_s25 + $0x18] ss:$12 sps:$4 sm:$0xff]  }
 0x7d7   :  { %15102 = vmatprep.subr.bf16.mxu0 %v4111_v31  ;;  %15262 = vmatprep.mubr.msk.bf16.mxu1 %vm2368_vm7, %v18538_v30  ;;  %v17125_v30 = vld [vmem:[%s21053_s25 + $0x34] ss:$12 sps:$4 sm:$0xff]  }
 0x7d8   :  { %15103 = vmatpush3.bf16.msra.mxu0 %v4111_v31  ;;  %4163 = vmatprep.mubr.bf16.mxu0 %v17123_v22  ;;  %v17176_v22 = vld [vmem:[%s21053_s25 + $0x170] ss:$12 sps:$4 sm:$0xff]  }
 0x7d9   :  { %v15100_v47 = vpop.f32.mrb[236].mxu1  ;;  %15104 = vmatprep.subr.bf16.mxu0 %v4112_v17 }
 0x7da   :  { %v4040_v35 = vpop.f32.mrb[237].mxu1 }
 0x7db   :  { %v15101_v20 = vpop.f32.mrb[238].mxu1 }
 0x7dc   :  { %v4114_v56 = vpack.c.bf16 %v15101_v20, %v15100_v47  ;;  %v4043_v27 = vpop.f32.mrb[239].mxu1  ;;  %15105 = vmatpush3.bf16.msra.mxu0 %v4112_v17  ;;  %v17177_v47 = vld [vmem:[%s21053_s25 + $0x188] ss:$12 sps:$4 sm:$0xff]  }
 0x7dd   :  { %v4113_v54 = vpack.c.bf16 %v4043_v27, %v4040_v35 }
 0x7de   :  { %4164 = vmatmul.mubr.bf16.gmra.mrb[204].mxu0 %v17124_v26  ;;  %15263 = vmatmul.mubr.msk.bf16.gmra.mrb[8].mxu1 %vm2368_vm7, %v18549_v41  ;;  %v17127_v41 = vld [vmem:[%s21053_s25 + $0x4c] ss:$12 sps:$4 sm:$0xff]  }
 0x7df   :  { %15106 = vmatprep.subr.bf16.mxu0 %v4113_v54  ;;  %15266 = vmatprep.mubr.msk.bf16.mxu1 %vm2368_vm7, %v18559_v34  ;;  %v17128_v34 = vld [vmem:[%s21053_s25 + $0x48] ss:$12 sps:$4 sm:$0xff]   ;;  %v17179_v26 = vld [vmem:[%s21053_s25 + $0x1b8] ss:$12 sps:$4 sm:$0xff]  }
 0x7e0   :  { %15107 = vmatpush3.bf16.msra.mxu0 %v4113_v54  ;;  %4171 = vmatprep.mubr.bf16.mxu0 %v17125_v30  ;;  %v17178_v54 = vld [vmem:[%s21053_s25 + $0x1a0] ss:$12 sps:$4 sm:$0xff]  }
 0x7e1   :  { %15108 = vmatprep.subr.bf16.mxu0 %v4114_v56 }
 0x7e4   :  { %15109 = vmatpush3.bf16.msra.mxu0 %v4114_v56 }
 0x7e6   :  { %4172 = vmatmul.mubr.bf16.gmra.mrb[208].mxu0 %v17126_v18  ;;  %15267 = vmatmul.mubr.msk.bf16.gmra.mrb[12].mxu1 %vm2368_vm7, %v18569_v21  ;;  %v17129_v21 = vld [vmem:[%s21053_s25 + $0x64] ss:$12 sps:$4 sm:$0xff]  }
 0x7e7   :  { %15270 = vmatprep.mubr.msk.bf16.mxu1 %vm2368_vm7, %v18585_v24  ;;  %4179 = vmatprep.mubr.bf16.mxu0 %v17127_v41  ;;  %v17130_v24 = vld [vmem:[%s21053_s25 + $0x60] ss:$12 sps:$4 sm:$0xff]  }
 0x7ee   :  { %4180 = vmatmul.mubr.bf16.gmra.mrb[212].mxu0 %v17128_v34  ;;  %15271 = vmatmul.mubr.msk.bf16.gmra.mrb[16].mxu1 %vm2368_vm7, %v18595_v42  ;;  %v17131_v42 = vld [vmem:[%s21053_s25 + $0x7c] ss:$12 sps:$4 sm:$0xff]  }
 0x7ef   :  { %15274 = vmatprep.mubr.msk.bf16.mxu1 %vm2368_vm7, %v18605_v8  ;;  %4187 = vmatprep.mubr.bf16.mxu0 %v17129_v21  ;;  %v17132_v8 = vld [vmem:[%s21053_s25 + $0x78] ss:$12 sps:$4 sm:$0xff]   ;;  %v17180_v21 = vld [vmem:[%s21053_s25 + $0x1d0] ss:$12 sps:$4 sm:$0xff]  }
 0x7f6   :  { %4188 = vmatmul.mubr.bf16.gmra.mrb[216].mxu0 %v17130_v24  ;;  %15275 = vmatmul.mubr.msk.bf16.gmra.mrb[20].mxu1 %vm2368_vm7, %v18614_v15  ;;  %v17135_v15 = vld [vmem:[%s21053_s25 + $0xac] ss:$12 sps:$4 sm:$0xff]  }
 0x7f7   :  { %4195 = vmatprep.mubr.bf16.mxu0 %v17131_v42 }
 0x7fe   :  { %4196 = vmatmul.mubr.bf16.gmra.mrb[220].mxu0 %v17132_v8 }
 0x7ff   :  { %4203 = vmatprep.mubr.bf16.mxu0 %v17133_v44 }
 0x806   :  { %4204 = vmatmul.mubr.bf16.gmra.mrb[224].mxu0 %v17134_v13 }
 0x807   :  { %4211 = vmatprep.mubr.bf16.mxu0 %v17135_v15 }
 0x80e   :  { %4212 = vmatmul.mubr.bf16.gmra.mrb[228].mxu0 %v17136_v40 }
 0x80f   :  { %4219 = vmatprep.mubr.bf16.mxu0 %v17137_v5 }
 0x816   :  { %4220 = vmatmul.mubr.bf16.gmra.mrb[232].mxu0 %v17138_v37 }
 0x817   :  { %4227 = vmatprep.mubr.bf16.mxu0 %v17139_v48 }
 0x81e   :  { %4228 = vmatmul.mubr.bf16.gmra.mrb[236].mxu0 %v17140_v49  ;;  %v16926_v49 = vld [vmem:[%s20979_s10 + $0x10] sm:$0xff]  }
 0x81f   :  { %4235 = vmatprep.mubr.bf16.mxu0 %v17141_v1  ;;  %15278 = vmatprep.subr.bf16.mxu1 %v16926_v49 }
 0x820   :  { %15279 = vmatpush3.bf16.msra.mxu1 %v16926_v49 }
 0x826   :  { %4236 = vmatmul.mubr.bf16.gmra.mrb[240].mxu0 %v17142_v19 }
 0x827   :  { %4243 = vmatprep.mubr.bf16.mxu0 %v17143_v10 }
 0x82e   :  { %4244 = vmatmul.mubr.bf16.gmra.mrb[244].mxu0 %v17144_v39 }
 0x82f   :  { %4251 = vmatprep.mubr.bf16.mxu0 %v17145_v14 }
 0x836   :  { %4252 = vmatmul.mubr.bf16.gmra.mrb[248].mxu0 %v17146_v58 }
 0x837   :  { %4259 = vmatprep.mubr.bf16.mxu0 %v17147_v62 }
 0x83e   :  { %4260 = vmatmul.mubr.bf16.gmra.mrb[252].mxu0 %v17148_v63 }
 0x83f   :  { %4267 = vmatprep.mubr.bf16.mxu0 %v17149_v29 }
 0x846   :  { %4268 = vmatmul.mubr.bf16.gmra.mrb[0].mxu0 %v17150_v33 }
 0x847   :  { %4275 = vmatprep.mubr.bf16.mxu0 %v17151_v32 }
 0x84e   :  { %4276 = vmatmul.mubr.bf16.gmra.mrb[4].mxu0 %v17152_v2 }
 0x84f   :  { %4283 = vmatprep.mubr.bf16.mxu0 %v17153_v23 }
 0x856   :  { %4284 = vmatmul.mubr.bf16.gmra.mrb[8].mxu0 %v17154_v55 }
 0x857   :  { %4291 = vmatprep.mubr.bf16.mxu0 %v17155_v16 }
 0x85e   :  { %4292 = vmatmul.mubr.bf16.gmra.mrb[12].mxu0 %v17156_v6 }
 0x85f   :  { %4299 = vmatprep.mubr.bf16.mxu0 %v17157_v28 }
 0x866   :  { %4300 = vmatmul.mubr.bf16.gmra.mrb[16].mxu0 %v17158_v7 }
 0x867   :  { %4307 = vmatprep.mubr.bf16.mxu0 %v17159_v53 }
 0x86e   :  { %4308 = vmatmul.mubr.bf16.gmra.mrb[20].mxu0 %v17160_v52 }
 0x86f   :  { %15110 = vmatprep.mubr.msk.bf16.mxu0 %vm577_vm6, %v17161_v4 }
 0x876   :  { %15111 = vmatmul.mubr.msk.bf16.vlgmr.msra.gmra.mrb[24].mxu0 %vm577_vm6, %v17162_v50 }
 0x877   :  { %15114 = vmatprep.mubr.msk.bf16.mxu0 %vm577_vm6, %v17163_v59 }
 0x87e   :  { %15115 = vmatmul.mubr.msk.bf16.gmra.mrb[28].mxu0 %vm577_vm6, %v17164_v51 }
 0x87f   :  { %15118 = vmatprep.mubr.msk.bf16.mxu0 %vm577_vm6, %v17165_v38 }
 0x886   :  { %15119 = vmatmul.mubr.msk.bf16.gmra.mrb[32].mxu0 %vm577_vm6, %v17166_v57 }
 0x887   :  { %15122 = vmatprep.mubr.msk.bf16.mxu0 %vm577_vm6, %v17167_v25 }
 0x88e   :  { %15123 = vmatmul.mubr.msk.bf16.gmra.mrb[36].mxu0 %vm577_vm6, %v17168_v45 }
 0x88f   :  { %15126 = vmatprep.mubr.msk.bf16.mxu0 %vm577_vm6, %v17169_v11 }
 0x896   :  { %15127 = vmatmul.mubr.msk.bf16.gmra.mrb[40].mxu0 %vm577_vm6, %v17170_v3 }
 0x897   :  { %15130 = vmatprep.mubr.msk.bf16.mxu0 %vm577_vm6, %v17171_v9 }
 0x89e   :  { %15131 = vmatmul.mubr.msk.bf16.gmra.mrb[44].mxu0 %vm577_vm6, %v17172_v36 }
 0x89f   :  { %15134 = vmatprep.mubr.msk.bf16.mxu0 %vm577_vm6, %v17173_v0 }
 0x8a6   :  { %15135 = vmatmul.mubr.msk.bf16.gmra.mrb[48].mxu0 %vm577_vm6, %v17174_v61 }
 0x8a7   :  { %15138 = vmatprep.mubr.msk.bf16.mxu0 %vm577_vm6, %v17175_v46 }
 0x8a9   :  { %v18945_v17 = vpop.f32.mrb[200].mxu0 }
 0x8aa   :  { %v4159_v60 = vpop.f32.mrb[201].mxu0 }
 0x8ab   :  { %v18947_v31 = vpop.f32.mrb[202].mxu0 }
 0x8ac   :  { %v4162_v12 = vpop.f32.mrb[203].mxu0 }
 0x8ae   :  { %15139 = vmatmul.mubr.msk.bf16.gmra.mrb[52].mxu0 %vm577_vm6, %v17176_v22 }
 0x8af   :  { %15142 = vmatprep.mubr.msk.bf16.mxu0 %vm577_vm6, %v17177_v47 }
 0x8b1   :  { %v18957_v35 = vpop.f32.mrb[204].mxu0 }
 0x8b2   :  { %v4167_v20 = vpop.f32.mrb[205].mxu0 }
 0x8b3   :  { %v18959_v56 = vpop.f32.mrb[206].mxu0 }
 0x8b4   :  { %v4170_v27 = vpop.f32.mrb[207].mxu0 }
 0x8b6   :  { %15143 = vmatmul.mubr.msk.bf16.gmra.mrb[56].mxu0 %vm577_vm6, %v17178_v54 }
 0x8b7   :  { %15146 = vmatprep.mubr.msk.bf16.mxu0 %vm577_vm6, %v17179_v26 }
 0x8b9   :  { %v18969_v30 = vpop.f32.mrb[208].mxu0 }
 0x8ba   :  { %v4175_v18 = vpop.f32.mrb[209].mxu0 }
 0x8bb   :  { %v18971_v41 = vpop.f32.mrb[210].mxu0 }
 0x8bc   :  { %v4178_v34 = vpop.f32.mrb[211].mxu0 }
 0x8be   :  { %15147 = vmatmul.mubr.msk.bf16.gmra.mrb[60].mxu0 %vm577_vm6, %v17180_v21 }
 0x8c1   :  { %v18977_v24 = vpop.f32.mrb[212].mxu0 }
 0x8c2   :  { %v4183_v42 = vpop.f32.mrb[213].mxu0 }
 0x8c3   :  { %v18979_v8 = vpop.f32.mrb[214].mxu0 }
 0x8c4   :  { %v4186_v44 = vpop.f32.mrb[215].mxu0 }
 0x8c9   :  { %v18981_v13 = vpop.f32.mrb[216].mxu0 }
 0x8ca   :  { %v4191_v15 = vpop.f32.mrb[217].mxu0 }
 0x8cb   :  { %v18983_v40 = vpop.f32.mrb[218].mxu0 }
 0x8cc   :  { %v4194_v5 = vpop.f32.mrb[219].mxu0 }
 0x8d1   :  { %v18985_v37 = vpop.f32.mrb[220].mxu0 }
 0x8d2   :  { %v4199_v48 = vpop.f32.mrb[221].mxu0 }
 0x8d3   :  { %v18990_v1 = vpop.f32.mrb[222].mxu0 }
 0x8d4   :  { %v4202_v19 = vpop.f32.mrb[223].mxu0 }
 0x8d9   :  { %v18992_v10 = vpop.f32.mrb[224].mxu0 }
 0x8da   :  { %v4207_v39 = vpop.f32.mrb[225].mxu0 }
 0x8db   :  { %v18994_v14 = vpop.f32.mrb[226].mxu0 }
 0x8dc   :  { %v4210_v58 = vpop.f32.mrb[227].mxu0 }
 0x8e1   :  { %v18996_v62 = vpop.f32.mrb[228].mxu0 }
 0x8e2   :  { %v4215_v63 = vpop.f32.mrb[229].mxu0 }
 0x8e3   :  { %v18998_v29 = vpop.f32.mrb[230].mxu0 }
 0x8e4   :  { %v4218_v33 = vpop.f32.mrb[231].mxu0 }
 0x8e9   :  { %v19000_v32 = vpop.f32.mrb[232].mxu0 }
 0x8ea   :  { %v4223_v2 = vpop.f32.mrb[233].mxu0 }
 0x8eb   :  { %v19002_v23 = vpop.f32.mrb[234].mxu0 }
 0x8ec   :  { %v4226_v55 = vpop.f32.mrb[235].mxu0 }
 0x8ed   :  { %v19051_v55 = vld [vmem:[%s20978_s8 + $0x2] ss:$0 sm:$0xff] }
 0x8f1   :  { %v19004_v16 = vpop.f32.mrb[236].mxu0 }
 0x8f2   :  { %v4231_v6 = vpop.f32.mrb[237].mxu0 }
 0x8f3   :  { %v19006_v28 = vpop.f32.mrb[238].mxu0  ;;  %v4166_v6 = vadd.f32 %v19051_v55, %v18957_v35 }
 0x8f4   :  { %v4234_v7 = vpop.f32.mrb[239].mxu0 }
 0x8f5   :  { %v4158_v7 = vadd.f32 %v19051_v55, %v18945_v17 }
 0x8f9   :  { %v19008_v53 = vpop.f32.mrb[240].mxu0 }
 0x8fa   :  { %v4239_v52 = vpop.f32.mrb[241].mxu0 }
 0x8fb   :  { %v19010_v4 = vpop.f32.mrb[242].mxu0 }
 0x8fc   :  { %v4242_v50 = vpop.f32.mrb[243].mxu0 }
 0x8fd   :  { %v4169_v50 = vadd.f32 %v19051_v55, %v18959_v56  ;;  %v4182_v56 = vadd.f32 %v19051_v55, %v18977_v24 }
 0x901   :  { %v19012_v59 = vpop.f32.mrb[244].mxu0 }
 0x902   :  { %v4247_v51 = vpop.f32.mrb[245].mxu0 }
 0x903   :  { %v19014_v38 = vpop.f32.mrb[246].mxu0 }
 0x904   :  { %v4250_v57 = vpop.f32.mrb[247].mxu0 }
 0x909   :  { %v19016_v25 = vpop.f32.mrb[248].mxu0 }
 0x90a   :  { %v4255_v45 = vpop.f32.mrb[249].mxu0 }
 0x90b   :  { %v19018_v11 = vpop.f32.mrb[250].mxu0  ;;  %v4161_v45 = vadd.f32 %v19051_v55, %v18947_v31  ;;  %v4174_v31 = vadd.f32 %v19051_v55, %v18969_v30 }
 0x90c   :  { %v4258_v3 = vpop.f32.mrb[251].mxu0 }
 0x911   :  { %v19020_v9 = vpop.f32.mrb[252].mxu0 }
 0x912   :  { %v4263_v36 = vpop.f32.mrb[253].mxu0 }
 0x913   :  { %v19022_v0 = vpop.f32.mrb[254].mxu0 }
 0x914   :  { %v4266_v61 = vpop.f32.mrb[255].mxu0 }
 0x919   :  { %v19024_v46 = vpop.f32.mrb[0].mxu0 }
 0x91a   :  { %v4271_v60 = vpop.f32.mrb[1].mxu0 }
 0x91b   :  { %v19026_v12 = vpop.f32.mrb[2].mxu0 }
 0x91c   :  { %v4274_v22 = vpop.f32.mrb[3].mxu0 }
 0x921   :  { %v19028_v47 = vpop.f32.mrb[4].mxu0 }
 0x922   :  { %v4279_v20 = vpop.f32.mrb[5].mxu0 }
 0x923   :  { %v19030_v27 = vpop.f32.mrb[6].mxu0 }
 0x924   :  { %v4282_v54 = vpop.f32.mrb[7].mxu0 }
 0x929   :  { %v19032_v26 = vpop.f32.mrb[8].mxu0 }
 0x92a   :  { %v4287_v18 = vpop.f32.mrb[9].mxu0 }
 0x92b   :  { %v19034_v34 = vpop.f32.mrb[10].mxu0 }
 0x92c   :  { %v4290_v21 = vpop.f32.mrb[11].mxu0 }
 0x931   :  { %v19036_v42 = vpop.f32.mrb[12].mxu0 }
 0x932   :  { %v4295_v44 = vpop.f32.mrb[13].mxu0 }
 0x933   :  { %v19038_v15 = vpop.f32.mrb[14].mxu0 }
 0x934   :  { %v4298_v5 = vpop.f32.mrb[15].mxu0 }
 0x939   :  { %v19040_v48 = vpop.f32.mrb[16].mxu0 }
 0x93a   :  { %v4303_v49 = vpop.f32.mrb[17].mxu0 }
 0x93b   :  { %v19042_v19 = vpop.f32.mrb[18].mxu0 }
 0x93c   :  { %v4306_v39 = vpop.f32.mrb[19].mxu0 }
 0x941   :  { %v19044_v58 = vpop.f32.mrb[20].mxu0 }
 0x942   :  { %v4311_v63 = vpop.f32.mrb[21].mxu0 }
 0x943   :  { %v19046_v33 = vpop.f32.mrb[22].mxu0  ;;  %v4185_v63 = vadd.f32 %v19051_v55, %v18979_v8 }
 0x944   :  { %v4314_v2 = vpop.f32.mrb[23].mxu0 }
 0x949   :  { %v15112_v52 = vpop.f32.mrb[24].mxu0 }
 0x94a   :  { %v4359_v51 = vadd.f32 %v15112_v52, %v4166_v6  ;;  %v4350_v57 = vpop.f32.mrb[25].mxu0  ;;  %v4177_v52 = vadd.f32 %v19051_v55, %v18971_v41  ;;  %v4198_v41 = vadd.f32 %v19051_v55, %v18985_v37 }
 0x94b   :  { %v4351_v3 = vadd.f32 %v4350_v57, %v4158_v7  ;;  %v15113_v36 = vpop.f32.mrb[26].mxu0 }
 0x94c   :  { %v4551_v61 = vmul.f32 0.01, %v4359_v51  ;;  %v4362_v60 = vadd.f32 %v15113_v36, %v4169_v50  ;;  %v4353_v22 = vpop.f32.mrb[27].mxu0  ;;  %vm4511_vm13 = vcmp.ge.f32.partialorder %v4359_v51, 0.0 }
 0x94d   :  { %v4549_v20 = vmul.f32 0.01, %v4351_v3  ;;  %v4354_v35 = vadd.f32 %v4353_v22, %v4161_v45  ;;  %vm4509_vm14 = vcmp.ge.f32.partialorder %v4351_v3, 0.0  ;;  %v4190_v22 = vadd.f32 %v19051_v55, %v18981_v13 }
 0x94e   :  { %vm4512_vm15 = vcmp.ge.f32.partialorder %v4362_v60, 0.0  ;;  %v4552_v17 = vmul.f32 0.01, %v4362_v60  ;;  %v4591_v18 = vsel %vm4511_vm13, %v4359_v51, %v4551_v61 }
 0x94f   :  { %vm4510_vm0 = vcmp.ge.f32.partialorder %v4354_v35, 0.0  ;;  %v4550_v54 = vmul.f32 0.01, %v4354_v35  ;;  %v4589_v44 = vsel %vm4509_vm14, %v4351_v3, %v4549_v20 }
 0x950   :  { %v4592_v21 = vsel %vm4512_vm15, %v4362_v60, %v4552_v17 }
 0x951   :  { %v5285_v5 = vpack.c.bf16 %v4592_v21, %v4591_v18  ;;  %v4590_v49 = vsel %vm4510_vm0, %v4354_v35, %v4550_v54  ;;  %v15116_v39 = vpop.f32.mrb[28].mxu0 }
 0x952   :  { %v4375_v2 = vadd.f32 %v15116_v39, %v4182_v56  ;;  %v4366_v6 = vpop.f32.mrb[29].mxu0  ;;  %v5284_v7 = vpack.c.bf16 %v4590_v49, %v4589_v44  ;;  %v4201_v56 = vadd.f32 %v19051_v55, %v18990_v1  ;;  %v4193_v44 = vadd.f32 %v19051_v55, %v18983_v40 }
 0x953   :  { %v4367_v50 = vadd.f32 %v4366_v6, %v4174_v31  ;;  %v15117_v24 = vpop.f32.mrb[30].mxu0  ;;  %v4214_v40 = vadd.f32 %v19051_v55, %v18996_v62 }
 0x954   :  { %v4555_v51 = vmul.f32 0.01, %v4375_v2  ;;  %v4378_v57 = vadd.f32 %v15117_v24, %v4185_v63  ;;  %v4369_v45 = vpop.f32.mrb[31].mxu0  ;;  %15280 = vmatprep.mubr.msk.bf16.mxu1 %vm2368_vm7, %v5284_v7  ;;  %vm4515_vm2 = vcmp.ge.f32.partialorder %v4375_v2, 0.0 }
 0x955   :  { %v4553_v30 = vmul.f32 0.01, %v4367_v50  ;;  %v4370_v3 = vadd.f32 %v4369_v45, %v4177_v52  ;;  %15281 = vmatmul.mubr.msk.bf16.vlgmr.msra.gmra.mrb[240].mxu1 %vm2368_vm7, %v5285_v5  ;;  %vm4513_vm3 = vcmp.ge.f32.partialorder %v4367_v50, 0.0 }
 0x956   :  { %vm4516_vm4 = vcmp.ge.f32.partialorder %v4378_v57, 0.0  ;;  %v4556_v8 = vmul.f32 0.01, %v4378_v57  ;;  %v4595_v61 = vsel %vm4515_vm2, %v4375_v2, %v4555_v51 }
 0x957   :  { %vm4514_vm5 = vcmp.ge.f32.partialorder %v4370_v3, 0.0  ;;  %v4554_v36 = vmul.f32 0.01, %v4370_v3  ;;  %v4593_v20 = vsel %vm4513_vm3, %v4367_v50, %v4553_v30 }
 0x958   :  { %v4596_v60 = vsel %vm4516_vm4, %v4378_v57, %v4556_v8  ;;  %v4206_v57 = vadd.f32 %v19051_v55, %v18992_v10  ;;  %v4217_v8 = vadd.f32 %v19051_v55, %v18998_v29 }
 0x959   :  { %v4594_v35 = vsel %vm4514_vm5, %v4370_v3, %v4554_v36  ;;  %v15120_v17 = vpop.f32.mrb[32].mxu0  ;;  %v5287_v54 = vpack.c.bf16 %v4596_v60, %v4595_v61  ;;  %v4209_v60 = vadd.f32 %v19051_v55, %v18994_v14  ;;  %v4230_v14 = vadd.f32 %v19051_v55, %v19004_v16 }
 0x95a   :  { %v4391_v18 = vadd.f32 %v15120_v17, %v4198_v41  ;;  %v4382_v21 = vpop.f32.mrb[33].mxu0  ;;  %v5286_v31 = vpack.c.bf16 %v4594_v35, %v4593_v20 }
 0x95b   :  { %v4383_v5 = vadd.f32 %v4382_v21, %v4190_v22  ;;  %v15121_v37 = vpop.f32.mrb[34].mxu0 }
 0x95c   :  { %v4559_v49 = vmul.f32 0.01, %v4391_v18  ;;  %v4394_v39 = vadd.f32 %v15121_v37, %v4201_v56  ;;  %v4385_v63 = vpop.f32.mrb[35].mxu0  ;;  %15284 = vmatprep.mubr.msk.bf16.mxu1 %vm2368_vm7, %v5286_v31  ;;  %vm4519_vm8 = vcmp.ge.f32.partialorder %v4391_v18, 0.0 }
 0x95d   :  { %v4557_v13 = vmul.f32 0.01, %v4383_v5  ;;  %v4386_v2 = vadd.f32 %v4385_v63, %v4193_v44  ;;  %15285 = vmatmul.mubr.msk.bf16.gmra.mrb[244].mxu1 %vm2368_vm7, %v5287_v54  ;;  %vm4517_vm10 = vcmp.ge.f32.partialorder %v4383_v5, 0.0  ;;  %v4222_v44 = vadd.f32 %v19051_v55, %v19000_v32 }
 0x95e   :  { %vm4520_vm11 = vcmp.ge.f32.partialorder %v4394_v39, 0.0  ;;  %v4560_v1 = vmul.f32 0.01, %v4394_v39  ;;  %v4599_v7 = vsel %vm4519_vm8, %v4391_v18, %v4559_v49 }
 0x95f   :  { %vm4518_vm12 = vcmp.ge.f32.partialorder %v4386_v2, 0.0  ;;  %v4558_v6 = vmul.f32 0.01, %v4386_v2  ;;  %v4597_v50 = vsel %vm4517_vm10, %v4383_v5, %v4557_v13 }
 0x960   :  { %v4600_v52 = vsel %vm4520_vm11, %v4394_v39, %v4560_v1  ;;  %v4233_v39 = vadd.f32 %v19051_v55, %v19006_v28  ;;  %v4225_v1 = vadd.f32 %v19051_v55, %v19002_v23 }
 0x961   :  { %v4598_v24 = vsel %vm4518_vm12, %v4386_v2, %v4558_v6  ;;  %v15124_v51 = vpop.f32.mrb[36].mxu0  ;;  %v5289_v45 = vpack.c.bf16 %v4600_v52, %v4599_v7 }
 0x962   :  { %v4407_v30 = vadd.f32 %v15124_v51, %v4214_v40  ;;  %v4398_v3 = vpop.f32.mrb[37].mxu0  ;;  %v5288_v36 = vpack.c.bf16 %v4598_v24, %v4597_v50  ;;  %v4246_v50 = vadd.f32 %v19051_v55, %v19012_v59  ;;  %v4241_v59 = vadd.f32 %v19051_v55, %v19010_v4 }
 0x963   :  { %v4399_v41 = vadd.f32 %v4398_v3, %v4206_v57  ;;  %v15125_v61 = vpop.f32.mrb[38].mxu0  ;;  %v4238_v3 = vadd.f32 %v19051_v55, %v19008_v53 }
 0x964   :  { %v4563_v22 = vmul.f32 0.01, %v4407_v30  ;;  %v4410_v62 = vadd.f32 %v15125_v61, %v4217_v8  ;;  %v4401_v20 = vpop.f32.mrb[39].mxu0  ;;  %15288 = vmatprep.mubr.msk.bf16.mxu1 %vm2368_vm7, %v5288_v36  ;;  %vm4523_vm13 = vcmp.ge.f32.partialorder %v4407_v30, 0.0  ;;  %v4249_v8 = vadd.f32 %v19051_v55, %v19014_v38 }
 0x965   :  { %v4561_v35 = vmul.f32 0.01, %v4399_v41  ;;  %v4402_v10 = vadd.f32 %v4401_v20, %v4209_v60  ;;  %15289 = vmatmul.mubr.msk.bf16.gmra.mrb[248].mxu1 %vm2368_vm7, %v5289_v45  ;;  %vm4521_vm14 = vcmp.ge.f32.partialorder %v4399_v41, 0.0 }
 0x966   :  { %vm4524_vm15 = vcmp.ge.f32.partialorder %v4410_v62, 0.0  ;;  %v4564_v17 = vmul.f32 0.01, %v4410_v62  ;;  %v4603_v54 = vsel %vm4523_vm13, %v4407_v30, %v4563_v22 }
 0x967   :  { %vm4522_vm0 = vcmp.ge.f32.partialorder %v4402_v10, 0.0  ;;  %v4562_v29 = vmul.f32 0.01, %v4402_v10  ;;  %v4601_v18 = vsel %vm4521_vm14, %v4399_v41, %v4561_v35 }
 0x968   :  { %v4604_v56 = vsel %vm4524_vm15, %v4410_v62, %v4564_v17 }
 0x969   :  { %v4602_v21 = vsel %vm4522_vm0, %v4402_v10, %v4562_v29  ;;  %v15128_v31 = vpop.f32.mrb[40].mxu0  ;;  %v5291_v5 = vpack.c.bf16 %v4604_v56, %v4603_v54  ;;  %v4262_v29 = vadd.f32 %v19051_v55, %v19020_v9  ;;  %v4254_v56 = vadd.f32 %v19051_v55, %v19016_v25 }
 0x96a   :  { %v4423_v37 = vadd.f32 %v15128_v31, %v4230_v14  ;;  %v4414_v49 = vpop.f32.mrb[41].mxu0  ;;  %v5290_v63 = vpack.c.bf16 %v4602_v21, %v4601_v18 }
 0x96b   :  { %v4415_v13 = vadd.f32 %v4414_v49, %v4222_v44  ;;  %v15129_v2 = vpop.f32.mrb[42].mxu0  ;;  %v4265_v44 = vadd.f32 %v19051_v55, %v19022_v0 }
 0x96c   :  { %v4567_v6 = vmul.f32 0.01, %v4423_v37  ;;  %v4426_v16 = vadd.f32 %v15129_v2, %v4233_v39  ;;  %v4417_v7 = vpop.f32.mrb[43].mxu0  ;;  %15292 = vmatprep.mubr.msk.bf16.mxu1 %vm2368_vm7, %v5290_v63  ;;  %vm4527_vm2 = vcmp.ge.f32.partialorder %v4423_v37, 0.0  ;;  %v4257_v39 = vadd.f32 %v19051_v55, %v19018_v11 }
 0x96d   :  { %v4565_v52 = vmul.f32 0.01, %v4415_v13  ;;  %v4418_v32 = vadd.f32 %v4417_v7, %v4225_v1  ;;  %15293 = vmatmul.mubr.msk.bf16.gmra.mrb[252].mxu1 %vm2368_vm7, %v5291_v5  ;;  %vm4525_vm3 = vcmp.ge.f32.partialorder %v4415_v13, 0.0  ;;  %v4278_v11 = vadd.f32 %v19051_v55, %v19028_v47 }
 0x96e   :  { %vm4528_vm4 = vcmp.ge.f32.partialorder %v4426_v16, 0.0  ;;  %v4568_v40 = vmul.f32 0.01, %v4426_v16  ;;  %v4607_v24 = vsel %vm4527_vm2, %v4423_v37, %v4567_v6 }
 0x96f   :  { %vm4526_vm5 = vcmp.ge.f32.partialorder %v4418_v32, 0.0  ;;  %v4566_v28 = vmul.f32 0.01, %v4418_v32  ;;  %v4605_v51 = vsel %vm4525_vm3, %v4415_v13, %v4565_v52 }
 0x970   :  { %v4608_v23 = vsel %vm4528_vm4, %v4426_v16, %v4568_v40 }
 0x971   :  { %v5293_v57 = vpack.c.bf16 %v4608_v23, %v4607_v24  ;;  %v4606_v45 = vsel %vm4526_vm5, %v4418_v32, %v4566_v28  ;;  %v15132_v30 = vpop.f32.mrb[44].mxu0  ;;  %v4270_v32 = vadd.f32 %v19051_v55, %v19024_v46  ;;  %v4281_v23 = vadd.f32 %v19051_v55, %v19030_v27 }
 0x972   :  { %v4439_v36 = vadd.f32 %v15132_v30, %v4246_v50  ;;  %v4430_v41 = vpop.f32.mrb[45].mxu0  ;;  %v5292_v61 = vpack.c.bf16 %v4606_v45, %v4605_v51  ;;  %v4273_v30 = vadd.f32 %v19051_v55, %v19026_v12  ;;  %v4294_v12 = vadd.f32 %v19051_v55, %v19036_v42 }
 0x973   :  { %v4431_v60 = vadd.f32 %v4430_v41, %v4238_v3  ;;  %v15133_v22 = vpop.f32.mrb[46].mxu0 }
 0x974   :  { %v4571_v62 = vmul.f32 0.01, %v4439_v36  ;;  %v4442_v20 = vadd.f32 %v15133_v22, %v4249_v8  ;;  %v4433_v35 = vpop.f32.mrb[47].mxu0  ;;  %15296 = vmatprep.mubr.msk.bf16.mxu1 %vm2368_vm7, %v5292_v61  ;;  %vm4531_vm8 = vcmp.ge.f32.partialorder %v4439_v36, 0.0 }
 0x975   :  { %v4569_v10 = vmul.f32 0.01, %v4431_v60  ;;  %v4434_v17 = vadd.f32 %v4433_v35, %v4241_v59  ;;  %15297 = vmatmul.mubr.msk.bf16.gmra.mrb[0].mxu1 %vm2368_vm7, %v5293_v57  ;;  %vm4529_vm10 = vcmp.ge.f32.partialorder %v4431_v60, 0.0 }
 0x976   :  { %vm4532_vm11 = vcmp.ge.f32.partialorder %v4442_v20, 0.0  ;;  %v4572_v53 = vmul.f32 0.01, %v4442_v20  ;;  %v4611_v54 = vsel %vm4531_vm8, %v4439_v36, %v4571_v62  ;;  %v4286_v62 = vadd.f32 %v19051_v55, %v19032_v26 }
 0x977   :  { %vm4530_vm12 = vcmp.ge.f32.partialorder %v4434_v17, 0.0  ;;  %v4570_v38 = vmul.f32 0.01, %v4434_v17  ;;  %v4609_v14 = vsel %vm4529_vm10, %v4431_v60, %v4569_v10 }
 0x978   :  { %v4612_v4 = vsel %vm4532_vm11, %v4442_v20, %v4572_v53  ;;  %v4297_v53 = vadd.f32 %v19051_v55, %v19038_v15 }
 0x979   :  { %v5295_v18 = vpack.c.bf16 %v4612_v4, %v4611_v54  ;;  %v4610_v21 = vsel %vm4530_vm12, %v4434_v17, %v4570_v38  ;;  %v15136_v31 = vpop.f32.mrb[48].mxu0  ;;  %v4289_v4 = vadd.f32 %v19051_v55, %v19034_v34  ;;  %v4310_v34 = vadd.f32 %v19051_v55, %v19044_v58 }
 0x97a   :  { %v4455_v5 = vadd.f32 %v15136_v31, %v4262_v29  ;;  %v4446_v37 = vpop.f32.mrb[49].mxu0  ;;  %v5294_v49 = vpack.c.bf16 %v4610_v21, %v4609_v14 }
 0x97b   :  { %v4447_v63 = vadd.f32 %v4446_v37, %v4254_v56  ;;  %v15137_v9 = vpop.f32.mrb[50].mxu0 }
 0x97c   :  { %v4575_v13 = vmul.f32 0.01, %v4455_v5  ;;  %v4458_v2 = vadd.f32 %v15137_v9, %v4265_v44  ;;  %v4449_v1 = vpop.f32.mrb[51].mxu0  ;;  %15300 = vmatprep.mubr.msk.bf16.mxu1 %vm2368_vm7, %v5294_v49  ;;  %vm4535_vm13 = vcmp.ge.f32.partialorder %v4455_v5, 0.0  ;;  %v4302_v49 = vadd.f32 %v19051_v55, %v19040_v48 }
 0x97d   :  { %v4573_v25 = vmul.f32 0.01, %v4447_v63  ;;  %v4450_v6 = vadd.f32 %v4449_v1, %v4257_v39  ;;  %15301 = vmatmul.mubr.msk.bf16.gmra.mrb[4].mxu1 %vm2368_vm7, %v5295_v18  ;;  %vm4533_vm14 = vcmp.ge.f32.partialorder %v4447_v63, 0.0 }
 0x97e   :  { %vm4536_vm15 = vcmp.ge.f32.partialorder %v4458_v2, 0.0  ;;  %v4576_v0 = vmul.f32 0.01, %v4458_v2  ;;  %v4615_v7 = vsel %vm4535_vm13, %v4455_v5, %v4575_v13 }
 0x97f   :  { %vm4534_vm0 = vcmp.ge.f32.partialorder %v4450_v6, 0.0  ;;  %v4574_v16 = vmul.f32 0.01, %v4450_v6  ;;  %v4613_v40 = vsel %vm4533_vm14, %v4447_v63, %v4573_v25 }
 0x980   :  { %v4616_v52 = vsel %vm4536_vm15, %v4458_v2, %v4576_v0  ;;  %v4313_v2 = vadd.f32 %v19051_v55, %v19046_v33  ;;  %v4305_v0 = vadd.f32 %v19051_v55, %v19042_v19 }
 0x981   :  { %v5297_v28 = vpack.c.bf16 %v4616_v52, %v4615_v7  ;;  %v4614_v50 = vsel %vm4534_vm0, %v4450_v6, %v4574_v16  ;;  %v15140_v24 = vpop.f32.mrb[52].mxu0 }
 0x982   :  { %v4471_v51 = vadd.f32 %v15140_v24, %v4278_v11  ;;  %v4462_v57 = vpop.f32.mrb[53].mxu0  ;;  %v5296_v45 = vpack.c.bf16 %v4614_v50, %v4613_v40 }
 0x983   :  { %v4463_v3 = vadd.f32 %v4462_v57, %v4270_v32  ;;  %v15141_v47 = vpop.f32.mrb[54].mxu0  ;;  %v16928_v57 = vld [vmem:[%s21033_s28 + $0x38] sm:$0xff]  }
 0x984   :  { %v4579_v8 = vmul.f32 0.01, %v4471_v51  ;;  %v4474_v36 = vadd.f32 %v15141_v47, %v4281_v23  ;;  %v4465_v41 = vpop.f32.mrb[55].mxu0  ;;  %15304 = vmatprep.mubr.msk.bf16.mxu1 %vm2368_vm7, %v5296_v45  ;;  %vm4539_vm2 = vcmp.ge.f32.partialorder %v4471_v51, 0.0  ;;  %v19163_v45 = vld [vmem:[%s20981_s11] ss:$0 sm:$0xff] }
 0x985   :  { %v4577_v46 = vmul.f32 0.01, %v4463_v3  ;;  %v4466_v61 = vadd.f32 %v4465_v41, %v4273_v30  ;;  %15305 = vmatmul.mubr.msk.bf16.gmra.mrb[8].mxu1 %vm2368_vm7, %v5297_v28  ;;  %vm4537_vm3 = vcmp.ge.f32.partialorder %v4463_v3, 0.0 }
 0x986   :  { %vm4540_vm4 = vcmp.ge.f32.partialorder %v4474_v36, 0.0  ;;  %v4580_v27 = vmul.f32 0.01, %v4474_v36  ;;  %v4619_v22 = vsel %vm4539_vm2, %v4471_v51, %v4579_v8  ;;  %v16927_v51 = vld [vmem:[%s21033_s28 + $0x30] sm:$0xff]  }
 0x987   :  { %vm4538_vm5 = vcmp.ge.f32.partialorder %v4466_v61, 0.0  ;;  %v4578_v60 = vmul.f32 0.01, %v4466_v61  ;;  %v4617_v20 = vsel %vm4537_vm3, %v4463_v3, %v4577_v46  ;;  %15320 = vmatprep.subr.bf16.mxu0 %v16927_v51 }
 0x988   :  { %v4620_v59 = vsel %vm4540_vm4, %v4474_v36, %v4580_v27  ;;  %15321 = vmatpush3.bf16.msra.mxu0 %v16927_v51 }
 0x989   :  { %v5299_v35 = vpack.c.bf16 %v4620_v59, %v4619_v22  ;;  %v4618_v10 = vsel %vm4538_vm5, %v4466_v61, %v4578_v60  ;;  %v15144_v17 = vpop.f32.mrb[56].mxu0  ;;  %15322 = vmatprep.subr.bf16.mxu0 %v16928_v57 }
 0x98a   :  { %v4487_v38 = vadd.f32 %v15144_v17, %v4294_v12  ;;  %v4478_v29 = vpop.f32.mrb[57].mxu0  ;;  %v5298_v54 = vpack.c.bf16 %v4618_v10, %v4617_v20 }
 0x98b   :  { %v4479_v56 = vadd.f32 %v4478_v29, %v4286_v62  ;;  %v15145_v42 = vpop.f32.mrb[58].mxu0 }
 0x98c   :  { %v4583_v14 = vmul.f32 0.01, %v4487_v38  ;;  %v4490_v18 = vadd.f32 %v15145_v42, %v4297_v53  ;;  %v4481_v21 = vpop.f32.mrb[59].mxu0  ;;  %15308 = vmatprep.mubr.msk.bf16.mxu1 %vm2368_vm7, %v5298_v54  ;;  %vm4543_vm8 = vcmp.ge.f32.partialorder %v4487_v38, 0.0  ;;  %15323 = vmatpush3.bf16.msra.mxu0 %v16928_v57 }
 0x98d   :  { %v4581_v26 = vmul.f32 0.01, %v4479_v56  ;;  %v4482_v31 = vadd.f32 %v4481_v21, %v4289_v4  ;;  %15309 = vmatmul.mubr.msk.bf16.gmra.mrb[12].mxu1 %vm2368_vm7, %v5299_v35  ;;  %vm4541_vm10 = vcmp.ge.f32.partialorder %v4479_v56, 0.0  ;;  %6118 = vmatprep.subr.bf16.mxu0 %v21078_v43 }
 0x98e   :  { %vm4544_vm11 = vcmp.ge.f32.partialorder %v4490_v18, 0.0  ;;  %v4584_v15 = vmul.f32 0.01, %v4490_v18  ;;  %v4623_v5 = vsel %vm4543_vm8, %v4487_v38, %v4583_v14 }
 0x98f   :  { %vm4542_vm12 = vcmp.ge.f32.partialorder %v4482_v31, 0.0  ;;  %v4582_v44 = vmul.f32 0.01, %v4482_v31  ;;  %v4621_v39 = vsel %vm4541_vm10, %v4479_v56, %v4581_v26 }
 0x990   :  { %v4624_v37 = vsel %vm4544_vm11, %v4490_v18, %v4584_v15 }
 0x991   :  { %v5301_v63 = vpack.c.bf16 %v4624_v37, %v4623_v5  ;;  %v4622_v9 = vsel %vm4542_vm12, %v4482_v31, %v4582_v44  ;;  %v15148_v13 = vpop.f32.mrb[60].mxu0 }
 0x992   :  { %v4503_v1 = vadd.f32 %v15148_v13, %v4310_v34  ;;  %v4494_v25 = vpop.f32.mrb[61].mxu0  ;;  %v5300_v6 = vpack.c.bf16 %v4622_v9, %v4621_v39 }
 0x993   :  { %v4495_v16 = vadd.f32 %v4494_v25, %v4302_v49  ;;  %v15149_v58 = vpop.f32.mrb[62].mxu0 }
 0x994   :  { %v4587_v11 = vmul.f32 0.01, %v4503_v1  ;;  %v4506_v7 = vadd.f32 %v15149_v58, %v4313_v2  ;;  %v4497_v52 = vpop.f32.mrb[63].mxu0  ;;  %15312 = vmatprep.mubr.msk.bf16.mxu1 %vm2368_vm7, %v5300_v6  ;;  %vm4547_vm13 = vcmp.ge.f32.partialorder %v4503_v1, 0.0 }
 0x995   :  { %v4585_v48 = vmul.f32 0.01, %v4495_v16  ;;  %v4498_v32 = vadd.f32 %v4497_v52, %v4305_v0  ;;  %15313 = vmatmul.mubr.msk.bf16.gmra.mrb[16].mxu1 %vm2368_vm7, %v5301_v63  ;;  %vm4545_vm14 = vcmp.ge.f32.partialorder %v4495_v16, 0.0 }
 0x996   :  { %vm4548_vm15 = vcmp.ge.f32.partialorder %v4506_v7, 0.0  ;;  %v4588_v33 = vmul.f32 0.01, %v4506_v7  ;;  %v4627_v28 = vsel %vm4547_vm13, %v4503_v1, %v4587_v11 }
 0x997   :  { %vm4546_vm0 = vcmp.ge.f32.partialorder %v4498_v32, 0.0  ;;  %v4586_v40 = vmul.f32 0.01, %v4498_v32  ;;  %v4625_v19 = vsel %vm4545_vm14, %v4495_v16, %v4585_v48 }
 0x998   :  { %v4628_v50 = vsel %vm4548_vm15, %v4506_v7, %v4588_v33 }
 0x999   :  { %v5303_v55 = vpack.c.bf16 %v4628_v50, %v4627_v28  ;;  %v4626_v24 = vsel %vm4546_vm0, %v4498_v32, %v4586_v40 }
 0x99a   :  { %v5302_v23 = vpack.c.bf16 %v4626_v24, %v4625_v19 }
 0x99c   :  { %15316 = vmatprep.mubr.msk.bf16.mxu1 %vm2368_vm7, %v5302_v23 }
 0x99d   :  { %15317 = vmatmul.mubr.msk.bf16.gmra.mrb[20].mxu1 %vm2368_vm7, %v5303_v55 }
 0xa28   :  { %v15282_v30 = vpop.f32.mrb[240].mxu1 }
 0xa29   :  { %v5612_v3 = vadd.f32 %v15282_v30, %v19163_v45  ;;  %v5404_v47 = vpop.f32.mrb[241].mxu1 }
 0xa2a   :  { %v5610_v8 = vadd.f32 %v19163_v45, %v5404_v47  ;;  %v15283_v36 = vpop.f32.mrb[242].mxu1 }
 0xa2b   :  { %v5692_v41 = vmul.f32 0.01, %v5612_v3  ;;  %v5613_v46 = vadd.f32 %v15283_v36, %v19163_v45  ;;  %v5407_v61 = vpop.f32.mrb[243].mxu1  ;;  %vm5652_vm2 = vcmp.ge.f32.partialorder %v5612_v3, 0.0 }
 0xa2c   :  { %v5690_v27 = vmul.f32 0.01, %v5610_v8  ;;  %v5611_v60 = vadd.f32 %v19163_v45, %v5407_v61  ;;  %vm5650_vm3 = vcmp.ge.f32.partialorder %v5610_v8, 0.0 }
 0xa2d   :  { %vm5653_vm4 = vcmp.ge.f32.partialorder %v5613_v46, 0.0  ;;  %v5693_v12 = vmul.f32 0.01, %v5613_v46  ;;  %v5732_v59 = vsel %vm5652_vm2, %v5612_v3, %v5692_v41 }
 0xa2e   :  { %vm5651_vm5 = vcmp.ge.f32.partialorder %v5611_v60, 0.0  ;;  %v5691_v22 = vmul.f32 0.01, %v5611_v60  ;;  %v5730_v20 = vsel %vm5650_vm3, %v5610_v8, %v5690_v27 }
 0xa2f   :  { %v5733_v62 = vsel %vm5653_vm4, %v5613_v46, %v5693_v12 }
 0xa30   :  { %v5771_v35 = vmax.f32 %v5732_v59, %v5733_v62  ;;  %v5731_v10 = vsel %vm5651_vm5, %v5611_v60, %v5691_v22  ;;  %v15286_v17 = vpop.f32.mrb[244].mxu1 }
 0xa31   :  { %v5770_v53 = vmax.f32 %v5730_v20, %v5731_v10  ;;  %v5616_v38 = vadd.f32 %v15286_v17, %v19163_v45  ;;  %v5420_v29 = vpop.f32.mrb[245].mxu1 }
 0xa32   :  { %v5614_v54 = vadd.f32 %v19163_v45, %v5420_v29  ;;  %v15287_v4 = vpop.f32.mrb[246].mxu1 }
 0xa33   :  { %v5696_v56 = vmul.f32 0.01, %v5616_v38  ;;  %v5617_v42 = vadd.f32 %v15287_v4, %v19163_v45  ;;  %v5423_v14 = vpop.f32.mrb[247].mxu1  ;;  %v19172_v18 = vpack.c.bf16 %v5771_v35, %v5770_v53  ;;  %vm5656_vm8 = vcmp.ge.f32.partialorder %v5616_v38, 0.0 }
 0xa34   :  { %v5694_v21 = vmul.f32 0.01, %v5614_v54  ;;  %v5615_v26 = vadd.f32 %v19163_v45, %v5423_v14  ;;  %vm5654_vm10 = vcmp.ge.f32.partialorder %v5614_v54, 0.0 }
 0xa35   :  { %vm5657_vm11 = vcmp.ge.f32.partialorder %v5617_v42, 0.0  ;;  %v5697_v31 = vmul.f32 0.01, %v5617_v42  ;;  %15324 = vmatprep.mubr.msk.bf16.mxu0 %vm1187_vm9, %v19172_v18  ;;  %v5736_v44 = vsel %vm5656_vm8, %v5616_v38, %v5696_v56 }
 0xa36   :  { %vm5655_vm12 = vcmp.ge.f32.partialorder %v5615_v26, 0.0  ;;  %v5695_v15 = vmul.f32 0.01, %v5615_v26  ;;  %v5734_v5 = vsel %vm5654_vm10, %v5614_v54, %v5694_v21 }
 0xa37   :  { %v5737_v34 = vsel %vm5657_vm11, %v5617_v42, %v5697_v31 }
 0xa38   :  { %v5773_v37 = vmax.f32 %v5736_v44, %v5737_v34  ;;  %v5735_v49 = vsel %vm5655_vm12, %v5615_v26, %v5695_v15  ;;  %v15290_v39 = vpop.f32.mrb[248].mxu1 }
 0xa39   :  { %v5772_v63 = vmax.f32 %v5734_v5, %v5735_v49  ;;  %v5620_v9 = vadd.f32 %v15290_v39, %v19163_v45  ;;  %v5436_v13 = vpop.f32.mrb[249].mxu1 }
 0xa3a   :  { %v5618_v2 = vadd.f32 %v19163_v45, %v5436_v13  ;;  %v15291_v1 = vpop.f32.mrb[250].mxu1 }
 0xa3b   :  { %v19179_v25 = vpack.c.bf16 %v5773_v37, %v5772_v63  ;;  %v5700_v6 = vmul.f32 0.01, %v5620_v9  ;;  %v5621_v0 = vadd.f32 %v15291_v1, %v19163_v45  ;;  %v5439_v16 = vpop.f32.mrb[251].mxu1  ;;  %vm5660_vm13 = vcmp.ge.f32.partialorder %v5620_v9, 0.0 }
 0xa3c   :  { %v5698_v58 = vmul.f32 0.01, %v5618_v2  ;;  %v5619_v11 = vadd.f32 %v19163_v45, %v5439_v16  ;;  %vm5658_vm14 = vcmp.ge.f32.partialorder %v5618_v2, 0.0 }
 0xa3d   :  { %vm5661_vm15 = vcmp.ge.f32.partialorder %v5621_v0, 0.0  ;;  %v5701_v7 = vmul.f32 0.01, %v5621_v0  ;;  %15325 = vmatmul.mubr.msk.bf16.vlgmr.msra.gmra.mrb[64].mxu0 %vm1187_vm9, %v19179_v25  ;;  %v5740_v48 = vsel %vm5660_vm13, %v5620_v9, %v5700_v6 }
 0xa3e   :  { %vm5659_vm0 = vcmp.ge.f32.partialorder %v5619_v11, 0.0  ;;  %v5699_v52 = vmul.f32 0.01, %v5619_v11  ;;  %v5738_v33 = vsel %vm5658_vm14, %v5618_v2, %v5698_v58 }
 0xa3f   :  { %v5741_v32 = vsel %vm5661_vm15, %v5621_v0, %v5701_v7 }
 0xa40   :  { %v5775_v40 = vmax.f32 %v5740_v48, %v5741_v32  ;;  %v5739_v28 = vsel %vm5659_vm0, %v5619_v11, %v5699_v52  ;;  %v15294_v50 = vpop.f32.mrb[252].mxu1 }
 0xa41   :  { %v5774_v19 = vmax.f32 %v5738_v33, %v5739_v28  ;;  %v5624_v55 = vadd.f32 %v15294_v50, %v19163_v45  ;;  %v5452_v24 = vpop.f32.mrb[253].mxu1 }
 0xa42   :  { %v5622_v23 = vadd.f32 %v19163_v45, %v5452_v24  ;;  %v15295_v51 = vpop.f32.mrb[254].mxu1 }
 0xa43   :  { %v5704_v57 = vmul.f32 0.01, %v5624_v55  ;;  %v5625_v30 = vadd.f32 %v15295_v51, %v19163_v45  ;;  %v5455_v3 = vpop.f32.mrb[255].mxu1  ;;  %v19188_v47 = vpack.c.bf16 %v5775_v40, %v5774_v19  ;;  %vm5664_vm2 = vcmp.ge.f32.partialorder %v5624_v55, 0.0 }
 0xa44   :  { %v5702_v8 = vmul.f32 0.01, %v5622_v23  ;;  %v5623_v36 = vadd.f32 %v19163_v45, %v5455_v3  ;;  %vm5662_vm3 = vcmp.ge.f32.partialorder %v5622_v23, 0.0 }
 0xa45   :  { %vm5665_vm4 = vcmp.ge.f32.partialorder %v5625_v30, 0.0  ;;  %v5705_v41 = vmul.f32 0.01, %v5625_v30  ;;  %15328 = vmatprep.mubr.msk.bf16.mxu0 %vm1187_vm9, %v19188_v47  ;;  %v5744_v61 = vsel %vm5664_vm2, %v5624_v55, %v5704_v57 }
 0xa46   :  { %vm5663_vm5 = vcmp.ge.f32.partialorder %v5623_v36, 0.0  ;;  %v5703_v46 = vmul.f32 0.01, %v5623_v36  ;;  %v5742_v60 = vsel %vm5662_vm3, %v5622_v23, %v5702_v8 }
 0xa47   :  { %v5745_v27 = vsel %vm5665_vm4, %v5625_v30, %v5705_v41 }
 0xa48   :  { %v5777_v12 = vmax.f32 %v5744_v61, %v5745_v27  ;;  %v5743_v22 = vsel %vm5663_vm5, %v5623_v36, %v5703_v46  ;;  %v15298_v59 = vpop.f32.mrb[0].mxu1 }
 0xa49   :  { %v5776_v62 = vmax.f32 %v5742_v60, %v5743_v22  ;;  %v5628_v20 = vadd.f32 %v15298_v59, %v19163_v45  ;;  %v5468_v35 = vpop.f32.mrb[1].mxu1 }
 0xa4a   :  { %v5626_v10 = vadd.f32 %v19163_v45, %v5468_v35  ;;  %v15299_v17 = vpop.f32.mrb[2].mxu1 }
 0xa4b   :  { %v19195_v53 = vpack.c.bf16 %v5777_v12, %v5776_v62  ;;  %v5708_v38 = vmul.f32 0.01, %v5628_v20  ;;  %v5629_v29 = vadd.f32 %v15299_v17, %v19163_v45  ;;  %v5471_v54 = vpop.f32.mrb[3].mxu1  ;;  %vm5668_vm8 = vcmp.ge.f32.partialorder %v5628_v20, 0.0 }
 0xa4c   :  { %v5706_v4 = vmul.f32 0.01, %v5626_v10  ;;  %v5627_v56 = vadd.f32 %v19163_v45, %v5471_v54  ;;  %vm5666_vm10 = vcmp.ge.f32.partialorder %v5626_v10, 0.0 }
 0xa4d   :  { %vm5669_vm11 = vcmp.ge.f32.partialorder %v5629_v29, 0.0  ;;  %v5709_v42 = vmul.f32 0.01, %v5629_v29  ;;  %15329 = vmatmul.mubr.msk.bf16.gmra.mrb[68].mxu0 %vm1187_vm9, %v19195_v53  ;;  %v5748_v21 = vsel %vm5668_vm8, %v5628_v20, %v5708_v38 }
 0xa4e   :  { %vm5667_vm12 = vcmp.ge.f32.partialorder %v5627_v56, 0.0  ;;  %v5707_v14 = vmul.f32 0.01, %v5627_v56  ;;  %v5746_v31 = vsel %vm5666_vm10, %v5626_v10, %v5706_v4 }
 0xa4f   :  { %v5749_v26 = vsel %vm5669_vm11, %v5629_v29, %v5709_v42 }
 0xa50   :  { %v5779_v15 = vmax.f32 %v5748_v21, %v5749_v26  ;;  %v5747_v44 = vsel %vm5667_vm12, %v5627_v56, %v5707_v14  ;;  %v15302_v34 = vpop.f32.mrb[4].mxu1 }
 0xa51   :  { %v5778_v5 = vmax.f32 %v5746_v31, %v5747_v44  ;;  %v5632_v37 = vadd.f32 %v15302_v34, %v19163_v45  ;;  %v5484_v49 = vpop.f32.mrb[5].mxu1 }
 0xa52   :  { %v5630_v39 = vadd.f32 %v19163_v45, %v5484_v49  ;;  %v15303_v63 = vpop.f32.mrb[6].mxu1 }
 0xa53   :  { %v5712_v9 = vmul.f32 0.01, %v5632_v37  ;;  %v5633_v13 = vadd.f32 %v15303_v63, %v19163_v45  ;;  %v5487_v2 = vpop.f32.mrb[7].mxu1  ;;  %v19204_v1 = vpack.c.bf16 %v5779_v15, %v5778_v5  ;;  %vm5672_vm13 = vcmp.ge.f32.partialorder %v5632_v37, 0.0 }
 0xa54   :  { %v5710_v6 = vmul.f32 0.01, %v5630_v39  ;;  %v5631_v0 = vadd.f32 %v19163_v45, %v5487_v2  ;;  %vm5670_vm14 = vcmp.ge.f32.partialorder %v5630_v39, 0.0 }
 0xa55   :  { %vm5673_vm15 = vcmp.ge.f32.partialorder %v5633_v13, 0.0  ;;  %v5713_v16 = vmul.f32 0.01, %v5633_v13  ;;  %15332 = vmatprep.mubr.msk.bf16.mxu0 %vm1187_vm9, %v19204_v1  ;;  %v5752_v11 = vsel %vm5672_vm13, %v5632_v37, %v5712_v9 }
 0xa56   :  { %vm5671_vm0 = vcmp.ge.f32.partialorder %v5631_v0, 0.0  ;;  %v5711_v58 = vmul.f32 0.01, %v5631_v0  ;;  %v5750_v52 = vsel %vm5670_vm14, %v5630_v39, %v5710_v6 }
 0xa57   :  { %v5753_v7 = vsel %vm5673_vm15, %v5633_v13, %v5713_v16 }
 0xa58   :  { %v5781_v48 = vmax.f32 %v5752_v11, %v5753_v7  ;;  %v5751_v32 = vsel %vm5671_vm0, %v5631_v0, %v5711_v58  ;;  %v15306_v33 = vpop.f32.mrb[8].mxu1 }
 0xa59   :  { %v5780_v40 = vmax.f32 %v5750_v52, %v5751_v32  ;;  %v5636_v28 = vadd.f32 %v15306_v33, %v19163_v45  ;;  %v5500_v50 = vpop.f32.mrb[9].mxu1 }
 0xa5a   :  { %v5634_v19 = vadd.f32 %v19163_v45, %v5500_v50  ;;  %v15307_v55 = vpop.f32.mrb[10].mxu1 }
 0xa5b   :  { %v19211_v24 = vpack.c.bf16 %v5781_v48, %v5780_v40  ;;  %v5716_v23 = vmul.f32 0.01, %v5636_v28  ;;  %v5637_v51 = vadd.f32 %v15307_v55, %v19163_v45  ;;  %v5503_v57 = vpop.f32.mrb[11].mxu1  ;;  %vm5676_vm2 = vcmp.ge.f32.partialorder %v5636_v28, 0.0 }
 0xa5c   :  { %v5714_v30 = vmul.f32 0.01, %v5634_v19  ;;  %v5635_v3 = vadd.f32 %v19163_v45, %v5503_v57  ;;  %vm5674_vm3 = vcmp.ge.f32.partialorder %v5634_v19, 0.0 }
 0xa5d   :  { %vm5677_vm4 = vcmp.ge.f32.partialorder %v5637_v51, 0.0  ;;  %v5717_v8 = vmul.f32 0.01, %v5637_v51  ;;  %15333 = vmatmul.mubr.msk.bf16.gmra.mrb[72].mxu0 %vm1187_vm9, %v19211_v24  ;;  %v5756_v41 = vsel %vm5676_vm2, %v5636_v28, %v5716_v23 }
 0xa5e   :  { %vm5675_vm5 = vcmp.ge.f32.partialorder %v5635_v3, 0.0  ;;  %v5715_v36 = vmul.f32 0.01, %v5635_v3  ;;  %v5754_v61 = vsel %vm5674_vm3, %v5634_v19, %v5714_v30 }
 0xa5f   :  { %v5757_v46 = vsel %vm5677_vm4, %v5637_v51, %v5717_v8 }
 0xa60   :  { %v5783_v27 = vmax.f32 %v5756_v41, %v5757_v46  ;;  %v5755_v60 = vsel %vm5675_vm5, %v5635_v3, %v5715_v36  ;;  %v15310_v12 = vpop.f32.mrb[12].mxu1 }
 0xa61   :  { %v5782_v22 = vmax.f32 %v5754_v61, %v5755_v60  ;;  %v5640_v59 = vadd.f32 %v15310_v12, %v19163_v45  ;;  %v5516_v62 = vpop.f32.mrb[13].mxu1 }
 0xa62   :  { %v5638_v20 = vadd.f32 %v19163_v45, %v5516_v62  ;;  %v15311_v35 = vpop.f32.mrb[14].mxu1 }
 0xa63   :  { %v5720_v10 = vmul.f32 0.01, %v5640_v59  ;;  %v5641_v17 = vadd.f32 %v15311_v35, %v19163_v45  ;;  %v5519_v38 = vpop.f32.mrb[15].mxu1  ;;  %v19220_v29 = vpack.c.bf16 %v5783_v27, %v5782_v22  ;;  %vm5680_vm8 = vcmp.ge.f32.partialorder %v5640_v59, 0.0 }
 0xa64   :  { %v5718_v54 = vmul.f32 0.01, %v5638_v20  ;;  %v5639_v4 = vadd.f32 %v19163_v45, %v5519_v38  ;;  %vm5678_vm10 = vcmp.ge.f32.partialorder %v5638_v20, 0.0 }
 0xa65   :  { %vm5681_vm11 = vcmp.ge.f32.partialorder %v5641_v17, 0.0  ;;  %v5721_v56 = vmul.f32 0.01, %v5641_v17  ;;  %15336 = vmatprep.mubr.msk.bf16.mxu0 %vm1187_vm9, %v19220_v29  ;;  %v5760_v14 = vsel %vm5680_vm8, %v5640_v59, %v5720_v10 }
 0xa66   :  { %vm5679_vm12 = vcmp.ge.f32.partialorder %v5639_v4, 0.0  ;;  %v5719_v42 = vmul.f32 0.01, %v5639_v4  ;;  %v5758_v26 = vsel %vm5678_vm10, %v5638_v20, %v5718_v54 }
 0xa67   :  { %v5761_v21 = vsel %vm5681_vm11, %v5641_v17, %v5721_v56 }
 0xa68   :  { %v5785_v31 = vmax.f32 %v5760_v14, %v5761_v21  ;;  %v5759_v15 = vsel %vm5679_vm12, %v5639_v4, %v5719_v42  ;;  %v15314_v44 = vpop.f32.mrb[16].mxu1 }
 0xa69   :  { %v5784_v34 = vmax.f32 %v5758_v26, %v5759_v15  ;;  %v5644_v5 = vadd.f32 %v15314_v44, %v19163_v45  ;;  %v5532_v37 = vpop.f32.mrb[17].mxu1 }
 0xa6a   :  { %v5642_v49 = vadd.f32 %v19163_v45, %v5532_v37  ;;  %v15315_v39 = vpop.f32.mrb[18].mxu1 }
 0xa6b   :  { %v19227_v63 = vpack.c.bf16 %v5785_v31, %v5784_v34  ;;  %v5724_v9 = vmul.f32 0.01, %v5644_v5  ;;  %v5645_v13 = vadd.f32 %v15315_v39, %v19163_v45  ;;  %v5535_v2 = vpop.f32.mrb[19].mxu1  ;;  %vm5684_vm13 = vcmp.ge.f32.partialorder %v5644_v5, 0.0 }
 0xa6c   :  { %v5722_v6 = vmul.f32 0.01, %v5642_v49  ;;  %v5643_v0 = vadd.f32 %v19163_v45, %v5535_v2  ;;  %vm5682_vm14 = vcmp.ge.f32.partialorder %v5642_v49, 0.0 }
 0xa6d   :  { %vm5685_vm15 = vcmp.ge.f32.partialorder %v5645_v13, 0.0  ;;  %v5725_v16 = vmul.f32 0.01, %v5645_v13  ;;  %15337 = vmatmul.mubr.msk.bf16.gmra.mrb[76].mxu0 %vm1187_vm9, %v19227_v63  ;;  %v5764_v11 = vsel %vm5684_vm13, %v5644_v5, %v5724_v9 }
 0xa6e   :  { %vm5683_vm0 = vcmp.ge.f32.partialorder %v5643_v0, 0.0  ;;  %v5723_v58 = vmul.f32 0.01, %v5643_v0  ;;  %v5762_v52 = vsel %vm5682_vm14, %v5642_v49, %v5722_v6 }
 0xa6f   :  { %v5765_v7 = vsel %vm5685_vm15, %v5645_v13, %v5725_v16 }
 0xa70   :  { %v5787_v48 = vmax.f32 %v5764_v11, %v5765_v7  ;;  %v5763_v32 = vsel %vm5683_vm0, %v5643_v0, %v5723_v58  ;;  %v15318_v33 = vpop.f32.mrb[20].mxu1 }
 0xa71   :  { %v5786_v40 = vmax.f32 %v5762_v52, %v5763_v32  ;;  %v5648_v28 = vadd.f32 %v15318_v33, %v19163_v45  ;;  %v5548_v50 = vpop.f32.mrb[21].mxu1  ;;  %v19264_v52 = vld [vmem:[%s20982_s17] ss:$8 sps:$4 sm:$0xff]   ;;  %v19277_v32 = vld [vmem:[%s20982_s17 + $0x10] ss:$8 sps:$4 sm:$0xff]  }
 0xa72   :  { %v5646_v19 = vadd.f32 %v19163_v45, %v5548_v50  ;;  %v15319_v55 = vpop.f32.mrb[22].mxu1  ;;  %v19282_v33 = vld [vmem:[%s20982_s17 + $0x24] ss:$8 sps:$4 sm:$0xff]   ;;  %v19303_v50 = vld [vmem:[%s20982_s17 + $0x30] ss:$8 sps:$4 sm:$0xff]  }
 0xa73   :  { %v5728_v23 = vmul.f32 0.01, %v5648_v28  ;;  %v5649_v51 = vadd.f32 %v15319_v55, %v19163_v45  ;;  %v5551_v57 = vpop.f32.mrb[23].mxu1  ;;  %v19236_v30 = vpack.c.bf16 %v5787_v48, %v5786_v40  ;;  %vm5688_vm2 = vcmp.ge.f32.partialorder %v5648_v28, 0.0  ;;  %v19269_v48 = vld [vmem:[%s20982_s17 + $0x14] ss:$8 sps:$4 sm:$0xff]  }
 0xa74   :  { %v5726_v3 = vmul.f32 0.01, %v5646_v19  ;;  %v5647_v8 = vadd.f32 %v19163_v45, %v5551_v57  ;;  %vm5686_vm3 = vcmp.ge.f32.partialorder %v5646_v19, 0.0  ;;  %v19248_v45 = vld [vmem:[%s20982_s17 + $0x4] ss:$8 sps:$4 sm:$0xff]  }
 0xa75   :  { %vm5689_vm4 = vcmp.ge.f32.partialorder %v5649_v51, 0.0  ;;  %v5729_v36 = vmul.f32 0.01, %v5649_v51  ;;  %15340 = vmatprep.mubr.msk.bf16.mxu0 %vm1187_vm9, %v19236_v30  ;;  %v5768_v46 = vsel %vm5688_vm2, %v5648_v28, %v5728_v23  ;;  %v19290_v40 = vld [vmem:[%s20982_s17 + $0x20] ss:$8 sps:$4 sm:$0xff]  }
 0xa76   :  { %vm5687_vm5 = vcmp.ge.f32.partialorder %v5647_v8, 0.0  ;;  %v5727_v41 = vmul.f32 0.01, %v5647_v8  ;;  %v5766_v27 = vsel %vm5686_vm3, %v5646_v19, %v5726_v3  ;;  %v19295_v28 = vld [vmem:[%s20982_s17 + $0x34] ss:$8 sps:$4 sm:$0xff]  }
 0xa77   :  { %v5769_v61 = vsel %vm5689_vm4, %v5649_v51, %v5729_v36  ;;  %v19308_v19 = vld [vmem:[%s20982_s17 + $0x44] ss:$8 sps:$4 sm:$0xff]   ;;  %v19316_v55 = vld [vmem:[%s20982_s17 + $0x40] ss:$8 sps:$4 sm:$0xff]   ;;  %v19321_v23 = vld [vmem:[%s20982_s17 + $0x54] ss:$8 sps:$4 sm:$0xff]  }
 0xa78   :  { %v5789_v60 = vmax.f32 %v5768_v46, %v5769_v61  ;;  %v5767_v12 = vsel %vm5687_vm5, %v5647_v8, %v5727_v41  ;;  %v19329_v51 = vld [vmem:[%s20982_s17 + $0x50] ss:$8 sps:$4 sm:$0xff]   ;;  %v19334_v57 = vld [vmem:[%s20982_s17 + $0x64] ss:$8 sps:$4 sm:$0xff]   ;;  %v19342_v3 = vld [vmem:[%s20982_s17 + $0x60] ss:$8 sps:$4 sm:$0xff]  }
 0xa79   :  { %v5788_v22 = vmax.f32 %v5766_v27, %v5767_v12  ;;  %v19347_v8 = vld [vmem:[%s20982_s17 + $0x74] ss:$8 sps:$4 sm:$0xff]   ;;  %v19355_v36 = vld [vmem:[%s20982_s17 + $0x70] ss:$8 sps:$4 sm:$0xff]   ;;  %v19360_v41 = vld [vmem:[%s20982_s17 + $0x84] ss:$8 sps:$4 sm:$0xff]  }
 0xa7a   :  { %v19368_v46 = vld [vmem:[%s20982_s17 + $0x80] ss:$8 sps:$4 sm:$0xff]   ;;  %v19373_v61 = vld [vmem:[%s20982_s17 + $0x94] ss:$8 sps:$4 sm:$0xff]   ;;  %v19381_v27 = vld [vmem:[%s20982_s17 + $0x90] ss:$8 sps:$4 sm:$0xff]  }
 0xa7b   :  { %v19241_v59 = vpack.c.bf16 %v5789_v60, %v5788_v22  ;;  %v16959_v60 = vld [vmem:[%s20977_s7 + $0x40] sm:$0xff]   ;;  %v16960_v12 = vld [vmem:[%s20977_s7 + $0x50] sm:$0xff]  }
 0xa7c   :  { %15390 = vmatprep.subr.bf16.mxu1 %v16960_v12  ;;  %v16961_v22 = vld [vmem:[%s21033_s28 + $0x40] sm:$0xff]  }
 0xa7d   :  { %15341 = vmatmul.mubr.msk.bf16.gmra.mrb[80].mxu0 %vm1187_vm9, %v19241_v59  ;;  %15391 = vmatpush3.bf16.msra.mxu1 %v16960_v12 }
 0xa7e   :  { %13351 = vmatprep.mubr.msk.bf16.mxu0 %vm1187_vm9, %v19248_v45 }
 0xb10   :  { %v15326_v62 = vpop.f32.mrb[64].mxu0 }
 0xb11   :  { %v5901_v20 = vpop.f32.mrb[65].mxu0 }
 0xb12   :  { %v15327_v35 = vpop.f32.mrb[66].mxu0 }
 0xb13   :  { %v5981_v10 = vpack.c.bf16 %v15327_v35, %v15326_v62  ;;  %v5904_v17 = vpop.f32.mrb[67].mxu0  ;;  %v16962_v62 = vld [vmem:[%s21033_s28 + $0x50] sm:$0xff]  }
 0xb14   :  { %v5980_v38 = vpack.c.bf16 %v5904_v17, %v5901_v20  ;;  %15412 = vmatprep.subr.bf16.mxu1 %v16962_v62  ;;  %v19399_v20 = vld [vmem:[%s20978_s8 + $0x3] ss:$0 sm:$0xff] }
 0xb16   :  { %6119 = vmatpush1.bf16.msra.mxu0 %v5980_v38 }
 0xb17   :  { %6120 = vmatprep.subr.bf16.mxu0 %v21078_v43 }
 0xb1a   :  { %6121 = vmatpush1.bf16.msra.mxu0 %v5981_v10 }
 0xb1b   :  { %6122 = vmatprep.subr.bf16.mxu0 %v21078_v43 }
 0xb20   :  { %v15330_v54 = vpop.f32.mrb[68].mxu0 }
 0xb21   :  { %v5917_v4 = vpop.f32.mrb[69].mxu0 }
 0xb22   :  { %v15331_v56 = vpop.f32.mrb[70].mxu0 }
 0xb23   :  { %v5983_v42 = vpack.c.bf16 %v15331_v56, %v15330_v54  ;;  %v5920_v14 = vpop.f32.mrb[71].mxu0 }
 0xb24   :  { %v5982_v21 = vpack.c.bf16 %v5920_v14, %v5917_v4 }
 0xb26   :  { %6123 = vmatpush1.bf16.msra.mxu0 %v5982_v21 }
 0xb27   :  { %6124 = vmatprep.subr.bf16.mxu0 %v21078_v43 }
 0xb2a   :  { %6125 = vmatpush1.bf16.msra.mxu0 %v5983_v42 }
 0xb2b   :  { %6126 = vmatprep.subr.bf16.mxu0 %v21078_v43 }
 0xb30   :  { %v15334_v26 = vpop.f32.mrb[72].mxu0 }
 0xb31   :  { %v5933_v31 = vpop.f32.mrb[73].mxu0 }
 0xb32   :  { %v15335_v15 = vpop.f32.mrb[74].mxu0 }
 0xb33   :  { %v5985_v44 = vpack.c.bf16 %v15335_v15, %v15334_v26  ;;  %v5936_v34 = vpop.f32.mrb[75].mxu0 }
 0xb34   :  { %v5984_v5 = vpack.c.bf16 %v5936_v34, %v5933_v31 }
 0xb36   :  { %6127 = vmatpush1.bf16.msra.mxu0 %v5984_v5 }
 0xb37   :  { %6128 = vmatprep.subr.bf16.mxu0 %v21078_v43 }
 0xb3a   :  { %6129 = vmatpush1.bf16.msra.mxu0 %v5985_v44 }
 0xb3b   :  { %6130 = vmatprep.subr.bf16.mxu0 %v21078_v43 }
 0xb40   :  { %v15338_v37 = vpop.f32.mrb[76].mxu0 }
 0xb41   :  { %v5949_v49 = vpop.f32.mrb[77].mxu0 }
 0xb42   :  { %v15339_v39 = vpop.f32.mrb[78].mxu0 }
 0xb43   :  { %v5987_v9 = vpack.c.bf16 %v15339_v39, %v15338_v37  ;;  %v5952_v13 = vpop.f32.mrb[79].mxu0 }
 0xb44   :  { %v5986_v2 = vpack.c.bf16 %v5952_v13, %v5949_v49 }
 0xb46   :  { %6131 = vmatpush1.bf16.msra.mxu0 %v5986_v2 }
 0xb47   :  { %6132 = vmatprep.subr.bf16.mxu0 %v21078_v43 }
 0xb4a   :  { %6133 = vmatpush1.bf16.msra.mxu0 %v5987_v9 }
 0xb4b   :  { %6134 = vmatprep.subr.bf16.mxu0 %v21078_v43 }
 0xb50   :  { %v15342_v6 = vpop.f32.mrb[80].mxu0 }
 0xb51   :  { %v5965_v0 = vpop.f32.mrb[81].mxu0 }
 0xb52   :  { %v15343_v16 = vpop.f32.mrb[82].mxu0 }
 0xb53   :  { %v5989_v58 = vpack.c.bf16 %v15343_v16, %v15342_v6  ;;  %v5968_v11 = vpop.f32.mrb[83].mxu0  ;;  %v16964_v16 = vld [vmem:[%s21033_s28 + $0x58] sm:$0xff]  }
 0xb54   :  { %v5988_v7 = vpack.c.bf16 %v5968_v11, %v5965_v0  ;;  %v16963_v0 = vld [vmem:[%s21033_s28 + $0x48] sm:$0xff]  }
 0xb56   :  { %6135 = vmatpush1.bf16.msra.mxu0 %v5988_v7 }
 0xb57   :  { %6136 = vmatprep.subr.bf16.mxu0 %v21078_v43 }
 0xb5a   :  { %6137 = vmatpush1.bf16.msra.mxu0 %v5989_v58 }
 0xb5b   :  { %15344 = vmatprep.subr.bf16.mxu0 %v16959_v60 }
 0xb5d   :  { %6151 = vmatmul.mubr.bf16.vlgmr.msra.gmra.mrb[84].mxu0 %v19264_v52 }
 0xb5e   :  { %13352 = vmatprep.mubr.msk.bf16.mxu0 %vm1187_vm9, %v19269_v48  ;;  %15345 = vmatpush3.bf16.msra.mxu0 %v16959_v60 }
 0xb5f   :  { %15366 = vmatprep.subr.bf16.mxu0 %v16961_v22 }
 0xb65   :  { %6159 = vmatmul.mubr.bf16.gmra.mrb[88].mxu0 %v19277_v32 }
 0xb66   :  { %13353 = vmatprep.mubr.msk.bf16.mxu0 %vm1187_vm9, %v19282_v33 }
 0xb6d   :  { %6167 = vmatmul.mubr.bf16.gmra.mrb[92].mxu0 %v19290_v40 }
 0xb6e   :  { %13354 = vmatprep.mubr.msk.bf16.mxu0 %vm1187_vm9, %v19295_v28 }
 0xb75   :  { %6175 = vmatmul.mubr.bf16.gmra.mrb[96].mxu0 %v19303_v50 }
 0xb76   :  { %13355 = vmatprep.mubr.msk.bf16.mxu0 %vm1187_vm9, %v19308_v19 }
 0xb7d   :  { %6183 = vmatmul.mubr.bf16.gmra.mrb[100].mxu0 %v19316_v55 }
 0xb7e   :  { %13356 = vmatprep.mubr.msk.bf16.mxu0 %vm1187_vm9, %v19321_v23 }
 0xb85   :  { %6191 = vmatmul.mubr.bf16.gmra.mrb[104].mxu0 %v19329_v51 }
 0xb86   :  { %13357 = vmatprep.mubr.msk.bf16.mxu0 %vm1187_vm9, %v19334_v57 }
 0xb8d   :  { %6199 = vmatmul.mubr.bf16.gmra.mrb[108].mxu0 %v19342_v3 }
 0xb8e   :  { %13358 = vmatprep.mubr.msk.bf16.mxu0 %vm1187_vm9, %v19347_v8 }
 0xb95   :  { %6207 = vmatmul.mubr.bf16.gmra.mrb[112].mxu0 %v19355_v36 }
 0xb96   :  { %13359 = vmatprep.mubr.msk.bf16.mxu0 %vm1187_vm9, %v19360_v41 }
 0xb9d   :  { %6215 = vmatmul.mubr.bf16.gmra.mrb[116].mxu0 %v19368_v46 }
 0xb9e   :  { %13360 = vmatprep.mubr.msk.bf16.mxu0 %vm1187_vm9, %v19373_v61 }
 0xba5   :  { %6223 = vmatmul.mubr.bf16.gmra.mrb[120].mxu0 %v19381_v27 }
 0xc30   :  { %v6152_v35 = vpop.f32.mrb[84].mxu0 }
 0xc31   :  { %v6153_v10 = vadd.f32 %v19399_v20, %v6152_v35  ;;  %v6154_v17 = vpop.f32.mrb[85].mxu0 }
 0xc32   :  { %v6155_v38 = vpop.f32.mrb[86].mxu0 }
 0xc33   :  { %v6251_v54 = vmul.f32 0.01, %v6153_v10  ;;  %v6156_v4 = vadd.f32 %v19399_v20, %v6155_v38  ;;  %v6157_v56 = vpop.f32.mrb[87].mxu0  ;;  %vm6231_vm8 = vcmp.ge.f32.partialorder %v6153_v10, 0.0 }
 0xc35   :  { %vm6232_vm10 = vcmp.ge.f32.partialorder %v6156_v4, 0.0  ;;  %v6252_v42 = vmul.f32 0.01, %v6156_v4  ;;  %v6271_v14 = vsel %vm6231_vm8, %v6153_v10, %v6251_v54 }
 0xc37   :  { %v6272_v21 = vsel %vm6232_vm10, %v6156_v4, %v6252_v42 }
 0xc38   :  { %v6160_v26 = vpop.f32.mrb[88].mxu0  ;;  %v19403_v31 = vpack.c.bf16 %v6272_v21, %v6271_v14 }
 0xc39   :  { %v6161_v15 = vadd.f32 %v19399_v20, %v6160_v26  ;;  %v6162_v44 = vpop.f32.mrb[89].mxu0 }
 0xc3a   :  { %v6163_v34 = vpop.f32.mrb[90].mxu0  ;;  %15346 = vmatprep.mubr.msk.bf16.mxu0 %vm2368_vm7, %v19403_v31  ;;  %15392 = vmatprep.mubr.msk.bf16.mxu1 %vm2368_vm7, %v19403_v31 }
 0xc3b   :  { %v6253_v5 = vmul.f32 0.01, %v6161_v15  ;;  %v6164_v37 = vadd.f32 %v19399_v20, %v6163_v34  ;;  %v6165_v49 = vpop.f32.mrb[91].mxu0  ;;  %vm6233_vm11 = vcmp.ge.f32.partialorder %v6161_v15, 0.0 }
 0xc3d   :  { %vm6234_vm12 = vcmp.ge.f32.partialorder %v6164_v37, 0.0  ;;  %v6254_v39 = vmul.f32 0.01, %v6164_v37  ;;  %v6273_v9 = vsel %vm6233_vm11, %v6161_v15, %v6253_v5 }
 0xc3f   :  { %v6274_v13 = vsel %vm6234_vm12, %v6164_v37, %v6254_v39 }
 0xc40   :  { %v19411_v2 = vpack.c.bf16 %v6274_v13, %v6273_v9  ;;  %v6168_v6 = vpop.f32.mrb[92].mxu0 }
 0xc41   :  { %v6169_v58 = vadd.f32 %v19399_v20, %v6168_v6  ;;  %v6170_v11 = vpop.f32.mrb[93].mxu0 }
 0xc42   :  { %v6171_v7 = vpop.f32.mrb[94].mxu0  ;;  %15347 = vmatmul.mubr.msk.bf16.vlgmr.msra.gmra.mrb[124].mxu0 %vm2368_vm7, %v19411_v2  ;;  %15393 = vmatmul.mubr.msk.bf16.vlgmr.msra.gmra.mrb[24].mxu1 %vm2368_vm7, %v19411_v2 }
 0xc43   :  { %v6255_v60 = vmul.f32 0.01, %v6169_v58  ;;  %v6172_v12 = vadd.f32 %v19399_v20, %v6171_v7  ;;  %v6173_v35 = vpop.f32.mrb[95].mxu0  ;;  %15367 = vmatpush3.bf16.msra.mxu0 %v16961_v22  ;;  %15413 = vmatpush3.bf16.msra.mxu1 %v16962_v62  ;;  %vm6235_vm13 = vcmp.ge.f32.partialorder %v6169_v58, 0.0 }
 0xc44   :  { %15368 = vmatprep.subr.bf16.mxu0 %v16963_v0  ;;  %15414 = vmatprep.subr.bf16.mxu1 %v16964_v16 }
 0xc45   :  { %vm6236_vm14 = vcmp.ge.f32.partialorder %v6172_v12, 0.0  ;;  %v6256_v10 = vmul.f32 0.01, %v6172_v12  ;;  %v6275_v17 = vsel %vm6235_vm13, %v6169_v58, %v6255_v60 }
 0xc47   :  { %v6276_v38 = vsel %vm6236_vm14, %v6172_v12, %v6256_v10  ;;  %15369 = vmatpush3.bf16.msra.mxu0 %v16963_v0  ;;  %15415 = vmatpush3.bf16.msra.mxu1 %v16964_v16 }
 0xc48   :  { %v6176_v54 = vpop.f32.mrb[96].mxu0  ;;  %v19425_v4 = vpack.c.bf16 %v6276_v38, %v6275_v17  ;;  %6601 = vmatprep.subr.bf16.mxu0 %v21078_v43 }
 0xc49   :  { %v6177_v56 = vadd.f32 %v19399_v20, %v6176_v54  ;;  %v6178_v42 = vpop.f32.mrb[97].mxu0 }
 0xc4a   :  { %v6179_v14 = vpop.f32.mrb[98].mxu0  ;;  %15350 = vmatprep.mubr.msk.bf16.mxu0 %vm2368_vm7, %v19425_v4  ;;  %15396 = vmatprep.mubr.msk.bf16.mxu1 %vm2368_vm7, %v19425_v4 }
 0xc4b   :  { %v6257_v22 = vmul.f32 0.01, %v6177_v56  ;;  %v6180_v62 = vadd.f32 %v19399_v20, %v6179_v14  ;;  %v6181_v21 = vpop.f32.mrb[99].mxu0  ;;  %vm6237_vm15 = vcmp.ge.f32.partialorder %v6177_v56, 0.0 }
 0xc4d   :  { %vm6238_vm0 = vcmp.ge.f32.partialorder %v6180_v62, 0.0  ;;  %v6258_v26 = vmul.f32 0.01, %v6180_v62  ;;  %v6277_v15 = vsel %vm6237_vm15, %v6177_v56, %v6257_v22 }
 0xc4f   :  { %v6278_v44 = vsel %vm6238_vm0, %v6180_v62, %v6258_v26 }
 0xc50   :  { %v19434_v34 = vpack.c.bf16 %v6278_v44, %v6277_v15  ;;  %v6184_v5 = vpop.f32.mrb[100].mxu0 }
 0xc51   :  { %v6185_v37 = vadd.f32 %v19399_v20, %v6184_v5  ;;  %v6186_v49 = vpop.f32.mrb[101].mxu0 }
 0xc52   :  { %v6187_v39 = vpop.f32.mrb[102].mxu0  ;;  %15351 = vmatmul.mubr.msk.bf16.gmra.mrb[128].mxu0 %vm2368_vm7, %v19434_v34  ;;  %15397 = vmatmul.mubr.msk.bf16.gmra.mrb[28].mxu1 %vm2368_vm7, %v19434_v34 }
 0xc53   :  { %v6259_v9 = vmul.f32 0.01, %v6185_v37  ;;  %v6188_v13 = vadd.f32 %v19399_v20, %v6187_v39  ;;  %v6189_v6 = vpop.f32.mrb[103].mxu0  ;;  %vm6239_vm2 = vcmp.ge.f32.partialorder %v6185_v37, 0.0 }
 0xc55   :  { %vm6240_vm3 = vcmp.ge.f32.partialorder %v6188_v13, 0.0  ;;  %v6260_v0 = vmul.f32 0.01, %v6188_v13  ;;  %v6279_v16 = vsel %vm6239_vm2, %v6185_v37, %v6259_v9 }
 0xc57   :  { %v6280_v58 = vsel %vm6240_vm3, %v6188_v13, %v6260_v0 }
 0xc58   :  { %v6192_v11 = vpop.f32.mrb[104].mxu0  ;;  %v19442_v7 = vpack.c.bf16 %v6280_v58, %v6279_v16 }
 0xc59   :  { %v6193_v60 = vadd.f32 %v19399_v20, %v6192_v11  ;;  %v6194_v12 = vpop.f32.mrb[105].mxu0 }
 0xc5a   :  { %v6195_v35 = vpop.f32.mrb[106].mxu0  ;;  %15354 = vmatprep.mubr.msk.bf16.mxu0 %vm2368_vm7, %v19442_v7  ;;  %15400 = vmatprep.mubr.msk.bf16.mxu1 %vm2368_vm7, %v19442_v7 }
 0xc5b   :  { %v6261_v10 = vmul.f32 0.01, %v6193_v60  ;;  %v6196_v17 = vadd.f32 %v19399_v20, %v6195_v35  ;;  %v6197_v38 = vpop.f32.mrb[107].mxu0  ;;  %vm6241_vm4 = vcmp.ge.f32.partialorder %v6193_v60, 0.0 }
 0xc5d   :  { %vm6242_vm5 = vcmp.ge.f32.partialorder %v6196_v17, 0.0  ;;  %v6262_v54 = vmul.f32 0.01, %v6196_v17  ;;  %v6281_v56 = vsel %vm6241_vm4, %v6193_v60, %v6261_v10 }
 0xc5f   :  { %v6282_v42 = vsel %vm6242_vm5, %v6196_v17, %v6262_v54 }
 0xc60   :  { %v19450_v14 = vpack.c.bf16 %v6282_v42, %v6281_v56  ;;  %v6200_v22 = vpop.f32.mrb[108].mxu0 }
 0xc61   :  { %v6201_v62 = vadd.f32 %v19399_v20, %v6200_v22  ;;  %v6202_v21 = vpop.f32.mrb[109].mxu0 }
 0xc62   :  { %v6203_v26 = vpop.f32.mrb[110].mxu0  ;;  %15355 = vmatmul.mubr.msk.bf16.gmra.mrb[132].mxu0 %vm2368_vm7, %v19450_v14  ;;  %15401 = vmatmul.mubr.msk.bf16.gmra.mrb[32].mxu1 %vm2368_vm7, %v19450_v14 }
 0xc63   :  { %v6263_v15 = vmul.f32 0.01, %v6201_v62  ;;  %v6204_v44 = vadd.f32 %v19399_v20, %v6203_v26  ;;  %v6205_v5 = vpop.f32.mrb[111].mxu0  ;;  %vm6243_vm8 = vcmp.ge.f32.partialorder %v6201_v62, 0.0 }
 0xc65   :  { %vm6244_vm10 = vcmp.ge.f32.partialorder %v6204_v44, 0.0  ;;  %v6264_v37 = vmul.f32 0.01, %v6204_v44  ;;  %v6283_v49 = vsel %vm6243_vm8, %v6201_v62, %v6263_v15 }
 0xc67   :  { %v6284_v39 = vsel %vm6244_vm10, %v6204_v44, %v6264_v37 }
 0xc68   :  { %v6208_v9 = vpop.f32.mrb[112].mxu0  ;;  %v19458_v13 = vpack.c.bf16 %v6284_v39, %v6283_v49 }
 0xc69   :  { %v6209_v6 = vadd.f32 %v19399_v20, %v6208_v9  ;;  %v6210_v0 = vpop.f32.mrb[113].mxu0 }
 0xc6a   :  { %v6211_v16 = vpop.f32.mrb[114].mxu0  ;;  %15358 = vmatprep.mubr.msk.bf16.mxu0 %vm2368_vm7, %v19458_v13  ;;  %15404 = vmatprep.mubr.msk.bf16.mxu1 %vm2368_vm7, %v19458_v13 }
 0xc6b   :  { %v6265_v58 = vmul.f32 0.01, %v6209_v6  ;;  %v6212_v11 = vadd.f32 %v19399_v20, %v6211_v16  ;;  %v6213_v60 = vpop.f32.mrb[115].mxu0  ;;  %vm6245_vm11 = vcmp.ge.f32.partialorder %v6209_v6, 0.0 }
 0xc6d   :  { %vm6246_vm12 = vcmp.ge.f32.partialorder %v6212_v11, 0.0  ;;  %v6266_v12 = vmul.f32 0.01, %v6212_v11  ;;  %v6285_v35 = vsel %vm6245_vm11, %v6209_v6, %v6265_v58 }
 0xc6f   :  { %v6286_v10 = vsel %vm6246_vm12, %v6212_v11, %v6266_v12 }
 0xc70   :  { %v19466_v17 = vpack.c.bf16 %v6286_v10, %v6285_v35  ;;  %v6216_v38 = vpop.f32.mrb[116].mxu0 }
 0xc71   :  { %v6217_v54 = vadd.f32 %v19399_v20, %v6216_v38  ;;  %v6218_v56 = vpop.f32.mrb[117].mxu0 }
 0xc72   :  { %v6219_v42 = vpop.f32.mrb[118].mxu0  ;;  %15359 = vmatmul.mubr.msk.bf16.gmra.mrb[136].mxu0 %vm2368_vm7, %v19466_v17  ;;  %15405 = vmatmul.mubr.msk.bf16.gmra.mrb[36].mxu1 %vm2368_vm7, %v19466_v17 }
 0xc73   :  { %v6267_v22 = vmul.f32 0.01, %v6217_v54  ;;  %v6220_v62 = vadd.f32 %v19399_v20, %v6219_v42  ;;  %v6221_v21 = vpop.f32.mrb[119].mxu0  ;;  %vm6247_vm13 = vcmp.ge.f32.partialorder %v6217_v54, 0.0 }
 0xc75   :  { %vm6248_vm14 = vcmp.ge.f32.partialorder %v6220_v62, 0.0  ;;  %v6268_v26 = vmul.f32 0.01, %v6220_v62  ;;  %v6287_v15 = vsel %vm6247_vm13, %v6217_v54, %v6267_v22 }
 0xc77   :  { %v6288_v44 = vsel %vm6248_vm14, %v6220_v62, %v6268_v26 }
 0xc78   :  { %v6224_v5 = vpop.f32.mrb[120].mxu0  ;;  %v19474_v37 = vpack.c.bf16 %v6288_v44, %v6287_v15 }
 0xc79   :  { %v6225_v49 = vadd.f32 %v19399_v20, %v6224_v5  ;;  %v6226_v39 = vpop.f32.mrb[121].mxu0 }
 0xc7a   :  { %v6227_v9 = vpop.f32.mrb[122].mxu0  ;;  %15362 = vmatprep.mubr.msk.bf16.mxu0 %vm2368_vm7, %v19474_v37  ;;  %15408 = vmatprep.mubr.msk.bf16.mxu1 %vm2368_vm7, %v19474_v37 }
 0xc7b   :  { %v6269_v6 = vmul.f32 0.01, %v6225_v49  ;;  %v6228_v0 = vadd.f32 %v19399_v20, %v6227_v9  ;;  %v6229_v16 = vpop.f32.mrb[123].mxu0  ;;  %vm6249_vm15 = vcmp.ge.f32.partialorder %v6225_v49, 0.0 }
 0xc7d   :  { %vm6250_vm0 = vcmp.ge.f32.partialorder %v6228_v0, 0.0  ;;  %v6270_v58 = vmul.f32 0.01, %v6228_v0  ;;  %v6289_v11 = vsel %vm6249_vm15, %v6225_v49, %v6269_v6 }
 0xc7f   :  { %v6290_v60 = vsel %vm6250_vm0, %v6228_v0, %v6270_v58 }
 0xc80   :  { %v19482_v12 = vpack.c.bf16 %v6290_v60, %v6289_v11 }
 0xc82   :  { %15363 = vmatmul.mubr.msk.bf16.gmra.mrb[140].mxu0 %vm2368_vm7, %v19482_v12  ;;  %15409 = vmatmul.mubr.msk.bf16.gmra.mrb[40].mxu1 %vm2368_vm7, %v19482_v12 }
 0xc83   :  { %15370 = vmatprep.mubr.msk.bf16.mxu0 %vm1187_vm9, %v19172_v18  ;;  %15416 = vmatprep.mubr.msk.bf16.mxu1 %vm1187_vm9, %v19172_v18 }
 0xc8a   :  { %15371 = vmatmul.mubr.msk.bf16.vlgmr.msra.gmra.mrb[124].mxu0 %vm1187_vm9, %v19179_v25  ;;  %15417 = vmatmul.mubr.msk.bf16.vlgmr.msra.gmra.mrb[24].mxu1 %vm1187_vm9, %v19179_v25 }
 0xc8b   :  { %15374 = vmatprep.mubr.msk.bf16.mxu0 %vm1187_vm9, %v19188_v47  ;;  %15420 = vmatprep.mubr.msk.bf16.mxu1 %vm1187_vm9, %v19188_v47 }
 0xc92   :  { %15375 = vmatmul.mubr.msk.bf16.gmra.mrb[128].mxu0 %vm1187_vm9, %v19195_v53  ;;  %15421 = vmatmul.mubr.msk.bf16.gmra.mrb[28].mxu1 %vm1187_vm9, %v19195_v53 }
 0xc93   :  { %15378 = vmatprep.mubr.msk.bf16.mxu0 %vm1187_vm9, %v19204_v1  ;;  %15424 = vmatprep.mubr.msk.bf16.mxu1 %vm1187_vm9, %v19204_v1 }
 0xc9a   :  { %15379 = vmatmul.mubr.msk.bf16.gmra.mrb[132].mxu0 %vm1187_vm9, %v19211_v24  ;;  %15425 = vmatmul.mubr.msk.bf16.gmra.mrb[32].mxu1 %vm1187_vm9, %v19211_v24 }
 0xc9b   :  { %15382 = vmatprep.mubr.msk.bf16.mxu0 %vm1187_vm9, %v19220_v29  ;;  %15428 = vmatprep.mubr.msk.bf16.mxu1 %vm1187_vm9, %v19220_v29 }
 0xca2   :  { %15383 = vmatmul.mubr.msk.bf16.gmra.mrb[136].mxu0 %vm1187_vm9, %v19227_v63  ;;  %15429 = vmatmul.mubr.msk.bf16.gmra.mrb[36].mxu1 %vm1187_vm9, %v19227_v63 }
 0xca3   :  { %15386 = vmatprep.mubr.msk.bf16.mxu0 %vm1187_vm9, %v19236_v30  ;;  %15432 = vmatprep.mubr.msk.bf16.mxu1 %vm1187_vm9, %v19236_v30 }
 0xcaa   :  { %15387 = vmatmul.mubr.msk.bf16.gmra.mrb[140].mxu0 %vm1187_vm9, %v19241_v59  ;;  %15433 = vmatmul.mubr.msk.bf16.gmra.mrb[40].mxu1 %vm1187_vm9, %v19241_v59 }
 0xcab   :  { %13392 = vmatprep.mubr.msk.bf16.mxu0 %vm1187_vm9, %v19248_v45 }
 0xd5d   :  { %v15372_v20 = vpop.f32.mrb[124].mxu0 }
 0xd5e   :  { %v6504_v35 = vpop.f32.mrb[125].mxu0 }
 0xd5f   :  { %v15373_v10 = vpop.f32.mrb[126].mxu0 }
 0xd60   :  { %v6584_v38 = vpack.c.bf16 %v15373_v10, %v15372_v20  ;;  %v6507_v54 = vpop.f32.mrb[127].mxu0 }
 0xd61   :  { %v6583_v56 = vpack.c.bf16 %v6507_v54, %v6504_v35 }
 0xd63   :  { %6602 = vmatpush1.bf16.msra.mxu0 %v6583_v56 }
 0xd64   :  { %6603 = vmatprep.subr.bf16.mxu0 %v21078_v43 }
 0xd65   :  { %v15376_v42 = vpop.f32.mrb[128].mxu0 }
 0xd66   :  { %v6520_v22 = vpop.f32.mrb[129].mxu0 }
 0xd67   :  { %v15377_v62 = vpop.f32.mrb[130].mxu0  ;;  %6604 = vmatpush1.bf16.msra.mxu0 %v6584_v38 }
 0xd68   :  { %v6586_v21 = vpack.c.bf16 %v15377_v62, %v15376_v42  ;;  %v6523_v26 = vpop.f32.mrb[131].mxu0  ;;  %6605 = vmatprep.subr.bf16.mxu0 %v21078_v43  ;;  %v19576_v62 = vld [vmem:[%s20978_s8 + $0x4] ss:$0 sm:$0xff] }
 0xd69   :  { %v6585_v15 = vpack.c.bf16 %v6523_v26, %v6520_v22  ;;  %v16965_v22 = vld [vmem:[%s20977_s7 + $0x58] sm:$0xff]  }
 0xd6a   :  { %15436 = vmatprep.subr.bf16.mxu1 %v16965_v22 }
 0xd6b   :  { %6606 = vmatpush1.bf16.msra.mxu0 %v6585_v15  ;;  %15437 = vmatpush3.bf16.msra.mxu1 %v16965_v22 }
 0xd6c   :  { %6607 = vmatprep.subr.bf16.mxu0 %v21078_v43 }
 0xd6d   :  { %v15380_v44 = vpop.f32.mrb[132].mxu0 }
 0xd6e   :  { %v6536_v5 = vpop.f32.mrb[133].mxu0 }
 0xd6f   :  { %v15381_v49 = vpop.f32.mrb[134].mxu0  ;;  %6608 = vmatpush1.bf16.msra.mxu0 %v6586_v21 }
 0xd70   :  { %v6588_v39 = vpack.c.bf16 %v15381_v49, %v15380_v44  ;;  %v6539_v9 = vpop.f32.mrb[135].mxu0  ;;  %6609 = vmatprep.subr.bf16.mxu0 %v21078_v43 }
 0xd71   :  { %v6587_v6 = vpack.c.bf16 %v6539_v9, %v6536_v5 }
 0xd73   :  { %6610 = vmatpush1.bf16.msra.mxu0 %v6587_v6 }
 0xd74   :  { %6611 = vmatprep.subr.bf16.mxu0 %v21078_v43 }
 0xd75   :  { %v15384_v0 = vpop.f32.mrb[136].mxu0 }
 0xd76   :  { %v6552_v16 = vpop.f32.mrb[137].mxu0 }
 0xd77   :  { %v15385_v58 = vpop.f32.mrb[138].mxu0  ;;  %6612 = vmatpush1.bf16.msra.mxu0 %v6588_v39 }
 0xd78   :  { %v6590_v11 = vpack.c.bf16 %v15385_v58, %v15384_v0  ;;  %v6555_v60 = vpop.f32.mrb[139].mxu0  ;;  %6613 = vmatprep.subr.bf16.mxu0 %v21078_v43 }
 0xd79   :  { %v6589_v20 = vpack.c.bf16 %v6555_v60, %v6552_v16 }
 0xd7b   :  { %6614 = vmatpush1.bf16.msra.mxu0 %v6589_v20 }
 0xd7c   :  { %6615 = vmatprep.subr.bf16.mxu0 %v21078_v43 }
 0xd7d   :  { %v15388_v35 = vpop.f32.mrb[140].mxu0 }
 0xd7e   :  { %v6568_v10 = vpop.f32.mrb[141].mxu0 }
 0xd7f   :  { %v15389_v38 = vpop.f32.mrb[142].mxu0  ;;  %6616 = vmatpush1.bf16.msra.mxu0 %v6590_v11 }
 0xd80   :  { %v6592_v54 = vpack.c.bf16 %v15389_v38, %v15388_v35  ;;  %v6571_v56 = vpop.f32.mrb[143].mxu0  ;;  %6617 = vmatprep.subr.bf16.mxu0 %v21078_v43 }
 0xd81   :  { %v6591_v42 = vpack.c.bf16 %v6571_v56, %v6568_v10 }
 0xd83   :  { %6618 = vmatpush1.bf16.msra.mxu0 %v6591_v42 }
 0xd84   :  { %6619 = vmatprep.subr.bf16.mxu0 %v21078_v43 }
 0xd87   :  { %6620 = vmatpush1.bf16.msra.mxu0 %v6592_v54 }
 0xd88   :  { %7226 = vmatprep.subr.bf16.mxu0 %v21078_v43 }
 0xd8a   :  { %6634 = vmatmul.mubr.bf16.vlgmr.msra.gmra.mrb[144].mxu0 %v19264_v52 }
 0xd8b   :  { %13393 = vmatprep.mubr.msk.bf16.mxu0 %vm1187_vm9, %v19269_v48 }
 0xd92   :  { %6642 = vmatmul.mubr.bf16.gmra.mrb[148].mxu0 %v19277_v32 }
 0xd93   :  { %13394 = vmatprep.mubr.msk.bf16.mxu0 %vm1187_vm9, %v19282_v33 }
 0xd9a   :  { %6650 = vmatmul.mubr.bf16.gmra.mrb[152].mxu0 %v19290_v40 }
 0xd9b   :  { %13395 = vmatprep.mubr.msk.bf16.mxu0 %vm1187_vm9, %v19295_v28 }
 0xda2   :  { %6658 = vmatmul.mubr.bf16.gmra.mrb[156].mxu0 %v19303_v50 }
 0xda3   :  { %13396 = vmatprep.mubr.msk.bf16.mxu0 %vm1187_vm9, %v19308_v19 }
 0xdaa   :  { %6666 = vmatmul.mubr.bf16.gmra.mrb[160].mxu0 %v19316_v55 }
 0xdab   :  { %13397 = vmatprep.mubr.msk.bf16.mxu0 %vm1187_vm9, %v19321_v23 }
 0xdb2   :  { %6674 = vmatmul.mubr.bf16.gmra.mrb[164].mxu0 %v19329_v51 }
 0xdb3   :  { %13398 = vmatprep.mubr.msk.bf16.mxu0 %vm1187_vm9, %v19334_v57 }
 0xdba   :  { %6682 = vmatmul.mubr.bf16.gmra.mrb[168].mxu0 %v19342_v3 }
 0xdbb   :  { %13399 = vmatprep.mubr.msk.bf16.mxu0 %vm1187_vm9, %v19347_v8 }
 0xdc2   :  { %6690 = vmatmul.mubr.bf16.gmra.mrb[172].mxu0 %v19355_v36 }
 0xdc3   :  { %13400 = vmatprep.mubr.msk.bf16.mxu0 %vm1187_vm9, %v19360_v41 }
 0xdca   :  { %6698 = vmatmul.mubr.bf16.gmra.mrb[176].mxu0 %v19368_v46 }
 0xdcb   :  { %13401 = vmatprep.mubr.msk.bf16.mxu0 %vm1187_vm9, %v19373_v61 }
 0xdd2   :  { %6706 = vmatmul.mubr.bf16.gmra.mrb[180].mxu0 %v19381_v27 }
 0xdd3   :  { %13446 = vmatprep.mubr.msk.bf16.mxu0 %vm1187_vm9, %v19248_v45 }
 0xe5d   :  { %v6635_v21 = vpop.f32.mrb[144].mxu0 }
 0xe5e   :  { %v6636_v26 = vadd.f32 %v19576_v62, %v6635_v21  ;;  %v6637_v15 = vpop.f32.mrb[145].mxu0 }
 0xe5f   :  { %v6638_v44 = vpop.f32.mrb[146].mxu0 }
 0xe60   :  { %v6734_v5 = vmul.f32 0.01, %v6636_v26  ;;  %v6639_v49 = vadd.f32 %v19576_v62, %v6638_v44  ;;  %v6640_v45 = vpop.f32.mrb[147].mxu0  ;;  %vm6714_vm2 = vcmp.ge.f32.partialorder %v6636_v26, 0.0 }
 0xe62   :  { %vm6715_vm3 = vcmp.ge.f32.partialorder %v6639_v49, 0.0  ;;  %v6735_v39 = vmul.f32 0.01, %v6639_v49  ;;  %v6754_v9 = vsel %vm6714_vm2, %v6636_v26, %v6734_v5 }
 0xe64   :  { %v6755_v6 = vsel %vm6715_vm3, %v6639_v49, %v6735_v39 }
 0xe65   :  { %v6643_v0 = vpop.f32.mrb[148].mxu0  ;;  %v19580_v16 = vpack.c.bf16 %v6755_v6, %v6754_v9 }
 0xe66   :  { %v6644_v58 = vadd.f32 %v19576_v62, %v6643_v0  ;;  %v6645_v11 = vpop.f32.mrb[149].mxu0 }
 0xe67   :  { %v6646_v60 = vpop.f32.mrb[150].mxu0  ;;  %15438 = vmatprep.mubr.msk.bf16.mxu1 %vm2368_vm7, %v19580_v16 }
 0xe68   :  { %v6736_v20 = vmul.f32 0.01, %v6644_v58  ;;  %v6647_v35 = vadd.f32 %v19576_v62, %v6646_v60  ;;  %v6648_v10 = vpop.f32.mrb[151].mxu0  ;;  %vm6716_vm4 = vcmp.ge.f32.partialorder %v6644_v58, 0.0 }
 0xe6a   :  { %vm6717_vm5 = vcmp.ge.f32.partialorder %v6647_v35, 0.0  ;;  %v6737_v38 = vmul.f32 0.01, %v6647_v35  ;;  %v6756_v54 = vsel %vm6716_vm4, %v6644_v58, %v6736_v20 }
 0xe6c   :  { %v6757_v56 = vsel %vm6717_vm5, %v6647_v35, %v6737_v38 }
 0xe6d   :  { %v19586_v42 = vpack.c.bf16 %v6757_v56, %v6756_v54  ;;  %v6651_v22 = vpop.f32.mrb[152].mxu0 }
 0xe6e   :  { %v6652_v21 = vadd.f32 %v19576_v62, %v6651_v22  ;;  %v6653_v26 = vpop.f32.mrb[153].mxu0 }
 0xe6f   :  { %15439 = vmatmul.mubr.msk.bf16.vlgmr.msra.gmra.mrb[24].mxu1 %vm2368_vm7, %v19586_v42  ;;  %v6654_v15 = vpop.f32.mrb[154].mxu0 }
 0xe70   :  { %v6738_v44 = vmul.f32 0.01, %v6652_v21  ;;  %v6655_v5 = vadd.f32 %v19576_v62, %v6654_v15  ;;  %v6656_v49 = vpop.f32.mrb[155].mxu0  ;;  %vm6718_vm8 = vcmp.ge.f32.partialorder %v6652_v21, 0.0 }
 0xe72   :  { %vm6719_vm10 = vcmp.ge.f32.partialorder %v6655_v5, 0.0  ;;  %v6739_v45 = vmul.f32 0.01, %v6655_v5  ;;  %v6758_v39 = vsel %vm6718_vm8, %v6652_v21, %v6738_v44 }
 0xe74   :  { %v6759_v9 = vsel %vm6719_vm10, %v6655_v5, %v6739_v45 }
 0xe75   :  { %v6659_v6 = vpop.f32.mrb[156].mxu0  ;;  %v19592_v0 = vpack.c.bf16 %v6759_v9, %v6758_v39 }
 0xe76   :  { %v6660_v58 = vadd.f32 %v19576_v62, %v6659_v6  ;;  %v6661_v11 = vpop.f32.mrb[157].mxu0 }
 0xe77   :  { %v6662_v60 = vpop.f32.mrb[158].mxu0  ;;  %15442 = vmatprep.mubr.msk.bf16.mxu1 %vm2368_vm7, %v19592_v0 }
 0xe78   :  { %v6740_v20 = vmul.f32 0.01, %v6660_v58  ;;  %v6663_v35 = vadd.f32 %v19576_v62, %v6662_v60  ;;  %v6664_v10 = vpop.f32.mrb[159].mxu0  ;;  %vm6720_vm11 = vcmp.ge.f32.partialorder %v6660_v58, 0.0 }
 0xe7a   :  { %vm6721_vm12 = vcmp.ge.f32.partialorder %v6663_v35, 0.0  ;;  %v6741_v38 = vmul.f32 0.01, %v6663_v35  ;;  %v6760_v54 = vsel %vm6720_vm11, %v6660_v58, %v6740_v20 }
 0xe7c   :  { %v6761_v56 = vsel %vm6721_vm12, %v6663_v35, %v6741_v38 }
 0xe7d   :  { %v19598_v22 = vpack.c.bf16 %v6761_v56, %v6760_v54  ;;  %v6667_v21 = vpop.f32.mrb[160].mxu0 }
 0xe7e   :  { %v6668_v26 = vadd.f32 %v19576_v62, %v6667_v21  ;;  %v6669_v15 = vpop.f32.mrb[161].mxu0 }
 0xe7f   :  { %15443 = vmatmul.mubr.msk.bf16.gmra.mrb[28].mxu1 %vm2368_vm7, %v19598_v22  ;;  %v6670_v44 = vpop.f32.mrb[162].mxu0 }
 0xe80   :  { %v6671_v5 = vadd.f32 %v19576_v62, %v6670_v44  ;;  %v6672_v49 = vpop.f32.mrb[163].mxu0  ;;  %v6742_v45 = vmul.f32 0.01, %v6668_v26  ;;  %vm6722_vm13 = vcmp.ge.f32.partialorder %v6668_v26, 0.0 }
 0xe82   :  { %vm6723_vm14 = vcmp.ge.f32.partialorder %v6671_v5, 0.0  ;;  %v6743_v39 = vmul.f32 0.01, %v6671_v5  ;;  %v6762_v9 = vsel %vm6722_vm13, %v6668_v26, %v6742_v45 }
 0xe84   :  { %v6763_v6 = vsel %vm6723_vm14, %v6671_v5, %v6743_v39 }
 0xe85   :  { %v6675_v58 = vpop.f32.mrb[164].mxu0  ;;  %v19604_v11 = vpack.c.bf16 %v6763_v6, %v6762_v9 }
 0xe86   :  { %v6676_v60 = vadd.f32 %v19576_v62, %v6675_v58  ;;  %v6677_v20 = vpop.f32.mrb[165].mxu0 }
 0xe87   :  { %v6678_v35 = vpop.f32.mrb[166].mxu0  ;;  %15446 = vmatprep.mubr.msk.bf16.mxu1 %vm2368_vm7, %v19604_v11 }
 0xe88   :  { %v6744_v10 = vmul.f32 0.01, %v6676_v60  ;;  %v6679_v38 = vadd.f32 %v19576_v62, %v6678_v35  ;;  %v6680_v54 = vpop.f32.mrb[167].mxu0  ;;  %vm6724_vm15 = vcmp.ge.f32.partialorder %v6676_v60, 0.0 }
 0xe8a   :  { %vm6725_vm0 = vcmp.ge.f32.partialorder %v6679_v38, 0.0  ;;  %v6745_v56 = vmul.f32 0.01, %v6679_v38  ;;  %v6764_v21 = vsel %vm6724_vm15, %v6676_v60, %v6744_v10 }
 0xe8c   :  { %v6765_v26 = vsel %vm6725_vm0, %v6679_v38, %v6745_v56 }
 0xe8d   :  { %v19610_v15 = vpack.c.bf16 %v6765_v26, %v6764_v21  ;;  %v6683_v44 = vpop.f32.mrb[168].mxu0 }
 0xe8e   :  { %v6684_v5 = vadd.f32 %v19576_v62, %v6683_v44  ;;  %v6685_v49 = vpop.f32.mrb[169].mxu0 }
 0xe8f   :  { %15447 = vmatmul.mubr.msk.bf16.gmra.mrb[32].mxu1 %vm2368_vm7, %v19610_v15  ;;  %v6686_v45 = vpop.f32.mrb[170].mxu0 }
 0xe90   :  { %v6746_v39 = vmul.f32 0.01, %v6684_v5  ;;  %v6687_v9 = vadd.f32 %v19576_v62, %v6686_v45  ;;  %v6688_v6 = vpop.f32.mrb[171].mxu0  ;;  %vm6726_vm2 = vcmp.ge.f32.partialorder %v6684_v5, 0.0 }
 0xe92   :  { %vm6727_vm3 = vcmp.ge.f32.partialorder %v6687_v9, 0.0  ;;  %v6747_v58 = vmul.f32 0.01, %v6687_v9  ;;  %v6766_v20 = vsel %vm6726_vm2, %v6684_v5, %v6746_v39 }
 0xe94   :  { %v6767_v60 = vsel %vm6727_vm3, %v6687_v9, %v6747_v58 }
 0xe95   :  { %v6691_v35 = vpop.f32.mrb[172].mxu0  ;;  %v19616_v10 = vpack.c.bf16 %v6767_v60, %v6766_v20 }
 0xe96   :  { %v6692_v38 = vadd.f32 %v19576_v62, %v6691_v35  ;;  %v6693_v54 = vpop.f32.mrb[173].mxu0 }
 0xe97   :  { %v6694_v56 = vpop.f32.mrb[174].mxu0  ;;  %15450 = vmatprep.mubr.msk.bf16.mxu1 %vm2368_vm7, %v19616_v10 }
 0xe98   :  { %v6748_v21 = vmul.f32 0.01, %v6692_v38  ;;  %v6695_v26 = vadd.f32 %v19576_v62, %v6694_v56  ;;  %v6696_v44 = vpop.f32.mrb[175].mxu0  ;;  %vm6728_vm4 = vcmp.ge.f32.partialorder %v6692_v38, 0.0 }
 0xe9a   :  { %vm6729_vm5 = vcmp.ge.f32.partialorder %v6695_v26, 0.0  ;;  %v6749_v49 = vmul.f32 0.01, %v6695_v26  ;;  %v6768_v45 = vsel %vm6728_vm4, %v6692_v38, %v6748_v21 }
 0xe9c   :  { %v6769_v5 = vsel %vm6729_vm5, %v6695_v26, %v6749_v49 }
 0xe9d   :  { %v19622_v39 = vpack.c.bf16 %v6769_v5, %v6768_v45  ;;  %v6699_v9 = vpop.f32.mrb[176].mxu0 }
 0xe9e   :  { %v6700_v6 = vadd.f32 %v19576_v62, %v6699_v9  ;;  %v6701_v58 = vpop.f32.mrb[177].mxu0 }
 0xe9f   :  { %21080 = vst [vmem:[#allocation20_spill] sm:$0xff] %v19622_v39  ;;  %15451 = vmatmul.mubr.msk.bf16.gmra.mrb[36].mxu1 %vm2368_vm7, %v19622_v39  ;;  %v6702_v20 = vpop.f32.mrb[178].mxu0 }
 0xea0   :  { %v6750_v60 = vmul.f32 0.01, %v6700_v6  ;;  %v6703_v35 = vadd.f32 %v19576_v62, %v6702_v20  ;;  %v6704_v54 = vpop.f32.mrb[179].mxu0  ;;  %vm6730_vm8 = vcmp.ge.f32.partialorder %v6700_v6, 0.0 }
 0xea2   :  { %vm6731_vm10 = vcmp.ge.f32.partialorder %v6703_v35, 0.0  ;;  %v6751_v56 = vmul.f32 0.01, %v6703_v35  ;;  %v6770_v44 = vsel %vm6730_vm8, %v6700_v6, %v6750_v60 }
 0xea4   :  { %v6771_v38 = vsel %vm6731_vm10, %v6703_v35, %v6751_v56 }
 0xea5   :  { %v6707_v21 = vpop.f32.mrb[180].mxu0  ;;  %v19628_v26 = vpack.c.bf16 %v6771_v38, %v6770_v44 }
 0xea6   :  { %v6708_v49 = vadd.f32 %v19576_v62, %v6707_v21  ;;  %v6709_v45 = vpop.f32.mrb[181].mxu0 }
 0xea7   :  { %v6710_v5 = vpop.f32.mrb[182].mxu0  ;;  %15454 = vmatprep.mubr.msk.bf16.mxu1 %vm2368_vm7, %v19628_v26 }
 0xea8   :  { %v6752_v9 = vmul.f32 0.01, %v6708_v49  ;;  %v6711_v58 = vadd.f32 %v19576_v62, %v6710_v5  ;;  %v6712_v20 = vpop.f32.mrb[183].mxu0  ;;  %vm6732_vm11 = vcmp.ge.f32.partialorder %v6708_v49, 0.0 }
 0xeaa   :  { %vm6733_vm12 = vcmp.ge.f32.partialorder %v6711_v58, 0.0  ;;  %v6753_v54 = vmul.f32 0.01, %v6711_v58  ;;  %v6772_v39 = vsel %vm6732_vm11, %v6708_v49, %v6752_v9 }
 0xeac   :  { %v6773_v6 = vsel %vm6733_vm12, %v6711_v58, %v6753_v54 }
 0xead   :  { %v19634_v60 = vpack.c.bf16 %v6773_v6, %v6772_v39 }
 0xeaf   :  { %15455 = vmatmul.mubr.msk.bf16.gmra.mrb[40].mxu1 %vm2368_vm7, %v19634_v60 }
 0xf42   :  { %v15440_v35 = vpop.f32.mrb[24].mxu1 }
 0xf43   :  { %v7109_v56 = vpop.f32.mrb[25].mxu1 }
 0xf44   :  { %v15441_v44 = vpop.f32.mrb[26].mxu1 }
 0xf45   :  { %v7209_v38 = vpack.c.bf16 %v15441_v44, %v15440_v35  ;;  %v7112_v21 = vpop.f32.mrb[27].mxu1 }
 0xf46   :  { %v7208_v45 = vpack.c.bf16 %v7112_v21, %v7109_v56 }
 0xf48   :  { %7227 = vmatpush1.bf16.msra.mxu0 %v7208_v45 }
 0xf49   :  { %7228 = vmatprep.subr.bf16.mxu0 %v21078_v43 }
 0xf4c   :  { %7229 = vmatpush1.bf16.msra.mxu0 %v7209_v38 }
 0xf4d   :  { %7230 = vmatprep.subr.bf16.mxu0 %v21078_v43 }
 0xf52   :  { %v15444_v62 = vpop.f32.mrb[28].mxu1 }
 0xf53   :  { %v7125_v49 = vpop.f32.mrb[29].mxu1 }
 0xf54   :  { %v15445_v5 = vpop.f32.mrb[30].mxu1 }
 0xf55   :  { %v7211_v39 = vpack.c.bf16 %v15445_v5, %v15444_v62  ;;  %v7128_v9 = vpop.f32.mrb[31].mxu1 }
 0xf56   :  { %v7210_v58 = vpack.c.bf16 %v7128_v9, %v7125_v49 }
 0xf58   :  { %7231 = vmatpush1.bf16.msra.mxu0 %v7210_v58 }
 0xf59   :  { %7232 = vmatprep.subr.bf16.mxu0 %v21078_v43 }
 0xf5c   :  { %7233 = vmatpush1.bf16.msra.mxu0 %v7211_v39 }
 0xf5d   :  { %7234 = vmatprep.subr.bf16.mxu0 %v21078_v43 }
 0xf62   :  { %v15448_v20 = vpop.f32.mrb[32].mxu1 }
 0xf63   :  { %v7141_v54 = vpop.f32.mrb[33].mxu1 }
 0xf64   :  { %v15449_v6 = vpop.f32.mrb[34].mxu1 }
 0xf65   :  { %v7213_v35 = vpack.c.bf16 %v15449_v6, %v15448_v20  ;;  %v7144_v56 = vpop.f32.mrb[35].mxu1 }
 0xf66   :  { %v7212_v44 = vpack.c.bf16 %v7144_v56, %v7141_v54  ;;  %v16967_v56 = vld [vmem:[%s20980_s9 + $0x10] sm:$0xff]  }
 0xf68   :  { %7235 = vmatpush1.bf16.msra.mxu0 %v7212_v44 }
 0xf69   :  { %7236 = vmatprep.subr.bf16.mxu0 %v21078_v43 }
 0xf6c   :  { %7237 = vmatpush1.bf16.msra.mxu0 %v7213_v35  ;;  %v16966_v35 = vld [vmem:[%s20979_s10 + $0x18] sm:$0xff]  }
 0xf6d   :  { %7238 = vmatprep.subr.bf16.mxu0 %v21078_v43 }
 0xf72   :  { %v15452_v38 = vpop.f32.mrb[36].mxu1 }
 0xf73   :  { %v7157_v21 = vpop.f32.mrb[37].mxu1 }
 0xf74   :  { %v15453_v45 = vpop.f32.mrb[38].mxu1 }
 0xf75   :  { %v7215_v62 = vpack.c.bf16 %v15453_v45, %v15452_v38  ;;  %v7160_v49 = vpop.f32.mrb[39].mxu1 }
 0xf76   :  { %v7214_v5 = vpack.c.bf16 %v7160_v49, %v7157_v21 }
 0xf78   :  { %7239 = vmatpush1.bf16.msra.mxu0 %v7214_v5 }
 0xf79   :  { %7240 = vmatprep.subr.bf16.mxu0 %v21078_v43 }
 0xf7c   :  { %7241 = vmatpush1.bf16.msra.mxu0 %v7215_v62 }
 0xf7d   :  { %7242 = vmatprep.subr.bf16.mxu0 %v21078_v43 }
 0xf82   :  { %v15456_v39 = vpop.f32.mrb[40].mxu1 }
 0xf83   :  { %v7173_v9 = vpop.f32.mrb[41].mxu1 }
 0xf84   :  { %v15457_v58 = vpop.f32.mrb[42].mxu1 }
 0xf85   :  { %v7217_v20 = vpack.c.bf16 %v15457_v58, %v15456_v39  ;;  %v7176_v54 = vpop.f32.mrb[43].mxu1 }
 0xf86   :  { %v7216_v6 = vpack.c.bf16 %v7176_v54, %v7173_v9 }
 0xf88   :  { %7243 = vmatpush1.bf16.msra.mxu0 %v7216_v6 }
 0xf89   :  { %7244 = vmatprep.subr.bf16.mxu0 %v21078_v43  ;;  %v16968_v43 = vld [vmem:[%s20980_s9 + $0x18] sm:$0xff]  }
 0xf8c   :  { %7245 = vmatpush1.bf16.msra.mxu0 %v7217_v20 }
 0xf8d   :  { %15458 = vmatprep.subr.bf16.mxu0 %v16966_v35 }
 0xf8f   :  { %7259 = vmatmul.mubr.bf16.vlgmr.msra.gmra.mrb[184].mxu0 %v19264_v52  ;;  %v16969_v52 = vld [vmem:[%s20979_s10 + $0x20] sm:$0xff]  }
 0xf90   :  { %13447 = vmatprep.mubr.msk.bf16.mxu0 %vm1187_vm9, %v19269_v48  ;;  %15459 = vmatpush3.bf16.msra.mxu0 %v16966_v35  ;;  %v16970_v48 = vld [vmem:[%s20979_s10 + $0x28] sm:$0xff]  }
 0xf91   :  { %15480 = vmatprep.subr.bf16.mxu0 %v16967_v56 }
 0xf97   :  { %7267 = vmatmul.mubr.bf16.gmra.mrb[188].mxu0 %v19277_v32 }
 0xf98   :  { %13448 = vmatprep.mubr.msk.bf16.mxu0 %vm1187_vm9, %v19282_v33 }
 0xf9f   :  { %7275 = vmatmul.mubr.bf16.gmra.mrb[192].mxu0 %v19290_v40 }
 0xfa0   :  { %13449 = vmatprep.mubr.msk.bf16.mxu0 %vm1187_vm9, %v19295_v28 }
 0xfa7   :  { %7283 = vmatmul.mubr.bf16.gmra.mrb[196].mxu0 %v19303_v50 }
 0xfa8   :  { %13450 = vmatprep.mubr.msk.bf16.mxu0 %vm1187_vm9, %v19308_v19 }
 0xfaf   :  { %7291 = vmatmul.mubr.bf16.gmra.mrb[200].mxu0 %v19316_v55 }
 0xfb0   :  { %13451 = vmatprep.mubr.msk.bf16.mxu0 %vm1187_vm9, %v19321_v23 }
 0xfb7   :  { %7299 = vmatmul.mubr.bf16.gmra.mrb[204].mxu0 %v19329_v51 }
 0xfb8   :  { %13452 = vmatprep.mubr.msk.bf16.mxu0 %vm1187_vm9, %v19334_v57 }
 0xfbf   :  { %7307 = vmatmul.mubr.bf16.gmra.mrb[208].mxu0 %v19342_v3 }
 0xfc0   :  { %13453 = vmatprep.mubr.msk.bf16.mxu0 %vm1187_vm9, %v19347_v8 }
 0xfc7   :  { %7315 = vmatmul.mubr.bf16.gmra.mrb[212].mxu0 %v19355_v36 }
 0xfc8   :  { %13454 = vmatprep.mubr.msk.bf16.mxu0 %vm1187_vm9, %v19360_v41 }
 0xfcf   :  { %7323 = vmatmul.mubr.bf16.gmra.mrb[216].mxu0 %v19368_v46 }
 0xfd0   :  { %13455 = vmatprep.mubr.msk.bf16.mxu0 %vm1187_vm9, %v19373_v61 }
 0xfd7   :  { %7331 = vmatmul.mubr.bf16.gmra.mrb[220].mxu0 %v19381_v27 }
 0xfd8   :  { %15460 = vmatprep.mubr.msk.bf16.mxu0 %vm2368_vm7, %v19403_v31 }
 0xfdf   :  { %15461 = vmatmul.mubr.msk.bf16.vlgmr.msra.gmra.mrb[224].mxu0 %vm2368_vm7, %v19411_v2 }
 0xfe0   :  { %15464 = vmatprep.mubr.msk.bf16.mxu0 %vm2368_vm7, %v19425_v4  ;;  %15481 = vmatpush3.bf16.msra.mxu0 %v16967_v56 }
 0xfe1   :  { %15482 = vmatprep.subr.bf16.mxu0 %v16968_v43 }
 0xfe4   :  { %15483 = vmatpush3.bf16.msra.mxu0 %v16968_v43 }
 0xfe5   :  { %15504 = vmatprep.subr.bf16.mxu0 %v16969_v52 }
 0xfe7   :  { %15465 = vmatmul.mubr.msk.bf16.gmra.mrb[228].mxu0 %vm2368_vm7, %v19434_v34 }
 0xfe8   :  { %15468 = vmatprep.mubr.msk.bf16.mxu0 %vm2368_vm7, %v19442_v7 }
 0xfef   :  { %15469 = vmatmul.mubr.msk.bf16.gmra.mrb[232].mxu0 %vm2368_vm7, %v19450_v14 }
 0xff0   :  { %15472 = vmatprep.mubr.msk.bf16.mxu0 %vm2368_vm7, %v19458_v13 }
 0xff7   :  { %15473 = vmatmul.mubr.msk.bf16.gmra.mrb[236].mxu0 %vm2368_vm7, %v19466_v17 }
 0xff8   :  { %15476 = vmatprep.mubr.msk.bf16.mxu0 %vm2368_vm7, %v19474_v37 }
 0xfff   :  { %15477 = vmatmul.mubr.msk.bf16.gmra.mrb[240].mxu0 %vm2368_vm7, %v19482_v12 }
0x1000   :  { %15484 = vmatprep.mubr.msk.bf16.mxu0 %vm1187_vm9, %v19172_v18  ;;  %v21081_v18 = vld [vmem:[#allocation20_spill] sm:$0xff] }
0x1007   :  { %15485 = vmatmul.mubr.msk.bf16.vlgmr.msra.gmra.mrb[224].mxu0 %vm1187_vm9, %v19179_v25  ;;  %v19753_v25 = vld [vmem:[%s20978_s8 + $0x5] ss:$0 sm:$0xff] }
0x1008   :  { %15488 = vmatprep.mubr.msk.bf16.mxu0 %vm1187_vm9, %v19188_v47  ;;  %15505 = vmatpush3.bf16.msra.mxu0 %v16969_v52 }
0x1009   :  { %15526 = vmatprep.subr.bf16.mxu0 %v16970_v48 }
0x100f   :  { %15489 = vmatmul.mubr.msk.bf16.gmra.mrb[228].mxu0 %vm1187_vm9, %v19195_v53 }
0x1010   :  { %15492 = vmatprep.mubr.msk.bf16.mxu0 %vm1187_vm9, %v19204_v1 }
0x1017   :  { %15493 = vmatmul.mubr.msk.bf16.gmra.mrb[232].mxu0 %vm1187_vm9, %v19211_v24 }
0x1018   :  { %15496 = vmatprep.mubr.msk.bf16.mxu0 %vm1187_vm9, %v19220_v29 }
0x101f   :  { %15497 = vmatmul.mubr.msk.bf16.gmra.mrb[236].mxu0 %vm1187_vm9, %v19227_v63 }
0x1020   :  { %15500 = vmatprep.mubr.msk.bf16.mxu0 %vm1187_vm9, %v19236_v30 }
0x1027   :  { %15501 = vmatmul.mubr.msk.bf16.gmra.mrb[240].mxu0 %vm1187_vm9, %v19241_v59 }
0x1028   :  { %15506 = vmatprep.mubr.msk.bf16.mxu0 %vm2368_vm7, %v19580_v16 }
0x102f   :  { %15507 = vmatmul.mubr.msk.bf16.vlgmr.msra.gmra.mrb[224].mxu0 %vm2368_vm7, %v19586_v42 }
0x1030   :  { %15510 = vmatprep.mubr.msk.bf16.mxu0 %vm2368_vm7, %v19592_v0  ;;  %15527 = vmatpush3.bf16.msra.mxu0 %v16970_v48 }
0x1037   :  { %15511 = vmatmul.mubr.msk.bf16.gmra.mrb[228].mxu0 %vm2368_vm7, %v19598_v22 }
0x1038   :  { %15514 = vmatprep.mubr.msk.bf16.mxu0 %vm2368_vm7, %v19604_v11 }
0x103f   :  { %15515 = vmatmul.mubr.msk.bf16.gmra.mrb[232].mxu0 %vm2368_vm7, %v19610_v15 }
0x1040   :  { %15518 = vmatprep.mubr.msk.bf16.mxu0 %vm2368_vm7, %v19616_v10 }
0x1047   :  { %15519 = vmatmul.mubr.msk.bf16.gmra.mrb[236].mxu0 %vm2368_vm7, %v21081_v18 }
0x1048   :  { %15522 = vmatprep.mubr.msk.bf16.mxu0 %vm2368_vm7, %v19628_v26 }
0x104f   :  { %15523 = vmatmul.mubr.msk.bf16.gmra.mrb[240].mxu0 %vm2368_vm7, %v19634_v60 }
0x1062   :  { %v7260_v47 = vpop.f32.mrb[184].mxu0 }
0x1063   :  { %v7261_v53 = vadd.f32 %v19753_v25, %v7260_v47  ;;  %v7262_v1 = vpop.f32.mrb[185].mxu0 }
0x1064   :  { %v7263_v24 = vpop.f32.mrb[186].mxu0 }
0x1065   :  { %v7359_v29 = vmul.f32 0.01, %v7261_v53  ;;  %v7264_v63 = vadd.f32 %v19753_v25, %v7263_v24  ;;  %v7265_v30 = vpop.f32.mrb[187].mxu0  ;;  %vm7339_vm13 = vcmp.ge.f32.partialorder %v7261_v53, 0.0 }
0x1067   :  { %vm7340_vm14 = vcmp.ge.f32.partialorder %v7264_v63, 0.0  ;;  %v7360_v59 = vmul.f32 0.01, %v7264_v63  ;;  %v7379_v32 = vsel %vm7339_vm13, %v7261_v53, %v7359_v29 }
0x1069   :  { %v7380_v33 = vsel %vm7340_vm14, %v7264_v63, %v7360_v59 }
0x106a   :  { %v7268_v40 = vpop.f32.mrb[188].mxu0  ;;  %v7796_v28 = vpack.c.bf16 %v7380_v33, %v7379_v32 }
0x106b   :  { %v7269_v50 = vadd.f32 %v19753_v25, %v7268_v40  ;;  %v7270_v19 = vpop.f32.mrb[189].mxu0 }
0x106c   :  { %v7271_v55 = vpop.f32.mrb[190].mxu0  ;;  %15528 = vmatprep.mubr.msk.bf16.mxu0 %vm2368_vm7, %v7796_v28 }
0x106d   :  { %v7361_v23 = vmul.f32 0.01, %v7269_v50  ;;  %v7272_v51 = vadd.f32 %v19753_v25, %v7271_v55  ;;  %v7273_v57 = vpop.f32.mrb[191].mxu0  ;;  %vm7341_vm15 = vcmp.ge.f32.partialorder %v7269_v50, 0.0 }
0x106f   :  { %vm7342_vm0 = vcmp.ge.f32.partialorder %v7272_v51, 0.0  ;;  %v7362_v3 = vmul.f32 0.01, %v7272_v51  ;;  %v7381_v8 = vsel %vm7341_vm15, %v7269_v50, %v7361_v23 }
0x1071   :  { %v7382_v36 = vsel %vm7342_vm0, %v7272_v51, %v7362_v3 }
0x1072   :  { %v7797_v41 = vpack.c.bf16 %v7382_v36, %v7381_v8  ;;  %v7276_v46 = vpop.f32.mrb[192].mxu0 }
0x1073   :  { %v7277_v61 = vadd.f32 %v19753_v25, %v7276_v46  ;;  %v7278_v27 = vpop.f32.mrb[193].mxu0 }
0x1074   :  { %15529 = vmatmul.mubr.msk.bf16.vlgmr.msra.gmra.mrb[224].mxu0 %vm2368_vm7, %v7797_v41  ;;  %v7279_v31 = vpop.f32.mrb[194].mxu0 }
0x1075   :  { %v7363_v2 = vmul.f32 0.01, %v7277_v61  ;;  %v7280_v4 = vadd.f32 %v19753_v25, %v7279_v31  ;;  %v7281_v34 = vpop.f32.mrb[195].mxu0  ;;  %vm7343_vm2 = vcmp.ge.f32.partialorder %v7277_v61, 0.0 }
0x1077   :  { %vm7344_vm3 = vcmp.ge.f32.partialorder %v7280_v4, 0.0  ;;  %v7364_v7 = vmul.f32 0.01, %v7280_v4  ;;  %v7383_v14 = vsel %vm7343_vm2, %v7277_v61, %v7363_v2 }
0x1079   :  { %v7384_v13 = vsel %vm7344_vm3, %v7280_v4, %v7364_v7 }
0x107a   :  { %v7284_v17 = vpop.f32.mrb[196].mxu0  ;;  %v7798_v37 = vpack.c.bf16 %v7384_v13, %v7383_v14 }
0x107b   :  { %v7285_v12 = vadd.f32 %v19753_v25, %v7284_v17  ;;  %v7286_v16 = vpop.f32.mrb[197].mxu0 }
0x107c   :  { %v7287_v42 = vpop.f32.mrb[198].mxu0  ;;  %15532 = vmatprep.mubr.msk.bf16.mxu0 %vm2368_vm7, %v7798_v37 }
0x107d   :  { %v7365_v0 = vmul.f32 0.01, %v7285_v12  ;;  %v7288_v22 = vadd.f32 %v19753_v25, %v7287_v42  ;;  %v7289_v11 = vpop.f32.mrb[199].mxu0  ;;  %vm7345_vm4 = vcmp.ge.f32.partialorder %v7285_v12, 0.0 }
0x107f   :  { %vm7346_vm5 = vcmp.ge.f32.partialorder %v7288_v22, 0.0  ;;  %v7366_v15 = vmul.f32 0.01, %v7288_v22  ;;  %v7385_v10 = vsel %vm7345_vm4, %v7285_v12, %v7365_v0 }
0x1081   :  { %v7386_v26 = vsel %vm7346_vm5, %v7288_v22, %v7366_v15 }
0x1082   :  { %v7799_v60 = vpack.c.bf16 %v7386_v26, %v7385_v10  ;;  %v7292_v44 = vpop.f32.mrb[200].mxu0 }
0x1083   :  { %v7293_v38 = vadd.f32 %v19753_v25, %v7292_v44  ;;  %v7294_v21 = vpop.f32.mrb[201].mxu0 }
0x1084   :  { %15533 = vmatmul.mubr.msk.bf16.gmra.mrb[228].mxu0 %vm2368_vm7, %v7799_v60  ;;  %v7295_v45 = vpop.f32.mrb[202].mxu0 }
0x1085   :  { %v7367_v62 = vmul.f32 0.01, %v7293_v38  ;;  %v7296_v49 = vadd.f32 %v19753_v25, %v7295_v45  ;;  %v7297_v5 = vpop.f32.mrb[203].mxu0  ;;  %vm7347_vm8 = vcmp.ge.f32.partialorder %v7293_v38, 0.0  ;;  %v16971_v45 = vld [vmem:[%s21033_s28 + $0x60] sm:$0xff]  }
0x1087   :  { %vm7348_vm10 = vcmp.ge.f32.partialorder %v7296_v49, 0.0  ;;  %v7368_v39 = vmul.f32 0.01, %v7296_v49  ;;  %v7387_v9 = vsel %vm7347_vm8, %v7293_v38, %v7367_v62  ;;  %v17182_v62 = vmov 0.0  }
0x1088   :  { %15548 = vmatprep.subr.bf16.mxu1 %v17182_v62  ;;  %15648 = vmatprep.subr.bf16.mxu0 %v17182_v62  ;;  %vm17183_vm8 = vmmov 0  }
0x1089   :  { %v7388_v58 = vsel %vm7348_vm10, %v7296_v49, %v7368_v39  ;;  %15549 = vmatpush3.bf16.msra.mxu1 %v16971_v45  ;;  %15552 = vmatprep.mubr.msk.bf16.mxu1 %vm17183_vm8, %v17182_v62  ;;  %v19802_v49 = vld [vmem:[%s20981_s11 + $0x1] ss:$0 sm:$0xff] }
0x108a   :  { %v7300_v20 = vpop.f32.mrb[204].mxu0  ;;  %v7800_v54 = vpack.c.bf16 %v7388_v58, %v7387_v9  ;;  %15550 = vmatprep.subr.bf16.mxu1 %v17182_v62 }
0x108b   :  { %v7301_v6 = vadd.f32 %v19753_v25, %v7300_v20  ;;  %v7302_v35 = vpop.f32.mrb[205].mxu0 }
0x108c   :  { %v7303_v56 = vpop.f32.mrb[206].mxu0  ;;  %15536 = vmatprep.mubr.msk.bf16.mxu0 %vm2368_vm7, %v7800_v54 }
0x108d   :  { %v7369_v43 = vmul.f32 0.01, %v7301_v6  ;;  %v7304_v52 = vadd.f32 %v19753_v25, %v7303_v56  ;;  %v7305_v48 = vpop.f32.mrb[207].mxu0  ;;  %vm7349_vm11 = vcmp.ge.f32.partialorder %v7301_v6, 0.0 }
0x108f   :  { %vm7350_vm12 = vcmp.ge.f32.partialorder %v7304_v52, 0.0  ;;  %v7370_v18 = vmul.f32 0.01, %v7304_v52  ;;  %v7389_v47 = vsel %vm7349_vm11, %v7301_v6, %v7369_v43 }
0x1091   :  { %v7390_v53 = vsel %vm7350_vm12, %v7304_v52, %v7370_v18 }
0x1092   :  { %v7801_v1 = vpack.c.bf16 %v7390_v53, %v7389_v47  ;;  %v7308_v24 = vpop.f32.mrb[208].mxu0 }
0x1093   :  { %v7309_v29 = vadd.f32 %v19753_v25, %v7308_v24  ;;  %v7310_v63 = vpop.f32.mrb[209].mxu0 }
0x1094   :  { %15537 = vmatmul.mubr.msk.bf16.gmra.mrb[232].mxu0 %vm2368_vm7, %v7801_v1  ;;  %v7311_v30 = vpop.f32.mrb[210].mxu0 }
0x1095   :  { %v7371_v59 = vmul.f32 0.01, %v7309_v29  ;;  %v7312_v32 = vadd.f32 %v19753_v25, %v7311_v30  ;;  %v7313_v33 = vpop.f32.mrb[211].mxu0  ;;  %vm7351_vm13 = vcmp.ge.f32.partialorder %v7309_v29, 0.0 }
0x1097   :  { %vm7352_vm14 = vcmp.ge.f32.partialorder %v7312_v32, 0.0  ;;  %v7372_v40 = vmul.f32 0.01, %v7312_v32  ;;  %v7391_v28 = vsel %vm7351_vm13, %v7309_v29, %v7371_v59 }
0x1099   :  { %v7392_v50 = vsel %vm7352_vm14, %v7312_v32, %v7372_v40 }
0x109a   :  { %v7802_v19 = vpack.c.bf16 %v7392_v50, %v7391_v28  ;;  %v7316_v55 = vpop.f32.mrb[212].mxu0 }
0x109b   :  { %v7317_v23 = vadd.f32 %v19753_v25, %v7316_v55  ;;  %v7318_v51 = vpop.f32.mrb[213].mxu0 }
0x109c   :  { %v7319_v57 = vpop.f32.mrb[214].mxu0  ;;  %15540 = vmatprep.mubr.msk.bf16.mxu0 %vm2368_vm7, %v7802_v19 }
0x109d   :  { %v7373_v3 = vmul.f32 0.01, %v7317_v23  ;;  %v7320_v8 = vadd.f32 %v19753_v25, %v7319_v57  ;;  %v7321_v36 = vpop.f32.mrb[215].mxu0  ;;  %vm7353_vm15 = vcmp.ge.f32.partialorder %v7317_v23, 0.0 }
0x109f   :  { %vm7354_vm0 = vcmp.ge.f32.partialorder %v7320_v8, 0.0  ;;  %v7374_v41 = vmul.f32 0.01, %v7320_v8  ;;  %v7393_v46 = vsel %vm7353_vm15, %v7317_v23, %v7373_v3 }
0x10a1   :  { %v7394_v61 = vsel %vm7354_vm0, %v7320_v8, %v7374_v41 }
0x10a2   :  { %v7803_v27 = vpack.c.bf16 %v7394_v61, %v7393_v46  ;;  %v7324_v31 = vpop.f32.mrb[216].mxu0 }
0x10a3   :  { %v7325_v2 = vadd.f32 %v19753_v25, %v7324_v31  ;;  %v7326_v4 = vpop.f32.mrb[217].mxu0 }
0x10a4   :  { %15541 = vmatmul.mubr.msk.bf16.gmra.mrb[236].mxu0 %vm2368_vm7, %v7803_v27  ;;  %v7327_v34 = vpop.f32.mrb[218].mxu0 }
0x10a5   :  { %v7375_v7 = vmul.f32 0.01, %v7325_v2  ;;  %v7328_v14 = vadd.f32 %v19753_v25, %v7327_v34  ;;  %v7329_v13 = vpop.f32.mrb[219].mxu0  ;;  %vm7355_vm2 = vcmp.ge.f32.partialorder %v7325_v2, 0.0 }
0x10a7   :  { %vm7356_vm3 = vcmp.ge.f32.partialorder %v7328_v14, 0.0  ;;  %v7376_v17 = vmul.f32 0.01, %v7328_v14  ;;  %v7395_v37 = vsel %vm7355_vm2, %v7325_v2, %v7375_v7 }
0x10a9   :  { %v7396_v12 = vsel %vm7356_vm3, %v7328_v14, %v7376_v17 }
0x10aa   :  { %v7804_v16 = vpack.c.bf16 %v7396_v12, %v7395_v37  ;;  %v7332_v42 = vpop.f32.mrb[220].mxu0 }
0x10ab   :  { %v7333_v0 = vadd.f32 %v19753_v25, %v7332_v42  ;;  %v7334_v22 = vpop.f32.mrb[221].mxu0 }
0x10ac   :  { %v7335_v11 = vpop.f32.mrb[222].mxu0  ;;  %15544 = vmatprep.mubr.msk.bf16.mxu0 %vm2368_vm7, %v7804_v16 }
0x10ad   :  { %v7377_v15 = vmul.f32 0.01, %v7333_v0  ;;  %v7336_v10 = vadd.f32 %v19753_v25, %v7335_v11  ;;  %v7337_v26 = vpop.f32.mrb[223].mxu0  ;;  %vm7357_vm4 = vcmp.ge.f32.partialorder %v7333_v0, 0.0  ;;  %v16972_v25 = vld [vmem:[%s21033_s28 + $0x68] sm:$0xff]  }
0x10ae   :  { %15551 = vmatpush3.bf16.msra.mxu1 %v16972_v25 }
0x10af   :  { %vm7358_vm5 = vcmp.ge.f32.partialorder %v7336_v10, 0.0  ;;  %v7378_v60 = vmul.f32 0.01, %v7336_v10  ;;  %v7397_v44 = vsel %vm7357_vm4, %v7333_v0, %v7377_v15  ;;  %15572 = vmatprep.subr.bf16.mxu1 %v17182_v62 }
0x10b1   :  { %v7398_v38 = vsel %vm7358_vm5, %v7336_v10, %v7378_v60 }
0x10b2   :  { %v7805_v21 = vpack.c.bf16 %v7398_v38, %v7397_v44 }
0x10b4   :  { %15545 = vmatmul.mubr.msk.bf16.gmra.mrb[240].mxu0 %vm2368_vm7, %v7805_v21 }
0x10b5   :  { %15658 = vmatprep.mubr.msk.bf16.mxu0 %vm17183_vm8, %v17182_v62 }
0x1147   :  { %v15530_v5 = vpop.f32.mrb[224].mxu0 }
0x1148   :  { %v7985_v39 = vadd.f32 %v15530_v5, %v19802_v49  ;;  %v7876_v9 = vpop.f32.mrb[225].mxu0 }
0x1149   :  { %v7983_v58 = vadd.f32 %v19802_v49, %v7876_v9  ;;  %v15531_v20 = vpop.f32.mrb[226].mxu0 }
0x114a   :  { %v8025_v54 = vmul.f32 0.01, %v7985_v39  ;;  %v7986_v6 = vadd.f32 %v15531_v20, %v19802_v49  ;;  %v7879_v35 = vpop.f32.mrb[227].mxu0  ;;  %vm8005_vm10 = vcmp.ge.f32.partialorder %v7985_v39, 0.0 }
0x114b   :  { %v8023_v56 = vmul.f32 0.01, %v7983_v58  ;;  %v7984_v43 = vadd.f32 %v19802_v49, %v7879_v35  ;;  %vm8003_vm11 = vcmp.ge.f32.partialorder %v7983_v58, 0.0 }
0x114c   :  { %vm8006_vm12 = vcmp.ge.f32.partialorder %v7986_v6, 0.0  ;;  %v8026_v52 = vmul.f32 0.01, %v7986_v6  ;;  %v8045_v18 = vsel %vm8005_vm10, %v7985_v39, %v8025_v54 }
0x114d   :  { %vm8004_vm13 = vcmp.ge.f32.partialorder %v7984_v43, 0.0  ;;  %v8024_v48 = vmul.f32 0.01, %v7984_v43  ;;  %v8043_v53 = vsel %vm8003_vm11, %v7983_v58, %v8023_v56 }
0x114e   :  { %v8046_v47 = vsel %vm8006_vm12, %v7986_v6, %v8026_v52 }
0x114f   :  { %v8064_v1 = vmax.f32 %v8045_v18, %v8046_v47  ;;  %v8044_v24 = vsel %vm8004_vm13, %v7984_v43, %v8024_v48 }
0x1150   :  { %v8063_v29 = vmax.f32 %v8043_v53, %v8044_v24 }
0x1152   :  { %v19808_v63 = vpack.c.bf16 %v8064_v1, %v8063_v29 }
0x1154   :  { %15553 = vmatmul.mubr.msk.bf16.vlgmr.msra.gmra.mrb[44].mxu1 %vm1187_vm9, %v19808_v63 }
0x1155   :  { %15556 = vmatprep.mubr.msk.bf16.mxu1 %vm17183_vm8, %v17182_v62 }
0x1157   :  { %v15534_v30 = vpop.f32.mrb[228].mxu0 }
0x1158   :  { %v7989_v59 = vadd.f32 %v15534_v30, %v19802_v49  ;;  %v7892_v32 = vpop.f32.mrb[229].mxu0 }
0x1159   :  { %v7987_v33 = vadd.f32 %v19802_v49, %v7892_v32  ;;  %v15535_v40 = vpop.f32.mrb[230].mxu0 }
0x115a   :  { %v8029_v28 = vmul.f32 0.01, %v7989_v59  ;;  %v7990_v50 = vadd.f32 %v15535_v40, %v19802_v49  ;;  %v7895_v19 = vpop.f32.mrb[231].mxu0  ;;  %vm8009_vm14 = vcmp.ge.f32.partialorder %v7989_v59, 0.0 }
0x115b   :  { %v8027_v55 = vmul.f32 0.01, %v7987_v33  ;;  %v7988_v23 = vadd.f32 %v19802_v49, %v7895_v19  ;;  %vm8007_vm15 = vcmp.ge.f32.partialorder %v7987_v33, 0.0 }
0x115c   :  { %vm8010_vm0 = vcmp.ge.f32.partialorder %v7990_v50, 0.0  ;;  %v8030_v51 = vmul.f32 0.01, %v7990_v50  ;;  %v8049_v3 = vsel %vm8009_vm14, %v7989_v59, %v8029_v28 }
0x115d   :  { %vm8008_vm2 = vcmp.ge.f32.partialorder %v7988_v23, 0.0  ;;  %v8028_v57 = vmul.f32 0.01, %v7988_v23  ;;  %v8047_v36 = vsel %vm8007_vm15, %v7987_v33, %v8027_v55 }
0x115e   :  { %v8050_v8 = vsel %vm8010_vm0, %v7990_v50, %v8030_v51 }
0x115f   :  { %v8066_v41 = vmax.f32 %v8049_v3, %v8050_v8  ;;  %v8048_v46 = vsel %vm8008_vm2, %v7988_v23, %v8028_v57 }
0x1160   :  { %v8065_v61 = vmax.f32 %v8047_v36, %v8048_v46 }
0x1162   :  { %v19818_v27 = vpack.c.bf16 %v8066_v41, %v8065_v61 }
0x1164   :  { %15557 = vmatmul.mubr.msk.bf16.gmra.mrb[48].mxu1 %vm1187_vm9, %v19818_v27 }
0x1165   :  { %15560 = vmatprep.mubr.msk.bf16.mxu1 %vm17183_vm8, %v17182_v62 }
0x1167   :  { %v15538_v31 = vpop.f32.mrb[232].mxu0 }
0x1168   :  { %v7993_v2 = vadd.f32 %v15538_v31, %v19802_v49  ;;  %v7908_v4 = vpop.f32.mrb[233].mxu0 }
0x1169   :  { %v7991_v34 = vadd.f32 %v19802_v49, %v7908_v4  ;;  %v15539_v7 = vpop.f32.mrb[234].mxu0 }
0x116a   :  { %v8033_v14 = vmul.f32 0.01, %v7993_v2  ;;  %v7994_v13 = vadd.f32 %v15539_v7, %v19802_v49  ;;  %v7911_v17 = vpop.f32.mrb[235].mxu0  ;;  %vm8013_vm3 = vcmp.ge.f32.partialorder %v7993_v2, 0.0 }
0x116b   :  { %v8031_v37 = vmul.f32 0.01, %v7991_v34  ;;  %v7992_v12 = vadd.f32 %v19802_v49, %v7911_v17  ;;  %vm8011_vm4 = vcmp.ge.f32.partialorder %v7991_v34, 0.0 }
0x116c   :  { %vm8014_vm5 = vcmp.ge.f32.partialorder %v7994_v13, 0.0  ;;  %v8034_v16 = vmul.f32 0.01, %v7994_v13  ;;  %v8053_v0 = vsel %vm8013_vm3, %v7993_v2, %v8033_v14 }
0x116d   :  { %vm8012_vm10 = vcmp.ge.f32.partialorder %v7992_v12, 0.0  ;;  %v8032_v42 = vmul.f32 0.01, %v7992_v12  ;;  %v8051_v11 = vsel %vm8011_vm4, %v7991_v34, %v8031_v37  ;;  %vm8231_vm4 = vcmask 654336  }
0x116e   :  { %v8054_v22 = vsel %vm8014_vm5, %v7994_v13, %v8034_v16 }
0x116f   :  { %v8068_v15 = vmax.f32 %v8053_v0, %v8054_v22  ;;  %v8052_v10 = vsel %vm8012_vm10, %v7992_v12, %v8032_v42 }
0x1170   :  { %v8067_v26 = vmax.f32 %v8051_v11, %v8052_v10 }
0x1172   :  { %v19828_v60 = vpack.c.bf16 %v8068_v15, %v8067_v26 }
0x1174   :  { %15561 = vmatmul.mubr.msk.bf16.gmra.mrb[52].mxu1 %vm1187_vm9, %v19828_v60 }
0x1175   :  { %15564 = vmatprep.mubr.msk.bf16.mxu1 %vm17183_vm8, %v17182_v62 }
0x1177   :  { %v15542_v44 = vpop.f32.mrb[236].mxu0 }
0x1178   :  { %v7997_v38 = vadd.f32 %v15542_v44, %v19802_v49  ;;  %v7924_v21 = vpop.f32.mrb[237].mxu0 }
0x1179   :  { %v7995_v45 = vadd.f32 %v19802_v49, %v7924_v21  ;;  %v15543_v25 = vpop.f32.mrb[238].mxu0 }
0x117a   :  { %v8037_v5 = vmul.f32 0.01, %v7997_v38  ;;  %v7998_v39 = vadd.f32 %v15543_v25, %v19802_v49  ;;  %v7927_v9 = vpop.f32.mrb[239].mxu0  ;;  %vm8017_vm11 = vcmp.ge.f32.partialorder %v7997_v38, 0.0  ;;  %v19871_v25 = vld [vmem:[%s20983_s18 + $0x8] sm:$0xff]  }
0x117b   :  { %v8035_v58 = vmul.f32 0.01, %v7995_v45  ;;  %v7996_v20 = vadd.f32 %v19802_v49, %v7927_v9  ;;  %vm8015_vm12 = vcmp.ge.f32.partialorder %v7995_v45, 0.0  ;;  %v19898_v9 = vld [vmem:[%s20983_s18 + $0x20] sm:$0xff]  }
0x117c   :  { %vm8018_vm13 = vcmp.ge.f32.partialorder %v7998_v39, 0.0  ;;  %v8038_v54 = vmul.f32 0.01, %v7998_v39  ;;  %v8057_v35 = vsel %vm8017_vm11, %v7997_v38, %v8037_v5  ;;  %v19880_v5 = vld [vmem:[%s20983_s18 + $0x10] sm:$0xff]  }
0x117d   :  { %vm8016_vm14 = vcmp.ge.f32.partialorder %v7996_v20, 0.0  ;;  %v8036_v6 = vmul.f32 0.01, %v7996_v20  ;;  %v8055_v43 = vsel %vm8015_vm12, %v7995_v45, %v8035_v58  ;;  %v19861_v45 = vld [vmem:[%s20983_s18] sm:$0xff]   ;;  %v16978_v58 = vld [vmem:[%s20977_s7 + $0x70] sm:$0xff]  }
0x117e   :  { %v8058_v56 = vsel %vm8018_vm13, %v7998_v39, %v8038_v54  ;;  %v19889_v39 = vld [vmem:[%s20983_s18 + $0x18] sm:$0xff]  }
0x117f   :  { %v8070_v52 = vmax.f32 %v8057_v35, %v8058_v56  ;;  %v8056_v48 = vsel %vm8016_vm14, %v7996_v20, %v8036_v6  ;;  %v19911_v20 = vld [vmem:[%s20978_s8 + $0x6] ss:$0 sm:$0xff] }
0x1180   :  { %v8069_v18 = vmax.f32 %v8055_v43, %v8056_v48 }
0x1182   :  { %v19838_v47 = vpack.c.bf16 %v8070_v52, %v8069_v18 }
0x1184   :  { %15565 = vmatmul.mubr.msk.bf16.gmra.mrb[56].mxu1 %vm1187_vm9, %v19838_v47 }
0x1185   :  { %15568 = vmatprep.mubr.msk.bf16.mxu1 %vm17183_vm8, %v17182_v62 }
0x1187   :  { %v15546_v53 = vpop.f32.mrb[240].mxu0 }
0x1188   :  { %v8001_v1 = vadd.f32 %v15546_v53, %v19802_v49  ;;  %v7940_v24 = vpop.f32.mrb[241].mxu0 }
0x1189   :  { %v7999_v29 = vadd.f32 %v19802_v49, %v7940_v24  ;;  %v15547_v30 = vpop.f32.mrb[242].mxu0  ;;  %v16979_v24 = vld [vmem:[%s21033_s28 + $0x70] sm:$0xff]  }
0x118a   :  { %v8041_v59 = vmul.f32 0.01, %v8001_v1  ;;  %v8002_v32 = vadd.f32 %v15547_v30, %v19802_v49  ;;  %v7943_v33 = vpop.f32.mrb[243].mxu0  ;;  %vm8021_vm15 = vcmp.ge.f32.partialorder %v8001_v1, 0.0 }
0x118b   :  { %v8039_v40 = vmul.f32 0.01, %v7999_v29  ;;  %v8000_v28 = vadd.f32 %v19802_v49, %v7943_v33  ;;  %vm8019_vm0 = vcmp.ge.f32.partialorder %v7999_v29, 0.0 }
0x118c   :  { %vm8022_vm2 = vcmp.ge.f32.partialorder %v8002_v32, 0.0  ;;  %v8042_v50 = vmul.f32 0.01, %v8002_v32  ;;  %v8061_v55 = vsel %vm8021_vm15, %v8001_v1, %v8041_v59 }
0x118d   :  { %vm8020_vm3 = vcmp.ge.f32.partialorder %v8000_v28, 0.0  ;;  %v8040_v19 = vmul.f32 0.01, %v8000_v28  ;;  %v8059_v51 = vsel %vm8019_vm0, %v7999_v29, %v8039_v40 }
0x118e   :  { %v8062_v23 = vsel %vm8022_vm2, %v8002_v32, %v8042_v50 }
0x118f   :  { %v8072_v57 = vmax.f32 %v8061_v55, %v8062_v23  ;;  %v8060_v3 = vsel %vm8020_vm3, %v8000_v28, %v8040_v19  ;;  %v16980_v19 = vld [vmem:[%s21033_s28 + $0x78] sm:$0xff]  }
0x1190   :  { %v8071_v8 = vmax.f32 %v8059_v51, %v8060_v3 }
0x1192   :  { %v19848_v36 = vpack.c.bf16 %v8072_v57, %v8071_v8 }
0x1194   :  { %15569 = vmatmul.mubr.msk.bf16.gmra.mrb[60].mxu1 %vm1187_vm9, %v19848_v36 }
0x1195   :  { %15582 = vmatprep.mubr.msk.bf16.mxu1 %vm17183_vm8, %v17182_v62 }
0x1227   :  { %v8154_v49 = vpop.f32.mrb[44].mxu1 }
0x1228   :  { %v15554_v41 = vpop.f32.mrb[45].mxu1 }
0x1229   :  { %v8157_v46 = vpop.f32.mrb[46].mxu1 }
0x122a   :  { %v8193_v61 = vpack.c.bf16 %v8157_v46, %v8154_v49  ;;  %v15555_v31 = vpop.f32.mrb[47].mxu1 }
0x122c   :  { %15573 = vmatpush3.bf16.msra.mxu1 %v8193_v61 }
0x122d   :  { %15574 = vmatprep.subr.bf16.mxu1 %v17182_v62 }
0x1237   :  { %v8162_v2 = vpop.f32.mrb[48].mxu1 }
0x1238   :  { %v15558_v4 = vpop.f32.mrb[49].mxu1 }
0x1239   :  { %v8165_v34 = vpop.f32.mrb[50].mxu1 }
0x123a   :  { %v8194_v7 = vpack.c.bf16 %v8165_v34, %v8162_v2  ;;  %v15559_v14 = vpop.f32.mrb[51].mxu1 }
0x123c   :  { %15575 = vmatpush3.bf16.msra.mxu1 %v8194_v7 }
0x123d   :  { %15576 = vmatprep.subr.bf16.mxu1 %v17182_v62 }
0x1247   :  { %v8170_v13 = vpop.f32.mrb[52].mxu1 }
0x1248   :  { %v15562_v17 = vpop.f32.mrb[53].mxu1 }
0x1249   :  { %v8173_v37 = vpop.f32.mrb[54].mxu1 }
0x124a   :  { %v8195_v12 = vpack.c.bf16 %v8173_v37, %v8170_v13  ;;  %v15563_v16 = vpop.f32.mrb[55].mxu1 }
0x124c   :  { %15577 = vmatpush3.bf16.msra.mxu1 %v8195_v12 }
0x124d   :  { %15578 = vmatprep.subr.bf16.mxu1 %v17182_v62 }
0x1257   :  { %v8178_v42 = vpop.f32.mrb[56].mxu1 }
0x1258   :  { %v15566_v0 = vpop.f32.mrb[57].mxu1 }
0x1259   :  { %v8181_v22 = vpop.f32.mrb[58].mxu1 }
0x125a   :  { %v8196_v11 = vpack.c.bf16 %v8181_v22, %v8178_v42  ;;  %v15567_v15 = vpop.f32.mrb[59].mxu1 }
0x125c   :  { %15579 = vmatpush3.bf16.msra.mxu1 %v8196_v11 }
0x125d   :  { %15580 = vmatprep.subr.bf16.mxu1 %v17182_v62 }
0x1267   :  { %v8186_v10 = vpop.f32.mrb[60].mxu1 }
0x1268   :  { %v15570_v26 = vpop.f32.mrb[61].mxu1 }
0x1269   :  { %v8189_v44 = vpop.f32.mrb[62].mxu1 }
0x126a   :  { %v8197_v38 = vpack.c.bf16 %v8189_v44, %v8186_v10  ;;  %v15571_v21 = vpop.f32.mrb[63].mxu1 }
0x126c   :  { %15581 = vmatpush3.bf16.msra.mxu1 %v8197_v38 }
0x126d   :  { %15602 = vmatprep.subr.bf16.mxu1 %v17182_v62 }
0x126f   :  { %15583 = vmatmul.mubr.msk.bf16.vlgmr.msra.gmra.mrb[64].mxu1 %vm8231_vm4, %v19861_v45 }
0x1270   :  { %15586 = vmatprep.mubr.msk.bf16.mxu1 %vm17183_vm8, %v17182_v62  ;;  %15603 = vmatpush3.bf16.msra.mxu1 %v16978_v58 }
0x1271   :  { %15624 = vmatprep.subr.bf16.mxu1 %v17182_v62 }
0x1277   :  { %15587 = vmatmul.mubr.msk.bf16.gmra.mrb[68].mxu1 %vm8231_vm4, %v19871_v25 }
0x1278   :  { %15590 = vmatprep.mubr.msk.bf16.mxu1 %vm17183_vm8, %v17182_v62 }
0x127f   :  { %15591 = vmatmul.mubr.msk.bf16.gmra.mrb[72].mxu1 %vm8231_vm4, %v19880_v5 }
0x1280   :  { %15594 = vmatprep.mubr.msk.bf16.mxu1 %vm17183_vm8, %v17182_v62 }
0x1287   :  { %15595 = vmatmul.mubr.msk.bf16.gmra.mrb[76].mxu1 %vm8231_vm4, %v19889_v39 }
0x1288   :  { %15598 = vmatprep.mubr.msk.bf16.mxu1 %vm17183_vm8, %v17182_v62 }
0x128f   :  { %15599 = vmatmul.mubr.msk.bf16.gmra.mrb[80].mxu1 %vm8231_vm4, %v19898_v9 }
0x1290   :  { %15604 = vmatprep.mubr.msk.bf16.mxu1 %vm17183_vm8, %v17182_v62 }
0x1342   :  { %v8281_v54 = vpop.f32.mrb[64].mxu1 }
0x1343   :  { %v8282_v6 = vadd.f32 %v19911_v20, %v8281_v54  ;;  %v15584_v35 = vpop.f32.mrb[65].mxu1 }
0x1344   :  { %v8284_v56 = vpop.f32.mrb[66].mxu1 }
0x1345   :  { %v8330_v43 = vmul.f32 0.01, %v8282_v6  ;;  %v8285_v52 = vadd.f32 %v19911_v20, %v8284_v56  ;;  %v15585_v48 = vpop.f32.mrb[67].mxu1  ;;  %vm8320_vm5 = vcmp.ge.f32.partialorder %v8282_v6, 0.0 }
0x1346   :  { %v16983_v48 = vld [vmem:[%s21033_s28 + $0x88] sm:$0xff]  }
0x1347   :  { %vm8321_vm10 = vcmp.ge.f32.partialorder %v8285_v52, 0.0  ;;  %v8331_v18 = vmul.f32 0.01, %v8285_v52  ;;  %v8340_v53 = vsel %vm8320_vm5, %v8282_v6, %v8330_v43 }
0x1349   :  { %v8341_v1 = vsel %vm8321_vm10, %v8285_v52, %v8331_v18  ;;  %v16982_v52 = vld [vmem:[%s21033_s28 + $0x80] sm:$0xff]  }
0x134a   :  { %v19918_v29 = vpack.c.bf16 %v8341_v1, %v8340_v53  ;;  %v8289_v30 = vpop.f32.mrb[68].mxu1 }
0x134b   :  { %v8290_v59 = vadd.f32 %v19911_v20, %v8289_v30  ;;  %v15588_v32 = vpop.f32.mrb[69].mxu1 }
0x134c   :  { %v8292_v33 = vpop.f32.mrb[70].mxu1  ;;  %15605 = vmatmul.mubr.msk.bf16.vlgmr.msra.gmra.mrb[84].mxu1 %vm2368_vm7, %v19918_v29 }
0x134d   :  { %v8332_v40 = vmul.f32 0.01, %v8290_v59  ;;  %v8293_v28 = vadd.f32 %v19911_v20, %v8292_v33  ;;  %v15589_v50 = vpop.f32.mrb[71].mxu1  ;;  %15608 = vmatprep.mubr.msk.bf16.mxu1 %vm17183_vm8, %v17182_v62  ;;  %15625 = vmatpush3.bf16.msra.mxu1 %v16979_v24  ;;  %vm8322_vm11 = vcmp.ge.f32.partialorder %v8290_v59, 0.0 }
0x134e   :  { %15626 = vmatprep.subr.bf16.mxu1 %v17182_v62 }
0x134f   :  { %vm8323_vm12 = vcmp.ge.f32.partialorder %v8293_v28, 0.0  ;;  %v8333_v55 = vmul.f32 0.01, %v8293_v28  ;;  %v8342_v23 = vsel %vm8322_vm11, %v8290_v59, %v8332_v40 }
0x1351   :  { %v8343_v51 = vsel %vm8323_vm12, %v8293_v28, %v8333_v55  ;;  %15627 = vmatpush3.bf16.msra.mxu1 %v16980_v19 }
0x1352   :  { %v19930_v57 = vpack.c.bf16 %v8343_v51, %v8342_v23  ;;  %v8297_v3 = vpop.f32.mrb[72].mxu1  ;;  %15678 = vmatprep.subr.bf16.mxu1 %v17182_v62 }
0x1353   :  { %v8298_v8 = vadd.f32 %v19911_v20, %v8297_v3  ;;  %v15592_v49 = vpop.f32.mrb[73].mxu1 }
0x1354   :  { %v8300_v41 = vpop.f32.mrb[74].mxu1  ;;  %15609 = vmatmul.mubr.msk.bf16.gmra.mrb[88].mxu1 %vm2368_vm7, %v19930_v57 }
0x1355   :  { %v8334_v46 = vmul.f32 0.01, %v8298_v8  ;;  %v8301_v61 = vadd.f32 %v19911_v20, %v8300_v41  ;;  %v15593_v31 = vpop.f32.mrb[75].mxu1  ;;  %15612 = vmatprep.mubr.msk.bf16.mxu1 %vm17183_vm8, %v17182_v62  ;;  %vm8324_vm13 = vcmp.ge.f32.partialorder %v8298_v8, 0.0 }
0x1357   :  { %vm8325_vm14 = vcmp.ge.f32.partialorder %v8301_v61, 0.0  ;;  %v8335_v2 = vmul.f32 0.01, %v8301_v61  ;;  %v8344_v4 = vsel %vm8324_vm13, %v8298_v8, %v8334_v46 }
0x1359   :  { %v8345_v34 = vsel %vm8325_vm14, %v8301_v61, %v8335_v2 }
0x135a   :  { %v19939_v7 = vpack.c.bf16 %v8345_v34, %v8344_v4  ;;  %v8305_v14 = vpop.f32.mrb[76].mxu1 }
0x135b   :  { %v8306_v13 = vadd.f32 %v19911_v20, %v8305_v14  ;;  %v15596_v17 = vpop.f32.mrb[77].mxu1  ;;  %v16984_v14 = vld [vmem:[%s20977_s7 + $0x88] sm:$0xff]  }
0x135c   :  { %v8308_v37 = vpop.f32.mrb[78].mxu1  ;;  %15613 = vmatmul.mubr.msk.bf16.gmra.mrb[92].mxu1 %vm2368_vm7, %v19939_v7 }
0x135d   :  { %v8336_v12 = vmul.f32 0.01, %v8306_v13  ;;  %v8309_v16 = vadd.f32 %v19911_v20, %v8308_v37  ;;  %v15597_v42 = vpop.f32.mrb[79].mxu1  ;;  %15616 = vmatprep.mubr.msk.bf16.mxu1 %vm17183_vm8, %v17182_v62  ;;  %vm8326_vm15 = vcmp.ge.f32.partialorder %v8306_v13, 0.0 }
0x135f   :  { %vm8327_vm0 = vcmp.ge.f32.partialorder %v8309_v16, 0.0  ;;  %v8337_v0 = vmul.f32 0.01, %v8309_v16  ;;  %v8346_v22 = vsel %vm8326_vm15, %v8306_v13, %v8336_v12  ;;  %v20065_v13 = vld [vmem:[%s20978_s8 + $0x7] ss:$0 sm:$0xff] }
0x1361   :  { %v8347_v11 = vsel %vm8327_vm0, %v8309_v16, %v8337_v0 }
0x1362   :  { %v19947_v15 = vpack.c.bf16 %v8347_v11, %v8346_v22  ;;  %v8313_v10 = vpop.f32.mrb[80].mxu1 }
0x1363   :  { %v8314_v26 = vadd.f32 %v19911_v20, %v8313_v10  ;;  %v15600_v44 = vpop.f32.mrb[81].mxu1 }
0x1364   :  { %v8316_v38 = vpop.f32.mrb[82].mxu1  ;;  %15617 = vmatmul.mubr.msk.bf16.gmra.mrb[96].mxu1 %vm2368_vm7, %v19947_v15  ;;  %v16985_v44 = vld [vmem:[%s20979_s10 + $0x38] sm:$0xff]  }
0x1365   :  { %v8338_v21 = vmul.f32 0.01, %v8314_v26  ;;  %v8317_v58 = vadd.f32 %v19911_v20, %v8316_v38  ;;  %15620 = vmatprep.mubr.msk.bf16.mxu1 %vm17183_vm8, %v17182_v62  ;;  %v15601_v54 = vpop.f32.mrb[83].mxu1  ;;  %vm8328_vm2 = vcmp.ge.f32.partialorder %v8314_v26, 0.0  ;;  %v16981_v20 = vld [vmem:[%s20977_s7 + $0x80] sm:$0xff]  }
0x1367   :  { %vm8329_vm3 = vcmp.ge.f32.partialorder %v8317_v58, 0.0  ;;  %v8339_v6 = vmul.f32 0.01, %v8317_v58  ;;  %v8348_v35 = vsel %vm8328_vm2, %v8314_v26, %v8338_v21 }
0x1369   :  { %v8349_v56 = vsel %vm8329_vm3, %v8317_v58, %v8339_v6 }
0x136a   :  { %v19955_v43 = vpack.c.bf16 %v8349_v56, %v8348_v35 }
0x136c   :  { %15621 = vmatmul.mubr.msk.bf16.gmra.mrb[100].mxu1 %vm2368_vm7, %v19955_v43 }
0x136d   :  { %15628 = vmatprep.mubr.msk.bf16.mxu1 %vm17183_vm8, %v17182_v62 }
0x1374   :  { %15629 = vmatmul.mubr.msk.bf16.vlgmr.msra.gmra.mrb[84].mxu1 %vm1187_vm9, %v19808_v63 }
0x1375   :  { %15632 = vmatprep.mubr.msk.bf16.mxu1 %vm17183_vm8, %v17182_v62  ;;  %15679 = vmatpush3.bf16.msra.mxu1 %v16981_v20 }
0x1376   :  { %15700 = vmatprep.subr.bf16.mxu1 %v17182_v62 }
0x137c   :  { %15633 = vmatmul.mubr.msk.bf16.gmra.mrb[88].mxu1 %vm1187_vm9, %v19818_v27 }
0x137d   :  { %15636 = vmatprep.mubr.msk.bf16.mxu1 %vm17183_vm8, %v17182_v62 }
0x1384   :  { %15637 = vmatmul.mubr.msk.bf16.gmra.mrb[92].mxu1 %vm1187_vm9, %v19828_v60 }
0x1385   :  { %15640 = vmatprep.mubr.msk.bf16.mxu1 %vm17183_vm8, %v17182_v62 }
0x138c   :  { %15641 = vmatmul.mubr.msk.bf16.gmra.mrb[96].mxu1 %vm1187_vm9, %v19838_v47 }
0x138d   :  { %15644 = vmatprep.mubr.msk.bf16.mxu1 %vm17183_vm8, %v17182_v62 }
0x1394   :  { %15645 = vmatmul.mubr.msk.bf16.gmra.mrb[100].mxu1 %vm1187_vm9, %v19848_v36 }
0x1395   :  { %15680 = vmatprep.mubr.msk.bf16.mxu1 %vm17183_vm8, %v17182_v62 }
0x139c   :  { %15681 = vmatmul.mubr.msk.bf16.vlgmr.msra.gmra.mrb[104].mxu1 %vm2368_vm7, %v19918_v29 }
0x139d   :  { %15684 = vmatprep.mubr.msk.bf16.mxu1 %vm17183_vm8, %v17182_v62  ;;  %15701 = vmatpush3.bf16.msra.mxu1 %v16982_v52 }
0x139e   :  { %15702 = vmatprep.subr.bf16.mxu1 %v17182_v62 }
0x13a1   :  { %15703 = vmatpush3.bf16.msra.mxu1 %v16983_v48 }
0x13a2   :  { %15724 = vmatprep.subr.bf16.mxu1 %v17182_v62 }
0x13a4   :  { %15685 = vmatmul.mubr.msk.bf16.gmra.mrb[108].mxu1 %vm2368_vm7, %v19930_v57 }
0x13a5   :  { %15688 = vmatprep.mubr.msk.bf16.mxu1 %vm17183_vm8, %v17182_v62 }
0x13ac   :  { %15689 = vmatmul.mubr.msk.bf16.gmra.mrb[112].mxu1 %vm2368_vm7, %v19939_v7 }
0x13ad   :  { %15692 = vmatprep.mubr.msk.bf16.mxu1 %vm17183_vm8, %v17182_v62 }
0x13b4   :  { %15693 = vmatmul.mubr.msk.bf16.gmra.mrb[116].mxu1 %vm2368_vm7, %v19947_v15 }
0x13b5   :  { %15696 = vmatprep.mubr.msk.bf16.mxu1 %vm17183_vm8, %v17182_v62 }
0x13bc   :  { %15697 = vmatmul.mubr.msk.bf16.gmra.mrb[120].mxu1 %vm2368_vm7, %v19955_v43 }
0x13bd   :  { %15704 = vmatprep.mubr.msk.bf16.mxu1 %vm17183_vm8, %v17182_v62 }
0x13c4   :  { %15705 = vmatmul.mubr.msk.bf16.vlgmr.msra.gmra.mrb[104].mxu1 %vm1187_vm9, %v19808_v63 }
0x13c5   :  { %15708 = vmatprep.mubr.msk.bf16.mxu1 %vm17183_vm8, %v17182_v62  ;;  %15725 = vmatpush3.bf16.msra.mxu1 %v16984_v14 }
0x13c6   :  { %15822 = vmatprep.subr.bf16.mxu1 %v17182_v62 }
0x13cc   :  { %15709 = vmatmul.mubr.msk.bf16.gmra.mrb[108].mxu1 %vm1187_vm9, %v19818_v27 }
0x13cd   :  { %15712 = vmatprep.mubr.msk.bf16.mxu1 %vm17183_vm8, %v17182_v62 }
0x13d4   :  { %15713 = vmatmul.mubr.msk.bf16.gmra.mrb[112].mxu1 %vm1187_vm9, %v19828_v60 }
0x13d5   :  { %15716 = vmatprep.mubr.msk.bf16.mxu1 %vm17183_vm8, %v17182_v62 }
0x13dc   :  { %15717 = vmatmul.mubr.msk.bf16.gmra.mrb[116].mxu1 %vm1187_vm9, %v19838_v47 }
0x13dd   :  { %15720 = vmatprep.mubr.msk.bf16.mxu1 %vm17183_vm8, %v17182_v62 }
0x13e4   :  { %15721 = vmatmul.mubr.msk.bf16.gmra.mrb[120].mxu1 %vm1187_vm9, %v19848_v36 }
0x13e5   :  { %15726 = vmatprep.mubr.msk.bf16.mxu1 %vm17183_vm8, %v17182_v62 }
0x1447   :  { %v8503_v18 = vpop.f32.mrb[84].mxu1 }
0x1448   :  { %v15630_v53 = vpop.f32.mrb[85].mxu1 }
0x1449   :  { %v8506_v1 = vpop.f32.mrb[86].mxu1 }
0x144a   :  { %v8542_v24 = vpack.c.bf16 %v8506_v1, %v8503_v18  ;;  %v15631_v30 = vpop.f32.mrb[87].mxu1 }
0x144c   :  { %15649 = vmatpush3.bf16.msra.mxu0 %v8542_v24 }
0x144d   :  { %15650 = vmatprep.subr.bf16.mxu0 %v17182_v62 }
0x144f   :  { %v8511_v59 = vpop.f32.mrb[88].mxu1 }
0x1450   :  { %v15634_v32 = vpop.f32.mrb[89].mxu1 }
0x1451   :  { %v8514_v33 = vpop.f32.mrb[90].mxu1 }
0x1452   :  { %v8543_v40 = vpack.c.bf16 %v8514_v33, %v8511_v59  ;;  %v15635_v28 = vpop.f32.mrb[91].mxu1 }
0x1454   :  { %15651 = vmatpush3.bf16.msra.mxu0 %v8543_v40 }
0x1455   :  { %15652 = vmatprep.subr.bf16.mxu0 %v17182_v62 }
0x1457   :  { %v8519_v50 = vpop.f32.mrb[92].mxu1 }
0x1458   :  { %v15638_v19 = vpop.f32.mrb[93].mxu1 }
0x1459   :  { %v8522_v55 = vpop.f32.mrb[94].mxu1 }
0x145a   :  { %v8544_v23 = vpack.c.bf16 %v8522_v55, %v8519_v50  ;;  %v15639_v51 = vpop.f32.mrb[95].mxu1 }
0x145c   :  { %15653 = vmatpush3.bf16.msra.mxu0 %v8544_v23 }
0x145d   :  { %15654 = vmatprep.subr.bf16.mxu0 %v17182_v62 }
0x145f   :  { %v8527_v3 = vpop.f32.mrb[96].mxu1 }
0x1460   :  { %v15642_v8 = vpop.f32.mrb[97].mxu1 }
0x1461   :  { %v8530_v49 = vpop.f32.mrb[98].mxu1 }
0x1462   :  { %v8545_v41 = vpack.c.bf16 %v8530_v49, %v8527_v3  ;;  %v15643_v46 = vpop.f32.mrb[99].mxu1 }
0x1464   :  { %15655 = vmatpush3.bf16.msra.mxu0 %v8545_v41 }
0x1465   :  { %15656 = vmatprep.subr.bf16.mxu0 %v17182_v62 }
0x1467   :  { %v8535_v61 = vpop.f32.mrb[100].mxu1 }
0x1468   :  { %v15646_v31 = vpop.f32.mrb[101].mxu1 }
0x1469   :  { %v8538_v2 = vpop.f32.mrb[102].mxu1 }
0x146a   :  { %v8546_v4 = vpack.c.bf16 %v8538_v2, %v8535_v61  ;;  %v15647_v34 = vpop.f32.mrb[103].mxu1 }
0x146c   :  { %15657 = vmatpush3.bf16.msra.mxu0 %v8546_v4 }
0x146d   :  { %15746 = vmatprep.subr.bf16.mxu0 %v17182_v62 }
0x146f   :  { %15659 = vmatmul.mubr.msk.bf16.vlgmr.msra.gmra.mrb[244].mxu0 %vm8231_vm4, %v19861_v45 }
0x1470   :  { %15662 = vmatprep.mubr.msk.bf16.mxu0 %vm17183_vm8, %v17182_v62 }
0x1477   :  { %15663 = vmatmul.mubr.msk.bf16.gmra.mrb[248].mxu0 %vm8231_vm4, %v19871_v25 }
0x1478   :  { %15666 = vmatprep.mubr.msk.bf16.mxu0 %vm17183_vm8, %v17182_v62 }
0x147f   :  { %15667 = vmatmul.mubr.msk.bf16.gmra.mrb[252].mxu0 %vm8231_vm4, %v19880_v5 }
0x1480   :  { %15670 = vmatprep.mubr.msk.bf16.mxu0 %vm17183_vm8, %v17182_v62 }
0x1487   :  { %15671 = vmatmul.mubr.msk.bf16.gmra.mrb[0].mxu0 %vm8231_vm4, %v19889_v39 }
0x1488   :  { %15674 = vmatprep.mubr.msk.bf16.mxu0 %vm17183_vm8, %v17182_v62 }
0x148f   :  { %15675 = vmatmul.mubr.msk.bf16.gmra.mrb[4].mxu0 %vm8231_vm4, %v19898_v9 }
0x1490   :  { %15756 = vmatprep.mubr.msk.bf16.mxu0 %vm17183_vm8, %v17182_v62 }
0x1542   :  { %v8589_v17 = vpop.f32.mrb[244].mxu0 }
0x1543   :  { %v8590_v37 = vadd.f32 %v20065_v13, %v8589_v17  ;;  %v15660_v12 = vpop.f32.mrb[245].mxu0 }
0x1544   :  { %v8592_v16 = vpop.f32.mrb[246].mxu0 }
0x1545   :  { %v8638_v42 = vmul.f32 0.01, %v8590_v37  ;;  %v8593_v0 = vadd.f32 %v20065_v13, %v8592_v16  ;;  %v15661_v22 = vpop.f32.mrb[247].mxu0  ;;  %vm8628_vm5 = vcmp.ge.f32.partialorder %v8590_v37, 0.0 }
0x1547   :  { %vm8629_vm10 = vcmp.ge.f32.partialorder %v8593_v0, 0.0  ;;  %v8639_v11 = vmul.f32 0.01, %v8593_v0  ;;  %v8648_v10 = vsel %vm8628_vm5, %v8590_v37, %v8638_v42 }
0x1549   :  { %v8649_v26 = vsel %vm8629_vm10, %v8593_v0, %v8639_v11 }
0x154a   :  { %v20072_v38 = vpack.c.bf16 %v8649_v26, %v8648_v10  ;;  %v8597_v21 = vpop.f32.mrb[248].mxu0 }
0x154b   :  { %v8598_v58 = vadd.f32 %v20065_v13, %v8597_v21  ;;  %v15664_v54 = vpop.f32.mrb[249].mxu0 }
0x154c   :  { %v8600_v6 = vpop.f32.mrb[250].mxu0  ;;  %15727 = vmatmul.mubr.msk.bf16.vlgmr.msra.gmra.mrb[104].mxu1 %vm2368_vm7, %v20072_v38 }
0x154d   :  { %v8640_v35 = vmul.f32 0.01, %v8598_v58  ;;  %v8601_v56 = vadd.f32 %v20065_v13, %v8600_v6  ;;  %v15665_v20 = vpop.f32.mrb[251].mxu0  ;;  %15730 = vmatprep.mubr.msk.bf16.mxu1 %vm17183_vm8, %v17182_v62  ;;  %15823 = vmatpush3.bf16.msra.mxu1 %v16985_v44  ;;  %vm8630_vm11 = vcmp.ge.f32.partialorder %v8598_v58, 0.0 }
0x154e   :  { %16326 = vmatprep.subr.bf16.mxu1 %v17182_v62 }
0x154f   :  { %vm8631_vm12 = vcmp.ge.f32.partialorder %v8601_v56, 0.0  ;;  %v8641_v52 = vmul.f32 0.01, %v8601_v56  ;;  %v8650_v48 = vsel %vm8630_vm11, %v8598_v58, %v8640_v35 }
0x1551   :  { %v8651_v18 = vsel %vm8631_vm12, %v8601_v56, %v8641_v52 }
0x1552   :  { %v8834_v53 = vpack.c.bf16 %v8651_v18, %v8650_v48  ;;  %v8605_v1 = vpop.f32.mrb[252].mxu0 }
0x1553   :  { %v8606_v24 = vadd.f32 %v20065_v13, %v8605_v1  ;;  %v15668_v30 = vpop.f32.mrb[253].mxu0 }
0x1554   :  { %v8608_v59 = vpop.f32.mrb[254].mxu0  ;;  %15731 = vmatmul.mubr.msk.bf16.gmra.mrb[108].mxu1 %vm2368_vm7, %v8834_v53 }
0x1555   :  { %v8642_v32 = vmul.f32 0.01, %v8606_v24  ;;  %v8609_v33 = vadd.f32 %v20065_v13, %v8608_v59  ;;  %v15669_v40 = vpop.f32.mrb[255].mxu0  ;;  %15734 = vmatprep.mubr.msk.bf16.mxu1 %vm17183_vm8, %v17182_v62  ;;  %vm8632_vm13 = vcmp.ge.f32.partialorder %v8606_v24, 0.0 }
0x1557   :  { %vm8633_vm14 = vcmp.ge.f32.partialorder %v8609_v33, 0.0  ;;  %v8643_v28 = vmul.f32 0.01, %v8609_v33  ;;  %v8652_v50 = vsel %vm8632_vm13, %v8606_v24, %v8642_v32 }
0x1559   :  { %v8653_v19 = vsel %vm8633_vm14, %v8609_v33, %v8643_v28 }
0x155a   :  { %v8835_v55 = vpack.c.bf16 %v8653_v19, %v8652_v50  ;;  %v8613_v23 = vpop.f32.mrb[0].mxu0 }
0x155b   :  { %v8614_v51 = vadd.f32 %v20065_v13, %v8613_v23  ;;  %v15672_v3 = vpop.f32.mrb[1].mxu0 }
0x155c   :  { %v8616_v8 = vpop.f32.mrb[2].mxu0  ;;  %15735 = vmatmul.mubr.msk.bf16.gmra.mrb[112].mxu1 %vm2368_vm7, %v8835_v55 }
0x155d   :  { %v8644_v49 = vmul.f32 0.01, %v8614_v51  ;;  %v8617_v41 = vadd.f32 %v20065_v13, %v8616_v8  ;;  %v15673_v46 = vpop.f32.mrb[3].mxu0  ;;  %15738 = vmatprep.mubr.msk.bf16.mxu1 %vm17183_vm8, %v17182_v62  ;;  %vm8634_vm15 = vcmp.ge.f32.partialorder %v8614_v51, 0.0 }
0x155f   :  { %vm8635_vm0 = vcmp.ge.f32.partialorder %v8617_v41, 0.0  ;;  %v8645_v61 = vmul.f32 0.01, %v8617_v41  ;;  %v8654_v31 = vsel %vm8634_vm15, %v8614_v51, %v8644_v49 }
0x1561   :  { %v8655_v2 = vsel %vm8635_vm0, %v8617_v41, %v8645_v61 }
0x1562   :  { %v8836_v4 = vpack.c.bf16 %v8655_v2, %v8654_v31  ;;  %v8621_v34 = vpop.f32.mrb[4].mxu0 }
0x1563   :  { %v8622_v14 = vadd.f32 %v20065_v13, %v8621_v34  ;;  %v15676_v17 = vpop.f32.mrb[5].mxu0 }
0x1564   :  { %v8624_v37 = vpop.f32.mrb[6].mxu0  ;;  %15739 = vmatmul.mubr.msk.bf16.gmra.mrb[116].mxu1 %vm2368_vm7, %v8836_v4 }
0x1565   :  { %v8646_v12 = vmul.f32 0.01, %v8622_v14  ;;  %v8625_v16 = vadd.f32 %v20065_v13, %v8624_v37  ;;  %15742 = vmatprep.mubr.msk.bf16.mxu1 %vm17183_vm8, %v17182_v62  ;;  %v15677_v42 = vpop.f32.mrb[7].mxu0  ;;  %vm8636_vm2 = vcmp.ge.f32.partialorder %v8622_v14, 0.0 }
0x1567   :  { %vm8637_vm3 = vcmp.ge.f32.partialorder %v8625_v16, 0.0  ;;  %v8647_v0 = vmul.f32 0.01, %v8625_v16  ;;  %v8656_v22 = vsel %vm8636_vm2, %v8622_v14, %v8646_v12 }
0x1569   :  { %v8657_v11 = vsel %vm8637_vm3, %v8625_v16, %v8647_v0  ;;  %v16987_v16 = vld [vmem:[%s20980_s9 + $0x20] sm:$0xff]  }
0x156a   :  { %v8837_v10 = vpack.c.bf16 %v8657_v11, %v8656_v22 }
0x156c   :  { %15743 = vmatmul.mubr.msk.bf16.gmra.mrb[120].mxu1 %vm2368_vm7, %v8837_v10 }
0x156d   :  { %15824 = vmatprep.mubr.msk.bf16.mxu1 %vm17183_vm8, %v17182_v62 }
0x1574   :  { %15825 = vmatmul.mubr.msk.bf16.vlgmr.msra.gmra.mrb[124].mxu1 %vm2368_vm7, %v20072_v38 }
0x1575   :  { %15828 = vmatprep.mubr.msk.bf16.mxu1 %vm17183_vm8, %v17182_v62 }
0x157c   :  { %15829 = vmatmul.mubr.msk.bf16.gmra.mrb[128].mxu1 %vm2368_vm7, %v8834_v53 }
0x157d   :  { %15832 = vmatprep.mubr.msk.bf16.mxu1 %vm17183_vm8, %v17182_v62 }
0x1584   :  { %15833 = vmatmul.mubr.msk.bf16.gmra.mrb[132].mxu1 %vm2368_vm7, %v8835_v55  ;;  %v16986_v55 = vld [vmem:[%s20979_s10 + $0x30] sm:$0xff]  }
0x1585   :  { %15836 = vmatprep.mubr.msk.bf16.mxu1 %vm17183_vm8, %v17182_v62 }
0x158c   :  { %15837 = vmatmul.mubr.msk.bf16.gmra.mrb[136].mxu1 %vm2368_vm7, %v8836_v4 }
0x158d   :  { %15840 = vmatprep.mubr.msk.bf16.mxu1 %vm17183_vm8, %v17182_v62 }
0x1594   :  { %15841 = vmatmul.mubr.msk.bf16.gmra.mrb[140].mxu1 %vm2368_vm7, %v8837_v10 }
0x1595   :  { %15874 = vmatprep.mubr.msk.bf16.mxu1 %vm17183_vm8, %v17182_v62 }
0x161f   :  { %v8893_v13 = vpop.f32.mrb[104].mxu1 }
0x1620   :  { %v15728_v26 = vpop.f32.mrb[105].mxu1 }
0x1621   :  { %v8896_v44 = vpop.f32.mrb[106].mxu1 }
0x1622   :  { %v8942_v38 = vpack.c.bf16 %v8896_v44, %v8893_v13  ;;  %v15729_v21 = vpop.f32.mrb[107].mxu1 }
0x1624   :  { %15747 = vmatpush3.bf16.msra.mxu0 %v8942_v38 }
0x1625   :  { %15748 = vmatprep.subr.bf16.mxu0 %v17182_v62 }
0x1627   :  { %v8901_v58 = vpop.f32.mrb[108].mxu1 }
0x1628   :  { %v15732_v54 = vpop.f32.mrb[109].mxu1 }
0x1629   :  { %v8904_v6 = vpop.f32.mrb[110].mxu1 }
0x162a   :  { %v8943_v35 = vpack.c.bf16 %v8904_v6, %v8901_v58  ;;  %v15733_v56 = vpop.f32.mrb[111].mxu1 }
0x162c   :  { %15749 = vmatpush3.bf16.msra.mxu0 %v8943_v35 }
0x162d   :  { %15750 = vmatprep.subr.bf16.mxu0 %v17182_v62 }
0x162f   :  { %v8909_v20 = vpop.f32.mrb[112].mxu1 }
0x1630   :  { %v15736_v52 = vpop.f32.mrb[113].mxu1 }
0x1631   :  { %v8912_v48 = vpop.f32.mrb[114].mxu1 }
0x1632   :  { %v8944_v18 = vpack.c.bf16 %v8912_v48, %v8909_v20  ;;  %v15737_v53 = vpop.f32.mrb[115].mxu1 }
0x1634   :  { %15751 = vmatpush3.bf16.msra.mxu0 %v8944_v18 }
0x1635   :  { %15752 = vmatprep.subr.bf16.mxu0 %v17182_v62 }
0x1637   :  { %v8917_v1 = vpop.f32.mrb[116].mxu1 }
0x1638   :  { %v15740_v24 = vpop.f32.mrb[117].mxu1 }
0x1639   :  { %v8920_v30 = vpop.f32.mrb[118].mxu1 }
0x163a   :  { %v8945_v59 = vpack.c.bf16 %v8920_v30, %v8917_v1  ;;  %v15741_v32 = vpop.f32.mrb[119].mxu1 }
0x163c   :  { %15753 = vmatpush3.bf16.msra.mxu0 %v8945_v59 }
0x163d   :  { %15754 = vmatprep.subr.bf16.mxu0 %v17182_v62 }
0x163f   :  { %v8925_v33 = vpop.f32.mrb[120].mxu1 }
0x1640   :  { %v15744_v40 = vpop.f32.mrb[121].mxu1 }
0x1641   :  { %v8928_v28 = vpop.f32.mrb[122].mxu1 }
0x1642   :  { %v8946_v50 = vpack.c.bf16 %v8928_v28, %v8925_v33  ;;  %v15745_v19 = vpop.f32.mrb[123].mxu1 }
0x1644   :  { %15755 = vmatpush3.bf16.msra.mxu0 %v8946_v50 }
0x1645   :  { %15776 = vmatprep.subr.bf16.mxu0 %v17182_v62 }
0x1647   :  { %15757 = vmatmul.mubr.msk.bf16.vlgmr.msra.gmra.mrb[8].mxu0 %vm8231_vm4, %v19861_v45  ;;  %v20125_v23 = vpop.f32.mrb[124].mxu1 }
0x1648   :  { %15760 = vmatprep.mubr.msk.bf16.mxu0 %vm17183_vm8, %v17182_v62  ;;  %v15826_v51 = vpop.f32.mrb[125].mxu1  ;;  %15777 = vmatpush3.bf16.msra.mxu0 %v16986_v55 }
0x1649   :  { %v20129_v3 = vpop.f32.mrb[126].mxu1  ;;  %15798 = vmatprep.subr.bf16.mxu0 %v17182_v62 }
0x164a   :  { %v15827_v8 = vpop.f32.mrb[127].mxu1 }
0x164f   :  { %15761 = vmatmul.mubr.msk.bf16.gmra.mrb[12].mxu0 %vm8231_vm4, %v19871_v25  ;;  %v20134_v49 = vpop.f32.mrb[128].mxu1 }
0x1650   :  { %15764 = vmatprep.mubr.msk.bf16.mxu0 %vm17183_vm8, %v17182_v62  ;;  %v15830_v45 = vpop.f32.mrb[129].mxu1 }
0x1651   :  { %v20138_v41 = vpop.f32.mrb[130].mxu1 }
0x1652   :  { %v15831_v46 = vpop.f32.mrb[131].mxu1 }
0x1657   :  { %15765 = vmatmul.mubr.msk.bf16.gmra.mrb[16].mxu0 %vm8231_vm4, %v19880_v5  ;;  %v20142_v61 = vpop.f32.mrb[132].mxu1 }
0x1658   :  { %15768 = vmatprep.mubr.msk.bf16.mxu0 %vm17183_vm8, %v17182_v62  ;;  %v15834_v31 = vpop.f32.mrb[133].mxu1 }
0x1659   :  { %v20146_v2 = vpop.f32.mrb[134].mxu1 }
0x165a   :  { %v15835_v25 = vpop.f32.mrb[135].mxu1 }
0x165f   :  { %15769 = vmatmul.mubr.msk.bf16.gmra.mrb[20].mxu0 %vm8231_vm4, %v19889_v39  ;;  %v20150_v4 = vpop.f32.mrb[136].mxu1 }
0x1660   :  { %15772 = vmatprep.mubr.msk.bf16.mxu0 %vm17183_vm8, %v17182_v62  ;;  %v15838_v34 = vpop.f32.mrb[137].mxu1 }
0x1661   :  { %v20154_v14 = vpop.f32.mrb[138].mxu1 }
0x1662   :  { %v15839_v5 = vpop.f32.mrb[139].mxu1 }
0x1667   :  { %15773 = vmatmul.mubr.msk.bf16.gmra.mrb[24].mxu0 %vm8231_vm4, %v19898_v9  ;;  %v20158_v17 = vpop.f32.mrb[140].mxu1  ;;  %v16988_v9 = vld [vmem:[%s20980_s9 + $0x28] sm:$0xff]  }
0x1668   :  { %15778 = vmatprep.mubr.msk.bf16.mxu0 %vm17183_vm8, %v17182_v62  ;;  %v15842_v37 = vpop.f32.mrb[141].mxu1 }
0x1669   :  { %v20162_v12 = vpop.f32.mrb[142].mxu1 }
0x166a   :  { %v15843_v39 = vpop.f32.mrb[143].mxu1 }
0x166f   :  { %15779 = vmatmul.mubr.msk.bf16.vlgmr.msra.gmra.mrb[28].mxu0 %vm2368_vm7, %v19918_v29  ;;  %v16989_v29 = vld [vmem:[%s20979_s10 + $0x40] sm:$0xff]  }
0x1670   :  { %15782 = vmatprep.mubr.msk.bf16.mxu0 %vm17183_vm8, %v17182_v62  ;;  %15799 = vmatpush3.bf16.msra.mxu0 %v16987_v16 }
0x1671   :  { %15800 = vmatprep.subr.bf16.mxu0 %v17182_v62 }
0x1674   :  { %15801 = vmatpush3.bf16.msra.mxu0 %v16988_v9 }
0x1675   :  { %15844 = vmatprep.subr.bf16.mxu0 %v17182_v62 }
0x1677   :  { %15783 = vmatmul.mubr.msk.bf16.gmra.mrb[32].mxu0 %vm2368_vm7, %v19930_v57 }
0x1678   :  { %15786 = vmatprep.mubr.msk.bf16.mxu0 %vm17183_vm8, %v17182_v62 }
0x167f   :  { %15787 = vmatmul.mubr.msk.bf16.gmra.mrb[36].mxu0 %vm2368_vm7, %v19939_v7 }
0x1680   :  { %15790 = vmatprep.mubr.msk.bf16.mxu0 %vm17183_vm8, %v17182_v62 }
0x1687   :  { %15791 = vmatmul.mubr.msk.bf16.gmra.mrb[40].mxu0 %vm2368_vm7, %v19947_v15 }
0x1688   :  { %15794 = vmatprep.mubr.msk.bf16.mxu0 %vm17183_vm8, %v17182_v62 }
0x168f   :  { %15795 = vmatmul.mubr.msk.bf16.gmra.mrb[44].mxu0 %vm2368_vm7, %v19955_v43 }
0x1690   :  { %15802 = vmatprep.mubr.msk.bf16.mxu0 %vm17183_vm8, %v17182_v62 }
0x1697   :  { %15803 = vmatmul.mubr.msk.bf16.vlgmr.msra.gmra.mrb[48].mxu0 %vm1187_vm9, %v19808_v63  ;;  %v20219_v63 = vld [vmem:[%s20978_s8 + $0x8] ss:$0 sm:$0xff] }
0x1698   :  { %15806 = vmatprep.mubr.msk.bf16.mxu0 %vm17183_vm8, %v17182_v62  ;;  %15845 = vmatpush3.bf16.msra.mxu0 %v16989_v29 }
0x1699   :  { %15866 = vmatprep.subr.bf16.mxu0 %v17182_v62 }
0x169f   :  { %15807 = vmatmul.mubr.msk.bf16.gmra.mrb[52].mxu0 %vm1187_vm9, %v19818_v27 }
0x16a0   :  { %15810 = vmatprep.mubr.msk.bf16.mxu0 %vm17183_vm8, %v17182_v62 }
0x16a7   :  { %15811 = vmatmul.mubr.msk.bf16.gmra.mrb[56].mxu0 %vm1187_vm9, %v19828_v60 }
0x16a8   :  { %15814 = vmatprep.mubr.msk.bf16.mxu0 %vm17183_vm8, %v17182_v62 }
0x16af   :  { %15815 = vmatmul.mubr.msk.bf16.gmra.mrb[60].mxu0 %vm1187_vm9, %v19838_v47 }
0x16b0   :  { %15818 = vmatprep.mubr.msk.bf16.mxu0 %vm17183_vm8, %v17182_v62 }
0x16b7   :  { %15819 = vmatmul.mubr.msk.bf16.gmra.mrb[64].mxu0 %vm1187_vm9, %v19848_v36 }
0x16b8   :  { %15846 = vmatprep.mubr.msk.bf16.mxu0 %vm17183_vm8, %v17182_v62 }
0x171a   :  { %v8989_v27 = vpop.f32.mrb[8].mxu0 }
0x171b   :  { %v8990_v60 = vadd.f32 %v20219_v63, %v8989_v27  ;;  %v15758_v57 = vpop.f32.mrb[9].mxu0 }
0x171c   :  { %v8992_v7 = vpop.f32.mrb[10].mxu0 }
0x171d   :  { %v9038_v47 = vmul.f32 0.01, %v8990_v60  ;;  %v8993_v15 = vadd.f32 %v20219_v63, %v8992_v7  ;;  %v15759_v43 = vpop.f32.mrb[11].mxu0  ;;  %vm9028_vm4 = vcmp.ge.f32.partialorder %v8990_v60, 0.0 }
0x171f   :  { %vm9029_vm5 = vcmp.ge.f32.partialorder %v8993_v15, 0.0  ;;  %v9039_v36 = vmul.f32 0.01, %v8993_v15  ;;  %v9048_v42 = vsel %vm9028_vm4, %v8990_v60, %v9038_v47 }
0x1721   :  { %v9049_v0 = vsel %vm9029_vm5, %v8993_v15, %v9039_v36 }
0x1722   :  { %v9325_v22 = vpack.c.bf16 %v9049_v0, %v9048_v42  ;;  %v8997_v11 = vpop.f32.mrb[12].mxu0 }
0x1723   :  { %v8998_v10 = vadd.f32 %v20219_v63, %v8997_v11  ;;  %v15762_v13 = vpop.f32.mrb[13].mxu0 }
0x1724   :  { %v9000_v26 = vpop.f32.mrb[14].mxu0  ;;  %15847 = vmatmul.mubr.msk.bf16.vlgmr.msra.gmra.mrb[68].mxu0 %vm2368_vm7, %v9325_v22 }
0x1725   :  { %v9040_v44 = vmul.f32 0.01, %v8998_v10  ;;  %v9001_v38 = vadd.f32 %v20219_v63, %v9000_v26  ;;  %v15763_v21 = vpop.f32.mrb[15].mxu0  ;;  %15850 = vmatprep.mubr.msk.bf16.mxu0 %vm17183_vm8, %v17182_v62  ;;  %vm9030_vm10 = vcmp.ge.f32.partialorder %v8998_v10, 0.0 }
0x1727   :  { %vm9031_vm11 = vcmp.ge.f32.partialorder %v9001_v38, 0.0  ;;  %v9041_v58 = vmul.f32 0.01, %v9001_v38  ;;  %v9050_v54 = vsel %vm9030_vm10, %v8998_v10, %v9040_v44 }
0x1729   :  { %v9051_v6 = vsel %vm9031_vm11, %v9001_v38, %v9041_v58 }
0x172a   :  { %v9326_v35 = vpack.c.bf16 %v9051_v6, %v9050_v54  ;;  %v9005_v56 = vpop.f32.mrb[16].mxu0 }
0x172b   :  { %v9006_v20 = vadd.f32 %v20219_v63, %v9005_v56  ;;  %v15766_v52 = vpop.f32.mrb[17].mxu0 }
0x172c   :  { %v9008_v48 = vpop.f32.mrb[18].mxu0  ;;  %15851 = vmatmul.mubr.msk.bf16.gmra.mrb[72].mxu0 %vm2368_vm7, %v9326_v35 }
0x172d   :  { %v9042_v18 = vmul.f32 0.01, %v9006_v20  ;;  %v9009_v53 = vadd.f32 %v20219_v63, %v9008_v48  ;;  %v15767_v1 = vpop.f32.mrb[19].mxu0  ;;  %15854 = vmatprep.mubr.msk.bf16.mxu0 %vm17183_vm8, %v17182_v62  ;;  %vm9032_vm12 = vcmp.ge.f32.partialorder %v9006_v20, 0.0 }
0x172f   :  { %vm9033_vm13 = vcmp.ge.f32.partialorder %v9009_v53, 0.0  ;;  %v9043_v24 = vmul.f32 0.01, %v9009_v53  ;;  %v9052_v30 = vsel %vm9032_vm12, %v9006_v20, %v9042_v18 }
0x1731   :  { %v9053_v59 = vsel %vm9033_vm13, %v9009_v53, %v9043_v24 }
0x1732   :  { %v9327_v32 = vpack.c.bf16 %v9053_v59, %v9052_v30  ;;  %v9013_v33 = vpop.f32.mrb[20].mxu0 }
0x1733   :  { %v9014_v40 = vadd.f32 %v20219_v63, %v9013_v33  ;;  %v15770_v28 = vpop.f32.mrb[21].mxu0 }
0x1734   :  { %v9016_v50 = vpop.f32.mrb[22].mxu0  ;;  %15855 = vmatmul.mubr.msk.bf16.gmra.mrb[76].mxu0 %vm2368_vm7, %v9327_v32 }
0x1735   :  { %v9044_v19 = vmul.f32 0.01, %v9014_v40  ;;  %v9017_v55 = vadd.f32 %v20219_v63, %v9016_v50  ;;  %v15771_v51 = vpop.f32.mrb[23].mxu0  ;;  %15858 = vmatprep.mubr.msk.bf16.mxu0 %vm17183_vm8, %v17182_v62  ;;  %vm9034_vm14 = vcmp.ge.f32.partialorder %v9014_v40, 0.0 }
0x1737   :  { %vm9035_vm15 = vcmp.ge.f32.partialorder %v9017_v55, 0.0  ;;  %v9045_v8 = vmul.f32 0.01, %v9017_v55  ;;  %v9054_v45 = vsel %vm9034_vm14, %v9014_v40, %v9044_v19 }
0x1739   :  { %v9055_v46 = vsel %vm9035_vm15, %v9017_v55, %v9045_v8 }
0x173a   :  { %v9328_v31 = vpack.c.bf16 %v9055_v46, %v9054_v45  ;;  %v9021_v25 = vpop.f32.mrb[24].mxu0 }
0x173b   :  { %v9022_v34 = vadd.f32 %v20219_v63, %v9021_v25  ;;  %v15774_v5 = vpop.f32.mrb[25].mxu0 }
0x173c   :  { %v9024_v37 = vpop.f32.mrb[26].mxu0  ;;  %15859 = vmatmul.mubr.msk.bf16.gmra.mrb[80].mxu0 %vm2368_vm7, %v9328_v31 }
0x173d   :  { %v9046_v39 = vmul.f32 0.01, %v9022_v34  ;;  %v9025_v16 = vadd.f32 %v20219_v63, %v9024_v37  ;;  %v15775_v9 = vpop.f32.mrb[27].mxu0  ;;  %15862 = vmatprep.mubr.msk.bf16.mxu0 %vm17183_vm8, %v17182_v62  ;;  %vm9036_vm0 = vcmp.ge.f32.partialorder %v9022_v34, 0.0 }
0x173f   :  { %vm9037_vm2 = vcmp.ge.f32.partialorder %v9025_v16, 0.0  ;;  %v9047_v29 = vmul.f32 0.01, %v9025_v16  ;;  %v9056_v27 = vsel %vm9036_vm0, %v9022_v34, %v9046_v39 }
0x1741   :  { %v9057_v60 = vsel %vm9037_vm2, %v9025_v16, %v9047_v29  ;;  %vm9604_vm2 = vcmask 392192  }
0x1742   :  { %v9329_v57 = vpack.c.bf16 %v9057_v60, %v9056_v27  ;;  %v9106_v7 = vpop.f32.mrb[28].mxu0 }
0x1743   :  { %v15780_v47 = vpop.f32.mrb[29].mxu0 }
0x1744   :  { %v9109_v15 = vpop.f32.mrb[30].mxu0  ;;  %15863 = vmatmul.mubr.msk.bf16.gmra.mrb[84].mxu0 %vm2368_vm7, %v9329_v57 }
0x1745   :  { %v15781_v43 = vpop.f32.mrb[31].mxu0  ;;  %15870 = vmatprep.mubr.msk.bf16.mxu0 %vm17183_vm8, %v17182_v62 }
0x174a   :  { %v9114_v63 = vpop.f32.mrb[32].mxu0 }
0x174b   :  { %v15784_v36 = vpop.f32.mrb[33].mxu0 }
0x174c   :  { %v9117_v42 = vpop.f32.mrb[34].mxu0 }
0x174d   :  { %v15785_v0 = vpop.f32.mrb[35].mxu0 }
0x1752   :  { %v9122_v22 = vpop.f32.mrb[36].mxu0 }
0x1753   :  { %v15788_v11 = vpop.f32.mrb[37].mxu0 }
0x1754   :  { %v9125_v10 = vpop.f32.mrb[38].mxu0 }
0x1755   :  { %v15789_v13 = vpop.f32.mrb[39].mxu0 }
0x175a   :  { %v9130_v26 = vpop.f32.mrb[40].mxu0 }
0x175b   :  { %v15792_v44 = vpop.f32.mrb[41].mxu0 }
0x175c   :  { %v9133_v38 = vpop.f32.mrb[42].mxu0 }
0x175d   :  { %v15793_v21 = vpop.f32.mrb[43].mxu0 }
0x1762   :  { %v9138_v58 = vpop.f32.mrb[44].mxu0 }
0x1763   :  { %v15796_v54 = vpop.f32.mrb[45].mxu0 }
0x1764   :  { %v9141_v6 = vpop.f32.mrb[46].mxu0 }
0x1765   :  { %v15797_v35 = vpop.f32.mrb[47].mxu0 }
0x176a   :  { %v9191_v56 = vpop.f32.mrb[48].mxu0 }
0x176b   :  { %v9192_v20 = vadd.f32 %v9191_v56, %v9106_v7  ;;  %v15804_v52 = vpop.f32.mrb[49].mxu0 }
0x176c   :  { %v9194_v48 = vpop.f32.mrb[50].mxu0 }
0x176d   :  { %v9195_v18 = vadd.f32 %v9194_v48, %v9109_v15  ;;  %v15805_v53 = vpop.f32.mrb[51].mxu0  ;;  %v9312_v1 = vadd.f32 %v20125_v23, %v9192_v20  ;;  %v20277_v15 = vld [vmem:[%s20981_s11 + $0x2] ss:$0 sm:$0xff] }
0x176f   :  { %v9313_v24 = vadd.f32 %v20129_v3, %v9195_v18 }
0x1772   :  { %v9199_v30 = vpop.f32.mrb[52].mxu0 }
0x1773   :  { %v9200_v59 = vadd.f32 %v9199_v30, %v9114_v63  ;;  %v15808_v32 = vpop.f32.mrb[53].mxu0 }
0x1774   :  { %v9202_v33 = vpop.f32.mrb[54].mxu0 }
0x1775   :  { %v9203_v40 = vadd.f32 %v9202_v33, %v9117_v42  ;;  %v15809_v28 = vpop.f32.mrb[55].mxu0  ;;  %v9314_v50 = vadd.f32 %v20134_v49, %v9200_v59 }
0x1777   :  { %v9315_v19 = vadd.f32 %v20138_v41, %v9203_v40  ;;  %v16990_v41 = vld [vmem:[%s21033_s28 + $0x90] sm:$0xff]  }
0x1778   :  { %15867 = vmatpush3.bf16.msra.mxu0 %v16990_v41  ;;  %16328 = vmatpush3.bf16.msra.mxu1 %v16990_v41 }
0x1779   :  { %15868 = vmatprep.subr.bf16.mxu0 %v17182_v62  ;;  %16327 = vmatprep.subr.bf16.mxu1 %v17182_v62 }
0x177a   :  { %v9207_v55 = vpop.f32.mrb[56].mxu0 }
0x177b   :  { %v9208_v51 = vadd.f32 %v9207_v55, %v9122_v22  ;;  %v15812_v8 = vpop.f32.mrb[57].mxu0 }
0x177c   :  { %v9210_v45 = vpop.f32.mrb[58].mxu0 }
0x177d   :  { %v9211_v46 = vadd.f32 %v9210_v45, %v9125_v10  ;;  %v15813_v31 = vpop.f32.mrb[59].mxu0  ;;  %v9316_v23 = vadd.f32 %v20142_v61, %v9208_v51 }
0x177f   :  { %v9317_v3 = vadd.f32 %v20146_v2, %v9211_v46 }
0x1782   :  { %v9215_v25 = vpop.f32.mrb[60].mxu0 }
0x1783   :  { %v9216_v34 = vadd.f32 %v9215_v25, %v9130_v26  ;;  %v15816_v5 = vpop.f32.mrb[61].mxu0 }
0x1784   :  { %v9218_v37 = vpop.f32.mrb[62].mxu0 }
0x1785   :  { %v9219_v39 = vadd.f32 %v9218_v37, %v9133_v38  ;;  %v15817_v16 = vpop.f32.mrb[63].mxu0  ;;  %v20253_v49 = vadd.f32 %v20150_v4, %v9216_v34  ;;  %v16991_v4 = vld [vmem:[%s21033_s28 + $0x98] sm:$0xff]  }
0x1786   :  { %15869 = vmatpush3.bf16.msra.mxu0 %v16991_v4  ;;  %16329 = vmatpush3.bf16.msra.mxu1 %v16991_v4 }
0x1787   :  { %v20259_v9 = vadd.f32 %v20154_v14, %v9219_v39  ;;  %15882 = vmatprep.subr.bf16.mxu1 %v17182_v62  ;;  %15900 = vmatprep.subr.bf16.mxu0 %v17182_v62 }
0x178a   :  { %v9223_v61 = vpop.f32.mrb[64].mxu0 }
0x178b   :  { %v9224_v2 = vadd.f32 %v9223_v61, %v9138_v58  ;;  %v15820_v29 = vpop.f32.mrb[65].mxu0 }
0x178c   :  { %v9226_v27 = vpop.f32.mrb[66].mxu0 }
0x178d   :  { %v9227_v60 = vadd.f32 %v9226_v27, %v9141_v6  ;;  %v15821_v57 = vpop.f32.mrb[67].mxu0  ;;  %v20267_v14 = vadd.f32 %v20158_v17, %v9224_v2 }
0x178f   :  { %v20272_v7 = vadd.f32 %v20162_v12, %v9227_v60 }
0x17f7   :  { %v9385_v47 = vpop.f32.mrb[68].mxu0 }
0x17f8   :  { %v9424_v43 = vadd.f32 %v9385_v47, %v9312_v1  ;;  %v15848_v63 = vpop.f32.mrb[69].mxu0 }
0x17f9   :  { %v9388_v36 = vpop.f32.mrb[70].mxu0 }
0x17fa   :  { %v9442_v17 = vadd.f32 %v20277_v15, %v9424_v43  ;;  %v9425_v42 = vadd.f32 %v9388_v36, %v9313_v24  ;;  %v15849_v0 = vpop.f32.mrb[71].mxu0 }
0x17fc   :  { %v9462_v22 = vmul.f32 0.01, %v9442_v17  ;;  %v9443_v11 = vadd.f32 %v20277_v15, %v9425_v42  ;;  %vm9452_vm3 = vcmp.ge.f32.partialorder %v9442_v17, 0.0 }
0x17fe   :  { %vm9453_vm4 = vcmp.ge.f32.partialorder %v9443_v11, 0.0  ;;  %v9463_v12 = vmul.f32 0.01, %v9443_v11  ;;  %v9472_v13 = vsel %vm9452_vm3, %v9442_v17, %v9462_v22 }
0x17ff   :  { %v9393_v10 = vpop.f32.mrb[72].mxu0 }
0x1800   :  { %v9473_v26 = vsel %vm9453_vm4, %v9443_v11, %v9463_v12  ;;  %v9426_v44 = vadd.f32 %v9393_v10, %v9314_v50  ;;  %v15852_v38 = vpop.f32.mrb[73].mxu0 }
0x1801   :  { %v9482_v21 = vmax.f32 %v9472_v13, %v9473_v26  ;;  %v9396_v58 = vpop.f32.mrb[74].mxu0 }
0x1802   :  { %v9444_v54 = vadd.f32 %v20277_v15, %v9426_v44  ;;  %v9427_v6 = vadd.f32 %v9396_v58, %v9315_v19  ;;  %v15853_v35 = vpop.f32.mrb[75].mxu0 }
0x1803   :  { %v20316_v35 = vld [vmem:[%s20984_s19] sm:$0xff]  }
0x1804   :  { %v9464_v56 = vmul.f32 0.01, %v9444_v54  ;;  %v9445_v20 = vadd.f32 %v20277_v15, %v9427_v6  ;;  %vm9454_vm5 = vcmp.ge.f32.partialorder %v9444_v54, 0.0 }
0x1806   :  { %vm9455_vm10 = vcmp.ge.f32.partialorder %v9445_v20, 0.0  ;;  %v9465_v52 = vmul.f32 0.01, %v9445_v20  ;;  %v9474_v18 = vsel %vm9454_vm5, %v9444_v54, %v9464_v56  ;;  %v20326_v56 = vld [vmem:[%s20984_s19 + $0x8] sm:$0xff]  }
0x1807   :  { %v9401_v48 = vpop.f32.mrb[76].mxu0 }
0x1808   :  { %v9475_v53 = vsel %vm9455_vm10, %v9445_v20, %v9465_v52  ;;  %v9428_v1 = vadd.f32 %v9401_v48, %v9316_v23  ;;  %v15856_v24 = vpop.f32.mrb[77].mxu0  ;;  %v20335_v20 = vld [vmem:[%s20984_s19 + $0x10] sm:$0xff]   ;;  %v16995_v52 = vld [vmem:[%s20977_s7 + $0xa0] sm:$0xff]   ;;  %v13643_v48 = vld [vmem:[%s20978_s8 + $0x9] ss:$0 sm:$0xff] }
0x1809   :  { %v9483_v30 = vmax.f32 %v9474_v18, %v9475_v53  ;;  %v9404_v59 = vpop.f32.mrb[78].mxu0 }
0x180a   :  { %v9429_v32 = vadd.f32 %v9404_v59, %v9317_v3  ;;  %v15857_v33 = vpop.f32.mrb[79].mxu0  ;;  %v9446_v19 = vadd.f32 %v20277_v15, %v9428_v1 }
0x180b   :  { %v20283_v40 = vpack.c.bf16 %v9483_v30, %v9482_v21 }
0x180c   :  { %v9447_v28 = vadd.f32 %v20277_v15, %v9429_v32  ;;  %v9466_v3 = vmul.f32 0.01, %v9446_v19  ;;  %vm9456_vm13 = vcmp.ge.f32.partialorder %v9446_v19, 0.0 }
0x180d   :  { %15871 = vmatmul.mubr.msk.bf16.vlgmr.msra.gmra.mrb[88].mxu0 %vm1187_vm9, %v20283_v40 }
0x180e   :  { %15902 = vmatprep.mubr.msk.bf16.mxu0 %vm17183_vm8, %v17182_v62  ;;  %v9467_v45 = vmul.f32 0.01, %v9447_v28  ;;  %vm9457_vm11 = vcmp.ge.f32.partialorder %v9447_v28, 0.0  ;;  %15901 = vmatpush3.bf16.msra.mxu0 %v16995_v52 }
0x180f   :  { %v9409_v50 = vpop.f32.mrb[80].mxu0  ;;  %15914 = vmatprep.subr.bf16.mxu0 %v17182_v62 }
0x1810   :  { %v9430_v55 = vadd.f32 %v9409_v50, %v20253_v49  ;;  %v15860_v51 = vpop.f32.mrb[81].mxu0  ;;  %v9477_v34 = vsel %vm9457_vm11, %v9447_v28, %v9467_v45  ;;  %v9476_v49 = vsel %vm9456_vm13, %v9446_v19, %v9466_v3  ;;  %v16996_v19 = vld [vmem:[%s21033_s28 + $0xa0] sm:$0xff]  }
0x1811   :  { %v9412_v8 = vpop.f32.mrb[82].mxu0 }
0x1812   :  { %v9448_v46 = vadd.f32 %v20277_v15, %v9430_v55  ;;  %v9431_v31 = vadd.f32 %v9412_v8, %v20259_v9  ;;  %v15861_v23 = vpop.f32.mrb[83].mxu0 }
0x1814   :  { %vm9458_vm12 = vcmp.ge.f32.partialorder %v9448_v46, 0.0  ;;  %v9468_v25 = vmul.f32 0.01, %v9448_v46  ;;  %v9449_v37 = vadd.f32 %v20277_v15, %v9431_v31 }
0x1816   :  { %v9478_v5 = vsel %vm9458_vm12, %v9448_v46, %v9468_v25  ;;  %v9469_v9 = vmul.f32 0.01, %v9449_v37  ;;  %vm9459_vm14 = vcmp.ge.f32.partialorder %v9449_v37, 0.0  ;;  %v16997_v25 = vld [vmem:[%s21033_s28 + $0xa8] sm:$0xff]  }
0x1817   :  { %v9484_v39 = vmax.f32 %v9477_v34, %v9478_v5  ;;  %v9417_v16 = vpop.f32.mrb[84].mxu0 }
0x1818   :  { %v9432_v41 = vadd.f32 %v9417_v16, %v20267_v14  ;;  %v15864_v61 = vpop.f32.mrb[85].mxu0  ;;  %v9479_v14 = vsel %vm9459_vm14, %v9449_v37, %v9469_v9 }
0x1819   :  { %v20296_v2 = vpack.c.bf16 %v9484_v39, %v9476_v49  ;;  %v9420_v29 = vpop.f32.mrb[86].mxu0 }
0x181a   :  { %v9450_v4 = vadd.f32 %v20277_v15, %v9432_v41  ;;  %v9433_v27 = vadd.f32 %v9420_v29, %v20272_v7  ;;  %v15865_v60 = vpop.f32.mrb[87].mxu0 }
0x181b   :  { %15875 = vmatmul.mubr.msk.bf16.vlgmr.msra.gmra.mrb[144].mxu1 %vm1187_vm9, %v20296_v2 }
0x181c   :  { %vm9460_vm15 = vcmp.ge.f32.partialorder %v9450_v4, 0.0  ;;  %v9470_v57 = vmul.f32 0.01, %v9450_v4  ;;  %v9451_v47 = vadd.f32 %v20277_v15, %v9433_v27  ;;  %15878 = vmatprep.mubr.msk.bf16.mxu1 %vm17183_vm8, %v17182_v62 }
0x181e   :  { %v9480_v43 = vsel %vm9460_vm15, %v9450_v4, %v9470_v57  ;;  %vm9461_vm0 = vcmp.ge.f32.partialorder %v9451_v47, 0.0  ;;  %v9471_v63 = vmul.f32 0.01, %v9451_v47 }
0x181f   :  { %v9485_v36 = vmax.f32 %v9479_v14, %v9480_v43 }
0x1820   :  { %v9481_v17 = vsel %vm9461_vm0, %v9451_v47, %v9471_v63 }
0x1821   :  { %v20305_v42 = vpack.c.bf16 %v9481_v17, %v9485_v36 }
0x1823   :  { %15879 = vmatmul.mubr.msk.bf16.gmra.mrb[148].mxu1 %vm1187_vm9, %v20305_v42 }
0x1824   :  { %15888 = vmatprep.mubr.msk.bf16.mxu1 %vm17183_vm8, %v17182_v62 }
0x18e0   :  { %v9555_v7 = vpop.f32.mrb[88].mxu0 }
0x18e1   :  { %v15872_v0 = vpop.f32.mrb[89].mxu0 }
0x18e2   :  { %v9558_v15 = vpop.f32.mrb[90].mxu0 }
0x18e3   :  { %v9578_v22 = vpack.c.bf16 %v9558_v15, %v9555_v7  ;;  %v15873_v11 = vpop.f32.mrb[91].mxu0 }
0x18e5   :  { %15883 = vmatpush3.bf16.msra.mxu1 %v9578_v22 }
0x18e6   :  { %15884 = vmatprep.subr.bf16.mxu1 %v17182_v62 }
0x18ee   :  { %v9563_v12 = vpop.f32.mrb[144].mxu1 }
0x18ef   :  { %v15876_v10 = vpop.f32.mrb[145].mxu1 }
0x18f0   :  { %v9566_v13 = vpop.f32.mrb[146].mxu1 }
0x18f1   :  { %v9579_v26 = vpack.c.bf16 %v9566_v13, %v9563_v12  ;;  %v15877_v44 = vpop.f32.mrb[147].mxu1 }
0x18f3   :  { %15885 = vmatpush3.bf16.msra.mxu1 %v9579_v26 }
0x18f4   :  { %15886 = vmatprep.subr.bf16.mxu1 %v17182_v62 }
0x18f6   :  { %v9571_v38 = vpop.f32.mrb[148].mxu1 }
0x18f7   :  { %v15880_v21 = vpop.f32.mrb[149].mxu1 }
0x18f8   :  { %v9574_v58 = vpop.f32.mrb[150].mxu1  ;;  %v16999_v21 = vld [vmem:[%s21033_s28 + $0xb0] sm:$0xff]  }
0x18f9   :  { %v9580_v54 = vpack.c.bf16 %v9574_v58, %v9571_v38  ;;  %v15881_v6 = vpop.f32.mrb[151].mxu1  ;;  %v16998_v38 = vld [vmem:[%s20977_s7 + $0xb0] sm:$0xff]   ;;  %v17000_v58 = vld [vmem:[%s21033_s28 + $0xb8] sm:$0xff]  }
0x18fa   :  { %v13666_v6 = vld [vmem:[%s20978_s8 + $0xa] ss:$0 sm:$0xff] }
0x18fb   :  { %15887 = vmatpush3.bf16.msra.mxu1 %v9580_v54  ;;  %v17001_v54 = vld [vmem:[%s20977_s7 + $0xb8] sm:$0xff]  }
0x18fc   :  { %15930 = vmatprep.subr.bf16.mxu1 %v17182_v62 }
0x18fe   :  { %15889 = vmatmul.mubr.msk.bf16.vlgmr.msra.gmra.mrb[152].mxu1 %vm9604_vm2, %v20316_v35 }
0x18ff   :  { %15892 = vmatprep.mubr.msk.bf16.mxu1 %vm17183_vm8, %v17182_v62 }
0x1906   :  { %15893 = vmatmul.mubr.msk.bf16.gmra.mrb[156].mxu1 %vm9604_vm2, %v20326_v56 }
0x1907   :  { %15896 = vmatprep.mubr.msk.bf16.mxu1 %vm17183_vm8, %v17182_v62 }
0x190e   :  { %15897 = vmatmul.mubr.msk.bf16.gmra.mrb[160].mxu1 %vm9604_vm2, %v20335_v20 }
0x190f   :  { %15936 = vmatprep.mubr.msk.bf16.mxu1 %vm17183_vm8, %v17182_v62 }
0x19d1   :  { %v9648_v18 = vpop.f32.mrb[152].mxu1 }
0x19d2   :  { %v9649_v53 = vadd.f32 %v13643_v48, %v9648_v18  ;;  %v15890_v1 = vpop.f32.mrb[153].mxu1 }
0x19d3   :  { %v9651_v24 = vpop.f32.mrb[154].mxu1 }
0x19d4   :  { %v9677_v30 = vmul.f32 0.01, %v9649_v53  ;;  %v9652_v59 = vadd.f32 %v13643_v48, %v9651_v24  ;;  %v15891_v32 = vpop.f32.mrb[155].mxu1  ;;  %vm9671_vm3 = vcmp.ge.f32.partialorder %v9649_v53, 0.0 }
0x19d6   :  { %vm9672_vm4 = vcmp.ge.f32.partialorder %v9652_v59, 0.0  ;;  %v9678_v33 = vmul.f32 0.01, %v9652_v59  ;;  %v9683_v28 = vsel %vm9671_vm3, %v9649_v53, %v9677_v30 }
0x19d8   :  { %v9684_v50 = vsel %vm9672_vm4, %v9652_v59, %v9678_v33 }
0x19d9   :  { %v20351_v55 = vpack.c.bf16 %v9684_v50, %v9683_v28  ;;  %v9656_v51 = vpop.f32.mrb[156].mxu1  ;;  %v17002_v28 = vld [vmem:[%s20979_s10 + $0x50] sm:$0xff]  }
0x19da   :  { %v9657_v8 = vadd.f32 %v13643_v48, %v9656_v51  ;;  %v15894_v45 = vpop.f32.mrb[157].mxu1 }
0x19db   :  { %v9659_v46 = vpop.f32.mrb[158].mxu1  ;;  %15903 = vmatmul.mubr.msk.bf16.vlgmr.msra.gmra.mrb[92].mxu0 %vm2368_vm7, %v20351_v55 }
0x19dc   :  { %v9679_v31 = vmul.f32 0.01, %v9657_v8  ;;  %v9660_v23 = vadd.f32 %v13643_v48, %v9659_v46  ;;  %v15895_v3 = vpop.f32.mrb[159].mxu1  ;;  %15906 = vmatprep.mubr.msk.bf16.mxu0 %vm17183_vm8, %v17182_v62  ;;  %15915 = vmatpush3.bf16.msra.mxu0 %v16996_v19  ;;  %vm9673_vm5 = vcmp.ge.f32.partialorder %v9657_v8, 0.0 }
0x19dd   :  { %15916 = vmatprep.subr.bf16.mxu0 %v17182_v62 }
0x19de   :  { %vm9674_vm10 = vcmp.ge.f32.partialorder %v9660_v23, 0.0  ;;  %v9680_v34 = vmul.f32 0.01, %v9660_v23  ;;  %v9685_v5 = vsel %vm9673_vm5, %v9657_v8, %v9679_v31 }
0x19e0   :  { %v9686_v37 = vsel %vm9674_vm10, %v9660_v23, %v9680_v34  ;;  %15917 = vmatpush3.bf16.msra.mxu0 %v16997_v25 }
0x19e1   :  { %v20361_v39 = vpack.c.bf16 %v9686_v37, %v9685_v5  ;;  %v9664_v16 = vpop.f32.mrb[160].mxu1  ;;  %15992 = vmatprep.subr.bf16.mxu0 %v17182_v62 }
0x19e2   :  { %v9665_v49 = vadd.f32 %v13643_v48, %v9664_v16  ;;  %v15898_v41 = vpop.f32.mrb[161].mxu1 }
0x19e3   :  { %v9667_v61 = vpop.f32.mrb[162].mxu1  ;;  %15907 = vmatmul.mubr.msk.bf16.gmra.mrb[96].mxu0 %vm2368_vm7, %v20361_v39 }
0x19e4   :  { %v9681_v29 = vmul.f32 0.01, %v9665_v49  ;;  %v9668_v9 = vadd.f32 %v13643_v48, %v9667_v61  ;;  %15910 = vmatprep.mubr.msk.bf16.mxu0 %vm17183_vm8, %v17182_v62  ;;  %v15899_v4 = vpop.f32.mrb[163].mxu1  ;;  %vm9675_vm11 = vcmp.ge.f32.partialorder %v9665_v49, 0.0 }
0x19e6   :  { %vm9676_vm12 = vcmp.ge.f32.partialorder %v9668_v9, 0.0  ;;  %v9682_v27 = vmul.f32 0.01, %v9668_v9  ;;  %v9687_v60 = vsel %vm9675_vm11, %v9665_v49, %v9681_v29 }
0x19e8   :  { %v9688_v57 = vsel %vm9676_vm12, %v9668_v9, %v9682_v27 }
0x19e9   :  { %v20368_v47 = vpack.c.bf16 %v9688_v57, %v9687_v60 }
0x19eb   :  { %15911 = vmatmul.mubr.msk.bf16.gmra.mrb[100].mxu0 %vm2368_vm7, %v20368_v47 }
0x19ec   :  { %15918 = vmatprep.mubr.msk.bf16.mxu0 %vm17183_vm8, %v17182_v62 }
0x19f3   :  { %15919 = vmatmul.mubr.msk.bf16.vlgmr.msra.gmra.mrb[92].mxu0 %vm1187_vm9, %v20283_v40 }
0x19f4   :  { %15922 = vmatprep.mubr.msk.bf16.mxu0 %vm17183_vm8, %v17182_v62 }
0x19fb   :  { %15923 = vmatmul.mubr.msk.bf16.gmra.mrb[96].mxu0 %vm1187_vm9, %v20296_v2 }
0x19fc   :  { %15926 = vmatprep.mubr.msk.bf16.mxu0 %vm17183_vm8, %v17182_v62 }
0x1a03   :  { %15927 = vmatmul.mubr.msk.bf16.gmra.mrb[100].mxu0 %vm1187_vm9, %v20305_v42 }
0x1a04   :  { %15998 = vmatprep.mubr.msk.bf16.mxu0 %vm17183_vm8, %v17182_v62 }
0x1ac6   :  { %v9818_v14 = vpop.f32.mrb[92].mxu0 }
0x1ac7   :  { %v15920_v43 = vpop.f32.mrb[93].mxu0 }
0x1ac8   :  { %v9821_v63 = vpop.f32.mrb[94].mxu0 }
0x1ac9   :  { %v9841_v36 = vpack.c.bf16 %v9821_v63, %v9818_v14  ;;  %v15921_v17 = vpop.f32.mrb[95].mxu0 }
0x1acb   :  { %15931 = vmatpush3.bf16.msra.mxu1 %v9841_v36 }
0x1acc   :  { %15932 = vmatprep.subr.bf16.mxu1 %v17182_v62 }
0x1ace   :  { %v9826_v7 = vpop.f32.mrb[96].mxu0 }
0x1acf   :  { %v15924_v0 = vpop.f32.mrb[97].mxu0 }
0x1ad0   :  { %v9829_v15 = vpop.f32.mrb[98].mxu0 }
0x1ad1   :  { %v9842_v22 = vpack.c.bf16 %v9829_v15, %v9826_v7  ;;  %v15925_v11 = vpop.f32.mrb[99].mxu0 }
0x1ad3   :  { %15933 = vmatpush3.bf16.msra.mxu1 %v9842_v22 }
0x1ad4   :  { %15934 = vmatprep.subr.bf16.mxu1 %v17182_v62 }
0x1ad6   :  { %v9834_v12 = vpop.f32.mrb[100].mxu0 }
0x1ad7   :  { %v15928_v10 = vpop.f32.mrb[101].mxu0 }
0x1ad8   :  { %v9837_v13 = vpop.f32.mrb[102].mxu0 }
0x1ad9   :  { %v9843_v26 = vpack.c.bf16 %v9837_v13, %v9834_v12  ;;  %v15929_v44 = vpop.f32.mrb[103].mxu0 }
0x1adb   :  { %15935 = vmatpush3.bf16.msra.mxu1 %v9843_v26 }
0x1adc   :  { %15948 = vmatprep.subr.bf16.mxu1 %v17182_v62 }
0x1ade   :  { %15937 = vmatmul.mubr.msk.bf16.vlgmr.msra.gmra.mrb[164].mxu1 %vm9604_vm2, %v20316_v35 }
0x1adf   :  { %15940 = vmatprep.mubr.msk.bf16.mxu1 %vm17183_vm8, %v17182_v62  ;;  %15949 = vmatpush3.bf16.msra.mxu1 %v16998_v38  ;;  %v17003_v38 = vld [vmem:[%s20979_s10 + $0x48] sm:$0xff]  }
0x1ae0   :  { %15962 = vmatprep.subr.bf16.mxu1 %v17182_v62 }
0x1ae6   :  { %15941 = vmatmul.mubr.msk.bf16.gmra.mrb[168].mxu1 %vm9604_vm2, %v20326_v56 }
0x1ae7   :  { %15944 = vmatprep.mubr.msk.bf16.mxu1 %vm17183_vm8, %v17182_v62 }
0x1aee   :  { %15945 = vmatmul.mubr.msk.bf16.gmra.mrb[172].mxu1 %vm9604_vm2, %v20335_v20 }
0x1aef   :  { %15950 = vmatprep.mubr.msk.bf16.mxu1 %vm17183_vm8, %v17182_v62 }
0x1af6   :  { %15951 = vmatmul.mubr.msk.bf16.vlgmr.msra.gmra.mrb[176].mxu1 %vm2368_vm7, %v20351_v55 }
0x1af7   :  { %15954 = vmatprep.mubr.msk.bf16.mxu1 %vm17183_vm8, %v17182_v62  ;;  %15963 = vmatpush3.bf16.msra.mxu1 %v16999_v21 }
0x1af8   :  { %15964 = vmatprep.subr.bf16.mxu1 %v17182_v62 }
0x1afb   :  { %15965 = vmatpush3.bf16.msra.mxu1 %v17000_v58 }
0x1afc   :  { %15978 = vmatprep.subr.bf16.mxu1 %v17182_v62 }
0x1afe   :  { %15955 = vmatmul.mubr.msk.bf16.gmra.mrb[180].mxu1 %vm2368_vm7, %v20361_v39 }
0x1aff   :  { %15958 = vmatprep.mubr.msk.bf16.mxu1 %vm17183_vm8, %v17182_v62 }
0x1b06   :  { %15959 = vmatmul.mubr.msk.bf16.gmra.mrb[184].mxu1 %vm2368_vm7, %v20368_v47 }
0x1b07   :  { %15966 = vmatprep.mubr.msk.bf16.mxu1 %vm17183_vm8, %v17182_v62 }
0x1b0e   :  { %15967 = vmatmul.mubr.msk.bf16.vlgmr.msra.gmra.mrb[176].mxu1 %vm1187_vm9, %v20283_v40 }
0x1b0f   :  { %15970 = vmatprep.mubr.msk.bf16.mxu1 %vm17183_vm8, %v17182_v62  ;;  %15979 = vmatpush3.bf16.msra.mxu1 %v17001_v54 }
0x1b10   :  { %16040 = vmatprep.subr.bf16.mxu1 %v17182_v62 }
0x1b16   :  { %15971 = vmatmul.mubr.msk.bf16.gmra.mrb[180].mxu1 %vm1187_vm9, %v20296_v2 }
0x1b17   :  { %15974 = vmatprep.mubr.msk.bf16.mxu1 %vm17183_vm8, %v17182_v62 }
0x1b1e   :  { %15975 = vmatmul.mubr.msk.bf16.gmra.mrb[184].mxu1 %vm1187_vm9, %v20305_v42 }
0x1b1f   :  { %15980 = vmatprep.mubr.msk.bf16.mxu1 %vm17183_vm8, %v17182_v62 }
0x1bb1   :  { %v9886_v52 = vpop.f32.mrb[164].mxu1 }
0x1bb2   :  { %v9887_v48 = vadd.f32 %v13666_v6, %v9886_v52  ;;  %v15938_v18 = vpop.f32.mrb[165].mxu1 }
0x1bb3   :  { %v9889_v53 = vpop.f32.mrb[166].mxu1 }
0x1bb4   :  { %v9915_v1 = vmul.f32 0.01, %v9887_v48  ;;  %v9890_v24 = vadd.f32 %v13666_v6, %v9889_v53  ;;  %v15939_v30 = vpop.f32.mrb[167].mxu1  ;;  %vm9909_vm13 = vcmp.ge.f32.partialorder %v9887_v48, 0.0 }
0x1bb5   :  { %v17004_v30 = vld [vmem:[%s20980_s9 + $0x30] sm:$0xff]  }
0x1bb6   :  { %vm9910_vm14 = vcmp.ge.f32.partialorder %v9890_v24, 0.0  ;;  %v9916_v59 = vmul.f32 0.01, %v9890_v24  ;;  %v9921_v32 = vsel %vm9909_vm13, %v9887_v48, %v9915_v1 }
0x1bb8   :  { %v9922_v33 = vsel %vm9910_vm14, %v9890_v24, %v9916_v59 }
0x1bb9   :  { %v10070_v50 = vpack.c.bf16 %v9922_v33, %v9921_v32  ;;  %v9894_v19 = vpop.f32.mrb[168].mxu1 }
0x1bba   :  { %v9895_v51 = vadd.f32 %v13666_v6, %v9894_v19  ;;  %v15942_v8 = vpop.f32.mrb[169].mxu1 }
0x1bbb   :  { %v9897_v45 = vpop.f32.mrb[170].mxu1  ;;  %15981 = vmatmul.mubr.msk.bf16.vlgmr.msra.gmra.mrb[176].mxu1 %vm2368_vm7, %v10070_v50 }
0x1bbc   :  { %v9917_v46 = vmul.f32 0.01, %v9895_v51  ;;  %v9898_v31 = vadd.f32 %v13666_v6, %v9897_v45  ;;  %v15943_v23 = vpop.f32.mrb[171].mxu1  ;;  %15984 = vmatprep.mubr.msk.bf16.mxu1 %vm17183_vm8, %v17182_v62  ;;  %16041 = vmatpush3.bf16.msra.mxu1 %v17002_v28  ;;  %vm9911_vm15 = vcmp.ge.f32.partialorder %v9895_v51, 0.0 }
0x1bbe   :  { %vm9912_vm0 = vcmp.ge.f32.partialorder %v9898_v31, 0.0  ;;  %v9918_v3 = vmul.f32 0.01, %v9898_v31  ;;  %v9923_v25 = vsel %vm9911_vm15, %v9895_v51, %v9917_v46 }
0x1bc0   :  { %v9924_v34 = vsel %vm9912_vm0, %v9898_v31, %v9918_v3 }
0x1bc1   :  { %v10071_v5 = vpack.c.bf16 %v9924_v34, %v9923_v25  ;;  %v9902_v37 = vpop.f32.mrb[172].mxu1 }
0x1bc2   :  { %v9903_v16 = vadd.f32 %v13666_v6, %v9902_v37  ;;  %v15946_v49 = vpop.f32.mrb[173].mxu1 }
0x1bc3   :  { %v9905_v41 = vpop.f32.mrb[174].mxu1  ;;  %15985 = vmatmul.mubr.msk.bf16.gmra.mrb[180].mxu1 %vm2368_vm7, %v10071_v5 }
0x1bc4   :  { %v9919_v61 = vmul.f32 0.01, %v9903_v16  ;;  %v9906_v29 = vadd.f32 %v13666_v6, %v9905_v41  ;;  %15988 = vmatprep.mubr.msk.bf16.mxu1 %vm17183_vm8, %v17182_v62  ;;  %v15947_v9 = vpop.f32.mrb[175].mxu1  ;;  %vm9913_vm3 = vcmp.ge.f32.partialorder %v9903_v16, 0.0 }
0x1bc6   :  { %vm9914_vm4 = vcmp.ge.f32.partialorder %v9906_v29, 0.0  ;;  %v9920_v4 = vmul.f32 0.01, %v9906_v29  ;;  %v9925_v27 = vsel %vm9913_vm3, %v9903_v16, %v9919_v61 }
0x1bc8   :  { %v9926_v60 = vsel %vm9914_vm4, %v9906_v29, %v9920_v4 }
0x1bc9   :  { %v10072_v57 = vpack.c.bf16 %v9926_v60, %v9925_v27 }
0x1bcb   :  { %15989 = vmatmul.mubr.msk.bf16.gmra.mrb[184].mxu1 %vm2368_vm7, %v10072_v57 }
0x1bcc   :  { %16042 = vmatprep.mubr.msk.bf16.mxu1 %vm17183_vm8, %v17182_v62 }
0x1bd3   :  { %16043 = vmatmul.mubr.msk.bf16.vlgmr.msra.gmra.mrb[188].mxu1 %vm2368_vm7, %v10070_v50 }
0x1bd4   :  { %16046 = vmatprep.mubr.msk.bf16.mxu1 %vm17183_vm8, %v17182_v62 }
0x1bdb   :  { %16047 = vmatmul.mubr.msk.bf16.gmra.mrb[192].mxu1 %vm2368_vm7, %v10071_v5 }
0x1bdc   :  { %16050 = vmatprep.mubr.msk.bf16.mxu1 %vm17183_vm8, %v17182_v62 }
0x1be3   :  { %16051 = vmatmul.mubr.msk.bf16.gmra.mrb[196].mxu1 %vm2368_vm7, %v10072_v57 }
0x1c8e   :  { %v10122_v14 = vpop.f32.mrb[176].mxu1 }
0x1c8f   :  { %v15982_v43 = vpop.f32.mrb[177].mxu1 }
0x1c90   :  { %v10125_v63 = vpop.f32.mrb[178].mxu1 }
0x1c91   :  { %v10151_v36 = vpack.c.bf16 %v10125_v63, %v10122_v14  ;;  %v15983_v17 = vpop.f32.mrb[179].mxu1 }
0x1c93   :  { %15993 = vmatpush3.bf16.msra.mxu0 %v10151_v36 }
0x1c94   :  { %15994 = vmatprep.subr.bf16.mxu0 %v17182_v62 }
0x1c96   :  { %v10130_v7 = vpop.f32.mrb[180].mxu1 }
0x1c97   :  { %v15986_v0 = vpop.f32.mrb[181].mxu1 }
0x1c98   :  { %v10133_v15 = vpop.f32.mrb[182].mxu1 }
0x1c99   :  { %v10152_v22 = vpack.c.bf16 %v10133_v15, %v10130_v7  ;;  %v15987_v11 = vpop.f32.mrb[183].mxu1 }
0x1c9b   :  { %15995 = vmatpush3.bf16.msra.mxu0 %v10152_v22 }
0x1c9c   :  { %15996 = vmatprep.subr.bf16.mxu0 %v17182_v62 }
0x1c9e   :  { %v10138_v12 = vpop.f32.mrb[184].mxu1 }
0x1c9f   :  { %v15990_v10 = vpop.f32.mrb[185].mxu1 }
0x1ca0   :  { %v10141_v13 = vpop.f32.mrb[186].mxu1 }
0x1ca1   :  { %v10153_v26 = vpack.c.bf16 %v10141_v13, %v10138_v12  ;;  %v15991_v44 = vpop.f32.mrb[187].mxu1 }
0x1ca3   :  { %15997 = vmatpush3.bf16.msra.mxu0 %v10153_v26 }
0x1ca4   :  { %16010 = vmatprep.subr.bf16.mxu0 %v17182_v62 }
0x1ca6   :  { %15999 = vmatmul.mubr.msk.bf16.vlgmr.msra.gmra.mrb[104].mxu0 %vm9604_vm2, %v20316_v35  ;;  %v20471_v21 = vpop.f32.mrb[188].mxu1 }
0x1ca7   :  { %16002 = vmatprep.mubr.msk.bf16.mxu0 %vm17183_vm8, %v17182_v62  ;;  %16011 = vmatpush3.bf16.msra.mxu0 %v17003_v38  ;;  %v16044_v58 = vpop.f32.mrb[189].mxu1 }
0x1ca8   :  { %16024 = vmatprep.subr.bf16.mxu0 %v17182_v62  ;;  %v20476_v54 = vpop.f32.mrb[190].mxu1 }
0x1ca9   :  { %v16045_v6 = vpop.f32.mrb[191].mxu1 }
0x1cae   :  { %16003 = vmatmul.mubr.msk.bf16.gmra.mrb[108].mxu0 %vm9604_vm2, %v20326_v56  ;;  %v20480_v52 = vpop.f32.mrb[192].mxu1 }
0x1caf   :  { %16006 = vmatprep.mubr.msk.bf16.mxu0 %vm17183_vm8, %v17182_v62  ;;  %v16048_v35 = vpop.f32.mrb[193].mxu1 }
0x1cb0   :  { %v20484_v48 = vpop.f32.mrb[194].mxu1 }
0x1cb1   :  { %v16049_v18 = vpop.f32.mrb[195].mxu1 }
0x1cb6   :  { %16007 = vmatmul.mubr.msk.bf16.gmra.mrb[112].mxu0 %vm9604_vm2, %v20335_v20  ;;  %v20488_v53 = vpop.f32.mrb[196].mxu1  ;;  %v17005_v20 = vld [vmem:[%s20980_s9 + $0x38] sm:$0xff]  }
0x1cb7   :  { %16012 = vmatprep.mubr.msk.bf16.mxu0 %vm17183_vm8, %v17182_v62  ;;  %v16052_v1 = vpop.f32.mrb[197].mxu1 }
0x1cb8   :  { %v20492_v24 = vpop.f32.mrb[198].mxu1 }
0x1cb9   :  { %v16053_v56 = vpop.f32.mrb[199].mxu1 }
0x1cbe   :  { %16013 = vmatmul.mubr.msk.bf16.vlgmr.msra.gmra.mrb[116].mxu0 %vm2368_vm7, %v20351_v55  ;;  %v17006_v55 = vld [vmem:[%s20979_s10 + $0x58] sm:$0xff]  }
0x1cbf   :  { %16016 = vmatprep.mubr.msk.bf16.mxu0 %vm17183_vm8, %v17182_v62  ;;  %16025 = vmatpush3.bf16.msra.mxu0 %v17004_v30 }
0x1cc0   :  { %16026 = vmatprep.subr.bf16.mxu0 %v17182_v62 }
0x1cc3   :  { %16027 = vmatpush3.bf16.msra.mxu0 %v17005_v20 }
0x1cc4   :  { %16054 = vmatprep.subr.bf16.mxu0 %v17182_v62 }
0x1cc6   :  { %16017 = vmatmul.mubr.msk.bf16.gmra.mrb[120].mxu0 %vm2368_vm7, %v20361_v39 }
0x1cc7   :  { %16020 = vmatprep.mubr.msk.bf16.mxu0 %vm17183_vm8, %v17182_v62 }
0x1cce   :  { %16021 = vmatmul.mubr.msk.bf16.gmra.mrb[124].mxu0 %vm2368_vm7, %v20368_v47 }
0x1ccf   :  { %16028 = vmatprep.mubr.msk.bf16.mxu0 %vm17183_vm8, %v17182_v62 }
0x1cd6   :  { %16029 = vmatmul.mubr.msk.bf16.vlgmr.msra.gmra.mrb[128].mxu0 %vm1187_vm9, %v20283_v40  ;;  %v13692_v40 = vld [vmem:[%s20978_s8 + $0xb] ss:$0 sm:$0xff] }
0x1cd7   :  { %16032 = vmatprep.mubr.msk.bf16.mxu0 %vm17183_vm8, %v17182_v62  ;;  %16055 = vmatpush3.bf16.msra.mxu0 %v17006_v55 }
0x1cde   :  { %16033 = vmatmul.mubr.msk.bf16.gmra.mrb[132].mxu0 %vm1187_vm9, %v20296_v2 }
0x1cdf   :  { %16036 = vmatprep.mubr.msk.bf16.mxu0 %vm17183_vm8, %v17182_v62 }
0x1ce6   :  { %16037 = vmatmul.mubr.msk.bf16.gmra.mrb[136].mxu0 %vm1187_vm9, %v20305_v42 }
0x1ce7   :  { %16056 = vmatprep.mubr.msk.bf16.mxu0 %vm17183_vm8, %v17182_v62 }
0x1d79   :  { %v10196_v39 = vpop.f32.mrb[104].mxu0 }
0x1d7a   :  { %v10197_v2 = vadd.f32 %v13692_v40, %v10196_v39  ;;  %v16000_v47 = vpop.f32.mrb[105].mxu0 }
0x1d7b   :  { %v10199_v59 = vpop.f32.mrb[106].mxu0 }
0x1d7c   :  { %v10225_v32 = vmul.f32 0.01, %v10197_v2  ;;  %v10200_v33 = vadd.f32 %v13692_v40, %v10199_v59  ;;  %v16001_v28 = vpop.f32.mrb[107].mxu0  ;;  %vm10219_vm2 = vcmp.ge.f32.partialorder %v10197_v2, 0.0 }
0x1d7e   :  { %vm10220_vm5 = vcmp.ge.f32.partialorder %v10200_v33, 0.0  ;;  %v10226_v42 = vmul.f32 0.01, %v10200_v33  ;;  %v10231_v50 = vsel %vm10219_vm2, %v10197_v2, %v10225_v32 }
0x1d80   :  { %v10232_v19 = vsel %vm10220_vm5, %v10200_v33, %v10226_v42 }
0x1d81   :  { %v10452_v51 = vpack.c.bf16 %v10232_v19, %v10231_v50  ;;  %v10204_v8 = vpop.f32.mrb[108].mxu0 }
0x1d82   :  { %v10205_v45 = vadd.f32 %v13692_v40, %v10204_v8  ;;  %v16004_v46 = vpop.f32.mrb[109].mxu0  ;;  %v13724_v8 = vld [vmem:[%s20981_s11 + $0x3] ss:$0 sm:$0xff] }
0x1d83   :  { %v10207_v31 = vpop.f32.mrb[110].mxu0  ;;  %16057 = vmatmul.mubr.msk.bf16.vlgmr.msra.gmra.mrb[140].mxu0 %vm2368_vm7, %v10452_v51  ;;  %v17007_v51 = vld [vmem:[%s21033_s28 + $0xc0] sm:$0xff]  }
0x1d84   :  { %v10227_v23 = vmul.f32 0.01, %v10205_v45  ;;  %v10208_v3 = vadd.f32 %v13692_v40, %v10207_v31  ;;  %v16005_v25 = vpop.f32.mrb[111].mxu0  ;;  %16060 = vmatprep.mubr.msk.bf16.mxu0 %vm17183_vm8, %v17182_v62  ;;  %vm10221_vm10 = vcmp.ge.f32.partialorder %v10205_v45, 0.0  ;;  %16068 = vmatprep.subr.bf16.mxu1 %v17007_v51 }
0x1d85   :  { %16069 = vmatpush3.bf16.msra.mxu1 %v17007_v51 }
0x1d86   :  { %vm10222_vm11 = vcmp.ge.f32.partialorder %v10208_v3, 0.0  ;;  %v10228_v34 = vmul.f32 0.01, %v10208_v3  ;;  %v10233_v5 = vsel %vm10221_vm10, %v10205_v45, %v10227_v23 }
0x1d88   :  { %v10234_v37 = vsel %vm10222_vm11, %v10208_v3, %v10228_v34 }
0x1d89   :  { %v10453_v16 = vpack.c.bf16 %v10234_v37, %v10233_v5  ;;  %v10212_v49 = vpop.f32.mrb[112].mxu0 }
0x1d8a   :  { %v10213_v41 = vadd.f32 %v13692_v40, %v10212_v49  ;;  %v16008_v61 = vpop.f32.mrb[113].mxu0 }
0x1d8b   :  { %v10215_v29 = vpop.f32.mrb[114].mxu0  ;;  %16061 = vmatmul.mubr.msk.bf16.gmra.mrb[144].mxu0 %vm2368_vm7, %v10453_v16 }
0x1d8c   :  { %v10229_v9 = vmul.f32 0.01, %v10213_v41  ;;  %v10216_v4 = vadd.f32 %v13692_v40, %v10215_v29  ;;  %v16009_v27 = vpop.f32.mrb[115].mxu0  ;;  %16064 = vmatprep.mubr.msk.bf16.mxu0 %vm17183_vm8, %v17182_v62  ;;  %vm10223_vm12 = vcmp.ge.f32.partialorder %v10213_v41, 0.0 }
0x1d8e   :  { %vm10224_vm13 = vcmp.ge.f32.partialorder %v10216_v4, 0.0  ;;  %v10230_v60 = vmul.f32 0.01, %v10216_v4  ;;  %v10235_v57 = vsel %vm10223_vm12, %v10213_v41, %v10229_v9 }
0x1d90   :  { %v10236_v14 = vsel %vm10224_vm13, %v10216_v4, %v10230_v60 }
0x1d91   :  { %v10454_v43 = vpack.c.bf16 %v10236_v14, %v10235_v57  ;;  %v10285_v63 = vpop.f32.mrb[116].mxu0 }
0x1d92   :  { %v16014_v36 = vpop.f32.mrb[117].mxu0 }
0x1d93   :  { %v10288_v17 = vpop.f32.mrb[118].mxu0  ;;  %16065 = vmatmul.mubr.msk.bf16.gmra.mrb[148].mxu0 %vm2368_vm7, %v10454_v43 }
0x1d94   :  { %v16015_v7 = vpop.f32.mrb[119].mxu0 }
0x1d99   :  { %v10293_v0 = vpop.f32.mrb[120].mxu0 }
0x1d9a   :  { %v16018_v15 = vpop.f32.mrb[121].mxu0 }
0x1d9b   :  { %v10296_v22 = vpop.f32.mrb[122].mxu0 }
0x1d9c   :  { %v16019_v11 = vpop.f32.mrb[123].mxu0 }
0x1da1   :  { %v10301_v12 = vpop.f32.mrb[124].mxu0 }
0x1da2   :  { %v16022_v10 = vpop.f32.mrb[125].mxu0 }
0x1da3   :  { %v10304_v13 = vpop.f32.mrb[126].mxu0 }
0x1da4   :  { %v16023_v26 = vpop.f32.mrb[127].mxu0 }
0x1da9   :  { %v10354_v44 = vpop.f32.mrb[128].mxu0 }
0x1daa   :  { %v10355_v38 = vadd.f32 %v10354_v44, %v10285_v63  ;;  %v16030_v58 = vpop.f32.mrb[129].mxu0 }
0x1dab   :  { %v10357_v6 = vpop.f32.mrb[130].mxu0 }
0x1dac   :  { %v10358_v35 = vadd.f32 %v10357_v6, %v10288_v17  ;;  %v16031_v18 = vpop.f32.mrb[131].mxu0  ;;  %v10443_v1 = vadd.f32 %v20471_v21, %v10355_v38 }
0x1dae   :  { %v10444_v56 = vadd.f32 %v20476_v54, %v10358_v35  ;;  %v17009_v35 = vld [vmem:[%s20985_s20] sm:$0xff]  }
0x1daf   :  { %16080 = vmatprep.mubr.msk.bf16.mxu0 %vm1187_vm9, %v17009_v35 }
0x1db1   :  { %v10362_v30 = vpop.f32.mrb[132].mxu0 }
0x1db2   :  { %v10363_v20 = vadd.f32 %v10362_v30, %v10293_v0  ;;  %v16034_v55 = vpop.f32.mrb[133].mxu0 }
0x1db3   :  { %v10365_v40 = vpop.f32.mrb[134].mxu0 }
0x1db4   :  { %v10366_v39 = vadd.f32 %v10365_v40, %v10296_v22  ;;  %v16035_v2 = vpop.f32.mrb[135].mxu0  ;;  %v10445_v47 = vadd.f32 %v20480_v52, %v10363_v20  ;;  %v17008_v52 = vld [vmem:[%s21033_s28 + $0xc8] sm:$0xff]  }
0x1db5   :  { %16070 = vmatprep.subr.bf16.mxu1 %v17008_v52  ;;  %v20569_v40 = vld [vmem:[%s20985_s20 + $0x8] sm:$0xff]   ;;  %v17012_v2 = vld [vmem:[%s21033_s28 + $0xd0] sm:$0xff]  }
0x1db6   :  { %v10446_v59 = vadd.f32 %v20484_v48, %v10366_v39  ;;  %16071 = vmatpush3.bf16.msra.mxu1 %v17008_v52  ;;  %v17011_v39 = vld [vmem:[%s20977_s7 + $0xd0] sm:$0xff]  }
0x1db7   :  { %16084 = vmatprep.subr.bf16.mxu1 %v17011_v39 }
0x1db9   :  { %v10370_v32 = vpop.f32.mrb[136].mxu0 }
0x1dba   :  { %v10371_v33 = vadd.f32 %v10370_v32, %v10301_v12  ;;  %v16038_v28 = vpop.f32.mrb[137].mxu0 }
0x1dbb   :  { %v10373_v42 = vpop.f32.mrb[138].mxu0 }
0x1dbc   :  { %v10374_v50 = vadd.f32 %v10373_v42, %v10304_v13  ;;  %v16039_v19 = vpop.f32.mrb[139].mxu0  ;;  %v10447_v21 = vadd.f32 %v20488_v53, %v10371_v33 }
0x1dbe   :  { %v10448_v54 = vadd.f32 %v20492_v24, %v10374_v50 }
0x1e56   :  { %v10504_v48 = vpop.f32.mrb[140].mxu0 }
0x1e57   :  { %v10527_v53 = vadd.f32 %v10504_v48, %v10443_v1  ;;  %v16058_v45 = vpop.f32.mrb[141].mxu0 }
0x1e58   :  { %v10507_v24 = vpop.f32.mrb[142].mxu0 }
0x1e59   :  { %v10541_v46 = vadd.f32 %v13724_v8, %v10527_v53  ;;  %v10528_v31 = vadd.f32 %v10507_v24, %v10444_v56  ;;  %v16059_v23 = vpop.f32.mrb[143].mxu0 }
0x1e5a   :  { %v17013_v23 = vld [vmem:[%s21033_s28 + $0xd8] sm:$0xff]  }
0x1e5b   :  { %v10553_v3 = vmul.f32 0.01, %v10541_v46  ;;  %v10542_v25 = vadd.f32 %v13724_v8, %v10528_v31  ;;  %vm10547_vm14 = vcmp.ge.f32.partialorder %v10541_v46, 0.0 }
0x1e5d   :  { %vm10548_vm15 = vcmp.ge.f32.partialorder %v10542_v25, 0.0  ;;  %v10554_v34 = vmul.f32 0.01, %v10542_v25  ;;  %v10559_v37 = vsel %vm10547_vm14, %v10541_v46, %v10553_v3 }
0x1e5e   :  { %v10512_v5 = vpop.f32.mrb[144].mxu0 }
0x1e5f   :  { %v10560_v16 = vsel %vm10548_vm15, %v10542_v25, %v10554_v34  ;;  %v10529_v49 = vadd.f32 %v10512_v5, %v10445_v47  ;;  %v16062_v41 = vpop.f32.mrb[145].mxu0  ;;  %v13734_v47 = vld [vmem:[%s20978_s8 + $0xc] ss:$0 sm:$0xff] }
0x1e60   :  { %v10565_v61 = vmax.f32 %v10559_v37, %v10560_v16  ;;  %v10515_v29 = vpop.f32.mrb[146].mxu0  ;;  %v17015_v41 = vld [vmem:[%s21033_s28 + $0xe0] sm:$0xff]  }
0x1e61   :  { %v10543_v9 = vadd.f32 %v13724_v8, %v10529_v49  ;;  %v10530_v4 = vadd.f32 %v10515_v29, %v10446_v59  ;;  %v16063_v27 = vpop.f32.mrb[147].mxu0  ;;  %v17014_v49 = vld [vmem:[%s20977_s7 + $0xe0] sm:$0xff]   ;;  %v17017_v29 = vld [vmem:[%s20977_s7 + $0xe8] sm:$0xff]  }
0x1e63   :  { %vm10549_vm0 = vcmp.ge.f32.partialorder %v10543_v9, 0.0  ;;  %v10555_v60 = vmul.f32 0.01, %v10543_v9  ;;  %v10544_v14 = vadd.f32 %v13724_v8, %v10530_v4 }
0x1e65   :  { %v10561_v57 = vsel %vm10549_vm0, %v10543_v9, %v10555_v60  ;;  %v10556_v0 = vmul.f32 0.01, %v10544_v14  ;;  %vm10550_vm3 = vcmp.ge.f32.partialorder %v10544_v14, 0.0  ;;  %v13753_v9 = vld [vmem:[%s20978_s8 + $0xd] ss:$0 sm:$0xff] }
0x1e66   :  { %v10520_v43 = vpop.f32.mrb[148].mxu0  ;;  %v20554_v63 = vpack.c.bf16 %v10561_v57, %v10565_v61  ;;  %v17016_v61 = vld [vmem:[%s21033_s28 + $0xe8] sm:$0xff]  }
0x1e67   :  { %v10531_v36 = vadd.f32 %v10520_v43, %v10447_v21  ;;  %v16066_v17 = vpop.f32.mrb[149].mxu0  ;;  %v10562_v13 = vsel %vm10550_vm3, %v10544_v14, %v10556_v0 }
0x1e68   :  { %v10523_v7 = vpop.f32.mrb[150].mxu0  ;;  %16072 = vmatprep.mubr.msk.bf16.mxu1 %vm1187_vm9, %v20554_v63 }
0x1e69   :  { %v10545_v15 = vadd.f32 %v13724_v8, %v10531_v36  ;;  %v10532_v22 = vadd.f32 %v10523_v7, %v10448_v54  ;;  %v16067_v11 = vpop.f32.mrb[151].mxu0 }
0x1e6b   :  { %vm10551_vm4 = vcmp.ge.f32.partialorder %v10545_v15, 0.0  ;;  %v10557_v12 = vmul.f32 0.01, %v10545_v15  ;;  %v10546_v10 = vadd.f32 %v13724_v8, %v10532_v22 }
0x1e6d   :  { %v10563_v26 = vsel %vm10551_vm4, %v10545_v15, %v10557_v12  ;;  %vm10552_vm2 = vcmp.ge.f32.partialorder %v10546_v10, 0.0  ;;  %v10558_v44 = vmul.f32 0.01, %v10546_v10 }
0x1e6e   :  { %v10566_v38 = vmax.f32 %v10562_v13, %v10563_v26 }
0x1e6f   :  { %v10564_v58 = vsel %vm10552_vm2, %v10546_v10, %v10558_v44 }
0x1e70   :  { %v20558_v6 = vpack.c.bf16 %v10564_v58, %v10566_v38 }
0x1e72   :  { %16073 = vmatmul.mubr.msk.bf16.vlgmr.msra.gmra.mrb[200].mxu1 %vm1187_vm9, %v20558_v6 }
0x1e73   :  { %16085 = vmatpush3.bf16.msra.mxu1 %v17011_v39  ;;  %v13775_v39 = vld [vmem:[%s20978_s8 + $0xe] ss:$0 sm:$0xff] }
0x1e74   :  { %16090 = vmatprep.subr.bf16.mxu1 %v17012_v2 }
0x1f45   :  { %v16074_v18 = vpop.f32.mrb[200].mxu1 }
0x1f46   :  { %v10630_v1 = vpop.f32.mrb[201].mxu1 }
0x1f47   :  { %v16075_v56 = vpop.f32.mrb[202].mxu1 }
0x1f48   :  { %v10646_v30 = vpack.c.bf16 %v16075_v56, %v16074_v18  ;;  %v10633_v20 = vpop.f32.mrb[203].mxu1 }
0x1f49   :  { %v10645_v55 = vpack.c.bf16 %v10633_v20, %v10630_v1  ;;  %v17019_v20 = vld [vmem:[%s20980_s9 + $0x40] sm:$0xff]  }
0x1f4b   :  { %16076 = vmatprep.subr.bf16.mxu0 %v10645_v55 }
0x1f4c   :  { %16077 = vmatpush3.bf16.msra.mxu0 %v10645_v55  ;;  %v17020_v55 = vld [vmem:[%s20980_s9 + $0x48] sm:$0xff]  }
0x1f4d   :  { %16078 = vmatprep.subr.bf16.mxu0 %v10646_v30 }
0x1f50   :  { %16079 = vmatpush3.bf16.msra.mxu0 %v10646_v30  ;;  %v17018_v30 = vld [vmem:[%s20979_s10 + $0x60] sm:$0xff]  }
0x1f53   :  { %16081 = vmatmul.mubr.msk.bf16.vlgmr.msra.gmra.mrb[152].mxu0 %vm1187_vm9, %v20569_v40 }
0x1f54   :  { %16102 = vmatprep.mubr.msk.bf16.mxu0 %vm1187_vm9, %v17009_v35 }
0x2026   :  { %v16082_v59 = vpop.f32.mrb[152].mxu0 }
0x2027   :  { %v10714_v32 = vadd.f32 %v16082_v59, %v13734_v47  ;;  %v10705_v33 = vpop.f32.mrb[153].mxu0 }
0x2028   :  { %v10706_v28 = vadd.f32 %v13734_v47, %v10705_v33  ;;  %v16083_v42 = vpop.f32.mrb[154].mxu0 }
0x2029   :  { %v10726_v50 = vmul.f32 0.01, %v10714_v32  ;;  %v10717_v19 = vadd.f32 %v16083_v42, %v13734_v47  ;;  %v10708_v21 = vpop.f32.mrb[155].mxu0  ;;  %vm10722_vm5 = vcmp.ge.f32.partialorder %v10714_v32, 0.0 }
0x202a   :  { %v10724_v54 = vmul.f32 0.01, %v10706_v28  ;;  %v10709_v51 = vadd.f32 %v13734_v47, %v10708_v21  ;;  %vm10720_vm10 = vcmp.ge.f32.partialorder %v10706_v28, 0.0 }
0x202b   :  { %vm10723_vm11 = vcmp.ge.f32.partialorder %v10717_v19, 0.0  ;;  %v10727_v52 = vmul.f32 0.01, %v10717_v19  ;;  %v10730_v8 = vsel %vm10722_vm5, %v10714_v32, %v10726_v50 }
0x202c   :  { %vm10721_vm12 = vcmp.ge.f32.partialorder %v10709_v51, 0.0  ;;  %v10725_v48 = vmul.f32 0.01, %v10709_v51  ;;  %v10728_v45 = vsel %vm10720_vm10, %v10706_v28, %v10724_v54 }
0x202d   :  { %v10731_v53 = vsel %vm10723_vm11, %v10717_v19, %v10727_v52 }
0x202e   :  { %v20583_v24 = vpack.c.bf16 %v10731_v53, %v10730_v8  ;;  %v10729_v46 = vsel %vm10721_vm12, %v10709_v51, %v10725_v48 }
0x202f   :  { %v20585_v31 = vpack.c.bf16 %v10729_v46, %v10728_v45  ;;  %v17024_v46 = vld [vmem:[%s21033_s28 + $0xf8] sm:$0xff]  }
0x2031   :  { %16086 = vmatprep.mubr.msk.bf16.mxu1 %vm2368_vm7, %v20585_v31 }
0x2032   :  { %16087 = vmatmul.mubr.msk.bf16.vlgmr.msra.gmra.mrb[204].mxu1 %vm2368_vm7, %v20583_v24 }
0x2033   :  { %16094 = vmatprep.mubr.msk.bf16.mxu1 %vm1187_vm9, %v20554_v63  ;;  %16091 = vmatpush3.bf16.msra.mxu1 %v17012_v2 }
0x2034   :  { %16092 = vmatprep.subr.bf16.mxu1 %v17013_v23 }
0x2037   :  { %16093 = vmatpush3.bf16.msra.mxu1 %v17013_v23 }
0x203e   :  { %16095 = vmatmul.mubr.msk.bf16.vlgmr.msra.gmra.mrb[204].mxu1 %vm1187_vm9, %v20558_v6 }
0x203f   :  { %16130 = vmatprep.mubr.msk.bf16.mxu1 %vm1187_vm9, %v17009_v35 }
0x2111   :  { %v16096_v3 = vpop.f32.mrb[204].mxu1 }
0x2112   :  { %v10849_v25 = vpop.f32.mrb[205].mxu1 }
0x2113   :  { %v16097_v34 = vpop.f32.mrb[206].mxu1 }
0x2114   :  { %v10865_v5 = vpack.c.bf16 %v16097_v34, %v16096_v3  ;;  %v10852_v37 = vpop.f32.mrb[207].mxu1 }
0x2115   :  { %v10864_v16 = vpack.c.bf16 %v10852_v37, %v10849_v25 }
0x2117   :  { %16098 = vmatprep.subr.bf16.mxu0 %v10864_v16 }
0x2118   :  { %16099 = vmatpush3.bf16.msra.mxu0 %v10864_v16 }
0x2119   :  { %16100 = vmatprep.subr.bf16.mxu0 %v10865_v5 }
0x211c   :  { %16101 = vmatpush3.bf16.msra.mxu0 %v10865_v5 }
0x211d   :  { %16106 = vmatprep.subr.bf16.mxu0 %v17014_v49 }
0x211f   :  { %16103 = vmatmul.mubr.msk.bf16.vlgmr.msra.gmra.mrb[156].mxu0 %vm1187_vm9, %v20569_v40 }
0x2120   :  { %16108 = vmatprep.mubr.msk.bf16.mxu0 %vm2368_vm7, %v20585_v31  ;;  %16107 = vmatpush3.bf16.msra.mxu0 %v17014_v49 }
0x2121   :  { %16112 = vmatprep.subr.bf16.mxu0 %v17015_v41 }
0x2127   :  { %16109 = vmatmul.mubr.msk.bf16.vlgmr.msra.gmra.mrb[160].mxu0 %vm2368_vm7, %v20583_v24 }
0x2128   :  { %16116 = vmatprep.mubr.msk.bf16.mxu0 %vm1187_vm9, %v20554_v63  ;;  %16113 = vmatpush3.bf16.msra.mxu0 %v17015_v41 }
0x2129   :  { %16114 = vmatprep.subr.bf16.mxu0 %v17016_v61 }
0x212c   :  { %16115 = vmatpush3.bf16.msra.mxu0 %v17016_v61 }
0x212d   :  { %16120 = vmatprep.subr.bf16.mxu0 %v17017_v29 }
0x2133   :  { %16117 = vmatmul.mubr.msk.bf16.vlgmr.msra.gmra.mrb[160].mxu0 %vm1187_vm9, %v20558_v6 }
0x2134   :  { %16121 = vmatpush3.bf16.msra.mxu0 %v17017_v29 }
0x2135   :  { %16160 = vmatprep.subr.bf16.mxu0 %v17182_v62 }
0x21f2   :  { %v16104_v4 = vpop.f32.mrb[156].mxu0 }
0x21f3   :  { %v10917_v27 = vadd.f32 %v16104_v4, %v13753_v9  ;;  %v10908_v60 = vpop.f32.mrb[157].mxu0 }
0x21f4   :  { %v10909_v57 = vadd.f32 %v13753_v9, %v10908_v60  ;;  %v16105_v14 = vpop.f32.mrb[158].mxu0 }
0x21f5   :  { %v10929_v43 = vmul.f32 0.01, %v10917_v27  ;;  %v10920_v36 = vadd.f32 %v16105_v14, %v13753_v9  ;;  %v10911_v17 = vpop.f32.mrb[159].mxu0  ;;  %vm10925_vm13 = vcmp.ge.f32.partialorder %v10917_v27, 0.0 }
0x21f6   :  { %v10927_v7 = vmul.f32 0.01, %v10909_v57  ;;  %v10912_v0 = vadd.f32 %v13753_v9, %v10911_v17  ;;  %vm10923_vm14 = vcmp.ge.f32.partialorder %v10909_v57, 0.0 }
0x21f7   :  { %vm10926_vm15 = vcmp.ge.f32.partialorder %v10920_v36, 0.0  ;;  %v10930_v15 = vmul.f32 0.01, %v10920_v36  ;;  %v10933_v11 = vsel %vm10925_vm13, %v10917_v27, %v10929_v43 }
0x21f8   :  { %vm10924_vm0 = vcmp.ge.f32.partialorder %v10912_v0, 0.0  ;;  %v10928_v22 = vmul.f32 0.01, %v10912_v0  ;;  %v10931_v10 = vsel %vm10923_vm14, %v10909_v57, %v10927_v7 }
0x21f9   :  { %v10934_v12 = vsel %vm10926_vm15, %v10920_v36, %v10930_v15 }
0x21fa   :  { %v11063_v13 = vpack.c.bf16 %v10934_v12, %v10933_v11  ;;  %v10932_v26 = vsel %vm10924_vm0, %v10912_v0, %v10928_v22  ;;  %v20684_v11 = vld [vmem:[%s20986_s21] sm:$0xff]  }
0x21fb   :  { %v11062_v44 = vpack.c.bf16 %v10932_v26, %v10931_v10  ;;  %v17026_v12 = vld [vmem:[%s20977_s7 + $0x100] sm:$0xff]   ;;  %v13811_v10 = vld [vmem:[%s20978_s8 + $0xf] ss:$0 sm:$0xff] }
0x21fd   :  { %16122 = vmatprep.mubr.msk.bf16.mxu0 %vm2368_vm7, %v11062_v44 }
0x21fe   :  { %16123 = vmatmul.mubr.msk.bf16.vlgmr.msra.gmra.mrb[160].mxu0 %vm2368_vm7, %v11063_v13 }
0x21ff   :  { %16164 = vmatprep.mubr.msk.bf16.mxu0 %vm17183_vm8, %v17182_v62 }
0x22d1   :  { %v16124_v38 = vpop.f32.mrb[160].mxu0 }
0x22d2   :  { %v11110_v58 = vpop.f32.mrb[161].mxu0 }
0x22d3   :  { %v16125_v35 = vpop.f32.mrb[162].mxu0 }
0x22d4   :  { %v11130_v18 = vpack.c.bf16 %v16125_v35, %v16124_v38  ;;  %v11113_v1 = vpop.f32.mrb[163].mxu0 }
0x22d5   :  { %v11129_v56 = vpack.c.bf16 %v11113_v1, %v11110_v58 }
0x22d7   :  { %16126 = vmatprep.subr.bf16.mxu1 %v11129_v56 }
0x22d8   :  { %16127 = vmatpush3.bf16.msra.mxu1 %v11129_v56 }
0x22d9   :  { %16128 = vmatprep.subr.bf16.mxu1 %v11130_v18 }
0x22dc   :  { %16129 = vmatpush3.bf16.msra.mxu1 %v11130_v18 }
0x22dd   :  { %16134 = vmatprep.subr.bf16.mxu1 %v17018_v30 }
0x22df   :  { %16131 = vmatmul.mubr.msk.bf16.vlgmr.msra.gmra.mrb[208].mxu1 %vm1187_vm9, %v20569_v40  ;;  %v17021_v40 = vld [vmem:[%s20979_s10 + $0x68] sm:$0xff]  }
0x22e0   :  { %16136 = vmatprep.mubr.msk.bf16.mxu1 %vm2368_vm7, %v20585_v31  ;;  %16135 = vmatpush3.bf16.msra.mxu1 %v17018_v30  ;;  %v13802_v31 = vld [vmem:[%s20981_s11 + $0x4] ss:$0 sm:$0xff] }
0x22e1   :  { %16140 = vmatprep.subr.bf16.mxu1 %v17019_v20 }
0x22e7   :  { %16137 = vmatmul.mubr.msk.bf16.vlgmr.msra.gmra.mrb[212].mxu1 %vm2368_vm7, %v20583_v24  ;;  %v17023_v24 = vld [vmem:[%s21033_s28 + $0xf0] sm:$0xff]  }
0x22e8   :  { %16144 = vmatprep.mubr.msk.bf16.mxu1 %vm1187_vm9, %v20554_v63  ;;  %16141 = vmatpush3.bf16.msra.mxu1 %v17019_v20  ;;  %v17022_v63 = vld [vmem:[%s20979_s10 + $0x70] sm:$0xff]   ;;  %v17027_v20 = vld [vmem:[%s21033_s28 + $0x100] sm:$0xff]  }
0x22e9   :  { %16142 = vmatprep.subr.bf16.mxu1 %v17020_v55  ;;  %16161 = vmatpush3.bf16.msra.mxu0 %v17023_v24  ;;  %v17033_v24 = vld [vmem:[%s20979_s10 + $0x80] sm:$0xff]  }
0x22ea   :  { %16162 = vmatprep.subr.bf16.mxu0 %v17182_v62 }
0x22ec   :  { %16143 = vmatpush3.bf16.msra.mxu1 %v17020_v55 }
0x22ed   :  { %16148 = vmatprep.subr.bf16.mxu1 %v17021_v40  ;;  %16163 = vmatpush3.bf16.msra.mxu0 %v17024_v46 }
0x22ee   :  { %16168 = vmatprep.subr.bf16.mxu0 %v17182_v62 }
0x22f3   :  { %16145 = vmatmul.mubr.msk.bf16.vlgmr.msra.gmra.mrb[212].mxu1 %vm1187_vm9, %v20558_v6 }
0x22f4   :  { %16150 = vmatprep.mubr.msk.bf16.mxu1 %vm2368_vm7, %v11062_v44  ;;  %16149 = vmatpush3.bf16.msra.mxu1 %v17021_v40  ;;  %v17028_v40 = vld [vmem:[%s21033_s28 + $0x108] sm:$0xff]  }
0x22f5   :  { %16154 = vmatprep.subr.bf16.mxu1 %v17022_v63 }
0x22ff   :  { %16151 = vmatmul.mubr.msk.bf16.vlgmr.msra.gmra.mrb[212].mxu1 %vm2368_vm7, %v11063_v13 }
0x2300   :  { %16155 = vmatpush3.bf16.msra.mxu1 %v17022_v63 }
0x2301   :  { %16188 = vmatprep.subr.bf16.mxu1 %v17182_v62 }
0x23b2   :  { %v16132_v2 = vpop.f32.mrb[208].mxu1 }
0x23b3   :  { %v11182_v47 = vadd.f32 %v16132_v2, %v13775_v39  ;;  %v11173_v6 = vpop.f32.mrb[209].mxu1 }
0x23b4   :  { %v11174_v59 = vadd.f32 %v13775_v39, %v11173_v6  ;;  %v16133_v32 = vpop.f32.mrb[210].mxu1 }
0x23b5   :  { %v11194_v33 = vmul.f32 0.01, %v11182_v47  ;;  %v11185_v28 = vadd.f32 %v16133_v32, %v13775_v39  ;;  %v11176_v42 = vpop.f32.mrb[211].mxu1  ;;  %vm11190_vm3 = vcmp.ge.f32.partialorder %v11182_v47, 0.0  ;;  %v17030_v32 = vld [vmem:[%s21033_s28 + $0x110] sm:$0xff]  }
0x23b6   :  { %v11192_v50 = vmul.f32 0.01, %v11174_v59  ;;  %v11177_v19 = vadd.f32 %v13775_v39, %v11176_v42  ;;  %vm11188_vm4 = vcmp.ge.f32.partialorder %v11174_v59, 0.0  ;;  %v13826_v42 = vld [vmem:[%s20978_s8 + $0x10] ss:$0 sm:$0xff] }
0x23b7   :  { %vm11191_vm2 = vcmp.ge.f32.partialorder %v11185_v28, 0.0  ;;  %v11195_v21 = vmul.f32 0.01, %v11185_v28  ;;  %v11198_v51 = vsel %vm11190_vm3, %v11182_v47, %v11194_v33  ;;  %v17031_v33 = vld [vmem:[%s21033_s28 + $0x118] sm:$0xff]  }
0x23b8   :  { %vm11189_vm5 = vcmp.ge.f32.partialorder %v11177_v19, 0.0  ;;  %v11193_v54 = vmul.f32 0.01, %v11177_v19  ;;  %v11196_v48 = vsel %vm11188_vm4, %v11174_v59, %v11192_v50  ;;  %v17029_v59 = vld [vmem:[%s20977_s7 + $0x110] sm:$0xff]  }
0x23b9   :  { %v11199_v52 = vsel %vm11191_vm2, %v11185_v28, %v11195_v21  ;;  %v17032_v28 = vld [vmem:[%s20977_s7 + $0x118] sm:$0xff]   ;;  %s17185_s7 = smov 16  }
0x23ba   :  { %v11390_v8 = vpack.c.bf16 %v11199_v52, %v11198_v51  ;;  %v11197_v53 = vsel %vm11189_vm5, %v11177_v19, %v11193_v54 }
0x23bb   :  { %v11389_v45 = vpack.c.bf16 %v11197_v53, %v11196_v48 }
0x23bd   :  { %16156 = vmatprep.mubr.msk.bf16.mxu1 %vm2368_vm7, %v11389_v45 }
0x23be   :  { %16157 = vmatmul.mubr.msk.bf16.vlgmr.msra.gmra.mrb[212].mxu1 %vm2368_vm7, %v11390_v8 }
0x23bf   :  { %16190 = vmatprep.mubr.msk.bf16.mxu1 %vm17183_vm8, %v17182_v62 }
0x2491   :  { %v16158_v23 = vpop.f32.mrb[212].mxu1 }
0x2492   :  { %v11466_v3 = vadd.f32 %v16158_v23, %v13802_v31  ;;  %v11437_v25 = vpop.f32.mrb[213].mxu1 }
0x2493   :  { %v11464_v34 = vadd.f32 %v13802_v31, %v11437_v25  ;;  %v16159_v5 = vpop.f32.mrb[214].mxu1 }
0x2494   :  { %v11474_v37 = vmul.f32 0.01, %v11466_v3  ;;  %v11467_v16 = vadd.f32 %v16159_v5, %v13802_v31  ;;  %v11440_v49 = vpop.f32.mrb[215].mxu1  ;;  %vm11470_vm10 = vcmp.ge.f32.partialorder %v11466_v3, 0.0  ;;  %v17034_v5 = vld [vmem:[%s20979_s10 + $0x78] sm:$0xff]  }
0x2495   :  { %v11472_v41 = vmul.f32 0.01, %v11464_v34  ;;  %v11465_v61 = vadd.f32 %v13802_v31, %v11440_v49  ;;  %vm11468_vm11 = vcmp.ge.f32.partialorder %v11464_v34, 0.0 }
0x2496   :  { %vm11471_vm12 = vcmp.ge.f32.partialorder %v11467_v16, 0.0  ;;  %v11475_v29 = vmul.f32 0.01, %v11467_v16  ;;  %v11478_v4 = vsel %vm11470_vm10, %v11466_v3, %v11474_v37 }
0x2497   :  { %vm11469_vm13 = vcmp.ge.f32.partialorder %v11465_v61, 0.0  ;;  %v11473_v9 = vmul.f32 0.01, %v11465_v61  ;;  %v11476_v60 = vsel %vm11468_vm11, %v11464_v34, %v11472_v41 }
0x2498   :  { %v11479_v27 = vsel %vm11471_vm12, %v11467_v16, %v11475_v29  ;;  %v17036_v29 = vld [vmem:[%s20980_s9 + $0x58] sm:$0xff]  }
0x2499   :  { %v11481_v57 = vmax.f32 %v11478_v4, %v11479_v27  ;;  %v11477_v14 = vsel %vm11469_vm13, %v11465_v61, %v11473_v9  ;;  %v17035_v61 = vld [vmem:[%s20980_s9 + $0x50] sm:$0xff]   ;;  %v17037_v9 = vld [vmem:[%s20979_s10 + $0x88] sm:$0xff]  }
0x249a   :  { %v11480_v43 = vmax.f32 %v11476_v60, %v11477_v14  ;;  %v13844_v4 = vld [vmem:[%s20978_s8 + $0x11] ss:$0 sm:$0xff] }
0x249c   :  { %v20675_v36 = vpack.c.bf16 %v11481_v57, %v11480_v43 }
0x249e   :  { %16165 = vmatmul.mubr.msk.bf16.vlgmr.msra.gmra.mrb[164].mxu0 %vm1187_vm9, %v20675_v36 }
0x249f   :  { %16170 = vmatprep.mubr.msk.bf16.mxu0 %vm17183_vm8, %v17182_v62 }
0x2571   :  { %v11539_v17 = vpop.f32.mrb[164].mxu0 }
0x2572   :  { %v16166_v7 = vpop.f32.mrb[165].mxu0 }
0x2573   :  { %v11542_v0 = vpop.f32.mrb[166].mxu0 }
0x2574   :  { %v11546_v15 = vpack.c.bf16 %v11542_v0, %v11539_v17  ;;  %v16167_v22 = vpop.f32.mrb[167].mxu0 }
0x2576   :  { %16169 = vmatpush3.bf16.msra.mxu0 %v11546_v15 }
0x2577   :  { %16174 = vmatprep.subr.bf16.mxu0 %v17182_v62 }
0x2579   :  { %16171 = vmatmul.mubr.msk.bf16.vlgmr.msra.gmra.mrb[168].mxu0 %vm2368_vm7, %v20684_v11 }
0x257a   :  { %16176 = vmatprep.mubr.msk.bf16.mxu0 %vm17183_vm8, %v17182_v62  ;;  %16175 = vmatpush3.bf16.msra.mxu0 %v17026_v12 }
0x257b   :  { %16180 = vmatprep.subr.bf16.mxu0 %v17182_v62 }
0x264c   :  { %v11597_v13 = vpop.f32.mrb[168].mxu0 }
0x264d   :  { %v11598_v26 = vadd.f32 %v13811_v10, %v11597_v13  ;;  %v16172_v44 = vpop.f32.mrb[169].mxu0 }
0x264e   :  { %v11600_v38 = vpop.f32.mrb[170].mxu0 }
0x264f   :  { %v11606_v58 = vmul.f32 0.01, %v11598_v26  ;;  %v11601_v35 = vadd.f32 %v13811_v10, %v11600_v38  ;;  %v16173_v18 = vpop.f32.mrb[171].mxu0  ;;  %vm11604_vm14 = vcmp.ge.f32.partialorder %v11598_v26, 0.0 }
0x2651   :  { %vm11605_vm15 = vcmp.ge.f32.partialorder %v11601_v35, 0.0  ;;  %v11607_v1 = vmul.f32 0.01, %v11601_v35  ;;  %v11608_v56 = vsel %vm11604_vm14, %v11598_v26, %v11606_v58 }
0x2653   :  { %v11609_v30 = vsel %vm11605_vm15, %v11601_v35, %v11607_v1 }
0x2654   :  { %v20701_v55 = vpack.c.bf16 %v11609_v30, %v11608_v56  ;;  %v17038_v30 = vld [vmem:[%s20987_s12] sm:$0xff]  }
0x2656   :  { %16177 = vmatmul.mubr.msk.bf16.vlgmr.msra.gmra.mrb[172].mxu0 %vm2368_vm7, %v20701_v55 }
0x2657   :  { %16181 = vmatpush3.bf16.msra.mxu0 %v17027_v20  ;;  %16184 = vmatprep.mubr.msk.bf16.mxu0 %vm17183_vm8, %v17182_v62  ;;  %v17039_v20 = vld [vmem:[%s20987_s12 + $0x8] sm:$0xff]  }
0x2658   :  { %16182 = vmatprep.subr.bf16.mxu0 %v17182_v62 }
0x265b   :  { %16183 = vmatpush3.bf16.msra.mxu0 %v17028_v40  ;;  %v17043_v40 = vld [vmem:[%s20988_s14 + $0x8] sm:$0xff]  }
0x265c   :  { %16214 = vmatprep.subr.bf16.mxu0 %v17182_v62 }
0x2662   :  { %16185 = vmatmul.mubr.msk.bf16.vlgmr.msra.gmra.mrb[172].mxu0 %vm1187_vm9, %v20675_v36 }
0x2663   :  { %16216 = vmatprep.mubr.msk.bf16.mxu0 %vm17183_vm8, %v17182_v62 }
0x2735   :  { %v11715_v63 = vpop.f32.mrb[172].mxu0 }
0x2736   :  { %v16186_v39 = vpop.f32.mrb[173].mxu0 }
0x2737   :  { %v11718_v2 = vpop.f32.mrb[174].mxu0  ;;  %v13866_v39 = vld [vmem:[%s20981_s11 + $0x5] ss:$0 sm:$0xff] }
0x2738   :  { %v11722_v47 = vpack.c.bf16 %v11718_v2, %v11715_v63  ;;  %v16187_v6 = vpop.f32.mrb[175].mxu0 }
0x273a   :  { %16189 = vmatpush3.bf16.msra.mxu1 %v11722_v47 }
0x273b   :  { %16194 = vmatprep.subr.bf16.mxu1 %v17182_v62 }
0x273d   :  { %16191 = vmatmul.mubr.msk.bf16.vlgmr.msra.gmra.mrb[216].mxu1 %vm2368_vm7, %v20684_v11 }
0x273e   :  { %16195 = vmatpush3.bf16.msra.mxu1 %v17029_v59  ;;  %16196 = vmatprep.mubr.msk.bf16.mxu1 %vm17183_vm8, %v17182_v62 }
0x273f   :  { %16200 = vmatprep.subr.bf16.mxu1 %v17182_v62 }
0x2745   :  { %16197 = vmatmul.mubr.msk.bf16.vlgmr.msra.gmra.mrb[220].mxu1 %vm2368_vm7, %v20701_v55 }
0x2746   :  { %16201 = vmatpush3.bf16.msra.mxu1 %v17030_v32  ;;  %16204 = vmatprep.mubr.msk.bf16.mxu1 %vm17183_vm8, %v17182_v62 }
0x2747   :  { %16202 = vmatprep.subr.bf16.mxu1 %v17182_v62 }
0x274a   :  { %16203 = vmatpush3.bf16.msra.mxu1 %v17031_v33 }
0x274b   :  { %16208 = vmatprep.subr.bf16.mxu1 %v17182_v62 }
0x2751   :  { %16205 = vmatmul.mubr.msk.bf16.vlgmr.msra.gmra.mrb[220].mxu1 %vm1187_vm9, %v20675_v36 }
0x2752   :  { %16210 = vmatprep.mubr.msk.bf16.mxu1 %vm17183_vm8, %v17182_v62  ;;  %16209 = vmatpush3.bf16.msra.mxu1 %v17032_v28 }
0x2753   :  { %16234 = vmatprep.subr.bf16.mxu1 %v17182_v62 }
0x2810   :  { %v11765_v50 = vpop.f32.mrb[216].mxu1 }
0x2811   :  { %v11766_v19 = vadd.f32 %v13826_v42, %v11765_v50  ;;  %v16192_v21 = vpop.f32.mrb[217].mxu1 }
0x2812   :  { %v11768_v54 = vpop.f32.mrb[218].mxu1 }
0x2813   :  { %v11774_v51 = vmul.f32 0.01, %v11766_v19  ;;  %v11769_v52 = vadd.f32 %v13826_v42, %v11768_v54  ;;  %v16193_v48 = vpop.f32.mrb[219].mxu1  ;;  %vm11772_vm0 = vcmp.ge.f32.partialorder %v11766_v19, 0.0  ;;  %v17040_v54 = vld [vmem:[%s20987_s12 + $0x10] sm:$0xff]  }
0x2814   :  { %v17044_v48 = vld [vmem:[%s20988_s14 + $0x10] sm:$0xff]  }
0x2815   :  { %vm11773_vm3 = vcmp.ge.f32.partialorder %v11769_v52, 0.0  ;;  %v11775_v8 = vmul.f32 0.01, %v11769_v52  ;;  %v11776_v53 = vsel %vm11772_vm0, %v11766_v19, %v11774_v51 }
0x2817   :  { %v11777_v45 = vsel %vm11773_vm3, %v11769_v52, %v11775_v8  ;;  %v17041_v52 = vld [vmem:[%s20987_s12 + $0x18] sm:$0xff]   ;;  %v17045_v8 = vld [vmem:[%s20988_s14 + $0x20] sm:$0xff]  }
0x2818   :  { %v11889_v46 = vpack.c.bf16 %v11777_v45, %v11776_v53  ;;  %v17046_v53 = vld [vmem:[%s20988_s14 + $0x18] sm:$0xff]   ;;  %v17047_v45 = vld [vmem:[%s20988_s14 + $0x28] sm:$0xff]  }
0x281a   :  { %16211 = vmatmul.mubr.msk.bf16.vlgmr.msra.gmra.mrb[220].mxu1 %vm2368_vm7, %v11889_v46 }
0x281b   :  { %16235 = vmatpush3.bf16.msra.mxu1 %v17033_v24  ;;  %16236 = vmatprep.mubr.msk.bf16.mxu1 %vm17183_vm8, %v17182_v62  ;;  %v17048_v24 = vld [vmem:[%s20988_s14 + $0x30] sm:$0xff]  }
0x281c   :  { %16246 = vmatprep.subr.bf16.mxu1 %v17182_v62 }
0x2822   :  { %16237 = vmatmul.mubr.msk.bf16.vlgmr.msra.gmra.mrb[224].mxu1 %vm2368_vm7, %v11889_v46  ;;  %v17050_v46 = vld [vmem:[%s20988_s14 + $0x38] sm:$0xff]  }
0x2823   :  { %16250 = vmatprep.mubr.msk.bf16.mxu1 %vm17183_vm8, %v17182_v62  ;;  %16247 = vmatpush3.bf16.msra.mxu1 %v17038_v30 }
0x2824   :  { %16248 = vmatprep.subr.bf16.mxu1 %v17182_v62 }
0x2827   :  { %16249 = vmatpush3.bf16.msra.mxu1 %v17039_v20 }
0x2828   :  { %16266 = vmatprep.subr.bf16.mxu1 %v17182_v62 }
0x28ed   :  { %v11933_v31 = vpop.f32.mrb[220].mxu1 }
0x28ee   :  { %v16212_v23 = vpop.f32.mrb[221].mxu1 }
0x28ef   :  { %v11936_v3 = vpop.f32.mrb[222].mxu1 }
0x28f0   :  { %v11942_v25 = vpack.c.bf16 %v11936_v3, %v11933_v31  ;;  %v16213_v34 = vpop.f32.mrb[223].mxu1  ;;  %v13867_v31 = vld [vmem:[%s20989_s13] ss:$0 sm:$0xff] }
0x28f2   :  { %16215 = vmatpush3.bf16.msra.mxu0 %v11942_v25 }
0x28f3   :  { %16220 = vmatprep.subr.bf16.mxu0 %v17182_v62 }
0x28f5   :  { %16217 = vmatmul.mubr.msk.bf16.vlgmr.msra.gmra.mrb[176].mxu0 %vm2368_vm7, %v20684_v11  ;;  %v12149_v37 = vpop.f32.mrb[224].mxu1 }
0x28f6   :  { %16221 = vmatpush3.bf16.msra.mxu0 %v17034_v5  ;;  %16222 = vmatprep.mubr.msk.bf16.mxu0 %vm17183_vm8, %v17182_v62  ;;  %v16238_v16 = vpop.f32.mrb[225].mxu1 }
0x28f7   :  { %16226 = vmatprep.subr.bf16.mxu0 %v17182_v62  ;;  %v12152_v49 = vpop.f32.mrb[226].mxu1 }
0x28f8   :  { %v16239_v41 = vpop.f32.mrb[227].mxu1 }
0x28f9   :  { %v13882_v41 = vld [vmem:[%s20989_s13 + $0x1] ss:$0 sm:$0xff] }
0x28fd   :  { %16223 = vmatmul.mubr.msk.bf16.vlgmr.msra.gmra.mrb[180].mxu0 %vm2368_vm7, %v20701_v55  ;;  %v17042_v55 = vld [vmem:[%s20988_s14] sm:$0xff]  }
0x28fe   :  { %16227 = vmatpush3.bf16.msra.mxu0 %v17035_v61  ;;  %16230 = vmatprep.mubr.msk.bf16.mxu0 %vm17183_vm8, %v17182_v62 }
0x28ff   :  { %16228 = vmatprep.subr.bf16.mxu0 %v17182_v62 }
0x2902   :  { %16229 = vmatpush3.bf16.msra.mxu0 %v17036_v29 }
0x2903   :  { %16240 = vmatprep.subr.bf16.mxu0 %v17182_v62 }
0x2905   :  { %16231 = vmatmul.mubr.msk.bf16.vlgmr.msra.gmra.mrb[184].mxu0 %vm1187_vm9, %v20675_v36 }
0x2906   :  { %16242 = vmatprep.mubr.msk.bf16.mxu0 %vm17183_vm8, %v17182_v62  ;;  %16241 = vmatpush3.bf16.msra.mxu0 %v17037_v9  ;;  %v17049_v9 = vld [vmem:[%s20987_s12 + $0x20] sm:$0xff]  }
0x2907   :  { %16254 = vmatprep.subr.bf16.mxu0 %v17182_v62 }
0x29c8   :  { %v11985_v27 = vpop.f32.mrb[176].mxu0 }
0x29c9   :  { %v11986_v60 = vadd.f32 %v13844_v4, %v11985_v27  ;;  %v16218_v57 = vpop.f32.mrb[177].mxu0 }
0x29ca   :  { %v11988_v14 = vpop.f32.mrb[178].mxu0 }
0x29cb   :  { %v11994_v43 = vmul.f32 0.01, %v11986_v60  ;;  %v11989_v36 = vadd.f32 %v13844_v4, %v11988_v14  ;;  %v16219_v17 = vpop.f32.mrb[179].mxu0  ;;  %vm11992_vm4 = vcmp.ge.f32.partialorder %v11986_v60, 0.0 }
0x29cd   :  { %vm11993_vm2 = vcmp.ge.f32.partialorder %v11989_v36, 0.0  ;;  %v11995_v7 = vmul.f32 0.01, %v11989_v36  ;;  %v11996_v0 = vsel %vm11992_vm4, %v11986_v60, %v11994_v43 }
0x29cf   :  { %v11997_v15 = vsel %vm11993_vm2, %v11989_v36, %v11995_v7  ;;  %v17051_v7 = vld [vmem:[%s20987_s12 + $0x28] sm:$0xff]  }
0x29d0   :  { %v12161_v22 = vpack.c.bf16 %v11997_v15, %v11996_v0  ;;  %v12046_v11 = vpop.f32.mrb[180].mxu0 }
0x29d1   :  { %v16224_v12 = vpop.f32.mrb[181].mxu0 }
0x29d2   :  { %v12049_v10 = vpop.f32.mrb[182].mxu0  ;;  %16243 = vmatmul.mubr.msk.bf16.vlgmr.msra.gmra.mrb[188].mxu0 %vm2368_vm7, %v12161_v22 }
0x29d3   :  { %v16225_v13 = vpop.f32.mrb[183].mxu0  ;;  %16262 = vmatprep.mubr.msk.bf16.mxu0 %vm17183_vm8, %v17182_v62  ;;  %16255 = vmatpush3.bf16.msra.mxu0 %v17042_v55 }
0x29d4   :  { %16256 = vmatprep.subr.bf16.mxu0 %v17182_v62  ;;  %v17054_v13 = vld [vmem:[%s20988_s14 + $0x40] sm:$0xff]  }
0x29d7   :  { %16257 = vmatpush3.bf16.msra.mxu0 %v17043_v40  ;;  %v13895_v40 = vld [vmem:[%s20990_s15 + $0x1] ss:$0 sm:$0xff] }
0x29d8   :  { %v12099_v26 = vpop.f32.mrb[184].mxu0  ;;  %16258 = vmatprep.subr.bf16.mxu0 %v17182_v62 }
0x29d9   :  { %v12100_v44 = vadd.f32 %v12099_v26, %v12046_v11  ;;  %v16232_v38 = vpop.f32.mrb[185].mxu0  ;;  %v17052_v11 = vld [vmem:[%s20987_s12 + $0x30] sm:$0xff]   ;;  %v17055_v26 = vld [vmem:[%s20988_s14 + $0x48] sm:$0xff]  }
0x29da   :  { %v12102_v58 = vpop.f32.mrb[186].mxu0  ;;  %v17057_v38 = vld [vmem:[%s20988_s14 + $0x60] sm:$0xff]  }
0x29db   :  { %v12103_v35 = vadd.f32 %v12102_v58, %v12049_v10  ;;  %v16233_v18 = vpop.f32.mrb[187].mxu0  ;;  %v12156_v1 = vadd.f32 %v12149_v37, %v12100_v44  ;;  %16259 = vmatpush3.bf16.msra.mxu0 %v17044_v48  ;;  %v17053_v10 = vld [vmem:[%s20987_s12 + $0x38] sm:$0xff]   ;;  %v17056_v44 = vld [vmem:[%s20988_s14 + $0x50] sm:$0xff]   ;;  %v13930_v48 = vld [vmem:[%s20989_s13 + $0x3] ss:$0 sm:$0xff] }
0x29dc   :  { %16260 = vmatprep.subr.bf16.mxu0 %v17182_v62  ;;  %v17058_v58 = vld [vmem:[%s20988_s14 + $0x58] sm:$0xff]   ;;  %v17060_v18 = vld [vmem:[%s20988_s14 + $0x70] sm:$0xff]  }
0x29dd   :  { %v12157_v56 = vadd.f32 %v12152_v49, %v12103_v35  ;;  %v17059_v35 = vld [vmem:[%s20988_s14 + $0x68] sm:$0xff]  }
0x29df   :  { %16261 = vmatpush3.bf16.msra.mxu0 %v17046_v53 }
0x29e0   :  { %16286 = vmatprep.subr.bf16.mxu0 %v17182_v62 }
0x2aa5   :  { %v12205_v63 = vpop.f32.mrb[188].mxu0 }
0x2aa6   :  { %v12212_v2 = vadd.f32 %v12205_v63, %v12156_v1  ;;  %v16244_v47 = vpop.f32.mrb[189].mxu0  ;;  %v17061_v1 = vld [vmem:[%s20988_s14 + $0x78] sm:$0xff]   ;;  %v13906_v63 = vld [vmem:[%s20989_s13 + $0x2] ss:$0 sm:$0xff] }
0x2aa7   :  { %v12208_v6 = vpop.f32.mrb[190].mxu0 }
0x2aa8   :  { %v12222_v59 = vadd.f32 %v13866_v39, %v12212_v2  ;;  %v12213_v32 = vadd.f32 %v12208_v6, %v12157_v56  ;;  %v16245_v33 = vpop.f32.mrb[191].mxu0 }
0x2aaa   :  { %v12226_v28 = vmul.f32 0.01, %v12222_v59  ;;  %v12223_v42 = vadd.f32 %v13866_v39, %v12213_v32  ;;  %vm12224_vm5 = vcmp.ge.f32.partialorder %v12222_v59, 0.0 }
0x2aac   :  { %vm12225_vm10 = vcmp.ge.f32.partialorder %v12223_v42, 0.0  ;;  %v12227_v50 = vmul.f32 0.01, %v12223_v42  ;;  %v12228_v19 = vsel %vm12224_vm5, %v12222_v59, %v12226_v28  ;;  %v20933_v28 = vld [vmem:[%s20991_s1] sm:$0xff] }
0x2aae   :  { %v12229_v21 = vsel %vm12225_vm10, %v12223_v42, %v12227_v50 }
0x2aaf   :  { %v20815_v51 = vpack.c.bf16 %v12229_v21, %v12228_v19 }
0x2ab1   :  { %16251 = vmatmul.mubr.msk.bf16.vlgmr.msra.gmra.mrb[228].mxu1 %vm1187_vm9, %v20815_v51 }
0x2ab2   :  { %16267 = vmatpush3.bf16.msra.mxu1 %v17040_v54  ;;  %16270 = vmatprep.mubr.msk.bf16.mxu1 %vm17183_vm8, %v17182_v62 }
0x2ab3   :  { %16268 = vmatprep.subr.bf16.mxu1 %v17182_v62 }
0x2ab6   :  { %16269 = vmatpush3.bf16.msra.mxu1 %v17041_v52 }
0x2ab7   :  { %16274 = vmatprep.subr.bf16.mxu1 %v17182_v62 }
0x2ab9   :  { %16271 = vmatmul.mubr.msk.bf16.vlgmr.msra.gmra.mrb[232].mxu1 %vm1187_vm9, %v20815_v51 }
0x2aba   :  { %16282 = vmatprep.mubr.msk.bf16.mxu1 %vm17183_vm8, %v17182_v62  ;;  %16275 = vmatpush3.bf16.msra.mxu1 %v17045_v8  ;;  %v12231_v8 = vld [vmem:[%s20991_s1 + $0x8] sm:$0xff] }
0x2abb   :  { %16276 = vmatprep.subr.bf16.mxu1 %v17182_v62 }
0x2abe   :  { %16277 = vmatpush3.bf16.msra.mxu1 %v17047_v45 }
0x2abf   :  { %16278 = vmatprep.subr.bf16.mxu1 %v17182_v62 }
0x2ac2   :  { %16279 = vmatpush3.bf16.msra.mxu1 %v17048_v24 }
0x2ac3   :  { %16280 = vmatprep.subr.bf16.mxu1 %v17182_v62 }
0x2ac6   :  { %16281 = vmatpush3.bf16.msra.mxu1 %v17050_v46 }
0x2ac7   :  { %16306 = vmatprep.subr.bf16.mxu1 %v17182_v62 }
0x2b84   :  { %v12293_v23 = vpop.f32.mrb[228].mxu1 }
0x2b85   :  { %v12294_v3 = vadd.f32 %v13867_v31, %v12293_v23  ;;  %v16252_v25 = vpop.f32.mrb[229].mxu1 }
0x2b86   :  { %v12296_v34 = vpop.f32.mrb[230].mxu1 }
0x2b87   :  { %v12302_v5 = vmul.f32 0.01, %v12294_v3  ;;  %v12297_v37 = vadd.f32 %v13867_v31, %v12296_v34  ;;  %v16253_v16 = vpop.f32.mrb[231].mxu1  ;;  %vm12300_vm11 = vcmp.ge.f32.partialorder %v12294_v3, 0.0 }
0x2b89   :  { %vm12301_vm12 = vcmp.ge.f32.partialorder %v12297_v37, 0.0  ;;  %v12303_v49 = vmul.f32 0.01, %v12297_v37  ;;  %v12304_v61 = vsel %vm12300_vm11, %v12294_v3, %v12302_v5 }
0x2b8b   :  { %v12305_v29 = vsel %vm12301_vm12, %v12297_v37, %v12303_v49 }
0x2b8c   :  { %v12314_v4 = vpack.c.bf16 %v12305_v29, %v12304_v61  ;;  %v12451_v27 = vpop.f32.mrb[232].mxu1  ;;  %v13919_v29 = vld [vmem:[%s20990_s15 + $0x2] ss:$0 sm:$0xff] }
0x2b8d   :  { %v12452_v60 = vadd.f32 %v13882_v41, %v12451_v27  ;;  %v16272_v57 = vpop.f32.mrb[233].mxu1 }
0x2b8e   :  { %16263 = vmatmul.mubr.msk.bf16.vlgmr.msra.gmra.mrb[192].mxu0 %vm577_vm6, %v12314_v4  ;;  %v12454_v14 = vpop.f32.mrb[234].mxu1 }
0x2b8f   :  { %v12460_v43 = vmul.f32 0.01, %v12452_v60  ;;  %v12455_v36 = vadd.f32 %v13882_v41, %v12454_v14  ;;  %v16273_v17 = vpop.f32.mrb[235].mxu1  ;;  %16287 = vmatpush3.bf16.msra.mxu0 %v17049_v9  ;;  %16290 = vmatprep.mubr.msk.bf16.mxu0 %vm17183_vm8, %v17182_v62  ;;  %vm12458_vm13 = vcmp.ge.f32.partialorder %v12452_v60, 0.0 }
0x2b90   :  { %16288 = vmatprep.subr.bf16.mxu0 %v17182_v62 }
0x2b91   :  { %vm12459_vm14 = vcmp.ge.f32.partialorder %v12455_v36, 0.0  ;;  %v12461_v0 = vmul.f32 0.01, %v12455_v36  ;;  %v12462_v15 = vsel %vm12458_vm13, %v12452_v60, %v12460_v43 }
0x2b93   :  { %v12463_v22 = vsel %vm12459_vm14, %v12455_v36, %v12461_v0  ;;  %16289 = vmatpush3.bf16.msra.mxu0 %v17051_v7  ;;  %v13943_v36 = vld [vmem:[%s20990_s15 + $0x3] ss:$0 sm:$0xff] }
0x2b94   :  { %v12473_v12 = vpack.c.bf16 %v12463_v22, %v12462_v15  ;;  %16294 = vmatprep.subr.bf16.mxu0 %v17182_v62 }
0x2b96   :  { %16283 = vmatmul.mubr.msk.bf16.vlgmr.msra.gmra.mrb[236].mxu1 %vm577_vm6, %v12473_v12  ;;  %16291 = vmatmul.mubr.msk.bf16.vlgmr.msra.gmra.mrb[196].mxu0 %vm1187_vm9, %v20815_v51 }
0x2b97   :  { %16307 = vmatpush3.bf16.msra.mxu1 %v17052_v11  ;;  %16310 = vmatprep.mubr.msk.bf16.mxu1 %vm17183_vm8, %v17182_v62 }
0x2b98   :  { %16308 = vmatprep.subr.bf16.mxu1 %v17182_v62  ;;  %16302 = vmatprep.mubr.msk.bf16.mxu0 %vm17183_vm8, %v17182_v62 }
0x2b99   :  { %16295 = vmatpush3.bf16.msra.mxu0 %v17054_v13 }
0x2b9a   :  { %16296 = vmatprep.subr.bf16.mxu0 %v17182_v62 }
0x2b9b   :  { %16309 = vmatpush3.bf16.msra.mxu1 %v17053_v10 }
0x2b9c   :  { %16314 = vmatprep.subr.bf16.mxu1 %v17182_v62 }
0x2b9d   :  { %16297 = vmatpush3.bf16.msra.mxu0 %v17055_v26  ;;  %v13871_v26 = vld [vmem:[%s20990_s15] ss:$0 sm:$0xff] }
0x2b9e   :  { %16311 = vmatmul.mubr.msk.bf16.vlgmr.msra.gmra.mrb[240].mxu1 %vm1187_vm9, %v20815_v51  ;;  %16298 = vmatprep.subr.bf16.mxu0 %v17182_v62 }
0x2b9f   :  { %16322 = vmatprep.mubr.msk.bf16.mxu1 %vm17183_vm8, %v17182_v62  ;;  %16315 = vmatpush3.bf16.msra.mxu1 %v17057_v38 }
0x2ba0   :  { %16316 = vmatprep.subr.bf16.mxu1 %v17182_v62 }
0x2ba1   :  { %16299 = vmatpush3.bf16.msra.mxu0 %v17056_v44 }
0x2ba2   :  { %16300 = vmatprep.subr.bf16.mxu0 %v17182_v62 }
0x2ba3   :  { %16317 = vmatpush3.bf16.msra.mxu1 %v17059_v35 }
0x2ba4   :  { %16318 = vmatprep.subr.bf16.mxu1 %v17182_v62 }
0x2ba5   :  { %16301 = vmatpush3.bf16.msra.mxu0 %v17058_v58 }
0x2ba7   :  { %16319 = vmatpush3.bf16.msra.mxu1 %v17060_v18 }
0x2ba8   :  { %16320 = vmatprep.subr.bf16.mxu1 %v17182_v62 }
0x2bab   :  { %16321 = vmatpush3.bf16.msra.mxu1 %v17061_v1 }
0x2c61   :  { %v20920_v56 = vpop.f32.mrb[192].mxu0 }
0x2c62   :  { %v16264_v30 = vpop.f32.mrb[193].mxu0  ;;  %v12384_v58 = vadd.f32 %v13871_v26, %v20920_v56 }
0x2c63   :  { %v20922_v20 = vpop.f32.mrb[194].mxu0 }
0x2c64   :  { %v16265_v55 = vpop.f32.mrb[195].mxu0  ;;  %v12387_v35 = vadd.f32 %v13871_v26, %v20922_v20  ;;  %v12390_v1 = vadd.f32 %v12384_v58, %v20933_v28 }
0x2c66   :  { %v12391_v55 = vadd.f32 %v12387_v35, %v12231_v8 }
0x2c69   :  { %v12543_v62 = vpop.f32.mrb[236].mxu1  ;;  %v12611_v39 = vpop.f32.mrb[196].mxu0 }
0x2c6a   :  { %v12544_v2 = vadd.f32 %v13895_v40, %v12543_v62  ;;  %v12612_v47 = vadd.f32 %v13906_v63, %v12611_v39  ;;  %v16284_v6 = vpop.f32.mrb[237].mxu1  ;;  %v16292_v59 = vpop.f32.mrb[197].mxu0 }
0x2c6b   :  { %v12546_v32 = vpop.f32.mrb[238].mxu1  ;;  %v12614_v33 = vpop.f32.mrb[198].mxu0 }
0x2c6c   :  { %v12620_v42 = vmul.f32 0.01, %v12612_v47  ;;  %v12615_v50 = vadd.f32 %v13906_v63, %v12614_v33  ;;  %v16285_v19 = vpop.f32.mrb[239].mxu1  ;;  %v16293_v21 = vpop.f32.mrb[199].mxu0  ;;  %vm12618_vm8 = vcmp.ge.f32.partialorder %v12612_v47, 0.0  ;;  %v12547_v54 = vadd.f32 %v13895_v40, %v12546_v32 }
0x2c6d   :  { %v12550_v51 = vadd.f32 %v12544_v2, %v20933_v28 }
0x2c6e   :  { %vm12619_vm15 = vcmp.ge.f32.partialorder %v12615_v50, 0.0  ;;  %v12621_v52 = vmul.f32 0.01, %v12615_v50  ;;  %v12622_v53 = vsel %vm12618_vm8, %v12612_v47, %v12620_v42  ;;  %v12551_v24 = vadd.f32 %v12547_v54, %v12231_v8 }
0x2c6f   :  { %12874 = vrot.lane.b32.xlu0 %v12550_v51, %s17184_s5 }
0x2c70   :  { %v12623_v45 = vsel %vm12619_vm15, %v12615_v50, %v12621_v52 }
0x2c71   :  { %v12633_v46 = vpack.c.bf16 %v12623_v45, %v12622_v53  ;;  %v12771_v31 = vpop.f32.mrb[240].mxu1 }
0x2c72   :  { %v12772_v23 = vadd.f32 %v13930_v48, %v12771_v31  ;;  %v16312_v3 = vpop.f32.mrb[241].mxu1 }
0x2c73   :  { %12876 = vrot.lane.b32.xlu0 %v12551_v24, %s17184_s5  ;;  %16303 = vmatmul.mubr.msk.bf16.vlgmr.msra.gmra.mrb[200].mxu0 %vm577_vm6, %v12633_v46  ;;  %v12774_v25 = vpop.f32.mrb[242].mxu1 }
0x2c74   :  { %v12780_v34 = vmul.f32 0.01, %v12772_v23  ;;  %v12775_v5 = vadd.f32 %v13930_v48, %v12774_v25  ;;  %v16313_v37 = vpop.f32.mrb[243].mxu1  ;;  %vm12778_vm0 = vcmp.ge.f32.partialorder %v12772_v23, 0.0 }
0x2c76   :  { %vm12779_vm3 = vcmp.ge.f32.partialorder %v12775_v5, 0.0  ;;  %v12781_v16 = vmul.f32 0.01, %v12775_v5  ;;  %v12782_v49 = vsel %vm12778_vm0, %v12772_v23, %v12780_v34 }
0x2c78   :  { %v12783_v41 = vsel %vm12779_vm3, %v12775_v5, %v12781_v16 }
0x2c79   :  { %v12793_v61 = vpack.c.bf16 %v12783_v41, %v12782_v49 }
0x2c7b   :  { %16323 = vmatmul.mubr.msk.bf16.vlgmr.msra.gmra.mrb[244].mxu1 %vm577_vm6, %v12793_v61  ;;  %vm12900_vm6 = vcmask 195584  }
0x2ce1   :  { %v12875_v44 = vpop.permute.xlu0 %12874 }
0x2ce2   :  { %v12896_v40 = vsel %vm140_vm1, %v12390_v1, %v12875_v44 }
0x2ce5   :  { %v12877_v18 = vpop.permute.xlu0 %12876 }
0x2ce6   :  { %v12897_v39 = vsel %vm140_vm1, %v12391_v55, %v12877_v18 }
0x2d46   :  { %v12703_v9 = vpop.f32.mrb[200].mxu0 }
0x2d47   :  { %v12704_v4 = vadd.f32 %v13919_v29, %v12703_v9  ;;  %v16304_v27 = vpop.f32.mrb[201].mxu0 }
0x2d48   :  { %v12706_v60 = vpop.f32.mrb[202].mxu0 }
0x2d49   :  { %v12707_v57 = vadd.f32 %v13919_v29, %v12706_v60  ;;  %v16305_v14 = vpop.f32.mrb[203].mxu0  ;;  %v12710_v43 = vadd.f32 %v12704_v4, %v20933_v28 }
0x2d4b   :  { %12882 = vrot.lane.b32.xlu1 %v12710_v43, %s17185_s7  ;;  %v12711_v17 = vadd.f32 %v12707_v57, %v12231_v8 }
0x2d4e   :  { %v12863_v7 = vpop.f32.mrb[244].mxu1 }
0x2d4f   :  { %v12864_v0 = vadd.f32 %v13943_v36, %v12863_v7  ;;  %v16324_v15 = vpop.f32.mrb[245].mxu1  ;;  %12884 = vrot.lane.b32.xlu1 %v12711_v17, %s17185_s7 }
0x2d50   :  { %v12866_v22 = vpop.f32.mrb[246].mxu1 }
0x2d51   :  { %v12870_v11 = vadd.f32 %v12864_v0, %v20933_v28  ;;  %v12867_v12 = vadd.f32 %v13943_v36, %v12866_v22  ;;  %v16325_v10 = vpop.f32.mrb[247].mxu1 }
0x2d53   :  { %v12871_v13 = vadd.f32 %v12867_v12, %v12231_v8  ;;  %12890 = vrot.lane.b32.xlu0 %v12870_v11, %s17186_s26 }
0x2d55   :  { %12892 = vrot.lane.b32.xlu1 %v12871_v13, %s17186_s26 }
0x2dbd   :  { %v12883_v38 = vpop.permute.xlu1 %12882 }
0x2dbe   :  { %v12898_v63 = vsel %vm2368_vm7, %v12896_v40, %v12883_v38 }
0x2dc1   :  { %v12885_v30 = vpop.permute.xlu1 %12884 }
0x2dc2   :  { %v12899_v47 = vsel %vm2368_vm7, %v12897_v39, %v12885_v30 }
0x2dc5   :  { %v12891_v62 = vpop.permute.xlu0 %12890 }
0x2dc6   :  { %v12901_v2 = vsel %vm12900_vm6, %v12898_v63, %v12891_v62 }
0x2dc7   :  { %12903 = vst.msk [vmem:[%s20992_s22] sm:$0xff] %vm1187_vm9, %v12901_v2  ;;  %v12893_v56 = vpop.permute.xlu1 %12892 }
0x2dc8   :  { %v12902_v20 = vsel %vm12900_vm6, %v12899_v47, %v12893_v56 }
0x2dc9   :  { %12904 = vst.msk [vmem:[%s20992_s22 + $0x8] sm:$0xff] %vm1187_vm9, %v12902_v20 }

</bundles_post_ra>
